<compile_context>
chip_gen: v5e
topology: v5e:2x2
jax: 0.10.0
libtpu: 0.0.40
codegen_flags: <defaults>
</compile_context>

<pallas_src>
import functools

import jax
import jax.numpy as jnp
from jax import lax
from jax.experimental import pallas as pl
from jax.experimental.pallas import tpu as pltpu

# MXU operand dtype.  bf16 runs the MXU at native rate on v5e/v6e/v7x; set to
# jnp.float32 to match the pure-JAX reference to ~1e-4.
MATMUL_DTYPE = jnp.bfloat16


@functools.lru_cache(maxsize=None)
def _vmem_limit_bytes():
    """~3/4 of physical VMEM: ~96 MiB on v5e/v6e, ~48 MiB on v7x."""
    try:
        cap = int(pltpu.get_tpu_info().vmem_capacity_bytes)
    except Exception:
        return 32 * 1024 * 1024  # conservative fallback if query unavailable
    return int(min(cap * 3 // 4, 100 * 1024 * 1024))


# ---------------------- fused LSTM stack (all layers, all T) ----------------------
def _fused_lstm_kernel(nlayers, T, B, H, *refs):
    """Whole LSTM stack in a single kernel invocation.

    refs = [emb, (wih, whh, b) * nlayers, h0, c0,      # inputs
            y, hN, cN,                                  # outputs
            xproj_sc, ysc]                              # VMEM scratch
    """
    n_in = 1 + 3 * nlayers + 2
    in_refs = refs[:n_in]
    emb_ref = in_refs[0]
    h0_ref = in_refs[n_in - 2]
    c0_ref = in_refs[n_in - 1]
    y_ref, hN_ref, cN_ref = refs[n_in:n_in + 3]
    xproj_sc, ysc = refs[n_in + 3:]

    for l in range(nlayers):
        wih_ref, whh_ref, b_ref = in_refs[1 + 3 * l:4 + 3 * l]
        is_last = (l == nlayers - 1)
        # Last layer streams h_new straight into the output ref (no final copy).
        seq_out_ref = y_ref if is_last else ysc

        # (1) hoisted input projection: one (T*B, Din) @ (Din, 4H) matmul + bias.
        x_in = emb_ref[...] if l == 0 else ysc[...]
        xproj_sc[...] = (
            jnp.dot(x_in.astype(wih_ref.dtype), wih_ref[...],
                    preferred_element_type=jnp.float32)
            + b_ref[...].astype(jnp.float32))

        # (2) sequential recurrence over T (only h @ W_hh on the critical path).
        # W_hh is read from its VMEM ref each step (never a loop-carried vreg value).
        def step(t, carry):
            h, c = carry                               # f32 (B, H)
            off = pl.multiple_of(t * B, B)
            xp = xproj_sc[pl.ds(off, B), :]            # (B, 4H) = x@Wih + b
            gates = xp + jnp.dot(h.astype(whh_ref.dtype), whh_ref[...],
                                 preferred_element_type=jnp.float32)
            if_g = jax.nn.sigmoid(gates[:, 0:2 * H])   # fused i/f sigmoids
            i = if_g[:, 0:H]
            f = if_g[:, H:2 * H]
            g = jnp.tanh(gates[:, 2 * H:3 * H])
            o = jax.nn.sigmoid(gates[:, 3 * H:4 * H])
            c_new = f * c + i * g                      # f32 elementwise
            h_new = o * jnp.tanh(c_new)
            seq_out_ref[pl.ds(off, B), :] = h_new      # layer output seq (VMEM)
            return (h_new, c_new)

        unroll = True if T <= 16 else 4                # small unroll -> LLO overlap
        h_fin, c_fin = lax.fori_loop(0, T, step, (h0_ref[l], c0_ref[l]),
                                     unroll=unroll)

        # final hidden state written once, off the recurrent critical path
        hN_ref[l] = h_fin
        cN_ref[l] = c_fin


def fused_lstm_stack(emb_flat, lstm_params, h0, c0, T, B):
    """emb_flat: (T*B, Din0) f32 -> (y (T*B,H), hN (L,B,H), cN (L,B,H))."""
    nlayers, _, H = h0.shape
    N, Din0 = emb_flat.shape

    inputs = [emb_flat]
    in_specs = [pl.BlockSpec((N, Din0), lambda i: (0, 0))]
    for (wih, whh, b) in lstm_params:
        wih = wih.astype(MATMUL_DTYPE)
        whh = whh.astype(MATMUL_DTYPE)
        inputs += [wih, whh, b]
        in_specs += [pl.BlockSpec(wih.shape, lambda i: (0, 0)),
                     pl.BlockSpec(whh.shape, lambda i: (0, 0)),
                     pl.BlockSpec(b.shape, lambda i: (0, 0))]
    inputs += [h0, c0]
    in_specs += [pl.BlockSpec((nlayers, B, H), lambda i: (0, 0, 0))] * 2

    out_specs = [pl.BlockSpec((N, H), lambda i: (0, 0)),
                 pl.BlockSpec((nlayers, B, H), lambda i: (0, 0, 0)),
                 pl.BlockSpec((nlayers, B, H), lambda i: (0, 0, 0))]

    grid_spec = pltpu.PrefetchScalarGridSpec(
        num_scalar_prefetch=0,
        grid=(1,),                       # single step: no per-timestep grid overhead
        in_specs=in_specs,
        out_specs=out_specs,
        scratch_shapes=[pltpu.VMEM((N, 4 * H), jnp.float32),   # hoisted input proj
                        pltpu.VMEM((N, H), jnp.float32)],      # inter-layer activations
    )
    kernel = functools.partial(_fused_lstm_kernel, nlayers, T, B, H)
    y, hN, cN = pl.pallas_call(
        kernel,
        grid_spec=grid_spec,
        out_shape=(jax.ShapeDtypeStruct((N, H), jnp.float32),
                   jax.ShapeDtypeStruct((nlayers, B, H), jnp.float32),
                   jax.ShapeDtypeStruct((nlayers, B, H), jnp.float32)),
        compiler_params=pltpu.CompilerParams(
            dimension_semantics=("arbitrary",),
            vmem_limit_bytes=_vmem_limit_bytes()),
    )(*inputs)
    return y, hN, cN


# -------------------- decoder: tiled Linear + online log_softmax --------------------
def _decoder_kernel(x_ref, w_ref, b_ref, out_ref, m_sc, l_sc, cache_sc):
    p = pl.program_id(1)   # phase: 0 = matmul + online max/sum-exp, 1 = write output
    v = pl.program_id(2)

    @pl.when(jnp.logical_and(p == 0, v == 0))
    def _():
        m_sc[...] = jnp.full_like(m_sc, -jnp.inf)
        l_sc[...] = jnp.zeros_like(l_sc)

    @pl.when(p == 0)
    def _():
        # Single matmul per (n, v) tile; logits cached in VMEM for phase 1.
        logits = (jnp.dot(x_ref[...].astype(w_ref.dtype), w_ref[...],
                          preferred_element_type=jnp.float32)
                  + b_ref[...].astype(jnp.float32))          # (tile_n, tile_v) f32
        cache_sc[v] = logits.astype(cache_sc.dtype)
        m_new = jnp.maximum(m_sc[...], jnp.max(logits, axis=-1, keepdims=True))
        l_sc[...] = (l_sc[...] * jnp.exp(m_sc[...] - m_new)
                     + jnp.sum(jnp.exp(logits - m_new), axis=-1, keepdims=True))
        m_sc[...] = m_new

    @pl.when(p == 1)
    def _():
        lse = m_sc[...] + jnp.log(l_sc[...])
        out_ref[...] = cache_sc[v].astype(jnp.float32) - lse
        # TODO(synk): emit bf16 output here (mainly for v5e HBM/store-slot relief).


def decode_log_softmax(x, w_t, b2d, *, tile_n=None, tile_v=None):
    """x: (N, H), w_t: (H, V), b2d: (1, V) -> log_softmax(x @ w_t + b) of shape (N, V)."""
    N, H = x.shape
    V = w_t.shape[-1]
    w_t = w_t.astype(MATMUL_DTYPE)
    if tile_n is None:
        tile_n = N if N <= 512 else 512
    if tile_v is None:
        tile_v = V if V <= 2048 else 2048
    # TODO(synk): pad/mask for N, V not divisible by the tile sizes.
    assert N % tile_n == 0 and V % tile_v == 0
    nt, vt = N // tile_n, V // tile_v
    cache_dtype = jnp.bfloat16 if MATMUL_DTYPE == jnp.bfloat16 else jnp.float32

    # Weight/bias walk the V tiles in phase 0 and stay parked on the last V tile in
    # phase 1, so the (H, V) decoder weight is DMA'd exactly once per n-tile.
    frozen = lambda n, p, v, _last=vt - 1: (0, v * (1 - p) + _last * p)

    grid_spec = pltpu.PrefetchScalarGridSpec(
        num_scalar_prefetch=0,
        grid=(nt, 2, vt),
        in_specs=[pl.BlockSpec((tile_n, H), lambda n, p, v: (n, 0)),
                  pl.BlockSpec((H, tile_v), frozen),
                  pl.BlockSpec((1, tile_v), frozen)],
        # phase 0 keeps the output block parked at (n, 0) (nothing written yet;
        # phase 1 starts at the same index so no flush of uninitialized VMEM);
        # phase 1 walks the V tiles and writes the lane-dense log-probs.
        out_specs=pl.BlockSpec((tile_n, tile_v), lambda n, p, v: (n, v * p)),
        scratch_shapes=[pltpu.VMEM((tile_n, 1), jnp.float32),        # running max
                        pltpu.VMEM((tile_n, 1), jnp.float32),        # running sum-exp
                        pltpu.VMEM((vt, tile_n, tile_v), cache_dtype)],  # logits cache
    )
    return pl.pallas_call(
        _decoder_kernel,
        grid_spec=grid_spec,
        out_shape=jax.ShapeDtypeStruct((N, V), jnp.float32),
        compiler_params=pltpu.CompilerParams(
            dimension_semantics=("parallel", "arbitrary", "arbitrary"),
            vmem_limit_bytes=_vmem_limit_bytes()),
    )(x, w_t, b2d)


# --------------------------------- full forward ---------------------------------
def rnn_model_forward(params, tokens, hidden, target=None):
    """tokens: (T, B) int32; hidden: (h0, c0) each (nlayers, B, H).
    Returns (log_probs (T*B, ntoken), (hN, cN)).  `target` unused (adasoft=False)."""
    T, B = tokens.shape
    # embedding gather: glue in plain JAX
    emb = jnp.take(params["embedding"], tokens.reshape(-1), axis=0)   # (T*B, ninp)
    # dropout: identity (eval mode)
    h0, c0 = hidden
    y, hN, cN = fused_lstm_stack(emb, params["lstm"], h0, c0, T, B)
    # dropout: identity (eval mode)
    log_probs = decode_log_softmax(y, params["dec_w_t"],
                                   params["dec_b"].reshape(1, -1))
    return log_probs, (hN, cN)


# ------------------------------ pure-JAX reference -------------------------------
def _ref_forward(params, tokens, hidden):
    T, B = tokens.shape
    x = jnp.take(params["embedding"], tokens.reshape(-1), axis=0).reshape(T, B, -1)
    h0s, c0s = hidden
    H = h0s.shape[-1]
    hNs, cNs = [], []
    for l, (wih_t, whh_t, b) in enumerate(params["lstm"]):
        wih_t = wih_t.astype(jnp.float32)
        whh_t = whh_t.astype(jnp.float32)
        b = b.astype(jnp.float32)

        def step(carry, x_t):
            h, c = carry
            gates = x_t @ wih_t + h @ whh_t + b[0]
            i = jax.nn.sigmoid(gates[:, 0:H])
            f = jax.nn.sigmoid(gates[:, H:2 * H])
            g = jnp.tanh(gates[:, 2 * H:3 * H])
            o = jax.nn.sigmoid(gates[:, 3 * H:4 * H])
            c_new = f * c + i * g
            h_new = o * jnp.tanh(c_new)
            return (h_new, c_new), h_new

        (hN, cN), y = lax.scan(step, (h0s[l], c0s[l]), x)
        x = y
        hNs.append(hN)
        cNs.append(cN)
    out = x.reshape(T * B, -1)
    logits = out @ params["dec_w_t"].astype(jnp.float32) + params["dec_b"]
    return jax.nn.log_softmax(logits, axis=-1), (jnp.stack(hNs), jnp.stack(cNs))


# --------------------------------------- main ---------------------------------------
if __name__ == "__main__":
    ntoken, ninp, nhid, nlayers = 256, 128, 128, 2
    T, B = 6, 8

    key = jax.random.PRNGKey(0)
    ks = jax.random.split(key, 4 + 3 * nlayers)

    def unif(k, shape, scale=0.1):
        return jax.random.uniform(k, shape, jnp.float32, -scale, scale)

    params = {
        "embedding": unif(ks[0], (ntoken, ninp)),
        "dec_w_t": unif(ks[1], (nhid, ntoken)),       # decoder.weight^T
        "dec_b": unif(ks[2], (ntoken,)),
        "lstm": [],
    }
    for l in range(nlayers):
        din = ninp if l == 0 else nhid
        k_ih, k_hh, k_b = ks[4 + 3 * l: 4 + 3 * l + 3]
        wih_t = unif(k_ih, (din, 4 * nhid))           # W_ih^T, gate order i,f,g,o
        whh_t = unif(k_hh, (nhid, 4 * nhid))          # W_hh^T
        b = unif(k_b, (1, 4 * nhid))                  # b_ih + b_hh combined
        params["lstm"].append((wih_t, whh_t, b))

    tokens = jax.random.randint(ks[3], (T, B), 0, ntoken, dtype=jnp.int32)
    hidden = (jnp.zeros((nlayers, B, nhid), jnp.float32),
              jnp.zeros((nlayers, B, nhid), jnp.float32))   # init_hidden(bsz)
    target = jax.random.randint(ks[3], (T * B,), 0, ntoken, dtype=jnp.int32)  # unused

    forward = jax.jit(rnn_model_forward)
    log_probs, (hN, cN) = forward(params, tokens, hidden, target)
    jax.block_until_ready((log_probs, hN, cN))

    # correctness check against pure-JAX f32 reference
    ref_lp, (ref_h, ref_c) = _ref_forward(params, tokens, hidden)
    tol = 2e-4 if MATMUL_DTYPE == jnp.float32 else 5e-2
    assert log_probs.shape == (T * B, ntoken)
    assert hN.shape == (nlayers, B, nhid) and cN.shape == (nlayers, B, nhid)
    assert jnp.allclose(log_probs, ref_lp, atol=tol), "log_prob mismatch"
    assert jnp.allclose(hN, ref_h, atol=tol), "hidden h mismatch"
    assert jnp.allclose(cN, ref_c, atol=tol), "hidden c mismatch"

    print("KERNEL_OK")
</pallas_src>

<mosaic_0001>
module attributes {stable_mosaic.version = 11 : i64} {
  func.func @_decoder_kernel(%arg0: i32, %arg1: i32, %arg2: i32, %arg3: memref<48x128xf32, #tpu.memory_space<vmem>>, %arg4: memref<128x256xbf16, #tpu.memory_space<vmem>>, %arg5: memref<1x256xf32, #tpu.memory_space<vmem>>, %arg6: memref<48x256xf32, #tpu.memory_space<vmem>>, %arg7: memref<48x1xf32, #tpu.memory_space<vmem>>, %arg8: memref<48x1xf32, #tpu.memory_space<vmem>>, %arg9: memref<1x48x256xbf16, #tpu.memory_space<vmem>>) attributes {dimension_semantics = [#tpu.dimension_semantics<parallel>, #tpu.dimension_semantics<arbitrary>, #tpu.dimension_semantics<arbitrary>], iteration_bounds = array<i64: 1, 2, 1>, scalar_prefetch = 0 : i64, scratch_operands = 3 : i64, tpu.core_type = #tpu.core_type<tc>, window_params = [{transform_indices = @transform_0, window_bounds = array<i64: 48, 128>}, {transform_indices = @transform_1, window_bounds = array<i64: 128, 256>}, {transform_indices = @transform_2, window_bounds = array<i64: 1, 256>}, {transform_indices = @transform_3, window_bounds = array<i64: 48, 256>}]} {
    %c0_i32 = arith.constant 0 : i32
    %0 = arith.cmpi eq, %arg1, %c0_i32 : i32
    %c0_i32_0 = arith.constant 0 : i32
    %1 = arith.cmpi eq, %arg2, %c0_i32_0 : i32
    %2 = arith.andi %0, %1 : i1
    %3 = arith.extui %2 : i1 to i32
    %c0_i32_1 = arith.constant 0 : i32
    %4 = arith.cmpi ne, %3, %c0_i32_1 : i32
    scf.if %4 {
      %cst = arith.constant 0xFF800000 : f32
      %11 = vector.broadcast %cst : f32 to vector<48x1xf32>
      %c0 = arith.constant 0 : index
      %c0_5 = arith.constant 0 : index
      %12 = vector.load %arg7[%c0, %c0_5] : memref<48x1xf32, #tpu.memory_space<vmem>>, vector<48x1xf32>
      tpu.vector_store %arg7[%c0, %c0_5], %11 {strides = array<i32>} : memref<48x1xf32, #tpu.memory_space<vmem>>, vector<48x1xf32>,
      %cst_6 = arith.constant 0.000000e+00 : f32
      %13 = vector.broadcast %cst_6 : f32 to vector<48x1xf32>
      %c0_7 = arith.constant 0 : index
      %c0_8 = arith.constant 0 : index
      %14 = vector.load %arg8[%c0_7, %c0_8] : memref<48x1xf32, #tpu.memory_space<vmem>>, vector<48x1xf32>
      tpu.vector_store %arg8[%c0_7, %c0_8], %13 {strides = array<i32>} : memref<48x1xf32, #tpu.memory_space<vmem>>, vector<48x1xf32>,
    } else {
    }
    %c0_i32_2 = arith.constant 0 : i32
    %5 = arith.cmpi eq, %arg1, %c0_i32_2 : i32
    %6 = arith.extui %5 : i1 to i32
    %c0_i32_3 = arith.constant 0 : i32
    %7 = arith.cmpi ne, %6, %c0_i32_3 : i32
    scf.if %7 {
      %c0 = arith.constant 0 : index
      %c0_5 = arith.constant 0 : index
      %11 = vector.load %arg3[%c0, %c0_5] : memref<48x128xf32, #tpu.memory_space<vmem>>, vector<48x128xf32>
      %12 = arith.truncf %11 : vector<48x128xf32> to vector<48x128xbf16>
      %c0_6 = arith.constant 0 : index
      %c0_7 = arith.constant 0 : index
      %13 = vector.load %arg4[%c0_6, %c0_7] : memref<128x256xbf16, #tpu.memory_space<vmem>>, vector<128x256xbf16>
      %cst = arith.constant dense<0.000000e+00> : vector<48x256xf32>
      %14 = tpu.matmul %12, %13, %cst {dimension_numbers = #tpu.dot_dimension_numbers<[1], [0], [0], [1], [0, 0, 1, 1], [], []>} : vector<48x128xbf16>, vector<128x256xbf16>, vector<48x256xf32> -> vector<48x256xf32>
      %c0_8 = arith.constant 0 : index
      %c0_9 = arith.constant 0 : index
      %15 = vector.load %arg5[%c0_8, %c0_9] : memref<1x256xf32, #tpu.memory_space<vmem>>, vector<1x256xf32>
      %16 = vector.broadcast %15 : vector<1x256xf32> to vector<48x256xf32>
      %17 = arith.addf %14, %16 : vector<48x256xf32>
      %18 = arith.truncf %17 : vector<48x256xf32> to vector<48x256xbf16>
      %19 = arith.index_cast %arg2 : i32 to index
      %c0_10 = arith.constant 0 : index
      %c0_11 = arith.constant 0 : index
      %20 = vector.load %arg9[%19, %c0_10, %c0_11] : memref<1x48x256xbf16, #tpu.memory_space<vmem>>, vector<1x48x256xbf16>
      %21 = vector.shape_cast %20 : vector<1x48x256xbf16> to vector<48x256xbf16>
      %22 = vector.shape_cast %18 : vector<48x256xbf16> to vector<1x48x256xbf16>
      tpu.vector_store %arg9[%19, %c0_10, %c0_11], %22 {strides = array<i32>} : memref<1x48x256xbf16, #tpu.memory_space<vmem>>, vector<1x48x256xbf16>,
      %c0_12 = arith.constant 0 : index
      %c0_13 = arith.constant 0 : index
      %23 = vector.load %arg7[%c0_12, %c0_13] : memref<48x1xf32, #tpu.memory_space<vmem>>, vector<48x1xf32>
      %cst_14 = arith.constant dense<0xFF800000> : vector<48xf32>
      %24 = vector.multi_reduction <maximumf>, %17, %cst_14 [1] : vector<48x256xf32> to vector<48xf32>
      %25 = vector.shape_cast %24 : vector<48xf32> to vector<48x1xf32>
      %26 = arith.maximumf %23, %25 : vector<48x1xf32>
      %c0_15 = arith.constant 0 : index
      %c0_16 = arith.constant 0 : index
      %27 = vector.load %arg8[%c0_15, %c0_16] : memref<48x1xf32, #tpu.memory_space<vmem>>, vector<48x1xf32>
      %c0_17 = arith.constant 0 : index
      %c0_18 = arith.constant 0 : index
      %28 = vector.load %arg7[%c0_17, %c0_18] : memref<48x1xf32, #tpu.memory_space<vmem>>, vector<48x1xf32>
      %29 = arith.subf %28, %26 : vector<48x1xf32>
      %30 = math.exp %29 : vector<48x1xf32>
      %31 = arith.mulf %27, %30 : vector<48x1xf32>
      %32 = vector.broadcast %26 : vector<48x1xf32> to vector<48x256xf32>
      %33 = arith.subf %17, %32 : vector<48x256xf32>
      %34 = math.exp %33 : vector<48x256xf32>
      %cst_19 = arith.constant dense<0.000000e+00> : vector<48xf32>
      %35 = vector.multi_reduction <add>, %34, %cst_19 [1] : vector<48x256xf32> to vector<48xf32>
      %36 = vector.shape_cast %35 : vector<48xf32> to vector<48x1xf32>
      %37 = arith.addf %31, %36 : vector<48x1xf32>
      %c0_20 = arith.constant 0 : index
      %c0_21 = arith.constant 0 : index
      %38 = vector.load %arg8[%c0_20, %c0_21] : memref<48x1xf32, #tpu.memory_space<vmem>>, vector<48x1xf32>
      tpu.vector_store %arg8[%c0_20, %c0_21], %37 {strides = array<i32>} : memref<48x1xf32, #tpu.memory_space<vmem>>, vector<48x1xf32>,
      %c0_22 = arith.constant 0 : index
      %c0_23 = arith.constant 0 : index
      %39 = vector.load %arg7[%c0_22, %c0_23] : memref<48x1xf32, #tpu.memory_space<vmem>>, vector<48x1xf32>
      tpu.vector_store %arg7[%c0_22, %c0_23], %26 {strides = array<i32>} : memref<48x1xf32, #tpu.memory_space<vmem>>, vector<48x1xf32>,
    } else {
    }
    %c1_i32 = arith.constant 1 : i32
    %8 = arith.cmpi eq, %arg1, %c1_i32 : i32
    %9 = arith.extui %8 : i1 to i32
    %c0_i32_4 = arith.constant 0 : i32
    %10 = arith.cmpi ne, %9, %c0_i32_4 : i32
    scf.if %10 {
      %c0 = arith.constant 0 : index
      %c0_5 = arith.constant 0 : index
      %11 = vector.load %arg7[%c0, %c0_5] : memref<48x1xf32, #tpu.memory_space<vmem>>, vector<48x1xf32>
      %c0_6 = arith.constant 0 : index
      %c0_7 = arith.constant 0 : index
      %12 = vector.load %arg8[%c0_6, %c0_7] : memref<48x1xf32, #tpu.memory_space<vmem>>, vector<48x1xf32>
      %13 = math.log %12 : vector<48x1xf32>
      %14 = arith.addf %11, %13 : vector<48x1xf32>
      %15 = arith.index_cast %arg2 : i32 to index
      %c0_8 = arith.constant 0 : index
      %c0_9 = arith.constant 0 : index
      %16 = vector.load %arg9[%15, %c0_8, %c0_9] : memref<1x48x256xbf16, #tpu.memory_space<vmem>>, vector<1x48x256xbf16>
      %17 = vector.shape_cast %16 : vector<1x48x256xbf16> to vector<48x256xbf16>
      %18 = arith.extf %17 : vector<48x256xbf16> to vector<48x256xf32>
      %19 = vector.broadcast %14 : vector<48x1xf32> to vector<48x256xf32>
      %20 = arith.subf %18, %19 : vector<48x256xf32>
      %c0_10 = arith.constant 0 : index
      %c0_11 = arith.constant 0 : index
      %21 = vector.load %arg6[%c0_10, %c0_11] : memref<48x256xf32, #tpu.memory_space<vmem>>, vector<48x256xf32>
      tpu.vector_store %arg6[%c0_10, %c0_11], %20 {strides = array<i32>} : memref<48x256xf32, #tpu.memory_space<vmem>>, vector<48x256xf32>,
    } else {
    }
    return
  }
  func.func @transform_0(%arg0: i32, %arg1: i32, %arg2: i32) -> (i32, i32) {
    %c0_i32 = arith.constant 0 : i32
    %c0_i32_0 = arith.constant 0 : i32
    return %arg0, %c0_i32 : i32, i32
  }
  func.func @transform_1(%arg0: i32, %arg1: i32, %arg2: i32) -> (i32, i32) {
    %c1_i32 = arith.constant 1 : i32
    %0 = arith.subi %c1_i32, %arg1 : i32
    %1 = arith.muli %arg2, %0 : i32
    %c0_i32 = arith.constant 0 : i32
    %2 = arith.muli %c0_i32, %arg1 : i32
    %3 = arith.addi %1, %2 : i32
    %c0_i32_0 = arith.constant 0 : i32
    %c0_i32_1 = arith.constant 0 : i32
    return %c0_i32_0, %3 : i32, i32
  }
  func.func @transform_2(%arg0: i32, %arg1: i32, %arg2: i32) -> (i32, i32) {
    %c1_i32 = arith.constant 1 : i32
    %0 = arith.subi %c1_i32, %arg1 : i32
    %1 = arith.muli %arg2, %0 : i32
    %c0_i32 = arith.constant 0 : i32
    %2 = arith.muli %c0_i32, %arg1 : i32
    %3 = arith.addi %1, %2 : i32
    %c0_i32_0 = arith.constant 0 : i32
    %c0_i32_1 = arith.constant 0 : i32
    return %c0_i32_0, %3 : i32, i32
  }
  func.func @transform_3(%arg0: i32, %arg1: i32, %arg2: i32) -> (i32, i32) {
    %0 = arith.muli %arg2, %arg1 : i32
    %c0_i32 = arith.constant 0 : i32
    return %arg0, %0 : i32, i32
  }
}

module attributes {stable_mosaic.version = 11 : i64} {
  func.func @_fused_lstm_kernel(%arg0: i32, %arg1: memref<48x128xf32, #tpu.memory_space<vmem>>, %arg2: memref<128x512xbf16, #tpu.memory_space<vmem>>, %arg3: memref<128x512xbf16, #tpu.memory_space<vmem>>, %arg4: memref<1x512xf32, #tpu.memory_space<vmem>>, %arg5: memref<128x512xbf16, #tpu.memory_space<vmem>>, %arg6: memref<128x512xbf16, #tpu.memory_space<vmem>>, %arg7: memref<1x512xf32, #tpu.memory_space<vmem>>, %arg8: memref<2x8x128xf32, #tpu.memory_space<vmem>>, %arg9: memref<2x8x128xf32, #tpu.memory_space<vmem>>, %arg10: memref<48x128xf32, #tpu.memory_space<vmem>>, %arg11: memref<2x8x128xf32, #tpu.memory_space<vmem>>, %arg12: memref<2x8x128xf32, #tpu.memory_space<vmem>>, %arg13: memref<48x512xf32, #tpu.memory_space<vmem>>, %arg14: memref<48x128xf32, #tpu.memory_space<vmem>>) attributes {dimension_semantics = [#tpu.dimension_semantics<arbitrary>], iteration_bounds = array<i64: 1>, scalar_prefetch = 0 : i64, scratch_operands = 2 : i64, tpu.core_type = #tpu.core_type<tc>, window_params = [{pipeline_mode = #tpu.pipeline_mode<synchronous>, transform_indices = @transform_0, window_bounds = array<i64: 48, 128>}, {pipeline_mode = #tpu.pipeline_mode<synchronous>, transform_indices = @transform_1, window_bounds = array<i64: 128, 512>}, {pipeline_mode = #tpu.pipeline_mode<synchronous>, transform_indices = @transform_2, window_bounds = array<i64: 128, 512>}, {pipeline_mode = #tpu.pipeline_mode<synchronous>, transform_indices = @transform_3, window_bounds = array<i64: 1, 512>}, {pipeline_mode = #tpu.pipeline_mode<synchronous>, transform_indices = @transform_4, window_bounds = array<i64: 128, 512>}, {pipeline_mode = #tpu.pipeline_mode<synchronous>, transform_indices = @transform_5, window_bounds = array<i64: 128, 512>}, {pipeline_mode = #tpu.pipeline_mode<synchronous>, transform_indices = @transform_6, window_bounds = array<i64: 1, 512>}, {pipeline_mode = #tpu.pipeline_mode<synchronous>, transform_indices = @transform_7, window_bounds = array<i64: 2, 8, 128>}, {pipeline_mode = #tpu.pipeline_mode<synchronous>, transform_indices = @transform_8, window_bounds = array<i64: 2, 8, 128>}, {pipeline_mode = #tpu.pipeline_mode<synchronous>, transform_indices = @transform_9, window_bounds = array<i64: 48, 128>}, {pipeline_mode = #tpu.pipeline_mode<synchronous>, transform_indices = @transform_10, window_bounds = array<i64: 2, 8, 128>}, {pipeline_mode = #tpu.pipeline_mode<synchronous>, transform_indices = @transform_11, window_bounds = array<i64: 2, 8, 128>}]} {
    %c0 = arith.constant 0 : index
    %c0_0 = arith.constant 0 : index
    %0 = vector.load %arg1[%c0, %c0_0] : memref<48x128xf32, #tpu.memory_space<vmem>>, vector<48x128xf32>
    %1 = arith.truncf %0 : vector<48x128xf32> to vector<48x128xbf16>
    %c0_1 = arith.constant 0 : index
    %c0_2 = arith.constant 0 : index
    %2 = vector.load %arg2[%c0_1, %c0_2] : memref<128x512xbf16, #tpu.memory_space<vmem>>, vector<128x512xbf16>
    %cst = arith.constant dense<0.000000e+00> : vector<48x512xf32>
    %3 = tpu.matmul %1, %2, %cst {dimension_numbers = #tpu.dot_dimension_numbers<[1], [0], [0], [1], [0, 0, 1, 1], [], []>} : vector<48x128xbf16>, vector<128x512xbf16>, vector<48x512xf32> -> vector<48x512xf32>
    %c0_3 = arith.constant 0 : index
    %c0_4 = arith.constant 0 : index
    %4 = vector.load %arg4[%c0_3, %c0_4] : memref<1x512xf32, #tpu.memory_space<vmem>>, vector<1x512xf32>
    %5 = vector.broadcast %4 : vector<1x512xf32> to vector<48x512xf32>
    %6 = arith.addf %3, %5 : vector<48x512xf32>
    %c0_5 = arith.constant 0 : index
    %c0_6 = arith.constant 0 : index
    %7 = vector.load %arg13[%c0_5, %c0_6] : memref<48x512xf32, #tpu.memory_space<vmem>>, vector<48x512xf32>
    tpu.vector_store %arg13[%c0_5, %c0_6], %6 {strides = array<i32>} : memref<48x512xf32, #tpu.memory_space<vmem>>, vector<48x512xf32>,
    %c0_7 = arith.constant 0 : index
    %c0_8 = arith.constant 0 : index
    %c0_9 = arith.constant 0 : index
    %8 = vector.load %arg8[%c0_7, %c0_8, %c0_9] : memref<2x8x128xf32, #tpu.memory_space<vmem>>, vector<1x8x128xf32>
    %9 = vector.shape_cast %8 : vector<1x8x128xf32> to vector<8x128xf32>
    %c0_10 = arith.constant 0 : index
    %c0_11 = arith.constant 0 : index
    %c0_12 = arith.constant 0 : index
    %10 = vector.load %arg9[%c0_10, %c0_11, %c0_12] : memref<2x8x128xf32, #tpu.memory_space<vmem>>, vector<1x8x128xf32>
    %11 = vector.shape_cast %10 : vector<1x8x128xf32> to vector<8x128xf32>
    %c0_i32 = arith.constant 0 : i32
    %c8_i32 = arith.constant 8 : i32
    %12 = arith.muli %c0_i32, %c8_i32 : i32
    %13 = tpu.assume_multiple %12, 8 : i32
    %14 = arith.index_cast %13 : i32 to index
    %c0_13 = arith.constant 0 : index
    %15 = vector.load %arg13[%14, %c0_13] : memref<48x512xf32, #tpu.memory_space<vmem>>, vector<8x512xf32>
    %16 = arith.truncf %9 : vector<8x128xf32> to vector<8x128xbf16>
    %c0_14 = arith.constant 0 : index
    %c0_15 = arith.constant 0 : index
    %17 = vector.load %arg3[%c0_14, %c0_15] : memref<128x512xbf16, #tpu.memory_space<vmem>>, vector<128x512xbf16>
    %cst_16 = arith.constant dense<0.000000e+00> : vector<8x512xf32>
    %18 = tpu.matmul %16, %17, %cst_16 {dimension_numbers = #tpu.dot_dimension_numbers<[1], [0], [0], [1], [0, 0, 1, 1], [], []>} : vector<8x128xbf16>, vector<128x512xbf16>, vector<8x512xf32> -> vector<8x512xf32>
    %19 = arith.addf %15, %18 : vector<8x512xf32>
    %20 = vector.extract_strided_slice %19 {offsets = [0, 0], sizes = [8, 256], strides = [1, 1]} : vector<8x512xf32> to vector<8x256xf32>
    %21 = arith.negf %20 : vector<8x256xf32>
    %22 = math.exp %21 : vector<8x256xf32>
    %cst_17 = arith.constant 1.000000e+00 : f32
    %23 = vector.broadcast %cst_17 : f32 to vector<8x256xf32>
    %24 = arith.addf %23, %22 : vector<8x256xf32>
    %25 = arith.divf %23, %24 : vector<8x256xf32>
    %26 = vector.extract_strided_slice %25 {offsets = [0, 0], sizes = [8, 128], strides = [1, 1]} : vector<8x256xf32> to vector<8x128xf32>
    %27 = vector.extract_strided_slice %25 {offsets = [0, 128], sizes = [8, 128], strides = [1, 1]} : vector<8x256xf32> to vector<8x128xf32>
    %28 = vector.extract_strided_slice %19 {offsets = [0, 256], sizes = [8, 128], strides = [1, 1]} : vector<8x512xf32> to vector<8x128xf32>
    %29 = math.tanh %28 : vector<8x128xf32>
    %30 = vector.extract_strided_slice %19 {offsets = [0, 384], sizes = [8, 128], strides = [1, 1]} : vector<8x512xf32> to vector<8x128xf32>
    %31 = arith.negf %30 : vector<8x128xf32>
    %32 = math.exp %31 : vector<8x128xf32>
    %cst_18 = arith.constant 1.000000e+00 : f32
    %33 = vector.broadcast %cst_18 : f32 to vector<8x128xf32>
    %34 = arith.addf %33, %32 : vector<8x128xf32>
    %35 = arith.divf %33, %34 : vector<8x128xf32>
    %36 = arith.mulf %27, %11 : vector<8x128xf32>
    %37 = arith.mulf %26, %29 : vector<8x128xf32>
    %38 = arith.addf %36, %37 : vector<8x128xf32>
    %39 = math.tanh %38 : vector<8x128xf32>
    %40 = arith.mulf %35, %39 : vector<8x128xf32>
    %41 = arith.index_cast %13 : i32 to index
    %c0_19 = arith.constant 0 : index
    %42 = vector.load %arg14[%41, %c0_19] : memref<48x128xf32, #tpu.memory_space<vmem>>, vector<8x128xf32>
    tpu.vector_store %arg14[%41, %c0_19], %40 {strides = array<i32>} : memref<48x128xf32, #tpu.memory_space<vmem>>, vector<8x128xf32>,
    %c1_i32 = arith.constant 1 : i32
    %c8_i32_20 = arith.constant 8 : i32
    %43 = arith.muli %c1_i32, %c8_i32_20 : i32
    %44 = tpu.assume_multiple %43, 8 : i32
    %45 = arith.index_cast %44 : i32 to index
    %c0_21 = arith.constant 0 : index
    %46 = vector.load %arg13[%45, %c0_21] : memref<48x512xf32, #tpu.memory_space<vmem>>, vector<8x512xf32>
    %47 = arith.truncf %40 : vector<8x128xf32> to vector<8x128xbf16>
    %c0_22 = arith.constant 0 : index
    %c0_23 = arith.constant 0 : index
    %48 = vector.load %arg3[%c0_22, %c0_23] : memref<128x512xbf16, #tpu.memory_space<vmem>>, vector<128x512xbf16>
    %cst_24 = arith.constant dense<0.000000e+00> : vector<8x512xf32>
    %49 = tpu.matmul %47, %48, %cst_24 {dimension_numbers = #tpu.dot_dimension_numbers<[1], [0], [0], [1], [0, 0, 1, 1], [], []>} : vector<8x128xbf16>, vector<128x512xbf16>, vector<8x512xf32> -> vector<8x512xf32>
    %50 = arith.addf %46, %49 : vector<8x512xf32>
    %51 = vector.extract_strided_slice %50 {offsets = [0, 0], sizes = [8, 256], strides = [1, 1]} : vector<8x512xf32> to vector<8x256xf32>
    %52 = arith.negf %51 : vector<8x256xf32>
    %53 = math.exp %52 : vector<8x256xf32>
    %cst_25 = arith.constant 1.000000e+00 : f32
    %54 = vector.broadcast %cst_25 : f32 to vector<8x256xf32>
    %55 = arith.addf %54, %53 : vector<8x256xf32>
    %56 = arith.divf %54, %55 : vector<8x256xf32>
    %57 = vector.extract_strided_slice %56 {offsets = [0, 0], sizes = [8, 128], strides = [1, 1]} : vector<8x256xf32> to vector<8x128xf32>
    %58 = vector.extract_strided_slice %56 {offsets = [0, 128], sizes = [8, 128], strides = [1, 1]} : vector<8x256xf32> to vector<8x128xf32>
    %59 = vector.extract_strided_slice %50 {offsets = [0, 256], sizes = [8, 128], strides = [1, 1]} : vector<8x512xf32> to vector<8x128xf32>
    %60 = math.tanh %59 : vector<8x128xf32>
    %61 = vector.extract_strided_slice %50 {offsets = [0, 384], sizes = [8, 128], strides = [1, 1]} : vector<8x512xf32> to vector<8x128xf32>
    %62 = arith.negf %61 : vector<8x128xf32>
    %63 = math.exp %62 : vector<8x128xf32>
    %cst_26 = arith.constant 1.000000e+00 : f32
    %64 = vector.broadcast %cst_26 : f32 to vector<8x128xf32>
    %65 = arith.addf %64, %63 : vector<8x128xf32>
    %66 = arith.divf %64, %65 : vector<8x128xf32>
    %67 = arith.mulf %58, %38 : vector<8x128xf32>
    %68 = arith.mulf %57, %60 : vector<8x128xf32>
    %69 = arith.addf %67, %68 : vector<8x128xf32>
    %70 = math.tanh %69 : vector<8x128xf32>
    %71 = arith.mulf %66, %70 : vector<8x128xf32>
    %72 = arith.index_cast %44 : i32 to index
    %c0_27 = arith.constant 0 : index
    %73 = vector.load %arg14[%72, %c0_27] : memref<48x128xf32, #tpu.memory_space<vmem>>, vector<8x128xf32>
    tpu.vector_store %arg14[%72, %c0_27], %71 {strides = array<i32>} : memref<48x128xf32, #tpu.memory_space<vmem>>, vector<8x128xf32>,
    %c2_i32 = arith.constant 2 : i32
    %c8_i32_28 = arith.constant 8 : i32
    %74 = arith.muli %c2_i32, %c8_i32_28 : i32
    %75 = tpu.assume_multiple %74, 8 : i32
    %76 = arith.index_cast %75 : i32 to index
    %c0_29 = arith.constant 0 : index
    %77 = vector.load %arg13[%76, %c0_29] : memref<48x512xf32, #tpu.memory_space<vmem>>, vector<8x512xf32>
    %78 = arith.truncf %71 : vector<8x128xf32> to vector<8x128xbf16>
    %c0_30 = arith.constant 0 : index
    %c0_31 = arith.constant 0 : index
    %79 = vector.load %arg3[%c0_30, %c0_31] : memref<128x512xbf16, #tpu.memory_space<vmem>>, vector<128x512xbf16>
    %cst_32 = arith.constant dense<0.000000e+00> : vector<8x512xf32>
    %80 = tpu.matmul %78, %79, %cst_32 {dimension_numbers = #tpu.dot_dimension_numbers<[1], [0], [0], [1], [0, 0, 1, 1], [], []>} : vector<8x128xbf16>, vector<128x512xbf16>, vector<8x512xf32> -> vector<8x512xf32>
    %81 = arith.addf %77, %80 : vector<8x512xf32>
    %82 = vector.extract_strided_slice %81 {offsets = [0, 0], sizes = [8, 256], strides = [1, 1]} : vector<8x512xf32> to vector<8x256xf32>
    %83 = arith.negf %82 : vector<8x256xf32>
    %84 = math.exp %83 : vector<8x256xf32>
    %cst_33 = arith.constant 1.000000e+00 : f32
    %85 = vector.broadcast %cst_33 : f32 to vector<8x256xf32>
    %86 = arith.addf %85, %84 : vector<8x256xf32>
    %87 = arith.divf %85, %86 : vector<8x256xf32>
    %88 = vector.extract_strided_slice %87 {offsets = [0, 0], sizes = [8, 128], strides = [1, 1]} : vector<8x256xf32> to vector<8x128xf32>
    %89 = vector.extract_strided_slice %87 {offsets = [0, 128], sizes = [8, 128], strides = [1, 1]} : vector<8x256xf32> to vector<8x128xf32>
    %90 = vector.extract_strided_slice %81 {offsets = [0, 256], sizes = [8, 128], strides = [1, 1]} : vector<8x512xf32> to vector<8x128xf32>
    %91 = math.tanh %90 : vector<8x128xf32>
    %92 = vector.extract_strided_slice %81 {offsets = [0, 384], sizes = [8, 128], strides = [1, 1]} : vector<8x512xf32> to vector<8x128xf32>
    %93 = arith.negf %92 : vector<8x128xf32>
    %94 = math.exp %93 : vector<8x128xf32>
    %cst_34 = arith.constant 1.000000e+00 : f32
    %95 = vector.broadcast %cst_34 : f32 to vector<8x128xf32>
    %96 = arith.addf %95, %94 : vector<8x128xf32>
    %97 = arith.divf %95, %96 : vector<8x128xf32>
    %98 = arith.mulf %89, %69 : vector<8x128xf32>
    %99 = arith.mulf %88, %91 : vector<8x128xf32>
    %100 = arith.addf %98, %99 : vector<8x128xf32>
    %101 = math.tanh %100 : vector<8x128xf32>
    %102 = arith.mulf %97, %101 : vector<8x128xf32>
    %103 = arith.index_cast %75 : i32 to index
    %c0_35 = arith.constant 0 : index
    %104 = vector.load %arg14[%103, %c0_35] : memref<48x128xf32, #tpu.memory_space<vmem>>, vector<8x128xf32>
    tpu.vector_store %arg14[%103, %c0_35], %102 {strides = array<i32>} : memref<48x128xf32, #tpu.memory_space<vmem>>, vector<8x128xf32>,
    %c3_i32 = arith.constant 3 : i32
    %c8_i32_36 = arith.constant 8 : i32
    %105 = arith.muli %c3_i32, %c8_i32_36 : i32
    %106 = tpu.assume_multiple %105, 8 : i32
    %107 = arith.index_cast %106 : i32 to index
    %c0_37 = arith.constant 0 : index
    %108 = vector.load %arg13[%107, %c0_37] : memref<48x512xf32, #tpu.memory_space<vmem>>, vector<8x512xf32>
    %109 = arith.truncf %102 : vector<8x128xf32> to vector<8x128xbf16>
    %c0_38 = arith.constant 0 : index
    %c0_39 = arith.constant 0 : index
    %110 = vector.load %arg3[%c0_38, %c0_39] : memref<128x512xbf16, #tpu.memory_space<vmem>>, vector<128x512xbf16>
    %cst_40 = arith.constant dense<0.000000e+00> : vector<8x512xf32>
    %111 = tpu.matmul %109, %110, %cst_40 {dimension_numbers = #tpu.dot_dimension_numbers<[1], [0], [0], [1], [0, 0, 1, 1], [], []>} : vector<8x128xbf16>, vector<128x512xbf16>, vector<8x512xf32> -> vector<8x512xf32>
    %112 = arith.addf %108, %111 : vector<8x512xf32>
    %113 = vector.extract_strided_slice %112 {offsets = [0, 0], sizes = [8, 256], strides = [1, 1]} : vector<8x512xf32> to vector<8x256xf32>
    %114 = arith.negf %113 : vector<8x256xf32>
    %115 = math.exp %114 : vector<8x256xf32>
    %cst_41 = arith.constant 1.000000e+00 : f32
    %116 = vector.broadcast %cst_41 : f32 to vector<8x256xf32>
    %117 = arith.addf %116, %115 : vector<8x256xf32>
    %118 = arith.divf %116, %117 : vector<8x256xf32>
    %119 = vector.extract_strided_slice %118 {offsets = [0, 0], sizes = [8, 128], strides = [1, 1]} : vector<8x256xf32> to vector<8x128xf32>
    %120 = vector.extract_strided_slice %118 {offsets = [0, 128], sizes = [8, 128], strides = [1, 1]} : vector<8x256xf32> to vector<8x128xf32>
    %121 = vector.extract_strided_slice %112 {offsets = [0, 256], sizes = [8, 128], strides = [1, 1]} : vector<8x512xf32> to vector<8x128xf32>
    %122 = math.tanh %121 : vector<8x128xf32>
    %123 = vector.extract_strided_slice %112 {offsets = [0, 384], sizes = [8, 128], strides = [1, 1]} : vector<8x512xf32> to vector<8x128xf32>
    %124 = arith.negf %123 : vector<8x128xf32>
    %125 = math.exp %124 : vector<8x128xf32>
    %cst_42 = arith.constant 1.000000e+00 : f32
    %126 = vector.broadcast %cst_42 : f32 to vector<8x128xf32>
    %127 = arith.addf %126, %125 : vector<8x128xf32>
    %128 = arith.divf %126, %127 : vector<8x128xf32>
    %129 = arith.mulf %120, %100 : vector<8x128xf32>
    %130 = arith.mulf %119, %122 : vector<8x128xf32>
    %131 = arith.addf %129, %130 : vector<8x128xf32>
    %132 = math.tanh %131 : vector<8x128xf32>
    %133 = arith.mulf %128, %132 : vector<8x128xf32>
    %134 = arith.index_cast %106 : i32 to index
    %c0_43 = arith.constant 0 : index
    %135 = vector.load %arg14[%134, %c0_43] : memref<48x128xf32, #tpu.memory_space<vmem>>, vector<8x128xf32>
    tpu.vector_store %arg14[%134, %c0_43], %133 {strides = array<i32>} : memref<48x128xf32, #tpu.memory_space<vmem>>, vector<8x128xf32>,
    %c4_i32 = arith.constant 4 : i32
    %c8_i32_44 = arith.constant 8 : i32
    %136 = arith.muli %c4_i32, %c8_i32_44 : i32
    %137 = tpu.assume_multiple %136, 8 : i32
    %138 = arith.index_cast %137 : i32 to index
    %c0_45 = arith.constant 0 : index
    %139 = vector.load %arg13[%138, %c0_45] : memref<48x512xf32, #tpu.memory_space<vmem>>, vector<8x512xf32>
    %140 = arith.truncf %133 : vector<8x128xf32> to vector<8x128xbf16>
    %c0_46 = arith.constant 0 : index
    %c0_47 = arith.constant 0 : index
    %141 = vector.load %arg3[%c0_46, %c0_47] : memref<128x512xbf16, #tpu.memory_space<vmem>>, vector<128x512xbf16>
    %cst_48 = arith.constant dense<0.000000e+00> : vector<8x512xf32>
    %142 = tpu.matmul %140, %141, %cst_48 {dimension_numbers = #tpu.dot_dimension_numbers<[1], [0], [0], [1], [0, 0, 1, 1], [], []>} : vector<8x128xbf16>, vector<128x512xbf16>, vector<8x512xf32> -> vector<8x512xf32>
    %143 = arith.addf %139, %142 : vector<8x512xf32>
    %144 = vector.extract_strided_slice %143 {offsets = [0, 0], sizes = [8, 256], strides = [1, 1]} : vector<8x512xf32> to vector<8x256xf32>
    %145 = arith.negf %144 : vector<8x256xf32>
    %146 = math.exp %145 : vector<8x256xf32>
    %cst_49 = arith.constant 1.000000e+00 : f32
    %147 = vector.broadcast %cst_49 : f32 to vector<8x256xf32>
    %148 = arith.addf %147, %146 : vector<8x256xf32>
    %149 = arith.divf %147, %148 : vector<8x256xf32>
    %150 = vector.extract_strided_slice %149 {offsets = [0, 0], sizes = [8, 128], strides = [1, 1]} : vector<8x256xf32> to vector<8x128xf32>
    %151 = vector.extract_strided_slice %149 {offsets = [0, 128], sizes = [8, 128], strides = [1, 1]} : vector<8x256xf32> to vector<8x128xf32>
    %152 = vector.extract_strided_slice %143 {offsets = [0, 256], sizes = [8, 128], strides = [1, 1]} : vector<8x512xf32> to vector<8x128xf32>
    %153 = math.tanh %152 : vector<8x128xf32>
    %154 = vector.extract_strided_slice %143 {offsets = [0, 384], sizes = [8, 128], strides = [1, 1]} : vector<8x512xf32> to vector<8x128xf32>
    %155 = arith.negf %154 : vector<8x128xf32>
    %156 = math.exp %155 : vector<8x128xf32>
    %cst_50 = arith.constant 1.000000e+00 : f32
    %157 = vector.broadcast %cst_50 : f32 to vector<8x128xf32>
    %158 = arith.addf %157, %156 : vector<8x128xf32>
    %159 = arith.divf %157, %158 : vector<8x128xf32>
    %160 = arith.mulf %151, %131 : vector<8x128xf32>
    %161 = arith.mulf %150, %153 : vector<8x128xf32>
    %162 = arith.addf %160, %161 : vector<8x128xf32>
    %163 = math.tanh %162 : vector<8x128xf32>
    %164 = arith.mulf %159, %163 : vector<8x128xf32>
    %165 = arith.index_cast %137 : i32 to index
    %c0_51 = arith.constant 0 : index
    %166 = vector.load %arg14[%165, %c0_51] : memref<48x128xf32, #tpu.memory_space<vmem>>, vector<8x128xf32>
    tpu.vector_store %arg14[%165, %c0_51], %164 {strides = array<i32>} : memref<48x128xf32, #tpu.memory_space<vmem>>, vector<8x128xf32>,
    %c5_i32 = arith.constant 5 : i32
    %c8_i32_52 = arith.constant 8 : i32
    %167 = arith.muli %c5_i32, %c8_i32_52 : i32
    %168 = tpu.assume_multiple %167, 8 : i32
    %169 = arith.index_cast %168 : i32 to index
    %c0_53 = arith.constant 0 : index
    %170 = vector.load %arg13[%169, %c0_53] : memref<48x512xf32, #tpu.memory_space<vmem>>, vector<8x512xf32>
    %171 = arith.truncf %164 : vector<8x128xf32> to vector<8x128xbf16>
    %c0_54 = arith.constant 0 : index
    %c0_55 = arith.constant 0 : index
    %172 = vector.load %arg3[%c0_54, %c0_55] : memref<128x512xbf16, #tpu.memory_space<vmem>>, vector<128x512xbf16>
    %cst_56 = arith.constant dense<0.000000e+00> : vector<8x512xf32>
    %173 = tpu.matmul %171, %172, %cst_56 {dimension_numbers = #tpu.dot_dimension_numbers<[1], [0], [0], [1], [0, 0, 1, 1], [], []>} : vector<8x128xbf16>, vector<128x512xbf16>, vector<8x512xf32> -> vector<8x512xf32>
    %174 = arith.addf %170, %173 : vector<8x512xf32>
    %175 = vector.extract_strided_slice %174 {offsets = [0, 0], sizes = [8, 256], strides = [1, 1]} : vector<8x512xf32> to vector<8x256xf32>
    %176 = arith.negf %175 : vector<8x256xf32>
    %177 = math.exp %176 : vector<8x256xf32>
    %cst_57 = arith.constant 1.000000e+00 : f32
    %178 = vector.broadcast %cst_57 : f32 to vector<8x256xf32>
    %179 = arith.addf %178, %177 : vector<8x256xf32>
    %180 = arith.divf %178, %179 : vector<8x256xf32>
    %181 = vector.extract_strided_slice %180 {offsets = [0, 0], sizes = [8, 128], strides = [1, 1]} : vector<8x256xf32> to vector<8x128xf32>
    %182 = vector.extract_strided_slice %180 {offsets = [0, 128], sizes = [8, 128], strides = [1, 1]} : vector<8x256xf32> to vector<8x128xf32>
    %183 = vector.extract_strided_slice %174 {offsets = [0, 256], sizes = [8, 128], strides = [1, 1]} : vector<8x512xf32> to vector<8x128xf32>
    %184 = math.tanh %183 : vector<8x128xf32>
    %185 = vector.extract_strided_slice %174 {offsets = [0, 384], sizes = [8, 128], strides = [1, 1]} : vector<8x512xf32> to vector<8x128xf32>
    %186 = arith.negf %185 : vector<8x128xf32>
    %187 = math.exp %186 : vector<8x128xf32>
    %cst_58 = arith.constant 1.000000e+00 : f32
    %188 = vector.broadcast %cst_58 : f32 to vector<8x128xf32>
    %189 = arith.addf %188, %187 : vector<8x128xf32>
    %190 = arith.divf %188, %189 : vector<8x128xf32>
    %191 = arith.mulf %182, %162 : vector<8x128xf32>
    %192 = arith.mulf %181, %184 : vector<8x128xf32>
    %193 = arith.addf %191, %192 : vector<8x128xf32>
    %194 = math.tanh %193 : vector<8x128xf32>
    %195 = arith.mulf %190, %194 : vector<8x128xf32>
    %196 = arith.index_cast %168 : i32 to index
    %c0_59 = arith.constant 0 : index
    %197 = vector.load %arg14[%196, %c0_59] : memref<48x128xf32, #tpu.memory_space<vmem>>, vector<8x128xf32>
    tpu.vector_store %arg14[%196, %c0_59], %195 {strides = array<i32>} : memref<48x128xf32, #tpu.memory_space<vmem>>, vector<8x128xf32>,
    %c6_i32 = arith.constant 6 : i32
    %c0_60 = arith.constant 0 : index
    %c0_61 = arith.constant 0 : index
    %c0_62 = arith.constant 0 : index
    %198 = vector.load %arg11[%c0_60, %c0_61, %c0_62] : memref<2x8x128xf32, #tpu.memory_space<vmem>>, vector<1x8x128xf32>
    %199 = vector.shape_cast %198 : vector<1x8x128xf32> to vector<8x128xf32>
    %200 = vector.shape_cast %195 : vector<8x128xf32> to vector<1x8x128xf32>
    tpu.vector_store %arg11[%c0_60, %c0_61, %c0_62], %200 {strides = array<i32>} : memref<2x8x128xf32, #tpu.memory_space<vmem>>, vector<1x8x128xf32>,
    %c0_63 = arith.constant 0 : index
    %c0_64 = arith.constant 0 : index
    %c0_65 = arith.constant 0 : index
    %201 = vector.load %arg12[%c0_63, %c0_64, %c0_65] : memref<2x8x128xf32, #tpu.memory_space<vmem>>, vector<1x8x128xf32>
    %202 = vector.shape_cast %201 : vector<1x8x128xf32> to vector<8x128xf32>
    %203 = vector.shape_cast %193 : vector<8x128xf32> to vector<1x8x128xf32>
    tpu.vector_store %arg12[%c0_63, %c0_64, %c0_65], %203 {strides = array<i32>} : memref<2x8x128xf32, #tpu.memory_space<vmem>>, vector<1x8x128xf32>,
    %c0_66 = arith.constant 0 : index
    %c0_67 = arith.constant 0 : index
    %204 = vector.load %arg14[%c0_66, %c0_67] : memref<48x128xf32, #tpu.memory_space<vmem>>, vector<48x128xf32>
    %205 = arith.truncf %204 : vector<48x128xf32> to vector<48x128xbf16>
    %c0_68 = arith.constant 0 : index
    %c0_69 = arith.constant 0 : index
    %206 = vector.load %arg5[%c0_68, %c0_69] : memref<128x512xbf16, #tpu.memory_space<vmem>>, vector<128x512xbf16>
    %cst_70 = arith.constant dense<0.000000e+00> : vector<48x512xf32>
    %207 = tpu.matmul %205, %206, %cst_70 {dimension_numbers = #tpu.dot_dimension_numbers<[1], [0], [0], [1], [0, 0, 1, 1], [], []>} : vector<48x128xbf16>, vector<128x512xbf16>, vector<48x512xf32> -> vector<48x512xf32>
    %c0_71 = arith.constant 0 : index
    %c0_72 = arith.constant 0 : index
    %208 = vector.load %arg7[%c0_71, %c0_72] : memref<1x512xf32, #tpu.memory_space<vmem>>, vector<1x512xf32>
    %209 = vector.broadcast %208 : vector<1x512xf32> to vector<48x512xf32>
    %210 = arith.addf %207, %209 : vector<48x512xf32>
    %c0_73 = arith.constant 0 : index
    %c0_74 = arith.constant 0 : index
    %211 = vector.load %arg13[%c0_73, %c0_74] : memref<48x512xf32, #tpu.memory_space<vmem>>, vector<48x512xf32>
    tpu.vector_store %arg13[%c0_73, %c0_74], %210 {strides = array<i32>} : memref<48x512xf32, #tpu.memory_space<vmem>>, vector<48x512xf32>,
    %c1 = arith.constant 1 : index
    %c0_75 = arith.constant 0 : index
    %c0_76 = arith.constant 0 : index
    %212 = vector.load %arg8[%c1, %c0_75, %c0_76] : memref<2x8x128xf32, #tpu.memory_space<vmem>>, vector<1x8x128xf32>
    %213 = vector.shape_cast %212 : vector<1x8x128xf32> to vector<8x128xf32>
    %c1_77 = arith.constant 1 : index
    %c0_78 = arith.constant 0 : index
    %c0_79 = arith.constant 0 : index
    %214 = vector.load %arg9[%c1_77, %c0_78, %c0_79] : memref<2x8x128xf32, #tpu.memory_space<vmem>>, vector<1x8x128xf32>
    %215 = vector.shape_cast %214 : vector<1x8x128xf32> to vector<8x128xf32>
    %c0_i32_80 = arith.constant 0 : i32
    %c8_i32_81 = arith.constant 8 : i32
    %216 = arith.muli %c0_i32_80, %c8_i32_81 : i32
    %217 = tpu.assume_multiple %216, 8 : i32
    %218 = arith.index_cast %217 : i32 to index
    %c0_82 = arith.constant 0 : index
    %219 = vector.load %arg13[%218, %c0_82] : memref<48x512xf32, #tpu.memory_space<vmem>>, vector<8x512xf32>
    %220 = arith.truncf %213 : vector<8x128xf32> to vector<8x128xbf16>
    %c0_83 = arith.constant 0 : index
    %c0_84 = arith.constant 0 : index
    %221 = vector.load %arg6[%c0_83, %c0_84] : memref<128x512xbf16, #tpu.memory_space<vmem>>, vector<128x512xbf16>
    %cst_85 = arith.constant dense<0.000000e+00> : vector<8x512xf32>
    %222 = tpu.matmul %220, %221, %cst_85 {dimension_numbers = #tpu.dot_dimension_numbers<[1], [0], [0], [1], [0, 0, 1, 1], [], []>} : vector<8x128xbf16>, vector<128x512xbf16>, vector<8x512xf32> -> vector<8x512xf32>
    %223 = arith.addf %219, %222 : vector<8x512xf32>
    %224 = vector.extract_strided_slice %223 {offsets = [0, 0], sizes = [8, 256], strides = [1, 1]} : vector<8x512xf32> to vector<8x256xf32>
    %225 = arith.negf %224 : vector<8x256xf32>
    %226 = math.exp %225 : vector<8x256xf32>
    %cst_86 = arith.constant 1.000000e+00 : f32
    %227 = vector.broadcast %cst_86 : f32 to vector<8x256xf32>
    %228 = arith.addf %227, %226 : vector<8x256xf32>
    %229 = arith.divf %227, %228 : vector<8x256xf32>
    %230 = vector.extract_strided_slice %229 {offsets = [0, 0], sizes = [8, 128], strides = [1, 1]} : vector<8x256xf32> to vector<8x128xf32>
    %231 = vector.extract_strided_slice %229 {offsets = [0, 128], sizes = [8, 128], strides = [1, 1]} : vector<8x256xf32> to vector<8x128xf32>
    %232 = vector.extract_strided_slice %223 {offsets = [0, 256], sizes = [8, 128], strides = [1, 1]} : vector<8x512xf32> to vector<8x128xf32>
    %233 = math.tanh %232 : vector<8x128xf32>
    %234 = vector.extract_strided_slice %223 {offsets = [0, 384], sizes = [8, 128], strides = [1, 1]} : vector<8x512xf32> to vector<8x128xf32>
    %235 = arith.negf %234 : vector<8x128xf32>
    %236 = math.exp %235 : vector<8x128xf32>
    %cst_87 = arith.constant 1.000000e+00 : f32
    %237 = vector.broadcast %cst_87 : f32 to vector<8x128xf32>
    %238 = arith.addf %237, %236 : vector<8x128xf32>
    %239 = arith.divf %237, %238 : vector<8x128xf32>
    %240 = arith.mulf %231, %215 : vector<8x128xf32>
    %241 = arith.mulf %230, %233 : vector<8x128xf32>
    %242 = arith.addf %240, %241 : vector<8x128xf32>
    %243 = math.tanh %242 : vector<8x128xf32>
    %244 = arith.mulf %239, %243 : vector<8x128xf32>
    %245 = arith.index_cast %217 : i32 to index
    %c0_88 = arith.constant 0 : index
    %246 = vector.load %arg10[%245, %c0_88] : memref<48x128xf32, #tpu.memory_space<vmem>>, vector<8x128xf32>
    tpu.vector_store %arg10[%245, %c0_88], %244 {strides = array<i32>} : memref<48x128xf32, #tpu.memory_space<vmem>>, vector<8x128xf32>,
    %c1_i32_89 = arith.constant 1 : i32
    %c8_i32_90 = arith.constant 8 : i32
    %247 = arith.muli %c1_i32_89, %c8_i32_90 : i32
    %248 = tpu.assume_multiple %247, 8 : i32
    %249 = arith.index_cast %248 : i32 to index
    %c0_91 = arith.constant 0 : index
    %250 = vector.load %arg13[%249, %c0_91] : memref<48x512xf32, #tpu.memory_space<vmem>>, vector<8x512xf32>
    %251 = arith.truncf %244 : vector<8x128xf32> to vector<8x128xbf16>
    %c0_92 = arith.constant 0 : index
    %c0_93 = arith.constant 0 : index
    %252 = vector.load %arg6[%c0_92, %c0_93] : memref<128x512xbf16, #tpu.memory_space<vmem>>, vector<128x512xbf16>
    %cst_94 = arith.constant dense<0.000000e+00> : vector<8x512xf32>
    %253 = tpu.matmul %251, %252, %cst_94 {dimension_numbers = #tpu.dot_dimension_numbers<[1], [0], [0], [1], [0, 0, 1, 1], [], []>} : vector<8x128xbf16>, vector<128x512xbf16>, vector<8x512xf32> -> vector<8x512xf32>
    %254 = arith.addf %250, %253 : vector<8x512xf32>
    %255 = vector.extract_strided_slice %254 {offsets = [0, 0], sizes = [8, 256], strides = [1, 1]} : vector<8x512xf32> to vector<8x256xf32>
    %256 = arith.negf %255 : vector<8x256xf32>
    %257 = math.exp %256 : vector<8x256xf32>
    %cst_95 = arith.constant 1.000000e+00 : f32
    %258 = vector.broadcast %cst_95 : f32 to vector<8x256xf32>
    %259 = arith.addf %258, %257 : vector<8x256xf32>
    %260 = arith.divf %258, %259 : vector<8x256xf32>
    %261 = vector.extract_strided_slice %260 {offsets = [0, 0], sizes = [8, 128], strides = [1, 1]} : vector<8x256xf32> to vector<8x128xf32>
    %262 = vector.extract_strided_slice %260 {offsets = [0, 128], sizes = [8, 128], strides = [1, 1]} : vector<8x256xf32> to vector<8x128xf32>
    %263 = vector.extract_strided_slice %254 {offsets = [0, 256], sizes = [8, 128], strides = [1, 1]} : vector<8x512xf32> to vector<8x128xf32>
    %264 = math.tanh %263 : vector<8x128xf32>
    %265 = vector.extract_strided_slice %254 {offsets = [0, 384], sizes = [8, 128], strides = [1, 1]} : vector<8x512xf32> to vector<8x128xf32>
    %266 = arith.negf %265 : vector<8x128xf32>
    %267 = math.exp %266 : vector<8x128xf32>
    %cst_96 = arith.constant 1.000000e+00 : f32
    %268 = vector.broadcast %cst_96 : f32 to vector<8x128xf32>
    %269 = arith.addf %268, %267 : vector<8x128xf32>
    %270 = arith.divf %268, %269 : vector<8x128xf32>
    %271 = arith.mulf %262, %242 : vector<8x128xf32>
    %272 = arith.mulf %261, %264 : vector<8x128xf32>
    %273 = arith.addf %271, %272 : vector<8x128xf32>
    %274 = math.tanh %273 : vector<8x128xf32>
    %275 = arith.mulf %270, %274 : vector<8x128xf32>
    %276 = arith.index_cast %248 : i32 to index
    %c0_97 = arith.constant 0 : index
    %277 = vector.load %arg10[%276, %c0_97] : memref<48x128xf32, #tpu.memory_space<vmem>>, vector<8x128xf32>
    tpu.vector_store %arg10[%276, %c0_97], %275 {strides = array<i32>} : memref<48x128xf32, #tpu.memory_space<vmem>>, vector<8x128xf32>,
    %c2_i32_98 = arith.constant 2 : i32
    %c8_i32_99 = arith.constant 8 : i32
    %278 = arith.muli %c2_i32_98, %c8_i32_99 : i32
    %279 = tpu.assume_multiple %278, 8 : i32
    %280 = arith.index_cast %279 : i32 to index
    %c0_100 = arith.constant 0 : index
    %281 = vector.load %arg13[%280, %c0_100] : memref<48x512xf32, #tpu.memory_space<vmem>>, vector<8x512xf32>
    %282 = arith.truncf %275 : vector<8x128xf32> to vector<8x128xbf16>
    %c0_101 = arith.constant 0 : index
    %c0_102 = arith.constant 0 : index
    %283 = vector.load %arg6[%c0_101, %c0_102] : memref<128x512xbf16, #tpu.memory_space<vmem>>, vector<128x512xbf16>
    %cst_103 = arith.constant dense<0.000000e+00> : vector<8x512xf32>
    %284 = tpu.matmul %282, %283, %cst_103 {dimension_numbers = #tpu.dot_dimension_numbers<[1], [0], [0], [1], [0, 0, 1, 1], [], []>} : vector<8x128xbf16>, vector<128x512xbf16>, vector<8x512xf32> -> vector<8x512xf32>
    %285 = arith.addf %281, %284 : vector<8x512xf32>
    %286 = vector.extract_strided_slice %285 {offsets = [0, 0], sizes = [8, 256], strides = [1, 1]} : vector<8x512xf32> to vector<8x256xf32>
    %287 = arith.negf %286 : vector<8x256xf32>
    %288 = math.exp %287 : vector<8x256xf32>
    %cst_104 = arith.constant 1.000000e+00 : f32
    %289 = vector.broadcast %cst_104 : f32 to vector<8x256xf32>
    %290 = arith.addf %289, %288 : vector<8x256xf32>
    %291 = arith.divf %289, %290 : vector<8x256xf32>
    %292 = vector.extract_strided_slice %291 {offsets = [0, 0], sizes = [8, 128], strides = [1, 1]} : vector<8x256xf32> to vector<8x128xf32>
    %293 = vector.extract_strided_slice %291 {offsets = [0, 128], sizes = [8, 128], strides = [1, 1]} : vector<8x256xf32> to vector<8x128xf32>
    %294 = vector.extract_strided_slice %285 {offsets = [0, 256], sizes = [8, 128], strides = [1, 1]} : vector<8x512xf32> to vector<8x128xf32>
    %295 = math.tanh %294 : vector<8x128xf32>
    %296 = vector.extract_strided_slice %285 {offsets = [0, 384], sizes = [8, 128], strides = [1, 1]} : vector<8x512xf32> to vector<8x128xf32>
    %297 = arith.negf %296 : vector<8x128xf32>
    %298 = math.exp %297 : vector<8x128xf32>
    %cst_105 = arith.constant 1.000000e+00 : f32
    %299 = vector.broadcast %cst_105 : f32 to vector<8x128xf32>
    %300 = arith.addf %299, %298 : vector<8x128xf32>
    %301 = arith.divf %299, %300 : vector<8x128xf32>
    %302 = arith.mulf %293, %273 : vector<8x128xf32>
    %303 = arith.mulf %292, %295 : vector<8x128xf32>
    %304 = arith.addf %302, %303 : vector<8x128xf32>
    %305 = math.tanh %304 : vector<8x128xf32>
    %306 = arith.mulf %301, %305 : vector<8x128xf32>
    %307 = arith.index_cast %279 : i32 to index
    %c0_106 = arith.constant 0 : index
    %308 = vector.load %arg10[%307, %c0_106] : memref<48x128xf32, #tpu.memory_space<vmem>>, vector<8x128xf32>
    tpu.vector_store %arg10[%307, %c0_106], %306 {strides = array<i32>} : memref<48x128xf32, #tpu.memory_space<vmem>>, vector<8x128xf32>,
    %c3_i32_107 = arith.constant 3 : i32
    %c8_i32_108 = arith.constant 8 : i32
    %309 = arith.muli %c3_i32_107, %c8_i32_108 : i32
    %310 = tpu.assume_multiple %309, 8 : i32
    %311 = arith.index_cast %310 : i32 to index
    %c0_109 = arith.constant 0 : index
    %312 = vector.load %arg13[%311, %c0_109] : memref<48x512xf32, #tpu.memory_space<vmem>>, vector<8x512xf32>
    %313 = arith.truncf %306 : vector<8x128xf32> to vector<8x128xbf16>
    %c0_110 = arith.constant 0 : index
    %c0_111 = arith.constant 0 : index
    %314 = vector.load %arg6[%c0_110, %c0_111] : memref<128x512xbf16, #tpu.memory_space<vmem>>, vector<128x512xbf16>
    %cst_112 = arith.constant dense<0.000000e+00> : vector<8x512xf32>
    %315 = tpu.matmul %313, %314, %cst_112 {dimension_numbers = #tpu.dot_dimension_numbers<[1], [0], [0], [1], [0, 0, 1, 1], [], []>} : vector<8x128xbf16>, vector<128x512xbf16>, vector<8x512xf32> -> vector<8x512xf32>
    %316 = arith.addf %312, %315 : vector<8x512xf32>
    %317 = vector.extract_strided_slice %316 {offsets = [0, 0], sizes = [8, 256], strides = [1, 1]} : vector<8x512xf32> to vector<8x256xf32>
    %318 = arith.negf %317 : vector<8x256xf32>
    %319 = math.exp %318 : vector<8x256xf32>
    %cst_113 = arith.constant 1.000000e+00 : f32
    %320 = vector.broadcast %cst_113 : f32 to vector<8x256xf32>
    %321 = arith.addf %320, %319 : vector<8x256xf32>
    %322 = arith.divf %320, %321 : vector<8x256xf32>
    %323 = vector.extract_strided_slice %322 {offsets = [0, 0], sizes = [8, 128], strides = [1, 1]} : vector<8x256xf32> to vector<8x128xf32>
    %324 = vector.extract_strided_slice %322 {offsets = [0, 128], sizes = [8, 128], strides = [1, 1]} : vector<8x256xf32> to vector<8x128xf32>
    %325 = vector.extract_strided_slice %316 {offsets = [0, 256], sizes = [8, 128], strides = [1, 1]} : vector<8x512xf32> to vector<8x128xf32>
    %326 = math.tanh %325 : vector<8x128xf32>
    %327 = vector.extract_strided_slice %316 {offsets = [0, 384], sizes = [8, 128], strides = [1, 1]} : vector<8x512xf32> to vector<8x128xf32>
    %328 = arith.negf %327 : vector<8x128xf32>
    %329 = math.exp %328 : vector<8x128xf32>
    %cst_114 = arith.constant 1.000000e+00 : f32
    %330 = vector.broadcast %cst_114 : f32 to vector<8x128xf32>
    %331 = arith.addf %330, %329 : vector<8x128xf32>
    %332 = arith.divf %330, %331 : vector<8x128xf32>
    %333 = arith.mulf %324, %304 : vector<8x128xf32>
    %334 = arith.mulf %323, %326 : vector<8x128xf32>
    %335 = arith.addf %333, %334 : vector<8x128xf32>
    %336 = math.tanh %335 : vector<8x128xf32>
    %337 = arith.mulf %332, %336 : vector<8x128xf32>
    %338 = arith.index_cast %310 : i32 to index
    %c0_115 = arith.constant 0 : index
    %339 = vector.load %arg10[%338, %c0_115] : memref<48x128xf32, #tpu.memory_space<vmem>>, vector<8x128xf32>
    tpu.vector_store %arg10[%338, %c0_115], %337 {strides = array<i32>} : memref<48x128xf32, #tpu.memory_space<vmem>>, vector<8x128xf32>,
    %c4_i32_116 = arith.constant 4 : i32
    %c8_i32_117 = arith.constant 8 : i32
    %340 = arith.muli %c4_i32_116, %c8_i32_117 : i32
    %341 = tpu.assume_multiple %340, 8 : i32
    %342 = arith.index_cast %341 : i32 to index
    %c0_118 = arith.constant 0 : index
    %343 = vector.load %arg13[%342, %c0_118] : memref<48x512xf32, #tpu.memory_space<vmem>>, vector<8x512xf32>
    %344 = arith.truncf %337 : vector<8x128xf32> to vector<8x128xbf16>
    %c0_119 = arith.constant 0 : index
    %c0_120 = arith.constant 0 : index
    %345 = vector.load %arg6[%c0_119, %c0_120] : memref<128x512xbf16, #tpu.memory_space<vmem>>, vector<128x512xbf16>
    %cst_121 = arith.constant dense<0.000000e+00> : vector<8x512xf32>
    %346 = tpu.matmul %344, %345, %cst_121 {dimension_numbers = #tpu.dot_dimension_numbers<[1], [0], [0], [1], [0, 0, 1, 1], [], []>} : vector<8x128xbf16>, vector<128x512xbf16>, vector<8x512xf32> -> vector<8x512xf32>
    %347 = arith.addf %343, %346 : vector<8x512xf32>
    %348 = vector.extract_strided_slice %347 {offsets = [0, 0], sizes = [8, 256], strides = [1, 1]} : vector<8x512xf32> to vector<8x256xf32>
    %349 = arith.negf %348 : vector<8x256xf32>
    %350 = math.exp %349 : vector<8x256xf32>
    %cst_122 = arith.constant 1.000000e+00 : f32
    %351 = vector.broadcast %cst_122 : f32 to vector<8x256xf32>
    %352 = arith.addf %351, %350 : vector<8x256xf32>
    %353 = arith.divf %351, %352 : vector<8x256xf32>
    %354 = vector.extract_strided_slice %353 {offsets = [0, 0], sizes = [8, 128], strides = [1, 1]} : vector<8x256xf32> to vector<8x128xf32>
    %355 = vector.extract_strided_slice %353 {offsets = [0, 128], sizes = [8, 128], strides = [1, 1]} : vector<8x256xf32> to vector<8x128xf32>
    %356 = vector.extract_strided_slice %347 {offsets = [0, 256], sizes = [8, 128], strides = [1, 1]} : vector<8x512xf32> to vector<8x128xf32>
    %357 = math.tanh %356 : vector<8x128xf32>
    %358 = vector.extract_strided_slice %347 {offsets = [0, 384], sizes = [8, 128], strides = [1, 1]} : vector<8x512xf32> to vector<8x128xf32>
    %359 = arith.negf %358 : vector<8x128xf32>
    %360 = math.exp %359 : vector<8x128xf32>
    %cst_123 = arith.constant 1.000000e+00 : f32
    %361 = vector.broadcast %cst_123 : f32 to vector<8x128xf32>
    %362 = arith.addf %361, %360 : vector<8x128xf32>
    %363 = arith.divf %361, %362 : vector<8x128xf32>
    %364 = arith.mulf %355, %335 : vector<8x128xf32>
    %365 = arith.mulf %354, %357 : vector<8x128xf32>
    %366 = arith.addf %364, %365 : vector<8x128xf32>
    %367 = math.tanh %366 : vector<8x128xf32>
    %368 = arith.mulf %363, %367 : vector<8x128xf32>
    %369 = arith.index_cast %341 : i32 to index
    %c0_124 = arith.constant 0 : index
    %370 = vector.load %arg10[%369, %c0_124] : memref<48x128xf32, #tpu.memory_space<vmem>>, vector<8x128xf32>
    tpu.vector_store %arg10[%369, %c0_124], %368 {strides = array<i32>} : memref<48x128xf32, #tpu.memory_space<vmem>>, vector<8x128xf32>,
    %c5_i32_125 = arith.constant 5 : i32
    %c8_i32_126 = arith.constant 8 : i32
    %371 = arith.muli %c5_i32_125, %c8_i32_126 : i32
    %372 = tpu.assume_multiple %371, 8 : i32
    %373 = arith.index_cast %372 : i32 to index
    %c0_127 = arith.constant 0 : index
    %374 = vector.load %arg13[%373, %c0_127] : memref<48x512xf32, #tpu.memory_space<vmem>>, vector<8x512xf32>
    %375 = arith.truncf %368 : vector<8x128xf32> to vector<8x128xbf16>
    %c0_128 = arith.constant 0 : index
    %c0_129 = arith.constant 0 : index
    %376 = vector.load %arg6[%c0_128, %c0_129] : memref<128x512xbf16, #tpu.memory_space<vmem>>, vector<128x512xbf16>
    %cst_130 = arith.constant dense<0.000000e+00> : vector<8x512xf32>
    %377 = tpu.matmul %375, %376, %cst_130 {dimension_numbers = #tpu.dot_dimension_numbers<[1], [0], [0], [1], [0, 0, 1, 1], [], []>} : vector<8x128xbf16>, vector<128x512xbf16>, vector<8x512xf32> -> vector<8x512xf32>
    %378 = arith.addf %374, %377 : vector<8x512xf32>
    %379 = vector.extract_strided_slice %378 {offsets = [0, 0], sizes = [8, 256], strides = [1, 1]} : vector<8x512xf32> to vector<8x256xf32>
    %380 = arith.negf %379 : vector<8x256xf32>
    %381 = math.exp %380 : vector<8x256xf32>
    %cst_131 = arith.constant 1.000000e+00 : f32
    %382 = vector.broadcast %cst_131 : f32 to vector<8x256xf32>
    %383 = arith.addf %382, %381 : vector<8x256xf32>
    %384 = arith.divf %382, %383 : vector<8x256xf32>
    %385 = vector.extract_strided_slice %384 {offsets = [0, 0], sizes = [8, 128], strides = [1, 1]} : vector<8x256xf32> to vector<8x128xf32>
    %386 = vector.extract_strided_slice %384 {offsets = [0, 128], sizes = [8, 128], strides = [1, 1]} : vector<8x256xf32> to vector<8x128xf32>
    %387 = vector.extract_strided_slice %378 {offsets = [0, 256], sizes = [8, 128], strides = [1, 1]} : vector<8x512xf32> to vector<8x128xf32>
    %388 = math.tanh %387 : vector<8x128xf32>
    %389 = vector.extract_strided_slice %378 {offsets = [0, 384], sizes = [8, 128], strides = [1, 1]} : vector<8x512xf32> to vector<8x128xf32>
    %390 = arith.negf %389 : vector<8x128xf32>
    %391 = math.exp %390 : vector<8x128xf32>
    %cst_132 = arith.constant 1.000000e+00 : f32
    %392 = vector.broadcast %cst_132 : f32 to vector<8x128xf32>
    %393 = arith.addf %392, %391 : vector<8x128xf32>
    %394 = arith.divf %392, %393 : vector<8x128xf32>
    %395 = arith.mulf %386, %366 : vector<8x128xf32>
    %396 = arith.mulf %385, %388 : vector<8x128xf32>
    %397 = arith.addf %395, %396 : vector<8x128xf32>
    %398 = math.tanh %397 : vector<8x128xf32>
    %399 = arith.mulf %394, %398 : vector<8x128xf32>
    %400 = arith.index_cast %372 : i32 to index
    %c0_133 = arith.constant 0 : index
    %401 = vector.load %arg10[%400, %c0_133] : memref<48x128xf32, #tpu.memory_space<vmem>>, vector<8x128xf32>
    tpu.vector_store %arg10[%400, %c0_133], %399 {strides = array<i32>} : memref<48x128xf32, #tpu.memory_space<vmem>>, vector<8x128xf32>,
    %c6_i32_134 = arith.constant 6 : i32
    %c1_135 = arith.constant 1 : index
    %c0_136 = arith.constant 0 : index
    %c0_137 = arith.constant 0 : index
    %402 = vector.load %arg11[%c1_135, %c0_136, %c0_137] : memref<2x8x128xf32, #tpu.memory_space<vmem>>, vector<1x8x128xf32>
    %403 = vector.shape_cast %402 : vector<1x8x128xf32> to vector<8x128xf32>
    %404 = vector.shape_cast %399 : vector<8x128xf32> to vector<1x8x128xf32>
    tpu.vector_store %arg11[%c1_135, %c0_136, %c0_137], %404 {strides = array<i32>} : memref<2x8x128xf32, #tpu.memory_space<vmem>>, vector<1x8x128xf32>,
    %c1_138 = arith.constant 1 : index
    %c0_139 = arith.constant 0 : index
    %c0_140 = arith.constant 0 : index
    %405 = vector.load %arg12[%c1_138, %c0_139, %c0_140] : memref<2x8x128xf32, #tpu.memory_space<vmem>>, vector<1x8x128xf32>
    %406 = vector.shape_cast %405 : vector<1x8x128xf32> to vector<8x128xf32>
    %407 = vector.shape_cast %397 : vector<8x128xf32> to vector<1x8x128xf32>
    tpu.vector_store %arg12[%c1_138, %c0_139, %c0_140], %407 {strides = array<i32>} : memref<2x8x128xf32, #tpu.memory_space<vmem>>, vector<1x8x128xf32>,
    return
  }
  func.func @transform_0(%arg0: i32) -> (i32, i32) {
    %c0_i32 = arith.constant 0 : i32
    %c0_i32_0 = arith.constant 0 : i32
    %c0_i32_1 = arith.constant 0 : i32
    return %c0_i32, %c0_i32_0 : i32, i32
  }
  func.func @transform_1(%arg0: i32) -> (i32, i32) {
    %c0_i32 = arith.constant 0 : i32
    %c0_i32_0 = arith.constant 0 : i32
    %c0_i32_1 = arith.constant 0 : i32
    return %c0_i32, %c0_i32_0 : i32, i32
  }
  func.func @transform_2(%arg0: i32) -> (i32, i32) {
    %c0_i32 = arith.constant 0 : i32
    %c0_i32_0 = arith.constant 0 : i32
    %c0_i32_1 = arith.constant 0 : i32
    return %c0_i32, %c0_i32_0 : i32, i32
  }
  func.func @transform_3(%arg0: i32) -> (i32, i32) {
    %c0_i32 = arith.constant 0 : i32
    %c0_i32_0 = arith.constant 0 : i32
    %c0_i32_1 = arith.constant 0 : i32
    return %c0_i32, %c0_i32_0 : i32, i32
  }
  func.func @transform_4(%arg0: i32) -> (i32, i32) {
    %c0_i32 = arith.constant 0 : i32
    %c0_i32_0 = arith.constant 0 : i32
    %c0_i32_1 = arith.constant 0 : i32
    return %c0_i32, %c0_i32_0 : i32, i32
  }
  func.func @transform_5(%arg0: i32) -> (i32, i32) {
    %c0_i32 = arith.constant 0 : i32
    %c0_i32_0 = arith.constant 0 : i32
    %c0_i32_1 = arith.constant 0 : i32
    return %c0_i32, %c0_i32_0 : i32, i32
  }
  func.func @transform_6(%arg0: i32) -> (i32, i32) {
    %c0_i32 = arith.constant 0 : i32
    %c0_i32_0 = arith.constant 0 : i32
    %c0_i32_1 = arith.constant 0 : i32
    return %c0_i32, %c0_i32_0 : i32, i32
  }
  func.func @transform_7(%arg0: i32) -> (i32, i32, i32) {
    %c0_i32 = arith.constant 0 : i32
    %c0_i32_0 = arith.constant 0 : i32
    %c0_i32_1 = arith.constant 0 : i32
    %c0_i32_2 = arith.constant 0 : i32
    return %c0_i32, %c0_i32_0, %c0_i32_1 : i32, i32, i32
  }
  func.func @transform_8(%arg0: i32) -> (i32, i32, i32) {
    %c0_i32 = arith.constant 0 : i32
    %c0_i32_0 = arith.constant 0 : i32
    %c0_i32_1 = arith.constant 0 : i32
    %c0_i32_2 = arith.constant 0 : i32
    return %c0_i32, %c0_i32_0, %c0_i32_1 : i32, i32, i32
  }
  func.func @transform_9(%arg0: i32) -> (i32, i32) {
    %c0_i32 = arith.constant 0 : i32
    %c0_i32_0 = arith.constant 0 : i32
    %c0_i32_1 = arith.constant 0 : i32
    return %c0_i32, %c0_i32_0 : i32, i32
  }
  func.func @transform_10(%arg0: i32) -> (i32, i32, i32) {
    %c0_i32 = arith.constant 0 : i32
    %c0_i32_0 = arith.constant 0 : i32
    %c0_i32_1 = arith.constant 0 : i32
    %c0_i32_2 = arith.constant 0 : i32
    return %c0_i32, %c0_i32_0, %c0_i32_1 : i32, i32, i32
  }
  func.func @transform_11(%arg0: i32) -> (i32, i32, i32) {
    %c0_i32 = arith.constant 0 : i32
    %c0_i32_0 = arith.constant 0 : i32
    %c0_i32_1 = arith.constant 0 : i32
    %c0_i32_2 = arith.constant 0 : i32
    return %c0_i32, %c0_i32_0, %c0_i32_1 : i32, i32, i32
  }
}

</mosaic_0001>

<bundles_post_ra>
// kernel: rnn_model_forward.3
= control target key start
LH: loop header
LB: loop body
LE: loop exit
PB: predicated region body
PF: predicated region fallthrough
CT: control target
= control target key end

     0   :  { %8 = vsyncpa [#allocation6], 0  ;;  %s1452_s0 = inlined_call_operand.vmem [shape: f32[48,128], index: 0, kind: input, shape index: {}]   ;;  %s1453_s1 = inlined_call_operand.vmem [shape: bf16[128,256], index: 1, kind: input, shape index: {}]   ;;  %s1454_s2 = inlined_call_operand.vmem [shape: f32[1,256], index: 2, kind: input, shape index: {}]   ;;  %s1455_s3 = inlined_call_operand.hbm [shape: f32[48,256], index: 3, kind: output, shape index: {}]  }
   0x1   :  { %10 = vsyncpa [#allocation6 + $0x1], 0  ;;  %s1149_s12 = smov 0   ;;  %s1151_s13 = smov 0  }
   0x2   :  { %s1153_s14 = smov 0  }
   0x3 LB: > { %s858_s15 = sadd.s32 4294967295, %s1120_s14   ;;  %s859_s16 = sadd.s32 4294967294, %s1120_s14   ;;  %s1120_s14 = sphi %s1153_s14, %s16_s14   ;;  %s1116_s13 = sphi %s1151_s13, %s1457_s13   ;;  %s1112_s12 = sphi %s1149_s12, %s1456_s12  }
   0x4   : > { %s31_s17 = sadd.s32 1, %s1116_s13  ;;  %p865_p0 = scmp.ge.s32.totalorder %s1120_s14, 1 }
   0x5   : > { %p33_p1 = scmp.ge.s32.totalorder %s31_s17, 2  ;;  %p201_p2 = scmp.lt.s32.totalorder %s1120_s14, 3 }
   0x7   : > { %s1459_s17 = smov (%p33_p1, %s31_s17), 0  ;;  %p202_p3 = pnand %p865_p0, %p201_p2 }
   0x8   : > { %p266_p4 = scmp.eq.s32.totalorder (!%p202_p3), %s1112_s12, 0 }
   0x9   : > { %205 = sbr.rel (%p202_p3) target bundleno = 739 (0x2e3), region = 32 }
   0xe   : > { %271 = sbr.rel (!%p266_p4) target bundleno = 27 (0x1b), region = 36  ;;  %vm272_vm0 = vcmask (%p266_p4), 7168   ;;  %v1122_v0 = vmov (%p266_p4), -inf   ;;  %v1123_v1 = vmov (%p266_p4), 0.0  }
   0xf   : > { %273 = vst.msk [vmem:[#allocation2] sm:$0xff] (%p266_p4), %vm272_vm0, %v1122_v0 }
  0x10   : > { %274 = vst.msk [vmem:[#allocation2 + $0x8] sm:$0xff] (%p266_p4), %vm272_vm0, %v1122_v0 }
  0x11   : > { %275 = vst.msk [vmem:[#allocation2 + $0x10] sm:$0xff] (%p266_p4), %vm272_vm0, %v1122_v0 }
  0x12   : > { %276 = vst.msk [vmem:[#allocation2 + $0x18] sm:$0xff] (%p266_p4), %vm272_vm0, %v1122_v0 }
  0x13   : > { %277 = vst.msk [vmem:[#allocation2 + $0x20] sm:$0xff] %vm272_vm0, %v1122_v0 }
  0x14   : > { %278 = vst.msk [vmem:[#allocation2 + $0x28] sm:$0xff] %vm272_vm0, %v1122_v0 }
  0x15   : > { %279 = vst.msk [vmem:[#allocation3] sm:$0xff] %vm272_vm0, %v1123_v1 }
  0x16   : > { %280 = vst.msk [vmem:[#allocation3 + $0x8] sm:$0xff] %vm272_vm0, %v1123_v1 }
  0x17   : > { %281 = vst.msk [vmem:[#allocation3 + $0x10] sm:$0xff] %vm272_vm0, %v1123_v1 }
  0x18   : > { %282 = vst.msk [vmem:[#allocation3 + $0x18] sm:$0xff] %vm272_vm0, %v1123_v1 }
  0x19   : > { %283 = vst.msk [vmem:[#allocation3 + $0x20] sm:$0xff] %vm272_vm0, %v1123_v1 }
  0x1a   : > { %284 = vst.msk [vmem:[#allocation3 + $0x28] sm:$0xff] %vm272_vm0, %v1123_v1 }
  0x1b PF: > { %p867_p5 = scmp.ne.s32.totalorder %s1112_s12, 0 }
  0x1d   : > { %287 = sbr.rel (%p867_p5) target bundleno = 587 (0x24b), region = 40 }
  0x22   : > { %v926_v2 = vld [vmem:[%s1453_s1 + $0x70] sm:$0xf]  ;;  %v953_v3 = vld [vmem:[%s1453_s1 + $0x74] sm:$0xf0]  ;;  %v952_v4 = vld [vmem:[%s1453_s1 + $0x74] sm:$0xf] }
  0x23   : > { %v927_v5 = vor.u32 %v953_v3, %v926_v2  ;;  %v928_v6 = vld [vmem:[%s1453_s1 + $0x78] sm:$0xf0]  ;;  %v918_v7 = vld [vmem:[%s1453_s1 + $0x60] sm:$0xf]  ;;  %v951_v8 = vld [vmem:[%s1453_s1 + $0x64] sm:$0xf0] }
  0x24   : > { %v931_v9 = vor.u32 %v952_v4, %v928_v6  ;;  %v950_v10 = vld [vmem:[%s1453_s1 + $0x64] sm:$0xf]  ;;  %v920_v11 = vld [vmem:[%s1453_s1 + $0x68] sm:$0xf0]  ;;  %v919_v12 = vor.u32 %v951_v8, %v918_v7  ;;  %v910_v14 = vld [vmem:[%s1453_s1 + $0x50] sm:$0xf] }
  0x25   : > { %399 = vmatpush.bf16.msra.mxu0 %v927_v5  ;;  %954 = vmatpush.bf16.msra.mxu2 %v927_v5  ;;  %v923_v13 = vor.u32 %v950_v10, %v920_v11  ;;  %v949_v15 = vld [vmem:[%s1453_s1 + $0x54] sm:$0xf0]  ;;  %v948_v16 = vld [vmem:[%s1453_s1 + $0x54] sm:$0xf]  ;;  %v912_v17 = vld [vmem:[%s1453_s1 + $0x58] sm:$0xf0] }
  0x26   : > { %423 = vmatpush.bf16.msra.mxu1 %v931_v9  ;;  %962 = vmatpush.bf16.msra.mxu3 %v931_v9  ;;  %v911_v18 = vor.u32 %v949_v15, %v910_v14  ;;  %v915_v19 = vor.u32 %v948_v16, %v912_v17  ;;  %v902_v20 = vld [vmem:[%s1453_s1 + $0x40] sm:$0xf]  ;;  %v947_v21 = vld [vmem:[%s1453_s1 + $0x44] sm:$0xf0]  ;;  %v946_v22 = vld [vmem:[%s1453_s1 + $0x44] sm:$0xf] }
  0x27   : > { %v904_v23 = vld [vmem:[%s1453_s1 + $0x48] sm:$0xf0]  ;;  %v903_v24 = vor.u32 %v947_v21, %v902_v20  ;;  %v894_v26 = vld [vmem:[%s1453_s1 + $0x30] sm:$0xf]  ;;  %v945_v27 = vld [vmem:[%s1453_s1 + $0x34] sm:$0xf0] }
  0x28   : > { %v907_v25 = vor.u32 %v946_v22, %v904_v23  ;;  %v944_v28 = vld [vmem:[%s1453_s1 + $0x34] sm:$0xf]  ;;  %v896_v29 = vld [vmem:[%s1453_s1 + $0x38] sm:$0xf0]  ;;  %v895_v30 = vor.u32 %v945_v27, %v894_v26  ;;  %v886_v32 = vld [vmem:[%s1453_s1 + $0x20] sm:$0xf] }
  0x29   : > { %400 = vmatpush.bf16.msra.mxu0 %v919_v12  ;;  %955 = vmatpush.bf16.msra.mxu2 %v919_v12  ;;  %v899_v31 = vor.u32 %v944_v28, %v896_v29  ;;  %v943_v33 = vld [vmem:[%s1453_s1 + $0x24] sm:$0xf0]  ;;  %v942_v34 = vld [vmem:[%s1453_s1 + $0x24] sm:$0xf]  ;;  %v888_v35 = vld [vmem:[%s1453_s1 + $0x28] sm:$0xf0] }
  0x2a   : > { %424 = vmatpush.bf16.msra.mxu1 %v923_v13  ;;  %963 = vmatpush.bf16.msra.mxu3 %v923_v13  ;;  %v887_v36 = vor.u32 %v943_v33, %v886_v32  ;;  %v891_v37 = vor.u32 %v942_v34, %v888_v35  ;;  %v878_v38 = vld [vmem:[%s1453_s1 + $0x10] sm:$0xf]  ;;  %v941_v39 = vld [vmem:[%s1453_s1 + $0x14] sm:$0xf0]  ;;  %v940_v40 = vld [vmem:[%s1453_s1 + $0x14] sm:$0xf] }
  0x2b   : > { %v880_v41 = vld [vmem:[%s1453_s1 + $0x18] sm:$0xf0]  ;;  %v879_v42 = vor.u32 %v941_v39, %v878_v38  ;;  %v870_v44 = vld [vmem:[%s1453_s1] sm:$0xf]  ;;  %v939_v45 = vld [vmem:[%s1453_s1 + $0x4] sm:$0xf0] }
  0x2c   : > { %v883_v43 = vor.u32 %v940_v40, %v880_v41  ;;  %v938_v46 = vld [vmem:[%s1453_s1 + $0x4] sm:$0xf]  ;;  %v872_v47 = vld [vmem:[%s1453_s1 + $0x8] sm:$0xf0]  ;;  %v871_v49 = vor.u32 %v939_v45, %v870_v44  ;;  %v290_v51 = vld [vmem:[%s1452_s0 + $0x10] sm:$0xff]  ;;  %v1124_v34 = vmov 0  }
  0x2d   : > { %401 = vmatpush.bf16.msra.mxu0 %v911_v18  ;;  %956 = vmatpush.bf16.msra.mxu2 %v911_v18  ;;  %v288_v48 = vld [vmem:[%s1452_s0] sm:$0xff]  ;;  %v289_v50 = vld [vmem:[%s1452_s0 + $0x8] sm:$0xff]  ;;  %v291_v52 = vld [vmem:[%s1452_s0 + $0x18] sm:$0xff]  ;;  %v875_v53 = vor.u32 %v938_v46, %v872_v47  ;;  %vm612_vm1 = vcmask 7168  }
  0x2e   : > { %425 = vmatpush.bf16.msra.mxu1 %v915_v19  ;;  %964 = vmatpush.bf16.msra.mxu3 %v915_v19  ;;  %v294_v54 = vpack.c.bf16 %v289_v50, %v288_v48  ;;  %v295_v55 = vpack.c.bf16 %v291_v52, %v290_v51  ;;  %v292_v56 = vld [vmem:[%s1452_s0 + $0x20] sm:$0xff]  ;;  %v293_v57 = vld [vmem:[%s1452_s0 + $0x28] sm:$0xff]  ;;  %v1348_v39 = vld [vmem:[#allocation2 + $0x10] sm:$0xff] }
  0x2f   : > { %v296_v58 = vpack.c.bf16 %v293_v57, %v292_v56  ;;  %v313_v59 = vld [vmem:[%s1454_s2] sm:$0x3]  ;;  %1012 = vset.pattern.permute.xlu0 %v1124_v34  ;;  %1013 = vset.pattern.permute.xlu2 %v1124_v34  ;;  %v1350_v41 = vld [vmem:[#allocation2 + $0x8] sm:$0xff]  ;;  %v1368_v47 = vld [vmem:[#allocation2 + $0x18] sm:$0xff] }
  0x30   : > { %v315_v60 = vperm.slane %v313_v59, 0  ;;  %v316_v61 = vperm.slane %v313_v59, 1  ;;  %1014 = vset.pattern.permute.xlu1 %v1124_v34  ;;  %v1338_v35 = vld [vmem:[#allocation2] sm:$0xff] }
  0x31   : > { %402 = vmatpush.bf16.msra.mxu0 %v903_v24  ;;  %957 = vmatpush.bf16.msra.mxu2 %v903_v24  ;;  %v1378_v51 = vld [vmem:[#allocation2 + $0x20] sm:$0xff] }
  0x32   : > { %426 = vmatpush.bf16.msra.mxu1 %v907_v25  ;;  %965 = vmatpush.bf16.msra.mxu3 %v907_v25 }
  0x35   : > { %403 = vmatpush.bf16.msra.mxu0 %v895_v30  ;;  %958 = vmatpush.bf16.msra.mxu2 %v895_v30 }
  0x36   : > { %427 = vmatpush.bf16.msra.mxu1 %v899_v31  ;;  %966 = vmatpush.bf16.msra.mxu3 %v899_v31 }
  0x39   : > { %404 = vmatpush.bf16.msra.mxu0 %v887_v36  ;;  %959 = vmatpush.bf16.msra.mxu2 %v887_v36 }
  0x3a   : > { %428 = vmatpush.bf16.msra.mxu1 %v891_v37  ;;  %967 = vmatpush.bf16.msra.mxu3 %v891_v37 }
  0x3d   : > { %405 = vmatpush.bf16.msra.mxu0 %v879_v42  ;;  %960 = vmatpush.bf16.msra.mxu2 %v879_v42 }
  0x3e   : > { %429 = vmatpush.bf16.msra.mxu1 %v883_v43  ;;  %968 = vmatpush.bf16.msra.mxu3 %v883_v43 }
  0x41   : > { %406 = vmatpush.bf16.msra.mxu0 %v871_v49  ;;  %961 = vmatpush.bf16.msra.mxu2 %v871_v49 }
  0x42   : > { %430 = vmatpush.bf16.msra.mxu1 %v875_v53  ;;  %969 = vmatpush.bf16.msra.mxu3 %v875_v53 }
  0x44   : > { %407 = vmatmul.bf16.vlgmr.msra.gmra.mxu0 %v294_v54  ;;  %412 = vmatmul.bf16.vlgmr.msra.gmra.mxu2 %v295_v55 }
  0x45   : > { %431 = vmatmul.bf16.vlgmr.msra.gmra.mxu1 %v294_v54  ;;  %436 = vmatmul.bf16.vlgmr.msra.gmra.mxu3 %v295_v55  ;;  %v1388_v55 = vld [vmem:[#allocation2 + $0x28] sm:$0xff] }
  0x54   : > { %417 = vmatmul.bf16.gmra.mxu2 %v296_v58 }
  0x55   : > { %441 = vmatmul.bf16.gmra.mxu3 %v296_v58 }
  0xc1   : > { %v408_v62 = vpop.f32.mrf.mxu0 }
  0xc2   : > { %v1290_v63 = vadd.f32 %v408_v62, %v315_v60  ;;  %v432_v0 = vpop.f32.mrf.mxu1 }
  0xc3   : > { %v1292_v1 = vadd.f32 %v432_v0, %v316_v61 }
  0xc5   : > { %v447_v2 = vpack.c.bf16 %v1292_v1, %v1290_v63  ;;  %v468_v3 = vmax.f32 %v1290_v63, %v1292_v1 }
  0xc7   : > { %456 = vst [vmem:[#allocation4 + $0x28] sm:$0xff] %v447_v2  ;;  %469 = vmax.xlane.f32.xlu0 %v468_v3  ;;  %v413_v4 = vpop.f32.mrf.mxu2 }
  0xc8   : > { %v1298_v5 = vadd.f32 %v413_v4, %v315_v60  ;;  %v437_v6 = vpop.f32.mrf.mxu3 }
  0xc9   : > { %v1300_v7 = vadd.f32 %v437_v6, %v316_v61  ;;  %v410_v8 = vpop.f32.mrf.mxu0 }
  0xca   : > { %v1302_v9 = vadd.f32 %v410_v8, %v315_v60  ;;  %v434_v10 = vpop.f32.mrf.mxu1 }
  0xcb   : > { %v449_v11 = vpack.c.bf16 %v1300_v7, %v1298_v5  ;;  %v1306_v12 = vadd.f32 %v434_v10, %v316_v61  ;;  %v474_v13 = vmax.f32 %v1298_v5, %v1300_v7 }
  0xcd   : > { %458 = vst [vmem:[#allocation4 + $0x8] sm:$0xff] %v449_v11  ;;  %v448_v14 = vpack.c.bf16 %v1306_v12, %v1302_v9  ;;  %475 = vmax.xlane.f32.xlu1 %v474_v13  ;;  %v471_v15 = vmax.f32 %v1302_v9, %v1306_v12 }
  0xcf   : > { %457 = vst [vmem:[#allocation4 + $0x10] sm:$0xff] %v448_v14  ;;  %472 = vmax.xlane.f32.xlu0 %v471_v15  ;;  %v415_v16 = vpop.f32.mrf.mxu2 }
  0xd0   : > { %v1314_v17 = vadd.f32 %v415_v16, %v315_v60  ;;  %v439_v18 = vpop.f32.mrf.mxu3 }
  0xd1   : > { %v1316_v19 = vadd.f32 %v439_v18, %v316_v61 }
  0xd3   : > { %v450_v20 = vpack.c.bf16 %v1316_v19, %v1314_v17  ;;  %v477_v21 = vmax.f32 %v1314_v17, %v1316_v19 }
  0xd5   : > { %459 = vst [vmem:[#allocation4] sm:$0xff] %v450_v20  ;;  %478 = vmax.xlane.f32.xlu1 %v477_v21 }
  0xd7   : > { %v418_v22 = vpop.f32.mrf.mxu2 }
  0xd8   : > { %v1322_v23 = vadd.f32 %v418_v22, %v315_v60  ;;  %v442_v24 = vpop.f32.mrf.mxu3 }
  0xd9   : > { %v1324_v25 = vadd.f32 %v442_v24, %v316_v61 }
  0xdb   : > { %v451_v26 = vpack.c.bf16 %v1324_v25, %v1322_v23  ;;  %v480_v27 = vmax.f32 %v1322_v23, %v1324_v25 }
  0xdd   : > { %460 = vst [vmem:[#allocation4 + $0x18] sm:$0xff] %v451_v26  ;;  %481 = vmax.xlane.f32.xlu2 %v480_v27 }
  0xdf   : > { %v420_v28 = vpop.f32.mrf.mxu2 }
  0xe0   : > { %v1330_v29 = vadd.f32 %v420_v28, %v315_v60  ;;  %v444_v30 = vpop.f32.mrf.mxu3 }
  0xe1   : > { %v1332_v31 = vadd.f32 %v444_v30, %v316_v61 }
  0xe3   : > { %v452_v32 = vpack.c.bf16 %v1332_v31, %v1330_v29  ;;  %v483_v33 = vmax.f32 %v1330_v29, %v1332_v31 }
  0xe5   : > { %461 = vst [vmem:[#allocation4 + $0x20] sm:$0xff] %v452_v32  ;;  %484 = vmax.xlane.f32.xlu2 %v483_v33 }
 0x13a   : > { %v470_v36 = vpop.xlane.xlu0 %469 }
 0x13b   : > { %v1341_v37 = vmax.f32 %v1338_v35, %v470_v36 }
 0x13d   : > { %v498_v38 = vsub.f32 %v1338_v35, %v1341_v37  ;;  %619 = vst.msk [vmem:[#allocation2] sm:$0xff] %vm612_vm1, %v1341_v37  ;;  %524 = vperm.xlu0 %1012, %v1341_v37  }
 0x140   : > { %v476_v40 = vpop.xlane.xlu1 %475 }
 0x141   : > { %v1353_v42 = vmax.f32 %v1348_v39, %v476_v40 }
 0x142   : > { %v473_v43 = vpop.xlane.xlu0 %472 }
 0x143   : > { %v500_v44 = vsub.f32 %v1348_v39, %v1353_v42  ;;  %621 = vst.msk [vmem:[#allocation2 + $0x10] sm:$0xff] %vm612_vm1, %v1353_v42  ;;  %v1360_v45 = vmax.f32 %v1350_v41, %v473_v43  ;;  %534 = vperm.xlu2 %1013, %v1353_v42  }
 0x145   : > { %v499_v46 = vsub.f32 %v1350_v41, %v1360_v45  ;;  %620 = vst.msk [vmem:[#allocation2 + $0x8] sm:$0xff] %vm612_vm1, %v1360_v45  ;;  %529 = vperm.xlu1 %1014, %v1360_v45   ;;  %v495_v41 = vld [vmem:[#allocation3 + $0x18] sm:$0xff]  ;;  %v493_v45 = vld [vmem:[#allocation3 + $0x8] sm:$0xff] }
 0x148   : > { %v479_v48 = vpop.xlane.xlu1 %478 }
 0x149   : > { %v1371_v49 = vmax.f32 %v1368_v47, %v479_v48 }
 0x14b   : > { %v501_v50 = vsub.f32 %v1368_v47, %v1371_v49  ;;  %622 = vst.msk [vmem:[#allocation2 + $0x18] sm:$0xff] %vm612_vm1, %v1371_v49  ;;  %539 = vperm.xlu2 %1013, %v1371_v49  }
 0x14d   : > { %v510_v39 = vmul.f32 1.442695, %v501_v50 }
 0x150   : > { %v482_v52 = vpop.xlane.xlu2 %481 }
 0x151   : > { %v1381_v53 = vmax.f32 %v1378_v51, %v482_v52 }
 0x153   : > { %v502_v54 = vsub.f32 %v1378_v51, %v1381_v53  ;;  %623 = vst.msk [vmem:[#allocation2 + $0x20] sm:$0xff] %vm612_vm1, %v1381_v53  ;;  %544 = vperm.xlu1 %1014, %v1381_v53  }
 0x155   : > { %v512_v49 = vmul.f32 1.442695, %v502_v54 }
 0x158   : > { %v485_v56 = vpop.xlane.xlu2 %484 }
 0x159   : > { %v1391_v57 = vmax.f32 %v1388_v55, %v485_v56 }
 0x15b   : > { %v503_v58 = vsub.f32 %v1388_v55, %v1391_v57  ;;  %624 = vst.msk [vmem:[#allocation2 + $0x28] sm:$0xff] %vm612_vm1, %v1391_v57  ;;  %549 = vperm.xlu2 %1013, %v1391_v57   ;;  %v497_v57 = vld [vmem:[#allocation3 + $0x28] sm:$0xff] }
 0x15d   : > { %v514_v35 = vmul.f32 1.442695, %v503_v58 }
 0x19d   : > { %v535_v59 = vpop.permute.xlu2 %534 }
 0x19e   : > { %v556_v60 = vsub.f32 %v1298_v5, %v535_v59  ;;  %v557_v61 = vsub.f32 %v1300_v7, %v535_v59 }
 0x1a0   : > { %v572_v62 = vmul.f32 1.442695, %v556_v60  ;;  %v574_v0 = vmul.f32 1.442695, %v557_v61 }
 0x1a2   : > { %1015 = vpow2.f32 %v572_v62 }
 0x1a3   : > { %1017 = vpow2.f32 %v574_v0  ;;  %v508_v0 = vmul.f32 1.442695, %v500_v44  ;;  %v492_v44 = vld [vmem:[#allocation3] sm:$0xff] }
 0x1a5   : > { %v540_v6 = vpop.permute.xlu2 %539 }
 0x1a6   : > { %v558_v13 = vsub.f32 %v1314_v17, %v540_v6  ;;  %v559_v7 = vsub.f32 %v1316_v19, %v540_v6  ;;  %v504_v6 = vmul.f32 1.442695, %v498_v38 }
 0x1a8   : > { %v1016_v2 = vpop.eup %1015  ;;  %v576_v15 = vmul.f32 1.442695, %v558_v13  ;;  %v578_v16 = vmul.f32 1.442695, %v559_v7 }
 0x1a9   : > { %v1018_v3 = vpop.eup %1017 }
 0x1aa   : > { %v594_v4 = vadd.f32 %v1018_v3, %v1016_v2 }
 0x1ac   : > { %595 = vadd.xlane.f32.xlu2 %v594_v4 }
 0x1af   : > { %v525_v8 = vpop.permute.xlu0 %524 }
 0x1b0   : > { %v552_v10 = vsub.f32 %v1290_v63, %v525_v8  ;;  %v553_v11 = vsub.f32 %v1292_v1, %v525_v8  ;;  %v506_v8 = vmul.f32 1.442695, %v499_v46 }
 0x1b2   : > { %v564_v14 = vmul.f32 1.442695, %v552_v10  ;;  %v566_v5 = vmul.f32 1.442695, %v553_v11 }
 0x1b4   : > { %1019 = vpow2.f32 %v564_v14 }
 0x1b5   : > { %1021 = vpow2.f32 %v566_v5  ;;  %v550_v18 = vpop.permute.xlu2 %549 }
 0x1b6   : > { %1023 = vpow2.f32 %v576_v15  ;;  %v562_v63 = vsub.f32 %v1330_v29, %v550_v18  ;;  %v563_v19 = vsub.f32 %v1332_v31, %v550_v18 }
 0x1b7   : > { %v530_v20 = vpop.permute.xlu1 %529  ;;  %1025 = vpow2.f32 %v578_v16 }
 0x1b8   : > { %v554_v21 = vsub.f32 %v1302_v9, %v530_v20  ;;  %v555_v22 = vsub.f32 %v1306_v12, %v530_v20  ;;  %v584_v28 = vmul.f32 1.442695, %v562_v63  ;;  %v586_v30 = vmul.f32 1.442695, %v563_v19  ;;  %v496_v20 = vld [vmem:[#allocation3 + $0x20] sm:$0xff] }
 0x1ba   : > { %v1020_v24 = vpop.eup %1019  ;;  %v568_v1 = vmul.f32 1.442695, %v554_v21  ;;  %v570_v17 = vmul.f32 1.442695, %v555_v22 }
 0x1bb   : > { %v1022_v26 = vpop.eup %1021 }
 0x1bc   : > { %1027 = vpow2.f32 %v568_v1  ;;  %v588_v27 = vadd.f32 %v1022_v26, %v1020_v24  ;;  %v1024_v32 = vpop.eup %1023 }
 0x1bd   : > { %1029 = vpow2.f32 %v570_v17  ;;  %v1026_v9 = vpop.eup %1025 }
 0x1be   : > { %589 = vadd.xlane.f32.xlu1 %v588_v27  ;;  %1031 = vpow2.f32 %v584_v28  ;;  %v597_v29 = vadd.f32 %v1026_v9, %v1024_v32 }
 0x1bf   : > { %1033 = vpow2.f32 %v586_v30 }
 0x1c2   : > { %v1028_v33 = vpop.eup %1027 }
 0x1c3   : > { %v1030_v12 = vpop.eup %1029 }
 0x1c4   : > { %v591_v34 = vadd.f32 %v1030_v12, %v1028_v33  ;;  %v1032_v43 = vpop.eup %1031 }
 0x1c5   : > { %v545_v36 = vpop.permute.xlu1 %544  ;;  %v1034_v56 = vpop.eup %1033 }
 0x1c6   : > { %592 = vadd.xlane.f32.xlu0 %v591_v34  ;;  %v560_v40 = vsub.f32 %v1322_v23, %v545_v36  ;;  %v561_v31 = vsub.f32 %v1324_v25, %v545_v36  ;;  %598 = vadd.xlane.f32.xlu1 %v597_v29  ;;  %v603_v59 = vadd.f32 %v1034_v56, %v1032_v43  ;;  %v494_v25 = vld [vmem:[#allocation3 + $0x10] sm:$0xff] }
 0x1c8   : > { %v580_v48 = vmul.f32 1.442695, %v560_v40  ;;  %v582_v52 = vmul.f32 1.442695, %v561_v31 }
 0x1ca   : > { %1035 = vpow2.f32 %v580_v48 }
 0x1cb   : > { %1037 = vpow2.f32 %v582_v52 }
 0x1cc   : > { %1039 = vpow2.f32 %v508_v0 }
 0x1cd   : > { %1041 = vpow2.f32 %v504_v6 }
 0x1ce   : > { %604 = vadd.xlane.f32.xlu0 %v603_v59  ;;  %1043 = vpow2.f32 %v506_v8 }
 0x1cf   : > { %1045 = vpow2.f32 %v510_v39 }
 0x1d0   : > { %v1036_v60 = vpop.eup %1035  ;;  %1047 = vpow2.f32 %v514_v35 }
 0x1d1   : > { %v1038_v61 = vpop.eup %1037  ;;  %1049 = vpow2.f32 %v512_v49 }
 0x1d2   : > { %v600_v62 = vadd.f32 %v1038_v61, %v1036_v60  ;;  %v1040_v23 = vpop.eup %1039 }
 0x1d3   : > { %v518_v2 = vmul.f32 %v1040_v23, %v494_v25  ;;  %v1042_v42 = vpop.eup %1041 }
 0x1d4   : > { %601 = vadd.xlane.f32.xlu2 %v600_v62  ;;  %v516_v10 = vmul.f32 %v1042_v42, %v492_v44  ;;  %v1044_v37 = vpop.eup %1043 }
 0x1d5   : > { %v1046_v38 = vpop.eup %1045  ;;  %v517_v47 = vmul.f32 %v1044_v37, %v493_v45 }
 0x1d6   : > { %v519_v46 = vmul.f32 %v1046_v38, %v495_v41  ;;  %v1048_v55 = vpop.eup %1047 }
 0x1d7   : > { %v521_v58 = vmul.f32 %v1048_v55, %v497_v57  ;;  %v1050_v18 = vpop.eup %1049 }
 0x1d8   : > { %v520_v51 = vmul.f32 %v1050_v18, %v496_v20 }
 0x21f   : > { %v596_v3 = vpop.xlane.xlu2 %595 }
 0x220   : > { %v608_v4 = vadd.f32 %v596_v3, %v518_v2 }
 0x222   : > { %615 = vst.msk [vmem:[#allocation3 + $0x10] sm:$0xff] %vm612_vm1, %v608_v4 }
 0x231   : > { %v590_v11 = vpop.xlane.xlu1 %589 }
 0x232   : > { %v606_v13 = vadd.f32 %v590_v11, %v516_v10 }
 0x234   : > { %613 = vst.msk [vmem:[#allocation3] sm:$0xff] %vm612_vm1, %v606_v13 }
 0x239   : > { %v599_v50 = vpop.xlane.xlu1 %598  ;;  %v593_v14 = vpop.xlane.xlu0 %592 }
 0x23a   : > { %v609_v5 = vadd.f32 %v599_v50, %v519_v46  ;;  %v607_v7 = vadd.f32 %v593_v14, %v517_v47 }
 0x23c   : > { %616 = vst.msk [vmem:[#allocation3 + $0x18] sm:$0xff] %vm612_vm1, %v609_v5 }
 0x23d   : > { %614 = vst.msk [vmem:[#allocation3 + $0x8] sm:$0xff] %vm612_vm1, %v607_v7 }
 0x241   : > { %v605_v15 = vpop.xlane.xlu0 %604 }
 0x242   : > { %v611_v16 = vadd.f32 %v605_v15, %v521_v58 }
 0x244   : > { %618 = vst.msk [vmem:[#allocation3 + $0x28] sm:$0xff] %vm612_vm1, %v611_v16 }
 0x247   : > { %v602_v53 = vpop.xlane.xlu2 %601 }
 0x248   : > { %v610_v54 = vadd.f32 %v602_v53, %v520_v51 }
 0x24a   : > { %617 = vst.msk [vmem:[#allocation3 + $0x20] sm:$0xff] %vm612_vm1, %v610_v54 }
 0x24b PF: > { %p932_p6 = scmp.ne.s32.totalorder %s1112_s12, 1 }
 0x24d   : > { %628 = sbr.rel (%p932_p6) target bundleno = 735 (0x2df), region = 44 }
 0x252   : > { %v637_v21 = vld [vmem:[#allocation3 + $0x10] sm:$0xff]  ;;  %v1125_v22 = vmov 0   ;;  %v635_v24 = vld [vmem:[#allocation3] sm:$0xff]  ;;  %v638_v63 = vld [vmem:[#allocation3 + $0x18] sm:$0xff] }
 0x253   : > { %1052 = vset.pattern.permute.xlu1 %v1125_v22  ;;  %1051 = vset.pattern.permute.xlu0 %v1125_v22  ;;  %1054 = vlog2.f32 %v637_v21  ;;  %v636_v1 = vld [vmem:[#allocation3 + $0x8] sm:$0xff]  ;;  %v639_v17 = vld [vmem:[#allocation3 + $0x20] sm:$0xff]  ;;  %v629_v32 = vld [vmem:[#allocation2] sm:$0xff] }
 0x254   : > { %1056 = vlog2.f32 %v635_v24  ;;  %1053 = vset.pattern.permute.xlu2 %v1125_v22  ;;  %v640_v26 = vld [vmem:[#allocation3 + $0x28] sm:$0xff]  ;;  %v631_v27 = vld [vmem:[#allocation2 + $0x10] sm:$0xff]  ;;  %v633_v40 = vld [vmem:[#allocation2 + $0x20] sm:$0xff] }
 0x255   : > { %1058 = vlog2.f32 %v638_v63  ;;  %v632_v52 = vld [vmem:[#allocation2 + $0x18] sm:$0xff]  ;;  %v630_v59 = vld [vmem:[#allocation2 + $0x8] sm:$0xff]  ;;  %v667_v42 = vld [vmem:[#allocation4 + $0x20] sm:$0xff] }
 0x256   : > { %1060 = vlog2.f32 %v636_v1  ;;  %v634_v23 = vld [vmem:[#allocation2 + $0x28] sm:$0xff]  ;;  %v666_v2 = vld [vmem:[#allocation4 + $0x18] sm:$0xff]  ;;  %v678_v44 = vunpack.c.l.bf16 %v667_v42  ;;  %v679_v10 = vunpack.c.h.bf16 %v667_v42  ;;  %v665_v57 = vld [vmem:[#allocation4] sm:$0xff] }
 0x257   : > { %1062 = vlog2.f32 %v639_v17  ;;  %v676_v3 = vunpack.c.l.bf16 %v666_v2  ;;  %v677_v4 = vunpack.c.h.bf16 %v666_v2  ;;  %v664_v37 = vld [vmem:[#allocation4 + $0x8] sm:$0xff]  ;;  %v663_v58 = vld [vmem:[#allocation4 + $0x10] sm:$0xff]  ;;  %v674_v15 = vunpack.c.l.bf16 %v665_v57 }
 0x258   : > { %1064 = vlog2.f32 %v640_v26  ;;  %v662_v38 = vld [vmem:[#allocation4 + $0x28] sm:$0xff]  ;;  %v672_v41 = vunpack.c.l.bf16 %v664_v37  ;;  %v673_v45 = vunpack.c.h.bf16 %v664_v37  ;;  %v675_v16 = vunpack.c.h.bf16 %v665_v57 }
 0x259   : > { %v1055_v19 = vpop.eup %1054  ;;  %v668_v46 = vunpack.c.l.bf16 %v662_v38  ;;  %v669_v47 = vunpack.c.h.bf16 %v662_v38  ;;  %v670_v18 = vunpack.c.l.bf16 %v663_v58  ;;  %v671_v20 = vunpack.c.h.bf16 %v663_v58 }
 0x25a   : > { %v1057_v28 = vpop.eup %1056  ;;  %v646_v30 = vmul.f32 0.6931472, %v1055_v19 }
 0x25b   : > { %v1059_v9 = vpop.eup %1058  ;;  %v642_v33 = vmul.f32 0.6931472, %v1057_v28 }
 0x25c   : > { %v1061_v12 = vpop.eup %1060  ;;  %v655_v34 = vadd.f32 %v646_v30, %v631_v27  ;;  %v648_v31 = vmul.f32 0.6931472, %v1059_v9 }
 0x25d   : > { %v1063_v29 = vpop.eup %1062  ;;  %v653_v36 = vadd.f32 %v642_v33, %v629_v32  ;;  %v644_v56 = vmul.f32 0.6931472, %v1061_v12 }
 0x25e   : > { %692 = vperm.xlu1 %1052, %v655_v34   ;;  %v650_v43 = vmul.f32 0.6931472, %v1063_v29  ;;  %v1065_v48 = vpop.eup %1064  ;;  %v656_v61 = vadd.f32 %v648_v31, %v632_v52 }
 0x25f   : > { %682 = vperm.xlu0 %1051, %v653_v36   ;;  %v652_v62 = vmul.f32 0.6931472, %v1065_v48  ;;  %v654_v0 = vadd.f32 %v644_v56, %v630_v59 }
 0x260   : > { %v657_v60 = vadd.f32 %v650_v43, %v633_v40 }
 0x261   : > { %v658_v25 = vadd.f32 %v652_v62, %v634_v23 }
 0x262   : > { %702 = vperm.xlu2 %1053, %v657_v60  }
 0x266   : > { %697 = vperm.xlu1 %1052, %v656_v61  }
 0x267   : > { %687 = vperm.xlu0 %1051, %v654_v0  }
 0x26a   : > { %707 = vperm.xlu2 %1053, %v658_v25  }
 0x2bc   : > { %v703_v6 = vpop.permute.xlu2 %702 }
 0x2bd   : > { %v718_v8 = vsub.f32 %v676_v3, %v703_v6  ;;  %v719_v39 = vsub.f32 %v677_v4, %v703_v6 }
 0x2bf   : > { %730 = vst [vmem:[#allocation5 + $0x40] sm:$0xff] %v718_v8 }
 0x2c0   : > { %731 = vst [vmem:[#allocation5 + $0x48] sm:$0xff] %v719_v39 }
 0x2c4   : > { %v708_v11 = vpop.permute.xlu2 %707 }
 0x2c5   : > { %v720_v13 = vsub.f32 %v678_v44, %v708_v11  ;;  %v721_v35 = vsub.f32 %v679_v10, %v708_v11 }
 0x2c7   : > { %732 = vst [vmem:[#allocation5 + $0x50] sm:$0xff] %v720_v13 }
 0x2c8   : > { %733 = vst [vmem:[#allocation5 + $0x58] sm:$0xff] %v721_v35 }
 0x2d0   : > { %v693_v49 = vpop.permute.xlu1 %692 }
 0x2d1   : > { %v714_v50 = vsub.f32 %v672_v41, %v693_v49  ;;  %v715_v14 = vsub.f32 %v673_v45, %v693_v49  ;;  %v683_v5 = vpop.permute.xlu0 %682 }
 0x2d2   : > { %v710_v7 = vsub.f32 %v668_v46, %v683_v5  ;;  %v711_v55 = vsub.f32 %v669_v47, %v683_v5 }
 0x2d3   : > { %726 = vst [vmem:[#allocation5 + $0x20] sm:$0xff] %v714_v50 }
 0x2d4   : > { %727 = vst [vmem:[#allocation5 + $0x28] sm:$0xff] %v715_v14 }
 0x2d5   : > { %722 = vst [vmem:[#allocation5] sm:$0xff] %v710_v7 }
 0x2d6   : > { %723 = vst [vmem:[#allocation5 + $0x8] sm:$0xff] %v711_v55 }
 0x2d8   : > { %v698_v51 = vpop.permute.xlu1 %697 }
 0x2d9   : > { %v716_v53 = vsub.f32 %v674_v15, %v698_v51  ;;  %v717_v54 = vsub.f32 %v675_v16, %v698_v51  ;;  %v688_v21 = vpop.permute.xlu0 %687 }
 0x2da   : > { %v712_v22 = vsub.f32 %v670_v18, %v688_v21  ;;  %v713_v24 = vsub.f32 %v671_v20, %v688_v21 }
 0x2db   : > { %728 = vst [vmem:[#allocation5 + $0x30] sm:$0xff] %v716_v53 }
 0x2dc   : > { %729 = vst [vmem:[#allocation5 + $0x38] sm:$0xff] %v717_v54 }
 0x2dd   : > { %724 = vst [vmem:[#allocation5 + $0x10] sm:$0xff] %v712_v22 }
 0x2de   : > { %725 = vst [vmem:[#allocation5 + $0x18] sm:$0xff] %v713_v24 }
 0x2df PF: > { %p978_p7 = scmp.eq.s32.totalorder %s858_s15, 1  ;;  %s753_s7 = sshll.u32 %s1455_s3, 4  ;;  %s754_s7 = int_to_ptr.hbm [resolvable:$true] %s753_s7 }
 0x2e0   : > { %s1126_s8 = smov [#allocation5]   ;;  %s1127_s10 = smov 256  }
 0x2e1   : > { %s751_s9 = sshll.u32 %s1126_s8, 4  ;;  %s1128_s11 = smov 16   ;;  %s752_s9 = int_to_ptr.vmem [resolvable:$true] %s751_s9 }
 0x2e2   : > { %971 = dma.vmem_to_hbm [thread:$0]  (%p978_p7), %s752_s9, 1536, %s754_s7, [#allocation6], %s1127_s10, %s1127_s10, %s1128_s11  }
 0x2e3 PF: > { %p979_p8 = scmp.ge.s32.totalorder %s1120_s14, 2  ;;  %p980_p9 = scmp.eq.s32.totalorder %s859_s16, 1 }
 0x2e5   : > { %p975_p10 = pnand %p980_p9, %p979_p8 }
 0x2e7   : > { %p976_p11 = pneg %p975_p10 }
 0x2e9   : > { %1107 = dma.done.wait (%p976_p11), [#allocation6], 1536  }
 0x2ea   : > { %1109 = vsyncadd (%p976_p11), [#allocation6], 4294965760  ;;  %s16_s14 = sadd.s32 1, %s1120_s14   ;;  %s1456_s12 = smov %s1116_s13 }
 0x2eb   : > { %p13_p12 = scmp.ge.s32.totalorder %s16_s14, 4   ;;  %s1457_s13 = smov %s1459_s17 }
 0x2ed   :  { %15 = sbr.rel (!%p13_p12) target bundleno = 3 (0x3), region = 87 }
 0x2f2   :  { %775 = vsyncpa [#allocation6], 1 }
 0x2f3   :  { %777 = vsyncpa [#allocation6 + $0x1], 1 }

// kernel: rnn_model_forward.2
= control target key start
LH: loop header
LB: loop body
LE: loop exit
PB: predicated region body
PF: predicated region fallthrough
CT: control target
= control target key end

     0   :  { %17 = vsyncpa [#allocation5], 0  ;;  %s10299_s0 = inlined_call_operand.vmem [shape: f32[48,128], index: 0, kind: input, shape index: {}]   ;;  %s10300_s1 = inlined_call_operand.vmem [shape: bf16[128,512], index: 1, kind: input, shape index: {}]   ;;  %s10301_s2 = inlined_call_operand.vmem [shape: bf16[128,512], index: 2, kind: input, shape index: {}]   ;;  %s10302_s3 = inlined_call_operand.vmem [shape: f32[1,512], index: 3, kind: input, shape index: {}]   ;;  %s10303_s4 = inlined_call_operand.vmem [shape: bf16[128,512], index: 4, kind: input, shape index: {}]   ;;  %s10304_s5 = inlined_call_operand.vmem [shape: bf16[128,512], index: 5, kind: input, shape index: {}]   ;;  %s10305_s6 = inlined_call_operand.vmem [shape: f32[1,512], index: 6, kind: input, shape index: {}]   ;;  %s10306_s7 = inlined_call_operand.vmem [shape: f32[2,8,128], index: 7, kind: input, shape index: {}]   ;;  %s10307_s8 = inlined_call_operand.vmem [shape: f32[2,8,128], index: 8, kind: input, shape index: {}]   ;;  %s10308_s9 = inlined_call_operand.vmem [shape: f32[48,128], index: 9, kind: output, shape index: {0}]   ;;  %s10309_s10 = inlined_call_operand.hbm [shape: f32[2,8,128], index: 10, kind: output, shape index: {1}]   ;;  %s10310_s11 = inlined_call_operand.hbm [shape: f32[2,8,128], index: 11, kind: output, shape index: {2}]  }
   0x1   :  { %v4702_v0 = vld [vmem:[%s10300_s1 + $0xe0] sm:$0xf]  ;;  %v6453_v1 = vld [vmem:[%s10300_s1 + $0xec] sm:$0xf0]  ;;  %v6451_v2 = vld [vmem:[%s10300_s1 + $0xe4] sm:$0xf] }
   0x2   :  { %v4703_v3 = vor.u32 %v6453_v1, %v4702_v0  ;;  %v4704_v4 = vld [vmem:[%s10300_s1 + $0xf0] sm:$0xf0]  ;;  %v4710_v5 = vld [vmem:[%s10300_s1 + $0xe8] sm:$0xf]  ;;  %v6454_v6 = vld [vmem:[%s10300_s1 + $0xf4] sm:$0xf0] }
   0x3   :  { %v4707_v7 = vor.u32 %v6451_v2, %v4704_v4  ;;  %v4711_v8 = vor.u32 %v6454_v6, %v4710_v5  ;;  %v6452_v9 = vld [vmem:[%s10300_s1 + $0xec] sm:$0xf]  ;;  %v4712_v10 = vld [vmem:[%s10300_s1 + $0xf8] sm:$0xf0]  ;;  %v4686_v11 = vld [vmem:[%s10300_s1 + $0xc0] sm:$0xf] }
   0x4   :  { %248 = vmatpush.bf16.msra.mxu0 %v4703_v3  ;;  %v4715_v12 = vor.u32 %v6452_v9, %v4712_v10  ;;  %v6449_v13 = vld [vmem:[%s10300_s1 + $0xcc] sm:$0xf0]  ;;  %v6447_v14 = vld [vmem:[%s10300_s1 + $0xc4] sm:$0xf]  ;;  %v4688_v15 = vld [vmem:[%s10300_s1 + $0xd0] sm:$0xf0] }
   0x5   :  { %272 = vmatpush.bf16.msra.mxu1 %v4707_v7  ;;  %296 = vmatpush.bf16.msra.mxu2 %v4711_v8  ;;  %v4687_v16 = vor.u32 %v6449_v13, %v4686_v11  ;;  %v4691_v17 = vor.u32 %v6447_v14, %v4688_v15  ;;  %v4694_v18 = vld [vmem:[%s10300_s1 + $0xc8] sm:$0xf]  ;;  %v6450_v19 = vld [vmem:[%s10300_s1 + $0xd4] sm:$0xf0]  ;;  %v6448_v20 = vld [vmem:[%s10300_s1 + $0xcc] sm:$0xf] }
   0x6   :  { %320 = vmatpush.bf16.msra.mxu3 %v4715_v12  ;;  %v4695_v21 = vor.u32 %v6450_v19, %v4694_v18  ;;  %v4696_v22 = vld [vmem:[%s10300_s1 + $0xd8] sm:$0xf0]  ;;  %v4670_v23 = vld [vmem:[%s10300_s1 + $0xa0] sm:$0xf]  ;;  %v6445_v24 = vld [vmem:[%s10300_s1 + $0xac] sm:$0xf0] }
   0x7   :  { %v4699_v25 = vor.u32 %v6448_v20, %v4696_v22  ;;  %v6443_v26 = vld [vmem:[%s10300_s1 + $0xa4] sm:$0xf]  ;;  %v4672_v27 = vld [vmem:[%s10300_s1 + $0xb0] sm:$0xf0]  ;;  %v4678_v28 = vld [vmem:[%s10300_s1 + $0xa8] sm:$0xf]  ;;  %v4671_v29 = vor.u32 %v6445_v24, %v4670_v23 }
   0x8   :  { %249 = vmatpush.bf16.msra.mxu0 %v4687_v16  ;;  %v6446_v30 = vld [vmem:[%s10300_s1 + $0xb4] sm:$0xf0]  ;;  %v6444_v31 = vld [vmem:[%s10300_s1 + $0xac] sm:$0xf]  ;;  %v4680_v32 = vld [vmem:[%s10300_s1 + $0xb8] sm:$0xf0]  ;;  %v4675_v33 = vor.u32 %v6443_v26, %v4672_v27 }
   0x9   :  { %273 = vmatpush.bf16.msra.mxu1 %v4691_v17  ;;  %297 = vmatpush.bf16.msra.mxu2 %v4695_v21  ;;  %v4679_v34 = vor.u32 %v6446_v30, %v4678_v28  ;;  %v4654_v35 = vld [vmem:[%s10300_s1 + $0x80] sm:$0xf]  ;;  %v6441_v36 = vld [vmem:[%s10300_s1 + $0x8c] sm:$0xf0]  ;;  %v6439_v37 = vld [vmem:[%s10300_s1 + $0x84] sm:$0xf]  ;;  %v4683_v38 = vor.u32 %v6444_v31, %v4680_v32 }
   0xa   :  { %321 = vmatpush.bf16.msra.mxu3 %v4699_v25  ;;  %v4656_v39 = vld [vmem:[%s10300_s1 + $0x90] sm:$0xf0]  ;;  %v4662_v40 = vld [vmem:[%s10300_s1 + $0x88] sm:$0xf]  ;;  %v6442_v41 = vld [vmem:[%s10300_s1 + $0x94] sm:$0xf0]  ;;  %v4655_v44 = vor.u32 %v6441_v36, %v4654_v35 }
   0xb   :  { %v6440_v42 = vld [vmem:[%s10300_s1 + $0x8c] sm:$0xf]  ;;  %v4664_v43 = vld [vmem:[%s10300_s1 + $0x98] sm:$0xf0]  ;;  %v4659_v45 = vor.u32 %v6439_v37, %v4656_v39  ;;  %v4663_v46 = vor.u32 %v6442_v41, %v4662_v40  ;;  %v4638_v47 = vld [vmem:[%s10300_s1 + $0x60] sm:$0xf] }
   0xc   :  { %250 = vmatpush.bf16.msra.mxu0 %v4671_v29  ;;  %v6437_v48 = vld [vmem:[%s10300_s1 + $0x6c] sm:$0xf0]  ;;  %v6435_v49 = vld [vmem:[%s10300_s1 + $0x64] sm:$0xf]  ;;  %v4667_v50 = vor.u32 %v6440_v42, %v4664_v43  ;;  %v4640_v51 = vld [vmem:[%s10300_s1 + $0x70] sm:$0xf0] }
   0xd   :  { %274 = vmatpush.bf16.msra.mxu1 %v4675_v33  ;;  %298 = vmatpush.bf16.msra.mxu2 %v4679_v34  ;;  %v4646_v52 = vld [vmem:[%s10300_s1 + $0x68] sm:$0xf]  ;;  %v6438_v53 = vld [vmem:[%s10300_s1 + $0x74] sm:$0xf0]  ;;  %v6436_v54 = vld [vmem:[%s10300_s1 + $0x6c] sm:$0xf]  ;;  %v4639_v56 = vor.u32 %v6437_v48, %v4638_v47  ;;  %v4643_v57 = vor.u32 %v6435_v49, %v4640_v51 }
   0xe   :  { %322 = vmatpush.bf16.msra.mxu3 %v4683_v38  ;;  %v4648_v55 = vld [vmem:[%s10300_s1 + $0x78] sm:$0xf0]  ;;  %v4647_v58 = vor.u32 %v6438_v53, %v4646_v52  ;;  %v4622_v59 = vld [vmem:[%s10300_s1 + $0x40] sm:$0xf]  ;;  %v6433_v60 = vld [vmem:[%s10300_s1 + $0x4c] sm:$0xf0] }
   0xf   :  { %v6431_v61 = vld [vmem:[%s10300_s1 + $0x44] sm:$0xf]  ;;  %v4651_v62 = vor.u32 %v6436_v54, %v4648_v55  ;;  %v4624_v63 = vld [vmem:[%s10300_s1 + $0x50] sm:$0xf0]  ;;  %v4630_v0 = vld [vmem:[%s10300_s1 + $0x48] sm:$0xf]  ;;  %v4623_v4 = vor.u32 %v6433_v60, %v4622_v59 }
  0x10   :  { %251 = vmatpush.bf16.msra.mxu0 %v4655_v44  ;;  %v6434_v1 = vld [vmem:[%s10300_s1 + $0x54] sm:$0xf0]  ;;  %v6432_v2 = vld [vmem:[%s10300_s1 + $0x4c] sm:$0xf]  ;;  %v4632_v3 = vld [vmem:[%s10300_s1 + $0x58] sm:$0xf0]  ;;  %v4627_v5 = vor.u32 %v6431_v61, %v4624_v63 }
  0x11   :  { %275 = vmatpush.bf16.msra.mxu1 %v4659_v45  ;;  %299 = vmatpush.bf16.msra.mxu2 %v4663_v46  ;;  %v4631_v6 = vor.u32 %v6434_v1, %v4630_v0  ;;  %v4606_v7 = vld [vmem:[%s10300_s1 + $0x20] sm:$0xf]  ;;  %v6429_v8 = vld [vmem:[%s10300_s1 + $0x2c] sm:$0xf0]  ;;  %v6427_v9 = vld [vmem:[%s10300_s1 + $0x24] sm:$0xf]  ;;  %v4635_v10 = vor.u32 %v6432_v2, %v4632_v3 }
  0x12   :  { %323 = vmatpush.bf16.msra.mxu3 %v4667_v50  ;;  %v4608_v11 = vld [vmem:[%s10300_s1 + $0x30] sm:$0xf0]  ;;  %v4614_v12 = vld [vmem:[%s10300_s1 + $0x28] sm:$0xf]  ;;  %v6430_v13 = vld [vmem:[%s10300_s1 + $0x34] sm:$0xf0]  ;;  %v4607_v16 = vor.u32 %v6429_v8, %v4606_v7 }
  0x13   :  { %v6428_v14 = vld [vmem:[%s10300_s1 + $0x2c] sm:$0xf]  ;;  %v4616_v15 = vld [vmem:[%s10300_s1 + $0x38] sm:$0xf0]  ;;  %v4590_v17 = vld [vmem:[%s10300_s1] sm:$0xf]  ;;  %v4611_v19 = vor.u32 %v6427_v9, %v4608_v11  ;;  %v4615_v20 = vor.u32 %v6430_v13, %v4614_v12 }
  0x14   :  { %252 = vmatpush.bf16.msra.mxu0 %v4639_v56  ;;  %v6425_v18 = vld [vmem:[%s10300_s1 + $0xc] sm:$0xf0]  ;;  %v6423_v21 = vld [vmem:[%s10300_s1 + $0x4] sm:$0xf]  ;;  %v4592_v22 = vld [vmem:[%s10300_s1 + $0x10] sm:$0xf0]  ;;  %v4619_v24 = vor.u32 %v6428_v14, %v4616_v15 }
  0x15   :  { %276 = vmatpush.bf16.msra.mxu1 %v4643_v57  ;;  %300 = vmatpush.bf16.msra.mxu2 %v4647_v58  ;;  %v4598_v23 = vld [vmem:[%s10300_s1 + $0x8] sm:$0xf]  ;;  %v6426_v25 = vld [vmem:[%s10300_s1 + $0x14] sm:$0xf0]  ;;  %v6424_v26 = vld [vmem:[%s10300_s1 + $0xc] sm:$0xf]  ;;  %v4591_v31 = vor.u32 %v6425_v18, %v4590_v17  ;;  %v4595_v35 = vor.u32 %v6423_v21, %v4592_v22 }
  0x16   :  { %324 = vmatpush.bf16.msra.mxu3 %v4651_v62  ;;  %v4600_v27 = vld [vmem:[%s10300_s1 + $0x18] sm:$0xf0]  ;;  %v37_v28 = vld [vmem:[%s10299_s0] sm:$0xff]  ;;  %v6485_v30 = vld [vmem:[%s10301_s2 + $0xec] sm:$0xf0]  ;;  %v4599_v36 = vor.u32 %v6426_v25, %v4598_v23 }
  0x17   :  { %v4830_v29 = vld [vmem:[%s10301_s2 + $0xe0] sm:$0xf]  ;;  %v38_v32 = vld [vmem:[%s10299_s0 + $0x8] sm:$0xff]  ;;  %v6483_v33 = vld [vmem:[%s10301_s2 + $0xe4] sm:$0xf]  ;;  %v4603_v37 = vor.u32 %v6424_v26, %v4600_v27 }
  0x18   :  { %253 = vmatpush.bf16.msra.mxu0 %v4623_v4  ;;  %v4832_v34 = vld [vmem:[%s10301_s2 + $0xf0] sm:$0xf0]  ;;  %v4831_v38 = vor.u32 %v6485_v30, %v4830_v29  ;;  %v6484_v39 = vld [vmem:[%s10301_s2 + $0xec] sm:$0xf]  ;;  %v4838_v40 = vld [vmem:[%s10301_s2 + $0xe8] sm:$0xf]  ;;  %v43_v42 = vpack.c.bf16 %v38_v32, %v37_v28 }
  0x19   :  { %277 = vmatpush.bf16.msra.mxu1 %v4627_v5  ;;  %301 = vmatpush.bf16.msra.mxu2 %v4631_v6  ;;  %v6486_v41 = vld [vmem:[%s10301_s2 + $0xf4] sm:$0xf0]  ;;  %v4835_v43 = vor.u32 %v6483_v33, %v4832_v34  ;;  %v4840_v44 = vld [vmem:[%s10301_s2 + $0xf8] sm:$0xf0]  ;;  %v4814_v45 = vld [vmem:[%s10301_s2 + $0xc0] sm:$0xf] }
  0x1a   :  { %325 = vmatpush.bf16.msra.mxu3 %v4635_v10  ;;  %v6481_v46 = vld [vmem:[%s10301_s2 + $0xcc] sm:$0xf0]  ;;  %v6479_v47 = vld [vmem:[%s10301_s2 + $0xc4] sm:$0xf]  ;;  %v4816_v48 = vld [vmem:[%s10301_s2 + $0xd0] sm:$0xf0]  ;;  %v4839_v49 = vor.u32 %v6486_v41, %v4838_v40  ;;  %v4843_v50 = vor.u32 %v6484_v39, %v4840_v44 }
  0x1b   :  { %v4815_v51 = vor.u32 %v6481_v46, %v4814_v45  ;;  %v6480_v52 = vld [vmem:[%s10301_s2 + $0xcc] sm:$0xf]  ;;  %v4822_v53 = vld [vmem:[%s10301_s2 + $0xc8] sm:$0xf]  ;;  %v6482_v54 = vld [vmem:[%s10301_s2 + $0xd4] sm:$0xf0]  ;;  %v4819_v55 = vor.u32 %v6479_v47, %v4816_v48 }
  0x1c   :  { %254 = vmatpush.bf16.msra.mxu0 %v4607_v16  ;;  %v4824_v56 = vld [vmem:[%s10301_s2 + $0xd8] sm:$0xf0]  ;;  %v4798_v57 = vld [vmem:[%s10301_s2 + $0xa0] sm:$0xf]  ;;  %v6477_v58 = vld [vmem:[%s10301_s2 + $0xac] sm:$0xf0]  ;;  %v4823_v61 = vor.u32 %v6482_v54, %v4822_v53 }
  0x1d   :  { %278 = vmatpush.bf16.msra.mxu1 %v4611_v19  ;;  %302 = vmatpush.bf16.msra.mxu2 %v4615_v20  ;;  %v6475_v59 = vld [vmem:[%s10301_s2 + $0xa4] sm:$0xf]  ;;  %v4800_v60 = vld [vmem:[%s10301_s2 + $0xb0] sm:$0xf0]  ;;  %v4827_v62 = vor.u32 %v6480_v52, %v4824_v56  ;;  %v4799_v63 = vor.u32 %v6477_v58, %v4798_v57  ;;  %v6476_v0 = vld [vmem:[%s10301_s2 + $0xac] sm:$0xf] }
  0x1e   :  { %326 = vmatpush.bf16.msra.mxu3 %v4619_v24  ;;  %v4806_v1 = vld [vmem:[%s10301_s2 + $0xa8] sm:$0xf]  ;;  %v6478_v2 = vld [vmem:[%s10301_s2 + $0xb4] sm:$0xf0]  ;;  %v4803_v3 = vor.u32 %v6475_v59, %v4800_v60  ;;  %v4808_v4 = vld [vmem:[%s10301_s2 + $0xb8] sm:$0xf0] }
  0x1f   :  { %v4782_v5 = vld [vmem:[%s10301_s2 + $0x80] sm:$0xf]  ;;  %v6473_v6 = vld [vmem:[%s10301_s2 + $0x8c] sm:$0xf0]  ;;  %v6471_v7 = vld [vmem:[%s10301_s2 + $0x84] sm:$0xf]  ;;  %v4807_v9 = vor.u32 %v6478_v2, %v4806_v1  ;;  %v4811_v11 = vor.u32 %v6476_v0, %v4808_v4 }
  0x20   :  { %255 = vmatpush.bf16.msra.mxu0 %v4591_v31  ;;  %v4784_v8 = vld [vmem:[%s10301_s2 + $0x90] sm:$0xf0]  ;;  %v4783_v12 = vor.u32 %v6473_v6, %v4782_v5  ;;  %v6472_v13 = vld [vmem:[%s10301_s2 + $0x8c] sm:$0xf]  ;;  %v4790_v14 = vld [vmem:[%s10301_s2 + $0x88] sm:$0xf] }
  0x21   :  { %279 = vmatpush.bf16.msra.mxu1 %v4595_v35  ;;  %303 = vmatpush.bf16.msra.mxu2 %v4599_v36  ;;  %v39_v10 = vld [vmem:[%s10299_s0 + $0x10] sm:$0xff]  ;;  %v6474_v15 = vld [vmem:[%s10301_s2 + $0x94] sm:$0xf0]  ;;  %v4787_v16 = vor.u32 %v6471_v7, %v4784_v8  ;;  %v4792_v17 = vld [vmem:[%s10301_s2 + $0x98] sm:$0xf0] }
  0x22   :  { %327 = vmatpush.bf16.msra.mxu3 %v4603_v37  ;;  %v4766_v18 = vld [vmem:[%s10301_s2 + $0x60] sm:$0xf]  ;;  %v6469_v19 = vld [vmem:[%s10301_s2 + $0x6c] sm:$0xf0]  ;;  %v40_v20 = vld [vmem:[%s10299_s0 + $0x18] sm:$0xff]  ;;  %v4791_v23 = vor.u32 %v6474_v15, %v4790_v14  ;;  %v4795_v25 = vor.u32 %v6472_v13, %v4792_v17 }
  0x23   :  { %256 = vmatmul.bf16.vlgmr.msra.gmra.mxu0 %v43_v42  ;;  %v6467_v21 = vld [vmem:[%s10301_s2 + $0x64] sm:$0xf]  ;;  %v4768_v22 = vld [vmem:[%s10301_s2 + $0x70] sm:$0xf0]  ;;  %v6468_v24 = vld [vmem:[%s10301_s2 + $0x6c] sm:$0xf]  ;;  %v4767_v26 = vor.u32 %v6469_v19, %v4766_v18 }
  0x24   :  { %570 = vmatpush.bf16.msrb.mxu0 %v4831_v38  ;;  %280 = vmatmul.bf16.vlgmr.msra.gmra.mxu1 %v43_v42  ;;  %v4774_v27 = vld [vmem:[%s10301_s2 + $0x68] sm:$0xf]  ;;  %v6470_v28 = vld [vmem:[%s10301_s2 + $0x74] sm:$0xf0] }
  0x25   :  { %583 = vmatpush.bf16.msrb.mxu1 %v4835_v43  ;;  %304 = vmatmul.bf16.vlgmr.msra.gmra.mxu2 %v43_v42 }
  0x26   :  { %328 = vmatmul.bf16.vlgmr.msra.gmra.mxu3 %v43_v42  ;;  %596 = vmatpush.bf16.msrb.mxu2 %v4839_v49 }
  0x27   :  { %609 = vmatpush.bf16.msrb.mxu3 %v4843_v50 }
  0x28   :  { %571 = vmatpush.bf16.msrb.mxu0 %v4815_v51 }
  0x29   :  { %584 = vmatpush.bf16.msrb.mxu1 %v4819_v55 }
  0x2a   :  { %597 = vmatpush.bf16.msrb.mxu2 %v4823_v61 }
  0x2b   :  { %610 = vmatpush.bf16.msrb.mxu3 %v4827_v62 }
  0x2c   :  { %572 = vmatpush.bf16.msrb.mxu0 %v4799_v63 }
  0x2d   :  { %585 = vmatpush.bf16.msrb.mxu1 %v4803_v3 }
  0x2e   :  { %598 = vmatpush.bf16.msrb.mxu2 %v4807_v9 }
  0x2f   :  { %611 = vmatpush.bf16.msrb.mxu3 %v4811_v11 }
  0x30   :  { %573 = vmatpush.bf16.msrb.mxu0 %v4783_v12 }
  0x31   :  { %18 = vsyncpa [#allocation7], 0  ;;  %v44_v29 = vpack.c.bf16 %v40_v20, %v39_v10  ;;  %586 = vmatpush.bf16.msrb.mxu1 %v4787_v16  ;;  %v4771_v30 = vor.u32 %v6467_v21, %v4768_v22  ;;  %v4776_v31 = vld [vmem:[%s10301_s2 + $0x78] sm:$0xf0]  ;;  %v4750_v32 = vld [vmem:[%s10301_s2 + $0x40] sm:$0xf]  ;;  %v4775_v36 = vor.u32 %v6470_v28, %v4774_v27 }
  0x32   :  { %v6465_v33 = vld [vmem:[%s10301_s2 + $0x4c] sm:$0xf0]  ;;  %v6463_v34 = vld [vmem:[%s10301_s2 + $0x44] sm:$0xf]  ;;  %v4752_v35 = vld [vmem:[%s10301_s2 + $0x50] sm:$0xf0]  ;;  %599 = vmatpush.bf16.msrb.mxu2 %v4791_v23  ;;  %v4779_v37 = vor.u32 %v6468_v24, %v4776_v31 }
  0x33   :  { %612 = vmatpush.bf16.msrb.mxu3 %v4795_v25  ;;  %v4751_v38 = vor.u32 %v6465_v33, %v4750_v32  ;;  %v6464_v39 = vld [vmem:[%s10301_s2 + $0x4c] sm:$0xf]  ;;  %v4758_v40 = vld [vmem:[%s10301_s2 + $0x48] sm:$0xf]  ;;  %v6466_v41 = vld [vmem:[%s10301_s2 + $0x54] sm:$0xf0]  ;;  %261 = vmatmul.bf16.gmra.mxu0 %v44_v29  ;;  %v4755_v42 = vor.u32 %v6463_v34, %v4752_v35 }
  0x34   :  { %574 = vmatpush.bf16.msrb.mxu0 %v4767_v26  ;;  %v4760_v43 = vld [vmem:[%s10301_s2 + $0x58] sm:$0xf0]  ;;  %v4734_v44 = vld [vmem:[%s10301_s2 + $0x20] sm:$0xf]  ;;  %v6461_v45 = vld [vmem:[%s10301_s2 + $0x2c] sm:$0xf0]  ;;  %285 = vmatmul.bf16.gmra.mxu1 %v44_v29  ;;  %v4759_v48 = vor.u32 %v6466_v41, %v4758_v40 }
  0x35   :  { %587 = vmatpush.bf16.msrb.mxu1 %v4771_v30  ;;  %309 = vmatmul.bf16.gmra.mxu2 %v44_v29  ;;  %v6459_v46 = vld [vmem:[%s10301_s2 + $0x24] sm:$0xf]  ;;  %v4736_v47 = vld [vmem:[%s10301_s2 + $0x30] sm:$0xf0]  ;;  %v4763_v49 = vor.u32 %v6464_v39, %v4760_v43  ;;  %v4735_v50 = vor.u32 %v6461_v45, %v4734_v44  ;;  %v4742_v51 = vld [vmem:[%s10301_s2 + $0x28] sm:$0xf] }
  0x36   :  { %333 = vmatmul.bf16.gmra.mxu3 %v44_v29  ;;  %600 = vmatpush.bf16.msrb.mxu2 %v4775_v36  ;;  %v6462_v52 = vld [vmem:[%s10301_s2 + $0x34] sm:$0xf0]  ;;  %v6460_v53 = vld [vmem:[%s10301_s2 + $0x2c] sm:$0xf]  ;;  %v4739_v54 = vor.u32 %v6459_v46, %v4736_v47  ;;  %v4744_v55 = vld [vmem:[%s10301_s2 + $0x38] sm:$0xf0] }
  0x37   :  { %613 = vmatpush.bf16.msrb.mxu3 %v4779_v37  ;;  %v4718_v56 = vld [vmem:[%s10301_s2] sm:$0xf]  ;;  %v6457_v57 = vld [vmem:[%s10301_s2 + $0xc] sm:$0xf0]  ;;  %v6455_v58 = vld [vmem:[%s10301_s2 + $0x4] sm:$0xf]  ;;  %v4743_v60 = vor.u32 %v6462_v52, %v4742_v51  ;;  %v4747_v61 = vor.u32 %v6460_v53, %v4744_v55 }
  0x38   :  { %575 = vmatpush.bf16.msrb.mxu0 %v4751_v38  ;;  %v4720_v59 = vld [vmem:[%s10301_s2 + $0x10] sm:$0xf0]  ;;  %v4719_v62 = vor.u32 %v6457_v57, %v4718_v56  ;;  %v4726_v63 = vld [vmem:[%s10301_s2 + $0x8] sm:$0xf]  ;;  %v6458_v0 = vld [vmem:[%s10301_s2 + $0x14] sm:$0xf0] }
  0x39   :  { %588 = vmatpush.bf16.msrb.mxu1 %v4755_v42  ;;  %v4723_v1 = vor.u32 %v6455_v58, %v4720_v59  ;;  %v6456_v2 = vld [vmem:[%s10301_s2 + $0xc] sm:$0xf]  ;;  %v4728_v3 = vld [vmem:[%s10301_s2 + $0x18] sm:$0xf0]  ;;  %v41_v4 = vld [vmem:[%s10299_s0 + $0x20] sm:$0xff]  ;;  %v4727_v6 = vor.u32 %v6458_v0, %v4726_v63  ;;  %s4564_s28 = sshll.u32 %s10310_s11, 4  ;;  %s4565_s28 = int_to_ptr.hbm [resolvable:$true] %s4564_s28 }
  0x3a   :  { %601 = vmatpush.bf16.msrb.mxu2 %v4759_v48  ;;  %v42_v5 = vld [vmem:[%s10299_s0 + $0x28] sm:$0xff]  ;;  %v4731_v7 = vor.u32 %v6456_v2, %v4728_v3  ;;  %v368_v9 = vld [vmem:[%s10306_s7] sm:$0xff]  ;;  %v6517_v35 = vld [vmem:[%s10301_s2 + $0xec] sm:$0xf0]  ;;  %s7122_s11 = smov [#allocation4]   ;;  %s4551_s13 = sshll.u32 %s10309_s10, 4  ;;  %s4552_s13 = int_to_ptr.hbm [resolvable:$true] %s4551_s13 }
  0x3b   :  { %614 = vmatpush.bf16.msrb.mxu3 %v4763_v49  ;;  %v45_v8 = vpack.c.bf16 %v42_v5, %v41_v4  ;;  %v377_v10 = vpack.c.bf16 %v368_v9, %v368_v9  ;;  %v78_v17 = vld [vmem:[%s10302_s3] sm:$0xf]  ;;  %v6515_v36 = vld [vmem:[%s10301_s2 + $0xe4] sm:$0xf]  ;;  %v4963_v39 = vld [vmem:[%s10301_s2 + $0xf0] sm:$0xf0] }
  0x3c   :  { %576 = vmatpush.bf16.msrb.mxu0 %v4735_v50  ;;  %v7603_v18 = vperm.slane %v78_v17, 0  ;;  %v7607_v20 = vperm.slane %v78_v17, 1  ;;  %v7617_v26 = vperm.slane %v78_v17, 2  ;;  %v7619_v27 = vperm.slane %v78_v17, 3  ;;  %v4961_v34 = vld [vmem:[%s10301_s2 + $0xe0] sm:$0xf] }
  0x3d   :  { %589 = vmatpush.bf16.msrb.mxu1 %v4739_v54  ;;  %v4962_v38 = vor.u32 %v6517_v35, %v4961_v34  ;;  %v4969_v40 = vld [vmem:[%s10301_s2 + $0xe8] sm:$0xf]  ;;  %v6518_v41 = vld [vmem:[%s10301_s2 + $0xf4] sm:$0xf0]  ;;  %v4966_v44 = vor.u32 %v6515_v36, %v4963_v39  ;;  %v6516_v46 = vld [vmem:[%s10301_s2 + $0xec] sm:$0xf] }
  0x3e   :  { %602 = vmatpush.bf16.msrb.mxu2 %v4743_v60  ;;  %v4970_v45 = vor.u32 %v6518_v41, %v4969_v40  ;;  %v4971_v47 = vld [vmem:[%s10301_s2 + $0xf8] sm:$0xf0]  ;;  %v4945_v52 = vld [vmem:[%s10301_s2 + $0xc0] sm:$0xf]  ;;  %v6513_v53 = vld [vmem:[%s10301_s2 + $0xcc] sm:$0xf0] }
  0x3f   :  { %615 = vmatpush.bf16.msrb.mxu3 %v4747_v61  ;;  %v4974_v50 = vor.u32 %v6516_v46, %v4971_v47  ;;  %v6511_v54 = vld [vmem:[%s10301_s2 + $0xc4] sm:$0xf]  ;;  %v4946_v55 = vor.u32 %v6513_v53, %v4945_v52  ;;  %v4947_v56 = vld [vmem:[%s10301_s2 + $0xd0] sm:$0xf0]  ;;  %v4953_v57 = vld [vmem:[%s10301_s2 + $0xc8] sm:$0xf] }
  0x40   :  { %577 = vmatpush.bf16.msrb.mxu0 %v4719_v62  ;;  %v6514_v58 = vld [vmem:[%s10301_s2 + $0xd4] sm:$0xf0]  ;;  %v4950_v59 = vor.u32 %v6511_v54, %v4947_v56  ;;  %v6512_v61 = vld [vmem:[%s10301_s2 + $0xcc] sm:$0xf]  ;;  %v4955_v62 = vld [vmem:[%s10301_s2 + $0xd8] sm:$0xf0] }
  0x41   :  { %590 = vmatpush.bf16.msrb.mxu1 %v4723_v1  ;;  %v4954_v60 = vor.u32 %v6514_v58, %v4953_v57  ;;  %v4958_v63 = vor.u32 %v6512_v61, %v4955_v62  ;;  %v4929_v0 = vld [vmem:[%s10301_s2 + $0xa0] sm:$0xf]  ;;  %v6509_v1 = vld [vmem:[%s10301_s2 + $0xac] sm:$0xf0]  ;;  %v6507_v2 = vld [vmem:[%s10301_s2 + $0xa4] sm:$0xf] }
  0x42   :  { %603 = vmatpush.bf16.msrb.mxu2 %v4727_v6  ;;  %v4930_v4 = vor.u32 %v6509_v1, %v4929_v0  ;;  %v4931_v5 = vld [vmem:[%s10301_s2 + $0xb0] sm:$0xf0]  ;;  %v4937_v6 = vld [vmem:[%s10301_s2 + $0xa8] sm:$0xf]  ;;  %v4913_v36 = vld [vmem:[%s10301_s2 + $0x80] sm:$0xf] }
  0x43   :  { %616 = vmatpush.bf16.msrb.mxu3 %v4731_v7  ;;  %266 = vmatmul.bf16.gmra.mxu0 %v45_v8  ;;  %v6510_v7 = vld [vmem:[%s10301_s2 + $0xb4] sm:$0xf0]  ;;  %v4934_v17 = vor.u32 %v6507_v2, %v4931_v5  ;;  %v6503_v40 = vld [vmem:[%s10301_s2 + $0x84] sm:$0xf]  ;;  %v4915_v41 = vld [vmem:[%s10301_s2 + $0x90] sm:$0xf0] }
  0x44   :  { %290 = vmatmul.bf16.gmra.mxu1 %v45_v8  ;;  %890 = vmatpush.bf16.msra.mxu0 %v4962_v38  ;;  %v6505_v38 = vld [vmem:[%s10301_s2 + $0x8c] sm:$0xf0]  ;;  %v6504_v46 = vld [vmem:[%s10301_s2 + $0x8c] sm:$0xf]  ;;  %v4923_v47 = vld [vmem:[%s10301_s2 + $0x98] sm:$0xf0] }
  0x45   :  { %314 = vmatmul.bf16.gmra.mxu2 %v45_v8  ;;  %903 = vmatpush.bf16.msra.mxu1 %v4966_v44  ;;  %v4914_v39 = vor.u32 %v6505_v38, %v4913_v36  ;;  %v4918_v44 = vor.u32 %v6503_v40, %v4915_v41  ;;  %v4897_v52 = vld [vmem:[%s10301_s2 + $0x60] sm:$0xf]  ;;  %v6501_v53 = vld [vmem:[%s10301_s2 + $0x6c] sm:$0xf0]  ;;  %v6499_v54 = vld [vmem:[%s10301_s2 + $0x64] sm:$0xf] }
  0x46   :  { %338 = vmatmul.bf16.gmra.mxu3 %v45_v8  ;;  %916 = vmatpush.bf16.msra.mxu2 %v4970_v45  ;;  %v6506_v45 = vld [vmem:[%s10301_s2 + $0x94] sm:$0xf0]  ;;  %v4898_v57 = vor.u32 %v6501_v53, %v4897_v52  ;;  %v4899_v58 = vld [vmem:[%s10301_s2 + $0x70] sm:$0xf0]  ;;  %v6500_v1 = vld [vmem:[%s10301_s2 + $0x6c] sm:$0xf] }
  0x47   :  { %929 = vmatpush.bf16.msra.mxu3 %v4974_v50  ;;  %v4926_v50 = vor.u32 %v6504_v46, %v4923_v47  ;;  %v4907_v2 = vld [vmem:[%s10301_s2 + $0x78] sm:$0xf0]  ;;  %v6498_v38 = vld [vmem:[%s10301_s2 + $0x54] sm:$0xf0]  ;;  %v6491_v47 = vld [vmem:[%s10301_s2 + $0x24] sm:$0xf] }
  0x48   :  { %891 = vmatpush.bf16.msra.mxu0 %v4946_v55  ;;  %v4910_v5 = vor.u32 %v6500_v1, %v4907_v2  ;;  %v4891_v41 = vld [vmem:[%s10301_s2 + $0x58] sm:$0xf0]  ;;  %s4549_s29 = sshll.u32 %s7122_s11, 4  ;;  %s4550_s29 = int_to_ptr.vmem [resolvable:$true] %s4549_s29 }
  0x49   :  { %904 = vmatpush.bf16.msra.mxu1 %v4950_v59  ;;  %v4905_v59 = vld [vmem:[%s10301_s2 + $0x68] sm:$0xf] }
  0x4a   :  { %917 = vmatpush.bf16.msra.mxu2 %v4954_v60  ;;  %v6502_v60 = vld [vmem:[%s10301_s2 + $0x74] sm:$0xf0] }
  0x4b   :  { %930 = vmatpush.bf16.msra.mxu3 %v4958_v63  ;;  %v4902_v63 = vor.u32 %v6499_v54, %v4899_v58  ;;  %v4906_v0 = vor.u32 %v6502_v60, %v4905_v59  ;;  %v4875_v58 = vld [vmem:[%s10301_s2 + $0x38] sm:$0xf0] }
  0x4c   :  { %892 = vmatpush.bf16.msra.mxu0 %v4930_v4 }
  0x4d   :  { %905 = vmatpush.bf16.msra.mxu1 %v4934_v17 }
  0x50   :  { %893 = vmatpush.bf16.msra.mxu0 %v4914_v39  ;;  %v6496_v39 = vld [vmem:[%s10301_s2 + $0x4c] sm:$0xf] }
  0x51   :  { %906 = vmatpush.bf16.msra.mxu1 %v4918_v44  ;;  %v6493_v44 = vld [vmem:[%s10301_s2 + $0x2c] sm:$0xf0] }
  0x53   :  { %578 = vmatmul.bf16.vlgmr.msrb.gmra.mxu0 %v377_v10 }
  0x54   :  { %591 = vmatmul.bf16.vlgmr.msrb.gmra.mxu1 %v377_v10  ;;  %894 = vmatpush.bf16.msra.mxu0 %v4898_v57  ;;  %v6492_v57 = vld [vmem:[%s10301_s2 + $0x2c] sm:$0xf] }
  0x55   :  { %604 = vmatmul.bf16.vlgmr.msrb.gmra.mxu2 %v377_v10  ;;  %907 = vmatpush.bf16.msra.mxu1 %v4902_v63  ;;  %v6489_v63 = vld [vmem:[%s10301_s2 + $0xc] sm:$0xf0] }
  0x56   :  { %617 = vmatmul.bf16.vlgmr.msrb.gmra.mxu3 %v377_v10 }
  0xa0   :  { %v7588_v11 = vpop.f32.mrf.mxu0 }
  0xa1   :  { %v7590_v12 = vpop.f32.mrf.mxu1  ;;  %v258_v55 = vadd.f32 %v7588_v11, %v7603_v18 }
  0xa2   :  { %v282_v11 = vadd.f32 %v7590_v12, %v7607_v20  ;;  %v4881_v12 = vld [vmem:[%s10301_s2 + $0x40] sm:$0xf] }
  0xa8   :  { %v7592_v13 = vpop.f32.mrf.mxu2  ;;  %v7596_v15 = vpop.f32.mrf.mxu0 }
  0xa9   :  { %v7594_v14 = vpop.f32.mrf.mxu3  ;;  %v7598_v16 = vpop.f32.mrf.mxu1 }
  0xaa   :  { %v330_v52 = vadd.f32 %v7594_v14, %v7619_v27  ;;  %v4878_v14 = vor.u32 %v6492_v57, %v4875_v58 }
  0xb0   :  { %v7605_v19 = vpop.f32.mrf.mxu2  ;;  %v262_v22 = vpop.f32.mrf.mxu0 }
  0xb1   :  { %v7609_v21 = vpop.f32.mrf.mxu3  ;;  %v7612_v23 = vadd.f32 %v262_v22, %v7603_v18  ;;  %v286_v24 = vpop.f32.mrf.mxu1  ;;  %v4938_v22 = vor.u32 %v6510_v7, %v4937_v6  ;;  %v6497_v7 = vld [vmem:[%s10301_s2 + $0x4c] sm:$0xf0] }
  0xb2   :  { %v7615_v25 = vadd.f32 %v286_v24, %v7607_v20  ;;  %v6508_v24 = vld [vmem:[%s10301_s2 + $0xac] sm:$0xf] }
  0xb3   :  { %918 = vmatpush.bf16.msra.mxu2 %v4938_v22  ;;  %v4882_v22 = vor.u32 %v6497_v7, %v4881_v12  ;;  %v6488_v7 = vld [vmem:[%s10301_s2 + $0xc] sm:$0xf] }
  0xb5   :  { %895 = vmatpush.bf16.msra.mxu0 %v4882_v22 }
  0xb8   :  { %v310_v28 = vpop.f32.mrf.mxu2  ;;  %v7624_v31 = vpop.f32.mrf.mxu0 }
  0xb9   :  { %v7622_v29 = vadd.f32 %v310_v28, %v7617_v26  ;;  %v334_v30 = vpop.f32.mrf.mxu3  ;;  %v7629_v33 = vpop.f32.mrf.mxu1  ;;  %v4939_v28 = vld [vmem:[%s10301_s2 + $0xb8] sm:$0xf0] }
  0xba   :  { %v7627_v32 = vadd.f32 %v334_v30, %v7619_v27  ;;  %v4942_v35 = vor.u32 %v6508_v24, %v4939_v28  ;;  %v4883_v24 = vld [vmem:[%s10301_s2 + $0x50] sm:$0xf0]  ;;  %v4889_v28 = vld [vmem:[%s10301_s2 + $0x48] sm:$0xf] }
  0xbb   :  { %v4890_v40 = vor.u32 %v6498_v38, %v4889_v28 }
  0xbc   :  { %931 = vmatpush.bf16.msra.mxu3 %v4942_v35 }
  0xc0   :  { %v7640_v37 = vpop.f32.mrf.mxu2  ;;  %v267_v43 = vpop.f32.mrf.mxu0  ;;  %932 = vmatpush.bf16.msra.mxu3 %v4926_v50  ;;  %v4873_v50 = vld [vmem:[%s10301_s2 + $0x28] sm:$0xf] }
  0xc1   :  { %v7651_v42 = vpop.f32.mrf.mxu3  ;;  %v7660_v48 = vadd.f32 %v267_v43, %v7603_v18  ;;  %v291_v49 = vpop.f32.mrf.mxu1  ;;  %v4921_v43 = vld [vmem:[%s10301_s2 + $0x88] sm:$0xf] }
  0xc2   :  { %v7663_v51 = vadd.f32 %v291_v49, %v7607_v20  ;;  %v4922_v49 = vor.u32 %v6506_v45, %v4921_v43  ;;  %v4865_v43 = vld [vmem:[%s10301_s2 + $0x20] sm:$0xf]  ;;  %v4894_v45 = vor.u32 %v6496_v39, %v4891_v41  ;;  %v306_v41 = vadd.f32 %v7592_v13, %v7617_v26 }
  0xc3   :  { %v4866_v46 = vor.u32 %v6493_v44, %v4865_v43 }
  0xc4   :  { %919 = vmatpush.bf16.msra.mxu2 %v4922_v49  ;;  %933 = vmatpush.bf16.msra.mxu3 %v4910_v5  ;;  %v4867_v49 = vld [vmem:[%s10301_s2 + $0x30] sm:$0xf0]  ;;  %v4857_v5 = vld [vmem:[%s10301_s2 + $0x8] sm:$0xf] }
  0xc5   :  { %v4870_v54 = vor.u32 %v6491_v47, %v4867_v49  ;;  %896 = vmatpush.bf16.msra.mxu0 %v4866_v46 }
  0xc8   :  { %v315_v3 = vpop.f32.mrf.mxu2  ;;  %v7710_v10 = vpop.f32.mrf.mxu0  ;;  %920 = vmatpush.bf16.msra.mxu2 %v4906_v0  ;;  %934 = vmatpush.bf16.msra.mxu3 %v4894_v45  ;;  %v6487_v0 = vld [vmem:[%s10301_s2 + $0x4] sm:$0xf] }
  0xc9   :  { %v7708_v8 = vadd.f32 %v315_v3, %v7617_v26  ;;  %v339_v9 = vpop.f32.mrf.mxu3  ;;  %v7721_v34 = vpop.f32.mrf.mxu1 }
  0xca   :  { %v7719_v30 = vadd.f32 %v339_v9, %v7619_v27  ;;  %v6495_v9 = vld [vmem:[%s10301_s2 + $0x44] sm:$0xf] }
  0xcb   :  { %v4886_v36 = vor.u32 %v6495_v9, %v4883_v24  ;;  %v4859_v9 = vld [vmem:[%s10301_s2 + $0x18] sm:$0xf0] }
  0xcc   :  { %921 = vmatpush.bf16.msra.mxu2 %v4890_v40  ;;  %935 = vmatpush.bf16.msra.mxu3 %v4878_v14 }
  0xcd   :  { %908 = vmatpush.bf16.msra.mxu1 %v4886_v36  ;;  %v4862_v36 = vor.u32 %v6488_v7, %v4859_v9 }
  0xd0   :  { %v7758_v56 = vpop.f32.mrf.mxu2  ;;  %v579_v62 = vpop.f32.mrf.mxu0  ;;  %936 = vmatpush.bf16.msra.mxu3 %v4862_v36 }
  0xd1   :  { %v7771_v61 = vpop.f32.mrf.mxu3  ;;  %v622_v3 = vadd.f32 %v579_v62, %v258_v55  ;;  %v592_v4 = vpop.f32.mrf.mxu1  ;;  %v6494_v55 = vld [vmem:[%s10301_s2 + $0x34] sm:$0xf0]  ;;  %v4849_v62 = vld [vmem:[%s10301_s2] sm:$0xf]  ;;  %909 = vmatpush.bf16.msra.mxu1 %v4870_v54 }
  0xd2   :  { %v623_v6 = vadd.f32 %v592_v4, %v282_v11  ;;  %v4874_v11 = vor.u32 %v6494_v55, %v4873_v50  ;;  %v4851_v4 = vld [vmem:[%s10301_s2 + $0x10] sm:$0xf0] }
  0xd3   :  { %v4844_v17 = vmul.f32 -1.442695, %v622_v3  ;;  %v4850_v3 = vor.u32 %v6489_v63, %v4849_v62  ;;  %v4854_v12 = vor.u32 %v6487_v0, %v4851_v4  ;;  %v369_v0 = vld [vmem:[%s10307_s8] sm:$0xff] }
  0xd4   :  { %v4845_v35 = vmul.f32 -1.442695, %v623_v6  ;;  %v6490_v6 = vld [vmem:[%s10301_s2 + $0x14] sm:$0xf0]  ;;  %922 = vmatpush.bf16.msra.mxu2 %v4874_v11 }
  0xd5   :  { %6875 = vpow2.f32 %v4844_v17  ;;  %v4858_v24 = vor.u32 %v6490_v6, %v4857_v5  ;;  %897 = vmatpush.bf16.msra.mxu0 %v4850_v3  ;;  %910 = vmatpush.bf16.msra.mxu1 %v4854_v12 }
  0xd6   :  { %6877 = vpow2.f32 %v4845_v35 }
  0xd8   :  { %v605_v53 = vpop.f32.mrf.mxu2  ;;  %v581_v60 = vpop.f32.mrf.mxu0  ;;  %923 = vmatpush.bf16.msra.mxu2 %v4858_v24 }
  0xd9   :  { %v618_v59 = vpop.f32.mrf.mxu3  ;;  %v594_v2 = vpop.f32.mrf.mxu1  ;;  %v624_v45 = vadd.f32 %v605_v53, %v306_v41 }
  0xda   :  { %v625_v1 = vadd.f32 %v618_v59, %v330_v52 }
  0xdb   :  { %v6876_v17 = vpop.eup %6875 }
  0xdc   :  { %v4846_v22 = vmul.f32 -1.442695, %v625_v1  ;;  %v6878_v28 = vpop.eup %6877  ;;  %v632_v35 = vadd.f32 1.0, %v6876_v17 }
  0xdd   :  { %v633_v38 = vadd.f32 1.0, %v6878_v28 }
  0xde   :  { %6879 = vpow2.f32 %v4846_v22  ;;  %v645_v55 = vand.u32 2147483648, %v632_v35  ;;  %v643_v59 = vand.u32 2147483647, %v632_v35  ;;  %vm639_vm2 = vweird.f32 %v632_v35 }
  0xdf   :  { %6881 = vrcp.f32 %v632_v35  ;;  %v660_v57 = vand.u32 2147483648, %v633_v38  ;;  %v658_v11 = vand.u32 2147483647, %v633_v38  ;;  %vm654_vm3 = vweird.f32 %v633_v38 }
  0xe0   :  { %6883 = vrcp.f32 %v633_v38  ;;  %v607_v39 = vpop.f32.mrf.mxu2  ;;  %v646_v53 = vor.u32 1.1754944e-38, %v645_v55  ;;  %vm644_vm6 = vcmp.eq.f32.partialorder %v643_v59, 8.507059e+37 }
  0xe1   :  { %v620_v40 = vpop.f32.mrf.mxu3  ;;  %v661_v63 = vor.u32 1.1754944e-38, %v660_v57  ;;  %vm659_vm7 = vcmp.eq.f32.partialorder %v658_v11, 8.507059e+37  ;;  %v6548_v57 = vld [vmem:[%s10301_s2 + $0xec] sm:$0xf]  ;;  %v6545_v11 = vld [vmem:[%s10301_s2 + $0xcc] sm:$0xf0] }
  0xe4   :  { %v6880_v43 = vpop.eup %6879 }
  0xe5   :  { %v6882_v44 = vpop.eup %6881  ;;  %v668_v46 = vadd.f32 1.0, %v6880_v43 }
  0xe6   :  { %v6884_v47 = vpop.eup %6883  ;;  %v635_v49 = vmul.f32 %v6882_v44, %v632_v35  ;;  %vm640_vm0 = vweird.f32 %v6882_v44 }
  0xe7   :  { %v650_v50 = vmul.f32 %v6884_v47, %v633_v38  ;;  %6885 = vrcp.f32 %v668_v46  ;;  %vm655_vm1 = vweird.f32 %v6884_v47  ;;  %vm641_vm4 = vmor %vm639_vm2, %vm640_vm0  ;;  %v680_v28 = vand.u32 2147483648, %v668_v46 }
  0xe8   :  { %v636_v52 = vsub.f32 1.0, %v635_v49  ;;  %6887 = vtanh.f32 %v624_v45  ;;  %vm656_vm5 = vmor %vm654_vm3, %vm655_vm1  ;;  %vm674_vm9 = vweird.f32 %v668_v46  ;;  %v678_v35 = vand.u32 2147483647, %v668_v46  ;;  %v6549_v45 = vld [vmem:[%s10301_s2 + $0xec] sm:$0xf0] }
  0xe9   :  { %v651_v54 = vsub.f32 1.0, %v650_v50  ;;  %v681_v38 = vor.u32 1.1754944e-38, %v680_v28  ;;  %v5094_v49 = vld [vmem:[%s10301_s2 + $0xf0] sm:$0xf0]  ;;  %v5100_v50 = vld [vmem:[%s10301_s2 + $0xe8] sm:$0xf] }
  0xea   :  { %v637_v58 = vmul.f32 %v6882_v44, %v636_v52  ;;  %vm679_vm11 = vcmp.eq.f32.partialorder %v678_v35, 8.507059e+37  ;;  %v6550_v52 = vld [vmem:[%s10301_s2 + $0xf4] sm:$0xf0] }
  0xeb   :  { %v652_v60 = vmul.f32 %v6884_v47, %v651_v54  ;;  %v5101_v55 = vor.u32 %v6550_v52, %v5100_v50 }
  0xec   :  { %v638_v13 = vadd.f32 %v6882_v44, %v637_v58  ;;  %v5102_v58 = vld [vmem:[%s10301_s2 + $0xf8] sm:$0xf0] }
  0xed   :  { %v6886_v14 = vpop.eup %6885  ;;  %v653_v62 = vadd.f32 %v6884_v47, %v652_v60  ;;  %v5105_v59 = vor.u32 %v6548_v57, %v5102_v58  ;;  %1237 = vmatpush.bf16.msrb.mxu2 %v5101_v55  ;;  %v5076_v60 = vld [vmem:[%s10301_s2 + $0xc0] sm:$0xf]  ;;  %v5054_v55 = vld [vmem:[%s10301_s2 + $0x98] sm:$0xf0] }
  0xee   :  { %v642_v1 = vsel %vm641_vm4, %v6882_v44, %v638_v13  ;;  %v670_v2 = vmul.f32 %v6886_v14, %v668_v46  ;;  %v6888_v3 = vpop.eup %6887  ;;  %vm675_vm8 = vweird.f32 %v6886_v14  ;;  %v5092_v44 = vld [vmem:[%s10301_s2 + $0xe0] sm:$0xf]  ;;  %v6547_v46 = vld [vmem:[%s10301_s2 + $0xe4] sm:$0xf] }
  0xef   :  { %v647_v4 = vsel %vm644_vm6, %v646_v53, %v642_v1  ;;  %v657_v5 = vsel %vm656_vm5, %v6884_v47, %v653_v62  ;;  %vm676_vm10 = vmor %vm674_vm9, %vm675_vm8  ;;  %v5093_v47 = vor.u32 %v6549_v45, %v5092_v44  ;;  %v5097_v54 = vor.u32 %v6547_v46, %v5094_v49  ;;  %v6543_v13 = vld [vmem:[%s10301_s2 + $0xc4] sm:$0xf]  ;;  %1250 = vmatpush.bf16.msrb.mxu3 %v5105_v59  ;;  %v5078_v53 = vld [vmem:[%s10301_s2 + $0xd0] sm:$0xf0] }
  0xf0   :  { %v662_v6 = vsel %vm659_vm7, %v661_v63, %v657_v5  ;;  %v685_v12 = vmul.f32 %v6888_v3, %v647_v4  ;;  %v671_v7 = vsub.f32 1.0, %v670_v2  ;;  %v5084_v62 = vld [vmem:[%s10301_s2 + $0xc8] sm:$0xf]  ;;  %v6546_v63 = vld [vmem:[%s10301_s2 + $0xd4] sm:$0xf0] }
  0xf1   :  { %v684_v9 = vmul.f32 %v662_v6, %v369_v0  ;;  %1211 = vmatpush.bf16.msrb.mxu0 %v5093_v47  ;;  %1224 = vmatpush.bf16.msrb.mxu1 %v5097_v54  ;;  %v5081_v0 = vor.u32 %v6543_v13, %v5078_v53  ;;  %v5085_v1 = vor.u32 %v6546_v63, %v5084_v62  ;;  %v6544_v2 = vld [vmem:[%s10301_s2 + $0xcc] sm:$0xf]  ;;  %v5086_v3 = vld [vmem:[%s10301_s2 + $0xd8] sm:$0xf0]  ;;  %v5060_v5 = vld [vmem:[%s10301_s2 + $0xa0] sm:$0xf] }
  0xf2   :  { %v672_v17 = vmul.f32 %v6886_v14, %v671_v7  ;;  %v5089_v4 = vor.u32 %v6544_v2, %v5086_v3  ;;  %v6541_v6 = vld [vmem:[%s10301_s2 + $0xac] sm:$0xf0]  ;;  %v6535_v44 = vld [vmem:[%s10301_s2 + $0x84] sm:$0xf]  ;;  %v5046_v46 = vld [vmem:[%s10301_s2 + $0x90] sm:$0xf0]  ;;  %v284_v13 = vadd.f32 %v7598_v16, %v7607_v20 }
  0xf3   :  { %v7858_v22 = vadd.f32 %v685_v12, %v684_v9  ;;  %1238 = vmatpush.bf16.msrb.mxu2 %v5085_v1  ;;  %v6539_v12 = vld [vmem:[%s10301_s2 + $0xa4] sm:$0xf]  ;;  %v5061_v7 = vor.u32 %v6541_v6, %v5060_v5  ;;  %v5062_v9 = vld [vmem:[%s10301_s2 + $0xb0] sm:$0xf0]  ;;  %v5052_v47 = vld [vmem:[%s10301_s2 + $0x88] sm:$0xf]  ;;  %v5049_v50 = vor.u32 %v6535_v44, %v5046_v46 }
  0xf4   :  { %v673_v24 = vadd.f32 %v6886_v14, %v672_v17  ;;  %1251 = vmatpush.bf16.msrb.mxu3 %v5089_v4  ;;  %v5068_v17 = vld [vmem:[%s10301_s2 + $0xa8] sm:$0xf]  ;;  %v5065_v28 = vor.u32 %v6539_v12, %v5062_v9  ;;  %v6538_v49 = vld [vmem:[%s10301_s2 + $0x94] sm:$0xf0]  ;;  %v6536_v54 = vld [vmem:[%s10301_s2 + $0x8c] sm:$0xf] }
  0xf5   :  { %6889 = vtanh.f32 %v7858_v22  ;;  %1225 = vmatpush.bf16.msrb.mxu1 %v5081_v0  ;;  %v5053_v52 = vor.u32 %v6538_v49, %v5052_v47  ;;  %v5057_v57 = vor.u32 %v6536_v54, %v5054_v55  ;;  %v5028_v58 = vld [vmem:[%s10301_s2 + $0x60] sm:$0xf]  ;;  %v6533_v59 = vld [vmem:[%s10301_s2 + $0x6c] sm:$0xf0]  ;;  %v5030_v53 = vld [vmem:[%s10301_s2 + $0x70] sm:$0xf0]  ;;  %v332_v47 = vadd.f32 %v7609_v21, %v7619_v27 }
  0xf6   :  { %v677_v36 = vsel %vm676_vm10, %v6886_v14, %v673_v24  ;;  %v5077_v14 = vor.u32 %v6545_v11, %v5076_v60  ;;  %v6542_v24 = vld [vmem:[%s10301_s2 + $0xb4] sm:$0xf0]  ;;  %v6531_v60 = vld [vmem:[%s10301_s2 + $0x64] sm:$0xf]  ;;  %v260_v11 = vadd.f32 %v7596_v15, %v7603_v18  ;;  %v5036_v62 = vld [vmem:[%s10301_s2 + $0x68] sm:$0xf] }
  0xf7   :  { %v682_v40 = vsel %vm679_vm11, %v681_v38, %v677_v36  ;;  %v5069_v35 = vor.u32 %v6542_v24, %v5068_v17  ;;  %v6540_v36 = vld [vmem:[%s10301_s2 + $0xac] sm:$0xf]  ;;  %v5070_v38 = vld [vmem:[%s10301_s2 + $0xb8] sm:$0xf0]  ;;  %v6534_v63 = vld [vmem:[%s10301_s2 + $0x74] sm:$0xf0]  ;;  %v5033_v15 = vor.u32 %v6531_v60, %v5030_v53 }
  0xf8   :  { %1212 = vmatpush.bf16.msrb.mxu0 %v5077_v14  ;;  %v5029_v14 = vor.u32 %v6533_v59, %v5028_v58  ;;  %v5037_v2 = vor.u32 %v6534_v63, %v5036_v62  ;;  %v6532_v16 = vld [vmem:[%s10301_s2 + $0x6c] sm:$0xf]  ;;  %v5038_v3 = vld [vmem:[%s10301_s2 + $0x78] sm:$0xf0]  ;;  %v5012_v12 = vld [vmem:[%s10301_s2 + $0x40] sm:$0xf] }
  0xf9   :  { %1226 = vmatpush.bf16.msrb.mxu1 %v5065_v28  ;;  %1239 = vmatpush.bf16.msrb.mxu2 %v5069_v35  ;;  %v5041_v6 = vor.u32 %v6532_v16, %v5038_v3  ;;  %v6527_v9 = vld [vmem:[%s10301_s2 + $0x44] sm:$0xf]  ;;  %v5014_v35 = vld [vmem:[%s10301_s2 + $0x50] sm:$0xf0]  ;;  %v5022_v44 = vld [vmem:[%s10301_s2 + $0x58] sm:$0xf0] }
  0xfa   :  { %v6525_v46 = vld [vmem:[%s10301_s2 + $0x2c] sm:$0xf0]  ;;  %v4998_v54 = vld [vmem:[%s10301_s2 + $0x30] sm:$0xf0]  ;;  %v5004_v55 = vld [vmem:[%s10301_s2 + $0x28] sm:$0xf] }
  0xfb   :  { %v6890_v39 = vpop.eup %6889  ;;  %v6526_v59 = vld [vmem:[%s10301_s2 + $0x34] sm:$0xf0]  ;;  %v6524_v60 = vld [vmem:[%s10301_s2 + $0x2c] sm:$0xf]  ;;  %v4982_v16 = vld [vmem:[%s10301_s2 + $0x10] sm:$0xf0] }
  0xfc   :  { %v7861_v41 = vmul.f32 %v6890_v39, %v682_v40  ;;  %1213 = vmatpush.bf16.msrb.mxu0 %v5061_v7  ;;  %v5073_v39 = vor.u32 %v6540_v36, %v5070_v38  ;;  %v5044_v40 = vld [vmem:[%s10301_s2 + $0x80] sm:$0xf]  ;;  %v6529_v7 = vld [vmem:[%s10301_s2 + $0x4c] sm:$0xf0]  ;;  %v5017_v36 = vor.u32 %v6527_v9, %v5014_v35  ;;  %v5020_v38 = vld [vmem:[%s10301_s2 + $0x48] sm:$0xf]  ;;  %v5005_v62 = vor.u32 %v6526_v59, %v5004_v55 }
  0xfd   :  { %1227 = vmatpush.bf16.msrb.mxu1 %v5049_v50  ;;  %1240 = vmatpush.bf16.msrb.mxu2 %v5053_v52  ;;  %v5013_v28 = vor.u32 %v6529_v7, %v5012_v12  ;;  %v6523_v52 = vld [vmem:[%s10301_s2 + $0x24] sm:$0xf]  ;;  %v4988_v3 = vld [vmem:[%s10301_s2 + $0x8] sm:$0xf]  ;;  %v6520_v12 = vld [vmem:[%s10301_s2 + $0xc] sm:$0xf] }
  0xfe   :  { %v697_v43 = vpack.c.bf16 %v7861_v41, %v7861_v41  ;;  %1252 = vmatpush.bf16.msrb.mxu3 %v5073_v39  ;;  %v6530_v39 = vld [vmem:[%s10301_s2 + $0x54] sm:$0xf0]  ;;  %v5001_v21 = vor.u32 %v6523_v52, %v4998_v54  ;;  %v4990_v7 = vld [vmem:[%s10301_s2 + $0x18] sm:$0xf0] }
  0xff   :  { %v4993_v35 = vor.u32 %v6520_v12, %v4990_v7 }
 0x100   :  { %898 = vmatmul.bf16.vlgmr.msra.gmra.mxu0 %v697_v43  ;;  %911 = vmatmul.bf16.vlgmr.msra.gmra.mxu1 %v697_v43 }
 0x101   :  { %924 = vmatmul.bf16.vlgmr.msra.gmra.mxu2 %v697_v43  ;;  %937 = vmatmul.bf16.vlgmr.msra.gmra.mxu3 %v697_v43  ;;  %v6537_v43 = vld [vmem:[%s10301_s2 + $0x8c] sm:$0xf0] }
 0x102   :  { %v5045_v45 = vor.u32 %v6537_v43, %v5044_v40  ;;  %1253 = vmatpush.bf16.msrb.mxu3 %v5057_v57  ;;  %1228 = vmatpush.bf16.msrb.mxu1 %v5033_v15  ;;  %v6528_v40 = vld [vmem:[%s10301_s2 + $0x4c] sm:$0xf]  ;;  %v5021_v43 = vor.u32 %v6530_v39, %v5020_v38  ;;  %v6519_v15 = vld [vmem:[%s10301_s2 + $0x4] sm:$0xf] }
 0x103   :  { %1241 = vmatpush.bf16.msrb.mxu2 %v5037_v2  ;;  %v5025_v49 = vor.u32 %v6528_v40, %v5022_v44 }
 0x104   :  { %1214 = vmatpush.bf16.msrb.mxu0 %v5045_v45  ;;  %v4996_v45 = vld [vmem:[%s10301_s2 + $0x20] sm:$0xf] }
 0x105   :  { %v4997_v50 = vor.u32 %v6525_v46, %v4996_v45 }
 0x106   :  { %1254 = vmatpush.bf16.msrb.mxu3 %v5041_v6  ;;  %1229 = vmatpush.bf16.msrb.mxu1 %v5017_v36  ;;  %v4985_v6 = vor.u32 %v6519_v15, %v4982_v16 }
 0x107   :  { %1242 = vmatpush.bf16.msrb.mxu2 %v5021_v43  ;;  %v308_v43 = vadd.f32 %v7605_v19, %v7617_v26 }
 0x108   :  { %1215 = vmatpush.bf16.msrb.mxu0 %v5029_v14 }
 0x10a   :  { %1255 = vmatpush.bf16.msrb.mxu3 %v5025_v49  ;;  %1230 = vmatpush.bf16.msrb.mxu1 %v5001_v21 }
 0x10b   :  { %1243 = vmatpush.bf16.msrb.mxu2 %v5005_v62 }
 0x10c   :  { %1216 = vmatpush.bf16.msrb.mxu0 %v5013_v28 }
 0x10e   :  { %1231 = vmatpush.bf16.msrb.mxu1 %v4985_v6 }
 0x110   :  { %1217 = vmatpush.bf16.msrb.mxu0 %v4997_v50 }
 0x17d   :  { %v899_v0 = vpop.f32.mrf.mxu0  ;;  %v912_v1 = vpop.f32.mrf.mxu1 }
 0x17e   :  { %v942_v4 = vadd.f32 %v899_v0, %v260_v11  ;;  %v943_v5 = vadd.f32 %v912_v1, %v284_v13  ;;  %v5006_v11 = vld [vmem:[%s10301_s2 + $0x38] sm:$0xf0]  ;;  %v4980_v0 = vld [vmem:[%s10301_s2] sm:$0xf]  ;;  %v6521_v1 = vld [vmem:[%s10301_s2 + $0xc] sm:$0xf0] }
 0x17f   :  { %v5009_v63 = vor.u32 %v6524_v60, %v5006_v11  ;;  %v4981_v2 = vor.u32 %v6521_v1, %v4980_v0 }
 0x180   :  { %v4975_v17 = vmul.f32 -1.442695, %v942_v4  ;;  %v4976_v24 = vmul.f32 -1.442695, %v943_v5  ;;  %v6522_v4 = vld [vmem:[%s10301_s2 + $0x14] sm:$0xf0] }
 0x181   :  { %1256 = vmatpush.bf16.msrb.mxu3 %v5009_v63  ;;  %1218 = vmatpush.bf16.msrb.mxu0 %v4981_v2 }
 0x182   :  { %6891 = vpow2.f32 %v4975_v17  ;;  %v4989_v17 = vor.u32 %v6522_v4, %v4988_v3 }
 0x183   :  { %6893 = vpow2.f32 %v4976_v24 }
 0x184   :  { %v925_v57 = vpop.f32.mrf.mxu2  ;;  %v938_v58 = vpop.f32.mrf.mxu3  ;;  %1244 = vmatpush.bf16.msrb.mxu2 %v4989_v17 }
 0x185   :  { %v945_v13 = vadd.f32 %v938_v58, %v332_v47  ;;  %v901_v14 = vpop.f32.mrf.mxu0  ;;  %v914_v53 = vpop.f32.mrf.mxu1  ;;  %1257 = vmatpush.bf16.msrb.mxu3 %v4993_v35  ;;  %v944_v46 = vadd.f32 %v925_v57, %v308_v43 }
 0x187   :  { %v4977_v5 = vmul.f32 -1.442695, %v945_v13 }
 0x188   :  { %v6892_v9 = vpop.eup %6891 }
 0x189   :  { %v6894_v24 = vpop.eup %6893  ;;  %v952_v28 = vadd.f32 1.0, %v6892_v9  ;;  %6895 = vpow2.f32 %v4977_v5 }
 0x18a   :  { %v953_v36 = vadd.f32 1.0, %v6894_v24 }
 0x18b   :  { %6897 = vrcp.f32 %v952_v28  ;;  %v965_v55 = vand.u32 2147483648, %v952_v28  ;;  %v963_v59 = vand.u32 2147483647, %v952_v28  ;;  %vm959_vm14 = vweird.f32 %v952_v28 }
 0x18c   :  { %6899 = vrcp.f32 %v953_v36  ;;  %v927_v38 = vpop.f32.mrf.mxu2  ;;  %v940_v39 = vpop.f32.mrf.mxu3  ;;  %v980_v58 = vand.u32 2147483648, %v953_v36  ;;  %v978_v11 = vand.u32 2147483647, %v953_v36  ;;  %vm974_vm15 = vweird.f32 %v953_v36 }
 0x18d   :  { %v966_v57 = vor.u32 1.1754944e-38, %v965_v55  ;;  %vm964_vm2 = vcmp.eq.f32.partialorder %v963_v59, 8.507059e+37  ;;  %v5223_v38 = vld [vmem:[%s10301_s2 + $0xe0] sm:$0xf]  ;;  %v6581_v39 = vld [vmem:[%s10301_s2 + $0xec] sm:$0xf0] }
 0x18e   :  { %v981_v62 = vor.u32 1.1754944e-38, %v980_v58  ;;  %vm979_vm3 = vcmp.eq.f32.partialorder %v978_v11, 8.507059e+37  ;;  %v5224_v43 = vor.u32 %v6581_v39, %v5223_v38  ;;  %v5207_v55 = vld [vmem:[%s10301_s2 + $0xc0] sm:$0xf]  ;;  %v6577_v58 = vld [vmem:[%s10301_s2 + $0xcc] sm:$0xf0] }
 0x18f   :  { %v6896_v40 = vpop.eup %6895  ;;  %v5208_v59 = vor.u32 %v6577_v58, %v5207_v55  ;;  %v5215_v11 = vld [vmem:[%s10301_s2 + $0xc8] sm:$0xf]  ;;  %v6570_v39 = vld [vmem:[%s10301_s2 + $0x94] sm:$0xf0] }
 0x190   :  { %v988_v44 = vadd.f32 1.0, %v6896_v40  ;;  %v6579_v40 = vld [vmem:[%s10301_s2 + $0xe4] sm:$0xf]  ;;  %1532 = vmatpush.bf16.msra.mxu0 %v5224_v43  ;;  %v5183_v38 = vld [vmem:[%s10301_s2 + $0x88] sm:$0xf] }
 0x191   :  { %v6898_v45 = vpop.eup %6897  ;;  %v5184_v43 = vor.u32 %v6570_v39, %v5183_v38  ;;  %v5167_v55 = vld [vmem:[%s10301_s2 + $0x68] sm:$0xf]  ;;  %v6566_v58 = vld [vmem:[%s10301_s2 + $0x74] sm:$0xf0] }
 0x192   :  { %v6900_v47 = vpop.eup %6899  ;;  %v955_v49 = vmul.f32 %v6898_v45, %v952_v28  ;;  %6901 = vrcp.f32 %v988_v44  ;;  %vm960_vm12 = vweird.f32 %v6898_v45  ;;  %v1000_v7 = vand.u32 2147483648, %v988_v44  ;;  %v6558_v39 = vld [vmem:[%s10301_s2 + $0x34] sm:$0xf0] }
 0x193   :  { %v970_v50 = vmul.f32 %v6900_v47, %v953_v36  ;;  %6903 = vtanh.f32 %v944_v46  ;;  %vm975_vm13 = vweird.f32 %v6900_v47  ;;  %vm961_vm0 = vmor %vm959_vm14, %vm960_vm12  ;;  %vm994_vm5 = vweird.f32 %v988_v44  ;;  %v6582_v46 = vld [vmem:[%s10301_s2 + $0xf4] sm:$0xf0] }
 0x194   :  { %v956_v52 = vsub.f32 1.0, %v955_v49  ;;  %vm976_vm1 = vmor %vm974_vm15, %vm975_vm13  ;;  %v998_v9 = vand.u32 2147483647, %v988_v44  ;;  %v1001_v24 = vor.u32 1.1754944e-38, %v1000_v7  ;;  %1533 = vmatpush.bf16.msra.mxu0 %v5208_v59  ;;  %v5201_v7 = vld [vmem:[%s10301_s2 + $0xb8] sm:$0xf0]  ;;  %v5168_v59 = vor.u32 %v6566_v58, %v5167_v55 }
 0x195   :  { %v971_v54 = vsub.f32 1.0, %v970_v50  ;;  %v6580_v50 = vld [vmem:[%s10301_s2 + $0xec] sm:$0xf] }
 0x196   :  { %v957_v21 = vmul.f32 %v6898_v45, %v956_v52  ;;  %vm999_vm7 = vcmp.eq.f32.partialorder %v998_v9, 8.507059e+37  ;;  %v5233_v52 = vld [vmem:[%s10301_s2 + $0xf8] sm:$0xf0] }
 0x197   :  { %v972_v60 = vmul.f32 %v6900_v47, %v971_v54  ;;  %v5236_v54 = vor.u32 %v6580_v50, %v5233_v52  ;;  %v6563_v50 = vld [vmem:[%s10301_s2 + $0x64] sm:$0xf] }
 0x198   :  { %v6902_v13 = vpop.eup %6901  ;;  %v958_v19 = vadd.f32 %v6898_v45, %v957_v21  ;;  %v6575_v21 = vld [vmem:[%s10301_s2 + $0xc4] sm:$0xf] }
 0x199   :  { %v973_v14 = vadd.f32 %v6900_v47, %v972_v60  ;;  %v990_v53 = vmul.f32 %v6902_v13, %v988_v44  ;;  %v6904_v0 = vpop.eup %6903  ;;  %vm995_vm4 = vweird.f32 %v6902_v13  ;;  %v5225_v44 = vld [vmem:[%s10301_s2 + $0xf0] sm:$0xf0]  ;;  %1571 = vmatpush.bf16.msra.mxu3 %v5236_v54 }
 0x19a   :  { %v962_v63 = vsel %vm961_vm0, %v6898_v45, %v958_v19  ;;  %vm996_vm6 = vmor %vm994_vm5, %vm995_vm4  ;;  %v5231_v45 = vld [vmem:[%s10301_s2 + $0xe8] sm:$0xf]  ;;  %v5209_v60 = vld [vmem:[%s10301_s2 + $0xd0] sm:$0xf0] }
 0x19b   :  { %v967_v1 = vsel %vm964_vm2, %v966_v57, %v962_v63  ;;  %v977_v15 = vsel %vm976_vm1, %v6900_v47, %v973_v14  ;;  %v991_v2 = vsub.f32 1.0, %v990_v53  ;;  %v5228_v47 = vor.u32 %v6579_v40, %v5225_v44  ;;  %v6576_v14 = vld [vmem:[%s10301_s2 + $0xcc] sm:$0xf]  ;;  %v5217_v53 = vld [vmem:[%s10301_s2 + $0xd8] sm:$0xf0] }
 0x19c   :  { %v982_v16 = vsel %vm979_vm3, %v981_v62, %v977_v15  ;;  %v1005_v3 = vmul.f32 %v6904_v0, %v967_v1  ;;  %v5232_v49 = vor.u32 %v6582_v46, %v5231_v45  ;;  %v5212_v19 = vor.u32 %v6575_v21, %v5209_v60  ;;  %v5191_v63 = vld [vmem:[%s10301_s2 + $0xa0] sm:$0xf]  ;;  %v6573_v0 = vld [vmem:[%s10301_s2 + $0xac] sm:$0xf0]  ;;  %v6571_v1 = vld [vmem:[%s10301_s2 + $0xa4] sm:$0xf] }
 0x19d   :  { %v1004_v4 = vmul.f32 %v982_v16, %v7858_v22  ;;  %v992_v5 = vmul.f32 %v6902_v13, %v991_v2  ;;  %1545 = vmatpush.bf16.msra.mxu1 %v5228_v47  ;;  %v5220_v62 = vor.u32 %v6576_v14, %v5217_v53  ;;  %v5192_v15 = vor.u32 %v6573_v0, %v5191_v63  ;;  %v5193_v2 = vld [vmem:[%s10301_s2 + $0xb0] sm:$0xf0]  ;;  %v5199_v16 = vld [vmem:[%s10301_s2 + $0xa8] sm:$0xf]  ;;  %v6568_v44 = vld [vmem:[%s10301_s2 + $0x8c] sm:$0xf] }
 0x19e   :  { %1558 = vmatpush.bf16.msra.mxu2 %v5232_v49  ;;  %v5185_v45 = vld [vmem:[%s10301_s2 + $0x98] sm:$0xf0]  ;;  %v5159_v47 = vld [vmem:[%s10301_s2 + $0x60] sm:$0xf]  ;;  %v6565_v49 = vld [vmem:[%s10301_s2 + $0x6c] sm:$0xf0] }
 0x19f   :  { %v8066_v6 = vadd.f32 %v1005_v3, %v1004_v4  ;;  %v993_v12 = vadd.f32 %v6902_v13, %v992_v5  ;;  %1572 = vmatpush.bf16.msra.mxu3 %v5220_v62  ;;  %v6574_v3 = vld [vmem:[%s10301_s2 + $0xb4] sm:$0xf0]  ;;  %v5196_v4 = vor.u32 %v6571_v1, %v5193_v2  ;;  %1534 = vmatpush.bf16.msra.mxu0 %v5192_v15  ;;  %v5161_v54 = vld [vmem:[%s10301_s2 + $0x70] sm:$0xf0]  ;;  %v6564_v60 = vld [vmem:[%s10301_s2 + $0x6c] sm:$0xf] }
 0x1a0   :  { %v5200_v5 = vor.u32 %v6574_v3, %v5199_v16  ;;  %v5188_v46 = vor.u32 %v6568_v44, %v5185_v45  ;;  %v5160_v52 = vor.u32 %v6565_v49, %v5159_v47  ;;  %v5164_v21 = vor.u32 %v6563_v50, %v5161_v54  ;;  %v5143_v62 = vld [vmem:[%s10301_s2 + $0x40] sm:$0xf]  ;;  %v6561_v63 = vld [vmem:[%s10301_s2 + $0x4c] sm:$0xf0]  ;;  %v6559_v0 = vld [vmem:[%s10301_s2 + $0x44] sm:$0xf] }
 0x1a1   :  { %6905 = vtanh.f32 %v8066_v6  ;;  %v997_v17 = vsel %vm996_vm6, %v6902_v13, %v993_v12  ;;  %v6578_v13 = vld [vmem:[%s10301_s2 + $0xd4] sm:$0xf0]  ;;  %1546 = vmatpush.bf16.msra.mxu1 %v5212_v19  ;;  %v6572_v12 = vld [vmem:[%s10301_s2 + $0xac] sm:$0xf]  ;;  %v5144_v1 = vor.u32 %v6561_v63, %v5143_v62  ;;  %v5111_v49 = vld [vmem:[%s10301_s2] sm:$0xf] }
 0x1a2   :  { %v1002_v35 = vsel %vm999_vm7, %v1001_v24, %v997_v17  ;;  %v5216_v57 = vor.u32 %v6578_v13, %v5215_v11  ;;  %v5204_v9 = vor.u32 %v6572_v12, %v5201_v7  ;;  %v5175_v17 = vld [vmem:[%s10301_s2 + $0x80] sm:$0xf]  ;;  %v6569_v24 = vld [vmem:[%s10301_s2 + $0x8c] sm:$0xf0]  ;;  %v5169_v11 = vld [vmem:[%s10301_s2 + $0x78] sm:$0xf0] }
 0x1a3   :  { %v6562_v15 = vld [vmem:[%s10301_s2 + $0x54] sm:$0xf0]  ;;  %v5153_v12 = vld [vmem:[%s10301_s2 + $0x58] sm:$0xf0]  ;;  %v5127_v7 = vld [vmem:[%s10301_s2 + $0x20] sm:$0xf] }
 0x1a4   :  { %1559 = vmatpush.bf16.msra.mxu2 %v5216_v57  ;;  %1573 = vmatpush.bf16.msra.mxu3 %v5204_v9  ;;  %v5172_v57 = vor.u32 %v6564_v60, %v5169_v11  ;;  %v6557_v9 = vld [vmem:[%s10301_s2 + $0x2c] sm:$0xf0]  ;;  %v5119_v60 = vld [vmem:[%s10301_s2 + $0x8] sm:$0xf]  ;;  %v6554_v11 = vld [vmem:[%s10301_s2 + $0x14] sm:$0xf0] }
 0x1a5   :  { %1547 = vmatpush.bf16.msra.mxu1 %v5196_v4  ;;  %v6553_v50 = vld [vmem:[%s10301_s2 + $0xc] sm:$0xf0] }
 0x1a7   :  { %v6906_v28 = vpop.eup %6905 }
 0x1a8   :  { %v8069_v36 = vmul.f32 %v6906_v28, %v1002_v35  ;;  %1560 = vmatpush.bf16.msra.mxu2 %v5200_v5  ;;  %v6567_v28 = vld [vmem:[%s10301_s2 + $0x84] sm:$0xf]  ;;  %v5176_v35 = vor.u32 %v6569_v24, %v5175_v17  ;;  %1574 = vmatpush.bf16.msra.mxu3 %v5188_v46  ;;  %v6560_v5 = vld [vmem:[%s10301_s2 + $0x4c] sm:$0xf]  ;;  %v5128_v24 = vor.u32 %v6557_v9, %v5127_v7 }
 0x1a9   :  { %v5156_v17 = vor.u32 %v6560_v5, %v5153_v12 }
 0x1aa   :  { %v1018_v22 = vpack.c.bf16 %v8069_v36, %v8069_v36  ;;  %1535 = vmatpush.bf16.msra.mxu0 %v5176_v35  ;;  %v5129_v35 = vld [vmem:[%s10301_s2 + $0x30] sm:$0xf0] }
 0x1ac   :  { %1219 = vmatmul.bf16.vlgmr.msrb.gmra.mxu0 %v1018_v22  ;;  %1232 = vmatmul.bf16.vlgmr.msrb.gmra.mxu1 %v1018_v22 }
 0x1ad   :  { %1245 = vmatmul.bf16.vlgmr.msrb.gmra.mxu2 %v1018_v22  ;;  %1258 = vmatmul.bf16.vlgmr.msrb.gmra.mxu3 %v1018_v22  ;;  %v5177_v22 = vld [vmem:[%s10301_s2 + $0x90] sm:$0xf0] }
 0x1ae   :  { %v5180_v40 = vor.u32 %v6567_v28, %v5177_v22  ;;  %1561 = vmatpush.bf16.msra.mxu2 %v5184_v43  ;;  %1536 = vmatpush.bf16.msra.mxu0 %v5160_v52  ;;  %v6555_v28 = vld [vmem:[%s10301_s2 + $0x24] sm:$0xf]  ;;  %v5135_v22 = vld [vmem:[%s10301_s2 + $0x28] sm:$0xf]  ;;  %v5137_v43 = vld [vmem:[%s10301_s2 + $0x38] sm:$0xf0] }
 0x1af   :  { %1575 = vmatpush.bf16.msra.mxu3 %v5172_v57  ;;  %v5132_v38 = vor.u32 %v6555_v28, %v5129_v35  ;;  %v5136_v46 = vor.u32 %v6558_v39, %v5135_v22  ;;  %v6551_v52 = vld [vmem:[%s10301_s2 + $0x4] sm:$0xf]  ;;  %v5121_v57 = vld [vmem:[%s10301_s2 + $0x18] sm:$0xf0] }
 0x1b0   :  { %1548 = vmatpush.bf16.msra.mxu1 %v5180_v40  ;;  %v6556_v40 = vld [vmem:[%s10301_s2 + $0x2c] sm:$0xf] }
 0x1b1   :  { %v5140_v47 = vor.u32 %v6556_v40, %v5137_v43 }
 0x1b2   :  { %1562 = vmatpush.bf16.msra.mxu2 %v5168_v59  ;;  %1537 = vmatpush.bf16.msra.mxu0 %v5144_v1  ;;  %v5113_v59 = vld [vmem:[%s10301_s2 + $0x10] sm:$0xf0] }
 0x1b3   :  { %1576 = vmatpush.bf16.msra.mxu3 %v5156_v17 }
 0x1b4   :  { %1549 = vmatpush.bf16.msra.mxu1 %v5164_v21  ;;  %v5112_v21 = vor.u32 %v6553_v50, %v5111_v49 }
 0x1b6   :  { %1538 = vmatpush.bf16.msra.mxu0 %v5128_v24 }
 0x1b7   :  { %1577 = vmatpush.bf16.msra.mxu3 %v5140_v47 }
 0x1ba   :  { %1539 = vmatpush.bf16.msra.mxu0 %v5112_v21 }
 0x229   :  { %v1220_v13 = vpop.f32.mrf.mxu0  ;;  %v1233_v19 = vpop.f32.mrf.mxu1 }
 0x22a   :  { %v1263_v14 = vadd.f32 %v1220_v13, %v7612_v23  ;;  %v1264_v53 = vadd.f32 %v1233_v19, %v7615_v25  ;;  %v5145_v23 = vld [vmem:[%s10301_s2 + $0x50] sm:$0xf0]  ;;  %v5151_v25 = vld [vmem:[%s10301_s2 + $0x48] sm:$0xf]  ;;  %v5116_v13 = vor.u32 %v6551_v52, %v5113_v59  ;;  %v6552_v19 = vld [vmem:[%s10301_s2 + $0xc] sm:$0xf] }
 0x22b   :  { %v5148_v3 = vor.u32 %v6559_v0, %v5145_v23  ;;  %v5152_v4 = vor.u32 %v6562_v15, %v5151_v25  ;;  %v5124_v62 = vor.u32 %v6552_v19, %v5121_v57 }
 0x22c   :  { %v5106_v2 = vmul.f32 -1.442695, %v1263_v14  ;;  %v5107_v16 = vmul.f32 -1.442695, %v1264_v53 }
 0x22d   :  { %1550 = vmatpush.bf16.msra.mxu1 %v5148_v3  ;;  %1563 = vmatpush.bf16.msra.mxu2 %v5152_v4 }
 0x22e   :  { %6907 = vpow2.f32 %v5106_v2  ;;  %1578 = vmatpush.bf16.msra.mxu3 %v5124_v62  ;;  %v5354_v62 = vld [vmem:[%s10301_s2 + $0xe0] sm:$0xf] }
 0x22f   :  { %6909 = vpow2.f32 %v5107_v16 }
 0x230   :  { %v1246_v44 = vpop.f32.mrf.mxu2  ;;  %v1259_v45 = vpop.f32.mrf.mxu3 }
 0x231   :  { %v1266_v54 = vadd.f32 %v1259_v45, %v7627_v32  ;;  %v1222_v55 = vpop.f32.mrf.mxu0  ;;  %v1235_v58 = vpop.f32.mrf.mxu1  ;;  %1551 = vmatpush.bf16.msra.mxu1 %v5132_v38  ;;  %1564 = vmatpush.bf16.msra.mxu2 %v5136_v46  ;;  %v5120_v32 = vor.u32 %v6554_v11, %v5119_v60  ;;  %v1265_v3 = vadd.f32 %v1246_v44, %v7622_v29 }
 0x233   :  { %v5108_v14 = vmul.f32 -1.442695, %v1266_v54 }
 0x234   :  { %v6908_v53 = vpop.eup %6907 }
 0x235   :  { %v6910_v63 = vpop.eup %6909  ;;  %v1273_v0 = vadd.f32 1.0, %v6908_v53  ;;  %6911 = vpow2.f32 %v5108_v14  ;;  %1552 = vmatpush.bf16.msra.mxu1 %v5116_v13  ;;  %1565 = vmatpush.bf16.msra.mxu2 %v5120_v32 }
 0x236   :  { %v1274_v1 = vadd.f32 1.0, %v6910_v63  ;;  %v6613_v63 = vld [vmem:[%s10301_s2 + $0xec] sm:$0xf0] }
 0x237   :  { %6913 = vrcp.f32 %v1273_v0  ;;  %v1286_v17 = vand.u32 2147483648, %v1273_v0  ;;  %v1284_v35 = vand.u32 2147483647, %v1273_v0  ;;  %vm1280_vm10 = vweird.f32 %v1273_v0 }
 0x238   :  { %6915 = vrcp.f32 %v1274_v1  ;;  %v1248_v23 = vpop.f32.mrf.mxu2  ;;  %v1261_v25 = vpop.f32.mrf.mxu3  ;;  %v1301_v24 = vand.u32 2147483648, %v1274_v1  ;;  %v1299_v38 = vand.u32 2147483647, %v1274_v1  ;;  %vm1295_vm11 = vweird.f32 %v1274_v1 }
 0x239   :  { %v1287_v29 = vor.u32 1.1754944e-38, %v1286_v17  ;;  %vm1285_vm14 = vcmp.eq.f32.partialorder %v1284_v35, 8.507059e+37  ;;  %v5356_v23 = vld [vmem:[%s10301_s2 + $0xf0] sm:$0xf0]  ;;  %v5362_v25 = vld [vmem:[%s10301_s2 + $0xe8] sm:$0xf] }
 0x23a   :  { %v1302_v45 = vor.u32 1.1754944e-38, %v1301_v24  ;;  %vm1300_vm15 = vcmp.eq.f32.partialorder %v1299_v38, 8.507059e+37  ;;  %v5340_v24 = vld [vmem:[%s10301_s2 + $0xd0] sm:$0xf0]  ;;  %v6610_v35 = vld [vmem:[%s10301_s2 + $0xd4] sm:$0xf0] }
 0x23b   :  { %v6912_v15 = vpop.eup %6911 }
 0x23c   :  { %v1309_v2 = vadd.f32 1.0, %v6912_v15  ;;  %v6614_v15 = vld [vmem:[%s10301_s2 + $0xf4] sm:$0xf0] }
 0x23d   :  { %v6914_v16 = vpop.eup %6913 }
 0x23e   :  { %v6916_v4 = vpop.eup %6915  ;;  %v1276_v5 = vmul.f32 %v6914_v16, %v1273_v0  ;;  %6917 = vrcp.f32 %v1309_v2  ;;  %vm1281_vm8 = vweird.f32 %v6914_v16  ;;  %v1321_v11 = vand.u32 2147483648, %v1309_v2  ;;  %v6611_v0 = vld [vmem:[%s10301_s2 + $0xe4] sm:$0xf] }
 0x23f   :  { %v1291_v12 = vmul.f32 %v6916_v4, %v1274_v1  ;;  %6919 = vtanh.f32 %v1265_v3  ;;  %vm1296_vm9 = vweird.f32 %v6916_v4  ;;  %vm1282_vm12 = vmor %vm1280_vm10, %vm1281_vm8  ;;  %vm1315_vm1 = vweird.f32 %v1309_v2  ;;  %v6612_v3 = vld [vmem:[%s10301_s2 + $0xec] sm:$0xf] }
 0x240   :  { %v1277_v7 = vsub.f32 1.0, %v1276_v5  ;;  %vm1297_vm13 = vmor %vm1295_vm11, %vm1296_vm9  ;;  %v1319_v13 = vand.u32 2147483647, %v1309_v2  ;;  %v1322_v19 = vor.u32 1.1754944e-38, %v1321_v11  ;;  %v5355_v1 = vor.u32 %v6613_v63, %v5354_v62  ;;  %v6601_v11 = vld [vmem:[%s10301_s2 + $0x8c] sm:$0xf0] }
 0x241   :  { %v1292_v9 = vsub.f32 1.0, %v1291_v12  ;;  %v5338_v12 = vld [vmem:[%s10301_s2 + $0xc0] sm:$0xf]  ;;  %v6600_v63 = vld [vmem:[%s10301_s2 + $0x8c] sm:$0xf] }
 0x242   :  { %v1278_v28 = vmul.f32 %v6914_v16, %v1277_v7  ;;  %vm1320_vm3 = vcmp.eq.f32.partialorder %v1319_v13, 8.507059e+37  ;;  %1853 = vmatpush.bf16.msrb.mxu0 %v5355_v1  ;;  %v6609_v7 = vld [vmem:[%s10301_s2 + $0xcc] sm:$0xf0]  ;;  %v6599_v13 = vld [vmem:[%s10301_s2 + $0x84] sm:$0xf] }
 0x243   :  { %v1293_v22 = vmul.f32 %v6916_v4, %v1292_v9  ;;  %v6607_v9 = vld [vmem:[%s10301_s2 + $0xc4] sm:$0xf]  ;;  %v5339_v17 = vor.u32 %v6609_v7, %v5338_v12  ;;  %v289_v12 = vadd.f32 %v7629_v33, %v7607_v20  ;;  %v6593_v33 = vld [vmem:[%s10301_s2 + $0x4c] sm:$0xf0] }
 0x244   :  { %v6918_v39 = vpop.eup %6917  ;;  %v1279_v40 = vadd.f32 %v6914_v16, %v1278_v28  ;;  %v5346_v28 = vld [vmem:[%s10301_s2 + $0xc8] sm:$0xf] }
 0x245   :  { %v1294_v43 = vadd.f32 %v6916_v4, %v1293_v22  ;;  %v1311_v44 = vmul.f32 %v6918_v39, %v1309_v2  ;;  %v6920_v47 = vpop.eup %6919  ;;  %vm1316_vm0 = vweird.f32 %v6918_v39  ;;  %v5359_v2 = vor.u32 %v6611_v0, %v5356_v23  ;;  %v5316_v0 = vld [vmem:[%s10301_s2 + $0x98] sm:$0xf0]  ;;  %v5290_v23 = vld [vmem:[%s10301_s2 + $0x60] sm:$0xf] }
 0x246   :  { %v1283_v46 = vsel %vm1282_vm12, %v6914_v16, %v1279_v40  ;;  %vm1317_vm2 = vmor %vm1315_vm1, %vm1316_vm0  ;;  %v5363_v16 = vor.u32 %v6614_v15, %v5362_v25  ;;  %v5343_v22 = vor.u32 %v6607_v9, %v5340_v24  ;;  %v5347_v38 = vor.u32 %v6610_v35, %v5346_v28  ;;  %v5348_v40 = vld [vmem:[%s10301_s2 + $0xd8] sm:$0xf0]  ;;  %1854 = vmatpush.bf16.msrb.mxu0 %v5339_v17  ;;  %v6597_v25 = vld [vmem:[%s10301_s2 + $0x6c] sm:$0xf0] }
 0x247   :  { %v1288_v49 = vsel %vm1285_vm14, %v1287_v29, %v1283_v46  ;;  %v1298_v50 = vsel %vm1297_vm13, %v6916_v4, %v1294_v43  ;;  %v1312_v52 = vsub.f32 1.0, %v1311_v44  ;;  %v5364_v4 = vld [vmem:[%s10301_s2 + $0xf8] sm:$0xf0]  ;;  %1866 = vmatpush.bf16.msrb.mxu1 %v5359_v2  ;;  %v5322_v43 = vld [vmem:[%s10301_s2 + $0xa0] sm:$0xf]  ;;  %v5319_v1 = vor.u32 %v6600_v63, %v5316_v0 }
 0x248   :  { %v1303_v54 = vsel %vm1300_vm15, %v1302_v45, %v1298_v50  ;;  %v1326_v55 = vmul.f32 %v6920_v47, %v1288_v49  ;;  %v5367_v5 = vor.u32 %v6612_v3, %v5364_v4  ;;  %1879 = vmatpush.bf16.msrb.mxu2 %v5363_v16  ;;  %v6605_v44 = vld [vmem:[%s10301_s2 + $0xac] sm:$0xf0]  ;;  %v6603_v45 = vld [vmem:[%s10301_s2 + $0xa4] sm:$0xf]  ;;  %v5324_v47 = vld [vmem:[%s10301_s2 + $0xb0] sm:$0xf0]  ;;  %v5291_v2 = vor.u32 %v6597_v25, %v5290_v23 }
 0x249   :  { %v1325_v58 = vmul.f32 %v1303_v54, %v8066_v6  ;;  %v1313_v21 = vmul.f32 %v6918_v39, %v1312_v52  ;;  %v5323_v46 = vor.u32 %v6605_v44, %v5322_v43  ;;  %v5330_v49 = vld [vmem:[%s10301_s2 + $0xa8] sm:$0xf]  ;;  %v6606_v50 = vld [vmem:[%s10301_s2 + $0xb4] sm:$0xf0]  ;;  %v5327_v52 = vor.u32 %v6603_v45, %v5324_v47  ;;  %v6595_v15 = vld [vmem:[%s10301_s2 + $0x64] sm:$0xf] }
 0x24a   :  { %1892 = vmatpush.bf16.msrb.mxu3 %v5367_v5  ;;  %v5331_v54 = vor.u32 %v6606_v50, %v5330_v49  ;;  %v5292_v16 = vld [vmem:[%s10301_s2 + $0x70] sm:$0xf0]  ;;  %v5298_v3 = vld [vmem:[%s10301_s2 + $0x68] sm:$0xf]  ;;  %v6598_v4 = vld [vmem:[%s10301_s2 + $0x74] sm:$0xf0]  ;;  %v265_v5 = vadd.f32 %v7624_v31, %v7603_v18 }
 0x24b   :  { %v8270_v59 = vadd.f32 %v1326_v55, %v1325_v58  ;;  %v1314_v60 = vadd.f32 %v6918_v39, %v1313_v21  ;;  %1867 = vmatpush.bf16.msrb.mxu1 %v5343_v22  ;;  %v6604_v55 = vld [vmem:[%s10301_s2 + $0xac] sm:$0xf]  ;;  %v5332_v58 = vld [vmem:[%s10301_s2 + $0xb8] sm:$0xf0]  ;;  %1855 = vmatpush.bf16.msrb.mxu0 %v5323_v46  ;;  %v5295_v7 = vor.u32 %v6595_v15, %v5292_v16  ;;  %v5274_v31 = vld [vmem:[%s10301_s2 + $0x40] sm:$0xf] }
 0x24c   :  { %1880 = vmatpush.bf16.msrb.mxu2 %v5347_v38  ;;  %v5335_v21 = vor.u32 %v6604_v55, %v5332_v58  ;;  %v5299_v9 = vor.u32 %v6598_v4, %v5298_v3  ;;  %v6596_v17 = vld [vmem:[%s10301_s2 + $0x6c] sm:$0xf]  ;;  %v5300_v24 = vld [vmem:[%s10301_s2 + $0x78] sm:$0xf0]  ;;  %v5276_v43 = vld [vmem:[%s10301_s2 + $0x50] sm:$0xf0] }
 0x24d   :  { %6921 = vtanh.f32 %v8270_v59  ;;  %v1318_v32 = vsel %vm1317_vm2, %v6918_v39, %v1314_v60  ;;  %v6608_v39 = vld [vmem:[%s10301_s2 + $0xcc] sm:$0xf]  ;;  %v5306_v60 = vld [vmem:[%s10301_s2 + $0x80] sm:$0xf]  ;;  %v5303_v22 = vor.u32 %v6596_v17, %v5300_v24  ;;  %v5282_v44 = vld [vmem:[%s10301_s2 + $0x48] sm:$0xf] }
 0x24e   :  { %v1323_v14 = vsel %vm1320_vm3, %v1322_v19, %v1318_v32  ;;  %v5351_v29 = vor.u32 %v6608_v39, %v5348_v40  ;;  %v5307_v32 = vor.u32 %v6601_v11, %v5306_v60  ;;  %v5308_v19 = vld [vmem:[%s10301_s2 + $0x90] sm:$0xf0]  ;;  %v6591_v40 = vld [vmem:[%s10301_s2 + $0x44] sm:$0xf]  ;;  %v6594_v45 = vld [vmem:[%s10301_s2 + $0x54] sm:$0xf0] }
 0x24f   :  { %1868 = vmatpush.bf16.msrb.mxu1 %v5327_v52  ;;  %v5279_v49 = vor.u32 %v6591_v40, %v5276_v43  ;;  %v5283_v50 = vor.u32 %v6594_v45, %v5282_v44  ;;  %v6592_v52 = vld [vmem:[%s10301_s2 + $0x4c] sm:$0xf]  ;;  %v5258_v55 = vld [vmem:[%s10301_s2 + $0x20] sm:$0xf]  ;;  %v6589_v58 = vld [vmem:[%s10301_s2 + $0x2c] sm:$0xf0]  ;;  %v313_v44 = vadd.f32 %v7640_v37, %v7617_v26 }
 0x250   :  { %1893 = vmatpush.bf16.msrb.mxu3 %v5351_v29  ;;  %1881 = vmatpush.bf16.msrb.mxu2 %v5331_v54  ;;  %v5275_v29 = vor.u32 %v6593_v33, %v5274_v31  ;;  %v5284_v54 = vld [vmem:[%s10301_s2 + $0x58] sm:$0xf0]  ;;  %v5259_v60 = vor.u32 %v6589_v58, %v5258_v55  ;;  %v6587_v11 = vld [vmem:[%s10301_s2 + $0x24] sm:$0xf]  ;;  %v6585_v25 = vld [vmem:[%s10301_s2 + $0xc] sm:$0xf0] }
 0x251   :  { %1856 = vmatpush.bf16.msrb.mxu0 %v5307_v32  ;;  %v5266_v32 = vld [vmem:[%s10301_s2 + $0x28] sm:$0xf]  ;;  %v6583_v15 = vld [vmem:[%s10301_s2 + $0x4] sm:$0xf]  ;;  %v6584_v24 = vld [vmem:[%s10301_s2 + $0xc] sm:$0xf] }
 0x253   :  { %v6922_v57 = vpop.eup %6921 }
 0x254   :  { %v8273_v53 = vmul.f32 %v6922_v57, %v1323_v14  ;;  %1894 = vmatpush.bf16.msrb.mxu3 %v5335_v21  ;;  %v5314_v57 = vld [vmem:[%s10301_s2 + $0x88] sm:$0xf]  ;;  %v6602_v14 = vld [vmem:[%s10301_s2 + $0x94] sm:$0xf0]  ;;  %v5287_v21 = vor.u32 %v6592_v52, %v5284_v54 }
 0x255   :  { %v5315_v62 = vor.u32 %v6602_v14, %v5314_v57  ;;  %1857 = vmatpush.bf16.msrb.mxu0 %v5291_v2  ;;  %v6590_v14 = vld [vmem:[%s10301_s2 + $0x34] sm:$0xf0] }
 0x256   :  { %v1339_v6 = vpack.c.bf16 %v8273_v53, %v8273_v53 }
 0x257   :  { %1882 = vmatpush.bf16.msrb.mxu2 %v5315_v62  ;;  %v5268_v62 = vld [vmem:[%s10301_s2 + $0x38] sm:$0xf0] }
 0x258   :  { %1540 = vmatmul.bf16.vlgmr.msra.gmra.mxu0 %v1339_v6  ;;  %1553 = vmatmul.bf16.vlgmr.msra.gmra.mxu1 %v1339_v6 }
 0x259   :  { %1566 = vmatmul.bf16.vlgmr.msra.gmra.mxu2 %v1339_v6  ;;  %1579 = vmatmul.bf16.vlgmr.msra.gmra.mxu3 %v1339_v6  ;;  %v5311_v6 = vor.u32 %v6599_v13, %v5308_v19  ;;  %v5260_v13 = vld [vmem:[%s10301_s2 + $0x30] sm:$0xf0]  ;;  %v337_v19 = vadd.f32 %v7651_v42, %v7619_v27  ;;  %v5242_v42 = vld [vmem:[%s10301_s2] sm:$0xf] }
 0x25a   :  { %1895 = vmatpush.bf16.msrb.mxu3 %v5319_v1  ;;  %1858 = vmatpush.bf16.msrb.mxu0 %v5275_v29  ;;  %v5263_v57 = vor.u32 %v6587_v11, %v5260_v13  ;;  %v5267_v1 = vor.u32 %v6590_v14, %v5266_v32  ;;  %v5243_v4 = vor.u32 %v6585_v25, %v5242_v42 }
 0x25b   :  { %1869 = vmatpush.bf16.msrb.mxu1 %v5311_v6  ;;  %1883 = vmatpush.bf16.msrb.mxu2 %v5299_v9  ;;  %v6588_v6 = vld [vmem:[%s10301_s2 + $0x2c] sm:$0xf] }
 0x25c   :  { %v5271_v23 = vor.u32 %v6588_v6, %v5268_v62 }
 0x25e   :  { %1896 = vmatpush.bf16.msrb.mxu3 %v5303_v22  ;;  %1859 = vmatpush.bf16.msrb.mxu0 %v5259_v60 }
 0x25f   :  { %1870 = vmatpush.bf16.msrb.mxu1 %v5295_v7  ;;  %1884 = vmatpush.bf16.msrb.mxu2 %v5283_v50  ;;  %v6586_v7 = vld [vmem:[%s10301_s2 + $0x14] sm:$0xf0] }
 0x262   :  { %1897 = vmatpush.bf16.msrb.mxu3 %v5287_v21  ;;  %1860 = vmatpush.bf16.msrb.mxu0 %v5243_v4 }
 0x263   :  { %1871 = vmatpush.bf16.msrb.mxu1 %v5279_v49  ;;  %1885 = vmatpush.bf16.msrb.mxu2 %v5267_v1 }
 0x266   :  { %1898 = vmatpush.bf16.msrb.mxu3 %v5271_v23 }
 0x267   :  { %1872 = vmatpush.bf16.msrb.mxu1 %v5263_v57 }
 0x2d5   :  { %v1541_v28 = vpop.f32.mrf.mxu0  ;;  %v1554_v35 = vpop.f32.mrf.mxu1 }
 0x2d6   :  { %v1584_v38 = vadd.f32 %v1541_v28, %v265_v5  ;;  %v1585_v39 = vadd.f32 %v1554_v35, %v289_v12  ;;  %v5244_v5 = vld [vmem:[%s10301_s2 + $0x10] sm:$0xf0]  ;;  %v5250_v12 = vld [vmem:[%s10301_s2 + $0x8] sm:$0xf]  ;;  %v5252_v28 = vld [vmem:[%s10301_s2 + $0x18] sm:$0xf0] }
 0x2d7   :  { %v5247_v9 = vor.u32 %v6583_v15, %v5244_v5  ;;  %v5251_v17 = vor.u32 %v6586_v7, %v5250_v12 }
 0x2d8   :  { %v5237_v46 = vmul.f32 -1.442695, %v1584_v38  ;;  %v5238_v47 = vmul.f32 -1.442695, %v1585_v39  ;;  %v5255_v38 = vor.u32 %v6584_v24, %v5252_v28 }
 0x2d9   :  { %1873 = vmatpush.bf16.msrb.mxu1 %v5247_v9  ;;  %1886 = vmatpush.bf16.msrb.mxu2 %v5251_v17 }
 0x2da   :  { %6923 = vpow2.f32 %v5237_v46  ;;  %1899 = vmatpush.bf16.msrb.mxu3 %v5255_v38  ;;  %v6643_v38 = vld [vmem:[%s10301_s2 + $0xe4] sm:$0xf] }
 0x2db   :  { %6925 = vpow2.f32 %v5238_v47 }
 0x2dc   :  { %v1567_v63 = vpop.f32.mrf.mxu2  ;;  %v1580_v0 = vpop.f32.mrf.mxu3 }
 0x2dd   :  { %v1587_v2 = vadd.f32 %v1580_v0, %v337_v19  ;;  %v1543_v16 = vpop.f32.mrf.mxu0  ;;  %v1556_v3 = vpop.f32.mrf.mxu1  ;;  %v1586_v47 = vadd.f32 %v1567_v63, %v313_v44  ;;  %v6644_v44 = vld [vmem:[%s10301_s2 + $0xec] sm:$0xf] }
 0x2df   :  { %v5239_v35 = vmul.f32 -1.442695, %v1587_v2 }
 0x2e0   :  { %v6924_v22 = vpop.eup %6923 }
 0x2e1   :  { %v6926_v39 = vpop.eup %6925  ;;  %v1594_v31 = vadd.f32 1.0, %v6924_v22  ;;  %6927 = vpow2.f32 %v5239_v35  ;;  %v5485_v35 = vld [vmem:[%s10301_s2 + $0xe0] sm:$0xf]  ;;  %v6645_v22 = vld [vmem:[%s10301_s2 + $0xec] sm:$0xf0] }
 0x2e2   :  { %v1595_v33 = vadd.f32 1.0, %v6926_v39  ;;  %v5486_v39 = vor.u32 %v6645_v22, %v5485_v35  ;;  %v5421_v22 = vld [vmem:[%s10301_s2 + $0x60] sm:$0xf] }
 0x2e3   :  { %6929 = vrcp.f32 %v1594_v31  ;;  %v1607_v58 = vand.u32 2147483648, %v1594_v31  ;;  %v1605_v11 = vand.u32 2147483647, %v1594_v31  ;;  %vm1601_vm6 = vweird.f32 %v1594_v31 }
 0x2e4   :  { %6931 = vrcp.f32 %v1595_v33  ;;  %v1569_v40 = vpop.f32.mrf.mxu2  ;;  %v1582_v29 = vpop.f32.mrf.mxu3  ;;  %v1622_v21 = vand.u32 2147483648, %v1595_v33  ;;  %v1620_v32 = vand.u32 2147483647, %v1595_v33  ;;  %vm1616_vm7 = vweird.f32 %v1595_v33  ;;  %2174 = vmatpush.bf16.msra.mxu0 %v5486_v39  ;;  %v6627_v39 = vld [vmem:[%s10301_s2 + $0x64] sm:$0xf] }
 0x2e5   :  { %v1608_v57 = vor.u32 1.1754944e-38, %v1607_v58  ;;  %vm1606_vm10 = vcmp.eq.f32.partialorder %v1605_v11, 8.507059e+37  ;;  %v6646_v40 = vld [vmem:[%s10301_s2 + $0xf4] sm:$0xf0]  ;;  %v6640_v11 = vld [vmem:[%s10301_s2 + $0xcc] sm:$0xf] }
 0x2e6   :  { %v1623_v62 = vor.u32 1.1754944e-38, %v1622_v21  ;;  %vm1621_vm11 = vcmp.eq.f32.partialorder %v1620_v32, 8.507059e+37  ;;  %v6642_v58 = vld [vmem:[%s10301_s2 + $0xd4] sm:$0xf0] }
 0x2e7   :  { %v6928_v43 = vpop.eup %6927 }
 0x2e8   :  { %v1630_v45 = vadd.f32 1.0, %v6928_v43 }
 0x2e9   :  { %v6930_v46 = vpop.eup %6929 }
 0x2ea   :  { %v6932_v49 = vpop.eup %6931  ;;  %v1597_v50 = vmul.f32 %v6930_v46, %v1594_v31  ;;  %6933 = vrcp.f32 %v1630_v45  ;;  %vm1602_vm4 = vweird.f32 %v6930_v46  ;;  %v1642_v5 = vand.u32 2147483648, %v1630_v45  ;;  %v5487_v31 = vld [vmem:[%s10301_s2 + $0xf0] sm:$0xf0] }
 0x2eb   :  { %v1612_v52 = vmul.f32 %v6932_v49, %v1595_v33  ;;  %6935 = vtanh.f32 %v1586_v47  ;;  %vm1617_vm5 = vweird.f32 %v6932_v49  ;;  %vm1603_vm8 = vmor %vm1601_vm6, %vm1602_vm4  ;;  %vm1636_vm13 = vweird.f32 %v1630_v45  ;;  %v5493_v33 = vld [vmem:[%s10301_s2 + $0xe8] sm:$0xf]  ;;  %v5469_v47 = vld [vmem:[%s10301_s2 + $0xc0] sm:$0xf] }
 0x2ec   :  { %v1598_v54 = vsub.f32 1.0, %v1597_v50  ;;  %vm1618_vm9 = vmor %vm1616_vm7, %vm1617_vm5  ;;  %v1640_v12 = vand.u32 2147483647, %v1630_v45  ;;  %v1643_v9 = vor.u32 1.1754944e-38, %v1642_v5  ;;  %v5490_v29 = vor.u32 %v6643_v38, %v5487_v31  ;;  %v6639_v50 = vld [vmem:[%s10301_s2 + $0xc4] sm:$0xf] }
 0x2ed   :  { %v1613_v55 = vsub.f32 1.0, %v1612_v52  ;;  %v5494_v43 = vor.u32 %v6646_v40, %v5493_v33  ;;  %v5439_v5 = vld [vmem:[%s10301_s2 + $0x90] sm:$0xf0]  ;;  %v6629_v38 = vld [vmem:[%s10301_s2 + $0x6c] sm:$0xf0] }
 0x2ee   :  { %v1599_v60 = vmul.f32 %v6930_v46, %v1598_v54  ;;  %vm1641_vm15 = vcmp.eq.f32.partialorder %v1640_v12, 8.507059e+37  ;;  %2187 = vmatpush.bf16.msra.mxu1 %v5490_v29  ;;  %v5471_v54 = vld [vmem:[%s10301_s2 + $0xd0] sm:$0xf0]  ;;  %v5445_v12 = vld [vmem:[%s10301_s2 + $0x88] sm:$0xf]  ;;  %v5422_v31 = vor.u32 %v6629_v38, %v5421_v22 }
 0x2ef   :  { %v1614_v13 = vmul.f32 %v6932_v49, %v1613_v55  ;;  %2200 = vmatpush.bf16.msra.mxu2 %v5494_v43  ;;  %v5477_v55 = vld [vmem:[%s10301_s2 + $0xc8] sm:$0xf]  ;;  %v5474_v21 = vor.u32 %v6639_v50, %v5471_v54  ;;  %v5423_v33 = vld [vmem:[%s10301_s2 + $0x70] sm:$0xf0]  ;;  %v6630_v29 = vld [vmem:[%s10301_s2 + $0x74] sm:$0xf0] }
 0x2f0   :  { %v6934_v19 = vpop.eup %6933  ;;  %v1600_v37 = vadd.f32 %v6930_v46, %v1599_v60  ;;  %v5478_v60 = vor.u32 %v6642_v58, %v5477_v55  ;;  %v5429_v40 = vld [vmem:[%s10301_s2 + $0x68] sm:$0xf]  ;;  %v5426_v43 = vor.u32 %v6627_v39, %v5423_v33  ;;  %v6625_v50 = vld [vmem:[%s10301_s2 + $0x4c] sm:$0xf0]  ;;  %v5407_v55 = vld [vmem:[%s10301_s2 + $0x50] sm:$0xf0] }
 0x2f1   :  { %v1615_v14 = vadd.f32 %v6932_v49, %v1614_v13  ;;  %v1632_v6 = vmul.f32 %v6934_v19, %v1630_v45  ;;  %v6936_v0 = vpop.eup %6935  ;;  %vm1637_vm12 = vweird.f32 %v6934_v19  ;;  %v5495_v45 = vld [vmem:[%s10301_s2 + $0xf8] sm:$0xf0]  ;;  %v5413_v58 = vld [vmem:[%s10301_s2 + $0x48] sm:$0xf]  ;;  %v5616_v22 = vld [vmem:[%s10303_s4 + $0xe0] sm:$0xf] }
 0x2f2   :  { %v1604_v63 = vsel %vm1603_vm8, %v6930_v46, %v1600_v37  ;;  %vm1638_vm14 = vmor %vm1636_vm13, %vm1637_vm12  ;;  %v5498_v46 = vor.u32 %v6644_v44, %v5495_v45  ;;  %v5479_v13 = vld [vmem:[%s10301_s2 + $0xd8] sm:$0xf0]  ;;  %2188 = vmatpush.bf16.msra.mxu1 %v5474_v21  ;;  %v6637_v37 = vld [vmem:[%s10301_s2 + $0xac] sm:$0xf0]  ;;  %v5430_v44 = vor.u32 %v6630_v29, %v5429_v40 }
 0x2f3   :  { %v1609_v1 = vsel %vm1606_vm10, %v1608_v57, %v1604_v63  ;;  %v1619_v23 = vsel %vm1618_vm9, %v6932_v49, %v1615_v14  ;;  %v1633_v42 = vsub.f32 1.0, %v1632_v6  ;;  %v6641_v49 = vld [vmem:[%s10301_s2 + $0xcc] sm:$0xf0]  ;;  %v5482_v32 = vor.u32 %v6640_v11, %v5479_v13  ;;  %2201 = vmatpush.bf16.msra.mxu2 %v5478_v60  ;;  %v6635_v57 = vld [vmem:[%s10301_s2 + $0xa4] sm:$0xf] }
 0x2f4   :  { %v1624_v25 = vsel %vm1621_vm11, %v1623_v62, %v1619_v23  ;;  %v1647_v15 = vmul.f32 %v6936_v0, %v1609_v1  ;;  %2213 = vmatpush.bf16.msra.mxu3 %v5498_v46  ;;  %v5470_v52 = vor.u32 %v6641_v49, %v5469_v47  ;;  %v5455_v6 = vld [vmem:[%s10301_s2 + $0xb0] sm:$0xf0]  ;;  %v5461_v62 = vld [vmem:[%s10301_s2 + $0xa8] sm:$0xf]  ;;  %v6638_v63 = vld [vmem:[%s10301_s2 + $0xb4] sm:$0xf0] }
 0x2f5   :  { %v1646_v2 = vmul.f32 %v1624_v25, %v8270_v59  ;;  %v1634_v16 = vmul.f32 %v6934_v19, %v1633_v42  ;;  %v5458_v0 = vor.u32 %v6635_v57, %v5455_v6  ;;  %v5462_v1 = vor.u32 %v6638_v63, %v5461_v62  ;;  %v6636_v23 = vld [vmem:[%s10301_s2 + $0xac] sm:$0xf]  ;;  %v5463_v42 = vld [vmem:[%s10301_s2 + $0xb8] sm:$0xf0]  ;;  %v5405_v49 = vld [vmem:[%s10301_s2 + $0x40] sm:$0xf] }
 0x2f6   :  { %2175 = vmatpush.bf16.msra.mxu0 %v5470_v52  ;;  %v5466_v25 = vor.u32 %v6636_v23, %v5463_v42  ;;  %v6628_v45 = vld [vmem:[%s10301_s2 + $0x6c] sm:$0xf]  ;;  %v5431_v46 = vld [vmem:[%s10301_s2 + $0x78] sm:$0xf0]  ;;  %v6623_v52 = vld [vmem:[%s10301_s2 + $0x44] sm:$0xf]  ;;  %v5406_v54 = vor.u32 %v6625_v50, %v5405_v49 }
 0x2f7   :  { %v8478_v3 = vadd.f32 %v1647_v15, %v1646_v2  ;;  %v1635_v4 = vadd.f32 %v6934_v19, %v1634_v16  ;;  %2189 = vmatpush.bf16.msra.mxu1 %v5458_v0  ;;  %2202 = vmatpush.bf16.msra.mxu2 %v5462_v1  ;;  %v5437_v15 = vld [vmem:[%s10301_s2 + $0x80] sm:$0xf]  ;;  %v6633_v2 = vld [vmem:[%s10301_s2 + $0x8c] sm:$0xf0]  ;;  %v6631_v16 = vld [vmem:[%s10301_s2 + $0x84] sm:$0xf]  ;;  %v5434_v47 = vor.u32 %v6628_v45, %v5431_v46 }
 0x2f8   :  { %2214 = vmatpush.bf16.msra.mxu3 %v5482_v32  ;;  %v6626_v21 = vld [vmem:[%s10301_s2 + $0x54] sm:$0xf0]  ;;  %v5410_v60 = vor.u32 %v6623_v52, %v5407_v55  ;;  %v6624_v13 = vld [vmem:[%s10301_s2 + $0x4c] sm:$0xf]  ;;  %v5415_v32 = vld [vmem:[%s10301_s2 + $0x58] sm:$0xf0] }
 0x2f9   :  { %6937 = vtanh.f32 %v8478_v3  ;;  %v1639_v7 = vsel %vm1638_vm14, %v6934_v19, %v1635_v4  ;;  %v5453_v19 = vld [vmem:[%s10301_s2 + $0xa0] sm:$0xf]  ;;  %v5438_v4 = vor.u32 %v6633_v2, %v5437_v15  ;;  %v5414_v11 = vor.u32 %v6626_v21, %v5413_v58  ;;  %v6621_v57 = vld [vmem:[%s10301_s2 + $0x2c] sm:$0xf0]  ;;  %v5391_v62 = vld [vmem:[%s10301_s2 + $0x30] sm:$0xf0] }
 0x2fa   :  { %v1644_v24 = vsel %vm1641_vm15, %v1643_v9, %v1639_v7  ;;  %v5454_v14 = vor.u32 %v6637_v37, %v5453_v19  ;;  %v6634_v7 = vld [vmem:[%s10301_s2 + $0x94] sm:$0xf0]  ;;  %v5442_v9 = vor.u32 %v6631_v16, %v5439_v5  ;;  %v5418_v19 = vor.u32 %v6624_v13, %v5415_v32  ;;  %v5389_v37 = vld [vmem:[%s10301_s2 + $0x20] sm:$0xf]  ;;  %v5397_v63 = vld [vmem:[%s10301_s2 + $0x28] sm:$0xf] }
 0x2fb   :  { %v5390_v6 = vor.u32 %v6621_v57, %v5389_v37  ;;  %v6622_v0 = vld [vmem:[%s10301_s2 + $0x34] sm:$0xf0]  ;;  %v6620_v42 = vld [vmem:[%s10301_s2 + $0x2c] sm:$0xf]  ;;  %v5373_v2 = vld [vmem:[%s10301_s2] sm:$0xf] }
 0x2fc   :  { %2176 = vmatpush.bf16.msra.mxu0 %v5454_v14  ;;  %2215 = vmatpush.bf16.msra.mxu3 %v5466_v25  ;;  %v6619_v14 = vld [vmem:[%s10301_s2 + $0x24] sm:$0xf]  ;;  %v5398_v23 = vor.u32 %v6622_v0, %v5397_v63  ;;  %v5399_v25 = vld [vmem:[%s10301_s2 + $0x38] sm:$0xf0]  ;;  %v6617_v16 = vld [vmem:[%s10301_s2 + $0xc] sm:$0xf0] }
 0x2fd   :  { %2190 = vmatpush.bf16.msra.mxu1 %v5442_v9  ;;  %v5394_v1 = vor.u32 %v6619_v14, %v5391_v62  ;;  %v5402_v15 = vor.u32 %v6620_v42, %v5399_v25  ;;  %v5374_v5 = vor.u32 %v6617_v16, %v5373_v2  ;;  %v6618_v9 = vld [vmem:[%s10301_s2 + $0x14] sm:$0xf0]  ;;  %v6677_v39 = vld [vmem:[%s10303_s4 + $0xec] sm:$0xf0]  ;;  %v5618_v33 = vld [vmem:[%s10303_s4 + $0xf0] sm:$0xf0] }
 0x2fe   :  { %v5624_v45 = vld [vmem:[%s10303_s4 + $0xe8] sm:$0xf]  ;;  %v6678_v46 = vld [vmem:[%s10303_s4 + $0xf4] sm:$0xf0]  ;;  %v5600_v55 = vld [vmem:[%s10303_s4 + $0xc0] sm:$0xf] }
 0x2ff   :  { %v6938_v17 = vpop.eup %6937  ;;  %v5625_v52 = vor.u32 %v6678_v46, %v5624_v45  ;;  %v6673_v58 = vld [vmem:[%s10303_s4 + $0xcc] sm:$0xf0]  ;;  %v6674_v37 = vld [vmem:[%s10303_s4 + $0xd4] sm:$0xf0]  ;;  %v6672_v14 = vld [vmem:[%s10303_s4 + $0xcc] sm:$0xf] }
 0x300   :  { %v8481_v28 = vmul.f32 %v6938_v17, %v1644_v24  ;;  %v5446_v17 = vor.u32 %v6634_v7, %v5445_v12  ;;  %v6632_v24 = vld [vmem:[%s10301_s2 + $0x8c] sm:$0xf]  ;;  %2177 = vmatpush.bf16.msra.mxu0 %v5438_v4  ;;  %v6615_v4 = vld [vmem:[%s10301_s2 + $0x4] sm:$0xf]  ;;  %v5375_v12 = vld [vmem:[%s10301_s2 + $0x10] sm:$0xf0] }
 0x301   :  { %2191 = vmatpush.bf16.msra.mxu1 %v5426_v43  ;;  %v5381_v7 = vld [vmem:[%s10301_s2 + $0x8] sm:$0xf]  ;;  %v5617_v43 = vor.u32 %v6677_v39, %v5616_v22  ;;  %v5584_v62 = vld [vmem:[%s10303_s4 + $0xa0] sm:$0xf]  ;;  %v6669_v0 = vld [vmem:[%s10303_s4 + $0xac] sm:$0xf0] }
 0x302   :  { %v1660_v59 = vpack.c.bf16 %v8481_v28, %v8481_v28  ;;  %2203 = vmatpush.bf16.msra.mxu2 %v5446_v17  ;;  %v5378_v17 = vor.u32 %v6615_v4, %v5375_v12  ;;  %v5585_v42 = vor.u32 %v6669_v0, %v5584_v62  ;;  %v6670_v2 = vld [vmem:[%s10303_s4 + $0xb4] sm:$0xf0]  ;;  %v6668_v16 = vld [vmem:[%s10303_s4 + $0xac] sm:$0xf]  ;;  %v5570_v39 = vld [vmem:[%s10303_s4 + $0x90] sm:$0xf0] }
 0x303   :  { %v5562_v62 = vld [vmem:[%s10303_s4 + $0x78] sm:$0xf0] }
 0x304   :  { %1861 = vmatmul.bf16.vlgmr.msrb.gmra.mxu0 %v1660_v59  ;;  %1874 = vmatmul.bf16.vlgmr.msrb.gmra.mxu1 %v1660_v59 }
 0x305   :  { %1887 = vmatmul.bf16.vlgmr.msrb.gmra.mxu2 %v1660_v59  ;;  %1900 = vmatmul.bf16.vlgmr.msrb.gmra.mxu3 %v1660_v59  ;;  %v5447_v59 = vld [vmem:[%s10301_s2 + $0x98] sm:$0xf0] }
 0x306   :  { %v5450_v35 = vor.u32 %v6632_v24, %v5447_v59  ;;  %2178 = vmatpush.bf16.msra.mxu0 %v5422_v31  ;;  %2204 = vmatpush.bf16.msra.mxu2 %v5430_v44  ;;  %v5382_v24 = vor.u32 %v6618_v9, %v5381_v7  ;;  %v6616_v59 = vld [vmem:[%s10301_s2 + $0xc] sm:$0xf]  ;;  %v6675_v31 = vld [vmem:[%s10303_s4 + $0xe4] sm:$0xf]  ;;  %v5594_v7 = vld [vmem:[%s10303_s4 + $0xb8] sm:$0xf0] }
 0x307   :  { %2192 = vmatpush.bf16.msra.mxu1 %v5410_v60  ;;  %v5621_v44 = vor.u32 %v6675_v31, %v5618_v33  ;;  %v5602_v60 = vld [vmem:[%s10303_s4 + $0xd0] sm:$0xf0]  ;;  %v5568_v9 = vld [vmem:[%s10303_s4 + $0x80] sm:$0xf]  ;;  %v5597_v22 = vor.u32 %v6668_v16, %v5594_v7  ;;  %v5576_v31 = vld [vmem:[%s10303_s4 + $0x88] sm:$0xf] }
 0x308   :  { %2216 = vmatpush.bf16.msra.mxu3 %v5450_v35  ;;  %v5383_v35 = vld [vmem:[%s10301_s2 + $0x18] sm:$0xf0]  ;;  %v6664_v33 = vld [vmem:[%s10303_s4 + $0x8c] sm:$0xf]  ;;  %v6658_v16 = vld [vmem:[%s10303_s4 + $0x54] sm:$0xf0] }
 0x309   :  { %v5386_v38 = vor.u32 %v6616_v59, %v5383_v35  ;;  %v5546_v7 = vld [vmem:[%s10303_s4 + $0x58] sm:$0xf0]  ;;  %s7119_s2 = smov [#allocation6]  }
 0x30a   :  { %2179 = vmatpush.bf16.msra.mxu0 %v5406_v54  ;;  %2205 = vmatpush.bf16.msra.mxu2 %v5414_v11  ;;  %v5626_v54 = vld [vmem:[%s10303_s4 + $0xf8] sm:$0xf0]  ;;  %v5608_v11 = vld [vmem:[%s10303_s4 + $0xc8] sm:$0xf]  ;;  %s4562_s25 = sshll.u32 %s7119_s2, 4  ;;  %s4563_s25 = int_to_ptr.vmem [resolvable:$true] %s4562_s25 }
 0x30b   :  { %2193 = vmatpush.bf16.msra.mxu1 %v5394_v1  ;;  %v5609_v57 = vor.u32 %v6674_v37, %v5608_v11  ;;  %v6667_v1 = vld [vmem:[%s10303_s4 + $0xa4] sm:$0xf] }
 0x30c   :  { %2217 = vmatpush.bf16.msra.mxu3 %v5434_v47  ;;  %v6676_v47 = vld [vmem:[%s10303_s4 + $0xec] sm:$0xf] }
 0x30d   :  { %v5629_v21 = vor.u32 %v6676_v47, %v5626_v54  ;;  %v5552_v54 = vld [vmem:[%s10303_s4 + $0x60] sm:$0xf] }
 0x30e   :  { %2180 = vmatpush.bf16.msra.mxu0 %v5390_v6  ;;  %2206 = vmatpush.bf16.msra.mxu2 %v5398_v23  ;;  %v5610_v6 = vld [vmem:[%s10303_s4 + $0xd8] sm:$0xf0]  ;;  %v5586_v23 = vld [vmem:[%s10303_s4 + $0xb0] sm:$0xf0] }
 0x30f   :  { %2194 = vmatpush.bf16.msra.mxu1 %v5378_v17  ;;  %v5613_v63 = vor.u32 %v6672_v14, %v5610_v6  ;;  %v5589_v25 = vor.u32 %v6667_v1, %v5586_v23  ;;  %v6665_v17 = vld [vmem:[%s10303_s4 + $0x8c] sm:$0xf0]  ;;  %v6660_v6 = vld [vmem:[%s10303_s4 + $0x6c] sm:$0xf]  ;;  %v6655_v23 = vld [vmem:[%s10303_s4 + $0x44] sm:$0xf] }
 0x310   :  { %2218 = vmatpush.bf16.msra.mxu3 %v5418_v19  ;;  %v5565_v1 = vor.u32 %v6660_v6, %v5562_v62 }
 0x312   :  { %2181 = vmatpush.bf16.msra.mxu0 %v5374_v5  ;;  %2207 = vmatpush.bf16.msra.mxu2 %v5382_v24 }
 0x313   :  { %2532 = vmatpush.bf16.msrb.mxu1 %v5621_v44 }
 0x314   :  { %2219 = vmatpush.bf16.msra.mxu3 %v5402_v15  ;;  %v5592_v15 = vld [vmem:[%s10303_s4 + $0xa8] sm:$0xf] }
 0x315   :  { %v5593_v12 = vor.u32 %v6670_v2, %v5592_v15  ;;  %v5538_v15 = vld [vmem:[%s10303_s4 + $0x50] sm:$0xf0]  ;;  %v5544_v2 = vld [vmem:[%s10303_s4 + $0x48] sm:$0xf] }
 0x316   :  { %2508 = vmatpush.bf16.msrb.mxu0 %v5617_v43  ;;  %2556 = vmatpush.bf16.msrb.mxu2 %v5625_v52  ;;  %v5569_v43 = vor.u32 %v6665_v17, %v5568_v9  ;;  %v5520_v9 = vld [vmem:[%s10303_s4 + $0x20] sm:$0xf] }
 0x318   :  { %2220 = vmatpush.bf16.msra.mxu3 %v5386_v38  ;;  %v6663_v38 = vld [vmem:[%s10303_s4 + $0x84] sm:$0xf] }
 0x319   :  { %v5573_v44 = vor.u32 %v6663_v38, %v5570_v39  ;;  %v5541_v38 = vor.u32 %v6655_v23, %v5538_v15  ;;  %v5545_v39 = vor.u32 %v6658_v16, %v5544_v2  ;;  %v5514_v23 = vld [vmem:[%s10303_s4 + $0x18] sm:$0xf0] }
 0x31a   :  { %2557 = vmatpush.bf16.msrb.mxu2 %v5609_v57 }
 0x31c   :  { %2580 = vmatpush.bf16.msrb.mxu3 %v5629_v21  ;;  %v6661_v21 = vld [vmem:[%s10303_s4 + $0x6c] sm:$0xf0] }
 0x31e   :  { %2558 = vmatpush.bf16.msrb.mxu2 %v5593_v12  ;;  %v6656_v12 = vld [vmem:[%s10303_s4 + $0x4c] sm:$0xf] }
 0x320   :  { %2581 = vmatpush.bf16.msrb.mxu3 %v5613_v63  ;;  %v5536_v63 = vld [vmem:[%s10303_s4 + $0x40] sm:$0xf] }
 0x324   :  { %2582 = vmatpush.bf16.msrb.mxu3 %v5597_v22 }
 0x381   :  { %v1862_v40 = vpop.f32.mrf.mxu0  ;;  %v1875_v29 = vpop.f32.mrf.mxu1 }
 0x382   :  { %v1905_v49 = vadd.f32 %v1862_v40, %v7660_v48  ;;  %v1906_v50 = vadd.f32 %v1875_v29, %v7663_v51  ;;  %v5601_v48 = vor.u32 %v6673_v58, %v5600_v55  ;;  %v6671_v51 = vld [vmem:[%s10303_s4 + $0xc4] sm:$0xf]  ;;  %v5578_v40 = vld [vmem:[%s10303_s4 + $0x98] sm:$0xf0] }
 0x383   :  { %v5605_v19 = vor.u32 %v6671_v51, %v5602_v60  ;;  %v6659_v51 = vld [vmem:[%s10303_s4 + $0x64] sm:$0xf]  ;;  %v5554_v60 = vld [vmem:[%s10303_s4 + $0x70] sm:$0xf0] }
 0x384   :  { %v5368_v13 = vmul.f32 -1.442695, %v1905_v49  ;;  %v5369_v32 = vmul.f32 -1.442695, %v1906_v50  ;;  %2509 = vmatpush.bf16.msrb.mxu0 %v5601_v48  ;;  %v5581_v50 = vor.u32 %v6664_v33, %v5578_v40  ;;  %v5553_v48 = vor.u32 %v6661_v21, %v5552_v54  ;;  %v5522_v33 = vld [vmem:[%s10303_s4 + $0x30] sm:$0xf0] }
 0x385   :  { %2533 = vmatpush.bf16.msrb.mxu1 %v5605_v19  ;;  %v6662_v19 = vld [vmem:[%s10303_s4 + $0x74] sm:$0xf0]  ;;  %v6652_v54 = vld [vmem:[%s10303_s4 + $0x2c] sm:$0xf] }
 0x386   :  { %6939 = vpow2.f32 %v5368_v13  ;;  %2583 = vmatpush.bf16.msrb.mxu3 %v5581_v50  ;;  %v5557_v13 = vor.u32 %v6659_v51, %v5554_v60  ;;  %v6654_v50 = vld [vmem:[%s10303_s4 + $0x34] sm:$0xf0]  ;;  %v5504_v51 = vld [vmem:[%s10303_s4] sm:$0xf]  ;;  %v6649_v60 = vld [vmem:[%s10303_s4 + $0xc] sm:$0xf0] }
 0x387   :  { %6941 = vpow2.f32 %v5369_v32  ;;  %v5560_v32 = vld [vmem:[%s10303_s4 + $0x68] sm:$0xf] }
 0x388   :  { %v1888_v4 = vpop.f32.mrf.mxu2  ;;  %v1901_v5 = vpop.f32.mrf.mxu3  ;;  %2510 = vmatpush.bf16.msrb.mxu0 %v5585_v42  ;;  %v5561_v14 = vor.u32 %v6662_v19, %v5560_v32  ;;  %v5505_v19 = vor.u32 %v6649_v60, %v5504_v51  ;;  %v5732_v60 = vld [vmem:[%s10304_s5 + $0xd0] sm:$0xf0] }
 0x389   :  { %v1908_v24 = vadd.f32 %v1901_v5, %v7719_v30  ;;  %v1864_v59 = vpop.f32.mrf.mxu0  ;;  %v1877_v35 = vpop.f32.mrf.mxu1  ;;  %v6666_v30 = vld [vmem:[%s10303_s4 + $0x94] sm:$0xf0]  ;;  %2534 = vmatpush.bf16.msrb.mxu1 %v5589_v25  ;;  %v1907_v57 = vadd.f32 %v1888_v4, %v7708_v8  ;;  %v6657_v8 = vld [vmem:[%s10303_s4 + $0x4c] sm:$0xf0] }
 0x38a   :  { %v5577_v46 = vor.u32 %v6666_v30, %v5576_v31  ;;  %v5537_v25 = vor.u32 %v6657_v8, %v5536_v63  ;;  %2584 = vmatpush.bf16.msrb.mxu3 %v5565_v1  ;;  %v6653_v35 = vld [vmem:[%s10303_s4 + $0x2c] sm:$0xf0]  ;;  %v5549_v31 = vor.u32 %v6656_v12, %v5546_v7  ;;  %v6651_v30 = vld [vmem:[%s10303_s4 + $0x24] sm:$0xf]  ;;  %v6648_v8 = vld [vmem:[%s10303_s4 + $0xc] sm:$0xf] }
 0x38b   :  { %v5370_v29 = vmul.f32 -1.442695, %v1908_v24  ;;  %v5517_v7 = vor.u32 %v6648_v8, %v5514_v23  ;;  %v6700_v8 = vld [vmem:[%s10304_s5 + $0xac] sm:$0xf]  ;;  %v5724_v23 = vld [vmem:[%s10304_s5 + $0xb8] sm:$0xf0] }
 0x38c   :  { %v6940_v45 = vpop.eup %6939  ;;  %2511 = vmatpush.bf16.msrb.mxu0 %v5569_v43  ;;  %2559 = vmatpush.bf16.msrb.mxu2 %v5577_v46 }
 0x38d   :  { %v6942_v47 = vpop.eup %6941  ;;  %v8776_v49 = vadd.f32 1.0, %v6940_v45  ;;  %6943 = vpow2.f32 %v5370_v29  ;;  %2535 = vmatpush.bf16.msrb.mxu1 %v5573_v44  ;;  %v5521_v44 = vor.u32 %v6653_v35, %v5520_v9  ;;  %v5528_v45 = vld [vmem:[%s10303_s4 + $0x28] sm:$0xf]  ;;  %v6709_v29 = vld [vmem:[%s10304_s5 + $0xec] sm:$0xf0] }
 0x38e   :  { %v8778_v52 = vadd.f32 1.0, %v6942_v47  ;;  %v5525_v47 = vor.u32 %v6651_v30, %v5522_v33  ;;  %2585 = vmatpush.bf16.msrb.mxu3 %v5549_v31  ;;  %v5529_v21 = vor.u32 %v6654_v50, %v5528_v45  ;;  %v2303_v33 = vpack.c.bf16 %v8069_v36, %v7861_v41  ;;  %v6707_v41 = vld [vmem:[%s10304_s5 + $0xe4] sm:$0xf]  ;;  %v5754_v50 = vld [vmem:[%s10304_s5 + $0xe8] sm:$0xf] }
 0x38f   :  { %6945 = vrcp.f32 %v8776_v49  ;;  %v1926_v11 = vand.u32 2147483647, %v8776_v49  ;;  %v1928_v59 = vand.u32 2147483648, %v8776_v49  ;;  %vm1922_vm4 = vweird.f32 %v8776_v49 }
 0x390   :  { %6947 = vrcp.f32 %v8778_v52  ;;  %v1890_v55 = vpop.f32.mrf.mxu2  ;;  %v1903_v58 = vpop.f32.mrf.mxu3  ;;  %2512 = vmatpush.bf16.msrb.mxu0 %v5553_v48  ;;  %2560 = vmatpush.bf16.msrb.mxu2 %v5561_v14  ;;  %v1943_v24 = vand.u32 2147483648, %v8778_v52  ;;  %v1941_v43 = vand.u32 2147483647, %v8778_v52  ;;  %vm1937_vm3 = vweird.f32 %v8778_v52  ;;  %v6650_v14 = vld [vmem:[%s10303_s4 + $0x14] sm:$0xf0] }
 0x391   :  { %2536 = vmatpush.bf16.msrb.mxu1 %v5557_v13  ;;  %vm8857_vm0 = vcmp.eq.f32.partialorder %v1926_v11, 8.507059e+37  ;;  %v5530_v55 = vld [vmem:[%s10303_s4 + $0x38] sm:$0xf0]  ;;  %v6647_v11 = vld [vmem:[%s10303_s4 + $0x4] sm:$0xf]  ;;  %v1929_v63 = vor.u32 1.1754944e-38, %v1928_v59  ;;  %v294_v45 = vadd.f32 %v7721_v34, %v7607_v20 }
 0x392   :  { %v5533_v48 = vor.u32 %v6652_v54, %v5530_v55  ;;  %v1944_v62 = vor.u32 1.1754944e-38, %v1943_v24  ;;  %vm1942_vm7 = vcmp.eq.f32.partialorder %v1941_v43, 8.507059e+37  ;;  %v5756_v43 = vld [vmem:[%s10304_s5 + $0xf8] sm:$0xf0]  ;;  %v6710_v54 = vld [vmem:[%s10304_s5 + $0xf4] sm:$0xf0] }
 0x393   :  { %v6944_v37 = vpop.eup %6943  ;;  %v6705_v20 = vld [vmem:[%s10304_s5 + $0xcc] sm:$0xf0] }
 0x394   :  { %v8811_v0 = vadd.f32 1.0, %v6944_v37  ;;  %2513 = vmatpush.bf16.msrb.mxu0 %v5537_v25  ;;  %2561 = vmatpush.bf16.msrb.mxu2 %v5545_v39  ;;  %v5506_v37 = vld [vmem:[%s10303_s4 + $0x10] sm:$0xf0] }
 0x395   :  { %v8819_v42 = vpop.eup %6945  ;;  %2537 = vmatpush.bf16.msrb.mxu1 %v5541_v38  ;;  %v5509_v15 = vor.u32 %v6647_v11, %v5506_v37  ;;  %2586 = vmatpush.bf16.msrb.mxu3 %v5533_v48  ;;  %v6704_v11 = vld [vmem:[%s10304_s5 + $0xcc] sm:$0xf] }
 0x396   :  { %v8830_v4 = vpop.eup %6947  ;;  %v1918_v5 = vmul.f32 %v8819_v42, %v8776_v49  ;;  %6949 = vrcp.f32 %v8811_v0  ;;  %vm1923_vm1 = vweird.f32 %v8819_v42  ;;  %vm1957_vm9 = vweird.f32 %v8811_v0 }
 0x397   :  { %v1933_v17 = vmul.f32 %v8830_v4, %v8778_v52  ;;  %6951 = vtanh.f32 %v1907_v57  ;;  %vm1938_vm2 = vweird.f32 %v8830_v4  ;;  %v5512_v57 = vld [vmem:[%s10303_s4 + $0x8] sm:$0xf]  ;;  %vm1924_vm5 = vmor %vm1922_vm4, %vm1923_vm1  ;;  %v1961_v35 = vand.u32 2147483647, %v8811_v0  ;;  %s7121_s4 = smov 8  }
 0x398   :  { %v1919_v22 = vsub.f32 1.0, %v1918_v5  ;;  %2514 = vmatpush.bf16.msrb.mxu0 %v5521_v44  ;;  %vm1939_vm6 = vmor %vm1937_vm3, %vm1938_vm2  ;;  %2562 = vmatpush.bf16.msrb.mxu2 %v5529_v21  ;;  %v5513_v2 = vor.u32 %v6650_v14, %v5512_v57  ;;  %v270_v44 = vadd.f32 %v7710_v10, %v7603_v18  ;;  %v5755_v21 = vor.u32 %v6710_v54, %v5754_v50  ;;  %v5730_v18 = vld [vmem:[%s10304_s5 + $0xc0] sm:$0xf]  ;;  %v6703_v10 = vld [vmem:[%s10304_s5 + $0xc4] sm:$0xf] }
 0x399   :  { %v1934_v40 = vsub.f32 1.0, %v1933_v17  ;;  %2538 = vmatpush.bf16.msrb.mxu1 %v5525_v47  ;;  %2587 = vmatpush.bf16.msrb.mxu3 %v5517_v7  ;;  %vm1962_vm11 = vcmp.eq.f32.partialorder %v1961_v35, 8.507059e+37  ;;  %v5731_v34 = vor.u32 %v6705_v20, %v5730_v18  ;;  %v5735_v37 = vor.u32 %v6703_v10, %v5732_v60  ;;  %v5738_v14 = vld [vmem:[%s10304_s5 + $0xc8] sm:$0xf]  ;;  %v6687_v18 = vld [vmem:[%s10304_s5 + $0x44] sm:$0xf] }
 0x39a   :  { %v1920_v46 = vmul.f32 %v8819_v42, %v1919_v22  ;;  %v5668_v20 = vld [vmem:[%s10304_s5 + $0x50] sm:$0xf0]  ;;  %v5690_v60 = vld [vmem:[%s10304_s5 + $0x68] sm:$0xf] }
 0x39b   :  { %v1935_v58 = vmul.f32 %v8830_v4, %v1934_v40  ;;  %v5746_v40 = vld [vmem:[%s10304_s5 + $0xe0] sm:$0xf] }
 0x39c   :  { %v6950_v13 = vpop.eup %6949  ;;  %v1921_v32 = vadd.f32 %v8819_v42, %v1920_v46  ;;  %2515 = vmatpush.bf16.msrb.mxu0 %v5505_v19  ;;  %2563 = vmatpush.bf16.msrb.mxu2 %v5513_v2  ;;  %v5747_v36 = vor.u32 %v6709_v29, %v5746_v40  ;;  %v5727_v2 = vor.u32 %v6700_v8, %v5724_v23  ;;  %v5722_v40 = vld [vmem:[%s10304_s5 + $0xa8] sm:$0xf] }
 0x39d   :  { %v6952_v6 = vpop.eup %6951  ;;  %v1936_v49 = vadd.f32 %v8830_v4, %v1935_v58  ;;  %v1953_v1 = vmul.f32 %v6950_v13, %v8811_v0  ;;  %2539 = vmatpush.bf16.msrb.mxu1 %v5509_v15  ;;  %vm1958_vm8 = vweird.f32 %v6950_v13  ;;  %v5674_v23 = vld [vmem:[%s10304_s5 + $0x48] sm:$0xf] }
 0x39e   :  { %v1925_v25 = vsel %vm1924_vm5, %v8819_v42, %v1921_v32  ;;  %vm1959_vm10 = vmor %vm1957_vm9, %vm1958_vm8 }
 0x39f   :  { %v1930_v16 = vsel %vm8857_vm0, %v1929_v63, %v1925_v25  ;;  %v1940_v5 = vsel %vm1939_vm6, %v8830_v4, %v1936_v49  ;;  %v1954_v12 = vsub.f32 1.0, %v1953_v1  ;;  %v1963_v4 = vand.u32 2147483648, %v8811_v0  ;;  %v6699_v63 = vld [vmem:[%s10304_s5 + $0xa4] sm:$0xf]  ;;  %v5716_v1 = vld [vmem:[%s10304_s5 + $0xb0] sm:$0xf0] }
 0x3a0   :  { %v1945_v9 = vsel %vm1942_vm7, %v1944_v62, %v1940_v5  ;;  %v1968_v17 = vmul.f32 %v6952_v6, %v1930_v16  ;;  %v2304_v0 = vpack.c.bf16 %v8481_v28, %v8273_v53  ;;  %v5748_v53 = vld [vmem:[%s10304_s5 + $0xf0] sm:$0xf0]  ;;  %v6708_v28 = vld [vmem:[%s10304_s5 + $0xec] sm:$0xf]  ;;  %v5714_v6 = vld [vmem:[%s10304_s5 + $0xa0] sm:$0xf]  ;;  %v342_v25 = vadd.f32 %v7771_v61, %v7619_v27 }
 0x3a1   :  { %v1967_v52 = vmul.f32 %v1945_v9, %v8478_v3  ;;  %v1955_v24 = vmul.f32 %v6950_v13, %v1954_v12  ;;  %v1964_v38 = vor.u32 1.1754944e-38, %v1963_v4  ;;  %v5751_v46 = vor.u32 %v6707_v41, %v5748_v53  ;;  %v6701_v62 = vld [vmem:[%s10304_s5 + $0xac] sm:$0xf0]  ;;  %v5698_v16 = vld [vmem:[%s10304_s5 + $0x80] sm:$0xf] }
 0x3a2   :  { %v5759_v47 = vor.u32 %v6708_v28, %v5756_v43  ;;  %v5715_v49 = vor.u32 %v6701_v62, %v5714_v6  ;;  %v5719_v15 = vor.u32 %v6699_v63, %v5716_v1  ;;  %v6697_v5 = vld [vmem:[%s10304_s5 + $0x8c] sm:$0xf0]  ;;  %v6695_v12 = vld [vmem:[%s10304_s5 + $0x84] sm:$0xf]  ;;  %v5700_v27 = vld [vmem:[%s10304_s5 + $0x90] sm:$0xf0] }
 0x3a3   :  { %v8918_v42 = vadd.f32 %v1968_v17, %v1967_v52  ;;  %v1956_v59 = vadd.f32 %v6950_v13, %v1955_v24  ;;  %v6706_v61 = vld [vmem:[%s10304_s5 + $0xd4] sm:$0xf0]  ;;  %v6696_v17 = vld [vmem:[%s10304_s5 + $0x8c] sm:$0xf]  ;;  %v5699_v4 = vor.u32 %v6697_v5, %v5698_v16 }
 0x3a4   :  { %v5739_v35 = vor.u32 %v6706_v61, %v5738_v14  ;;  %v6702_v41 = vld [vmem:[%s10304_s5 + $0xb4] sm:$0xf0]  ;;  %v5650_v14 = vld [vmem:[%s10304_s5 + $0x20] sm:$0xf]  ;;  %v6684_v16 = vld [vmem:[%s10304_s5 + $0x2c] sm:$0xf] }
 0x3a5   :  { %6953 = vtanh.f32 %v8918_v42  ;;  %v1960_v22 = vsel %vm1959_vm10, %v6950_v13, %v1956_v59  ;;  %v5740_v13 = vld [vmem:[%s10304_s5 + $0xd8] sm:$0xf0]  ;;  %v5723_v28 = vor.u32 %v6702_v41, %v5722_v40  ;;  %v6698_v43 = vld [vmem:[%s10304_s5 + $0x94] sm:$0xf0]  ;;  %v6681_v61 = vld [vmem:[%s10304_s5 + $0xc] sm:$0xf0] }
 0x3a6   :  { %v1965_v39 = vsel %vm1962_vm11, %v1964_v38, %v1960_v22  ;;  %v5743_v57 = vor.u32 %v6704_v11, %v5740_v13  ;;  %v5708_v22 = vld [vmem:[%s10304_s5 + $0x98] sm:$0xf0]  ;;  %v5682_v38 = vld [vmem:[%s10304_s5 + $0x60] sm:$0xf]  ;;  %v6694_v13 = vld [vmem:[%s10304_s5 + $0x74] sm:$0xf0] }
 0x3a7   :  { %v5691_v62 = vor.u32 %v6694_v13, %v5690_v60  ;;  %v6680_v40 = vld [vmem:[%s10304_s5 + $0xc] sm:$0xf] }
 0x3ab   :  { %v6954_v3 = vpop.eup %6953 }
 0x3ac   :  { %v8924_v31 = vmul.f32 %v6954_v3, %v1965_v39  ;;  %v6693_v3 = vld [vmem:[%s10304_s5 + $0x6c] sm:$0xf0]  ;;  %v5703_v39 = vor.u32 %v6695_v12, %v5700_v27  ;;  %v5634_v27 = vld [vmem:[%s10304_s5] sm:$0xf] }
 0x3ad   :  { %v5683_v50 = vor.u32 %v6693_v3, %v5682_v38  ;;  %v6679_v38 = vld [vmem:[%s10304_s5 + $0x4] sm:$0xf]  ;;  %v5636_v3 = vld [vmem:[%s10304_s5 + $0x10] sm:$0xf0] }
 0x3ae   :  { %v1981_v30 = vpack.c.bf16 %v8924_v31, %v8924_v31 }
 0x3b0   :  { %2182 = vmatmul.bf16.vlgmr.msra.gmra.mxu0 %v1981_v30  ;;  %2195 = vmatmul.bf16.vlgmr.msra.gmra.mxu1 %v1981_v30 }
 0x3b1   :  { %2208 = vmatmul.bf16.vlgmr.msra.gmra.mxu2 %v1981_v30  ;;  %2221 = vmatmul.bf16.vlgmr.msra.gmra.mxu3 %v1981_v30  ;;  %v5711_v30 = vor.u32 %v6696_v17, %v5708_v22 }
 0x3b2   :  { %2829 = vmatpush.bf16.msra.mxu0 %v5747_v36  ;;  %2842 = vmatpush.bf16.msra.mxu1 %v5751_v46  ;;  %v5706_v36 = vld [vmem:[%s10304_s5 + $0x88] sm:$0xf] }
 0x3b3   :  { %2868 = vmatpush.bf16.msra.mxu3 %v5759_v47  ;;  %2855 = vmatpush.bf16.msra.mxu2 %v5755_v21  ;;  %v5666_v21 = vld [vmem:[%s10304_s5 + $0x40] sm:$0xf] }
 0x3b6   :  { %2830 = vmatpush.bf16.msra.mxu0 %v5731_v34  ;;  %2843 = vmatpush.bf16.msra.mxu1 %v5735_v37  ;;  %v5671_v37 = vor.u32 %v6687_v18, %v5668_v20 }
 0x3b7   :  { %2869 = vmatpush.bf16.msra.mxu3 %v5743_v57  ;;  %2856 = vmatpush.bf16.msra.mxu2 %v5739_v35  ;;  %v5676_v57 = vld [vmem:[%s10304_s5 + $0x58] sm:$0xf0] }
 0x3ba   :  { %2831 = vmatpush.bf16.msra.mxu0 %v5715_v49  ;;  %2844 = vmatpush.bf16.msra.mxu1 %v5719_v15  ;;  %v6685_v49 = vld [vmem:[%s10304_s5 + $0x2c] sm:$0xf0] }
 0x3bb   :  { %2870 = vmatpush.bf16.msra.mxu3 %v5727_v2  ;;  %2857 = vmatpush.bf16.msra.mxu2 %v5723_v28  ;;  %v5651_v2 = vor.u32 %v6685_v49, %v5650_v14 }
 0x3be   :  { %2832 = vmatpush.bf16.msra.mxu0 %v5699_v4  ;;  %2845 = vmatpush.bf16.msra.mxu1 %v5703_v39  ;;  %v6686_v4 = vld [vmem:[%s10304_s5 + $0x34] sm:$0xf0] }
 0x3bf   :  { %2871 = vmatpush.bf16.msra.mxu3 %v5711_v30 }
 0x3c0   :  { %2516 = vmatmul.bf16.vlgmr.msrb.gmra.mxu0 %v2303_v33  ;;  %2540 = vmatmul.bf16.vlgmr.msrb.gmra.mxu1 %v2303_v33 }
 0x3c1   :  { %2564 = vmatmul.bf16.vlgmr.msrb.gmra.mxu2 %v2303_v33  ;;  %2588 = vmatmul.bf16.vlgmr.msrb.gmra.mxu3 %v2303_v33  ;;  %v6691_v33 = vld [vmem:[%s10304_s5 + $0x64] sm:$0xf] }
 0x3c2   :  { %2833 = vmatpush.bf16.msra.mxu0 %v5683_v50  ;;  %v5642_v50 = vld [vmem:[%s10304_s5 + $0x8] sm:$0xf] }
 0x3d0   :  { %2521 = vmatmul.bf16.gmra.mxu0 %v2304_v0  ;;  %2545 = vmatmul.bf16.gmra.mxu1 %v2304_v0 }
 0x3d1   :  { %2569 = vmatmul.bf16.gmra.mxu2 %v2304_v0  ;;  %2593 = vmatmul.bf16.gmra.mxu3 %v2304_v0  ;;  %v5684_v0 = vld [vmem:[%s10304_s5 + $0x70] sm:$0xf0] }
 0x42d   :  { %v2183_v55 = vpop.f32.mrf.mxu0  ;;  %v2196_v58 = vpop.f32.mrf.mxu1 }
 0x42e   :  { %v2226_v48 = vadd.f32 %v2183_v55, %v270_v44  ;;  %v2227_v51 = vadd.f32 %v2196_v58, %v294_v45  ;;  %v6692_v44 = vld [vmem:[%s10304_s5 + $0x6c] sm:$0xf]  ;;  %v5692_v45 = vld [vmem:[%s10304_s5 + $0x78] sm:$0xf0]  ;;  %v5687_v55 = vor.u32 %v6691_v33, %v5684_v0  ;;  %v5635_v0 = vor.u32 %v6681_v61, %v5634_v27 }
 0x42f   :  { %v5695_v58 = vor.u32 %v6692_v44, %v5692_v45 }
 0x430   :  { %v5499_v32 = vmul.f32 -1.442695, %v2226_v48  ;;  %v5500_v19 = vmul.f32 -1.442695, %v2227_v51  ;;  %v6689_v48 = vld [vmem:[%s10304_s5 + $0x4c] sm:$0xf0]  ;;  %v5707_v51 = vor.u32 %v6698_v43, %v5706_v36  ;;  %2846 = vmatpush.bf16.msra.mxu1 %v5687_v55  ;;  %v5639_v43 = vor.u32 %v6679_v38, %v5636_v3 }
 0x431   :  { %v5667_v11 = vor.u32 %v6689_v48, %v5666_v21  ;;  %2872 = vmatpush.bf16.msra.mxu3 %v5695_v58  ;;  %v5644_v36 = vld [vmem:[%s10304_s5 + $0x18] sm:$0xf0]  ;;  %v6682_v55 = vld [vmem:[%s10304_s5 + $0x14] sm:$0xf0]  ;;  %v5879_v38 = vld [vmem:[%s10304_s5 + $0xf0] sm:$0xf0] }
 0x432   :  { %6955 = vpow2.f32 %v5499_v32  ;;  %v6688_v32 = vld [vmem:[%s10304_s5 + $0x4c] sm:$0xf]  ;;  %2858 = vmatpush.bf16.msra.mxu2 %v5707_v51  ;;  %v5647_v44 = vor.u32 %v6680_v40, %v5644_v36  ;;  %v5885_v3 = vld [vmem:[%s10304_s5 + $0xe8] sm:$0xf] }
 0x433   :  { %6957 = vpow2.f32 %v5500_v19  ;;  %v318_v19 = vadd.f32 %v7758_v56, %v7617_v26  ;;  %v5679_v63 = vor.u32 %v6688_v32, %v5676_v57  ;;  %v6683_v26 = vld [vmem:[%s10304_s5 + $0x24] sm:$0xf]  ;;  %v5652_v56 = vld [vmem:[%s10304_s5 + $0x30] sm:$0xf0]  ;;  %2834 = vmatpush.bf16.msra.mxu0 %v5667_v11 }
 0x434   :  { %v9010_v7 = vpop.f32.mrf.mxu2  ;;  %v2222_v9 = vpop.f32.mrf.mxu3  ;;  %2847 = vmatpush.bf16.msra.mxu1 %v5671_v37 }
 0x435   :  { %v2229_v52 = vadd.f32 %v2222_v9, %v342_v25  ;;  %v2185_v24 = vpop.f32.mrf.mxu0  ;;  %v2198_v59 = vpop.f32.mrf.mxu1  ;;  %v2228_v1 = vadd.f32 %v9010_v7, %v318_v19  ;;  %v6690_v25 = vld [vmem:[%s10304_s5 + $0x54] sm:$0xf0]  ;;  %2873 = vmatpush.bf16.msra.mxu3 %v5679_v63  ;;  %v5655_v7 = vor.u32 %v6683_v26, %v5652_v56  ;;  %v5660_v9 = vld [vmem:[%s10304_s5 + $0x38] sm:$0xf0]  ;;  %v5630_v56 = vld [vmem:[%s10306_s7 + $0x8] sm:$0xff] }
 0x436   :  { %2859 = vmatpush.bf16.msra.mxu2 %v5691_v62  ;;  %v5675_v24 = vor.u32 %v6690_v25, %v5674_v23  ;;  %v5658_v59 = vld [vmem:[%s10304_s5 + $0x28] sm:$0xf]  ;;  %v5663_v22 = vor.u32 %v6684_v16, %v5660_v9 }
 0x437   :  { %v5501_v29 = vmul.f32 -1.442695, %v2229_v52  ;;  %2835 = vmatpush.bf16.msra.mxu0 %v5651_v2  ;;  %v5659_v28 = vor.u32 %v6686_v4, %v5658_v59  ;;  %v6739_v59 = vld [vmem:[%s10304_s5 + $0xe4] sm:$0xf] }
 0x438   :  { %v6956_v53 = vpop.eup %6955  ;;  %2848 = vmatpush.bf16.msra.mxu1 %v5655_v7 }
 0x439   :  { %v6958_v46 = vpop.eup %6957  ;;  %v9054_v47 = vadd.f32 1.0, %v6956_v53  ;;  %6959 = vpow2.f32 %v5501_v29  ;;  %2874 = vmatpush.bf16.msra.mxu3 %v5663_v22 }
 0x43a   :  { %v9056_v54 = vadd.f32 1.0, %v6958_v46  ;;  %2860 = vmatpush.bf16.msra.mxu2 %v5675_v24  ;;  %v6741_v24 = vld [vmem:[%s10304_s5 + $0xec] sm:$0xf0] }
 0x43b   :  { %6961 = vrcp.f32 %v9054_v47  ;;  %v2247_v52 = vand.u32 2147483647, %v9054_v47  ;;  %v2249_v33 = vand.u32 2147483648, %v9054_v47  ;;  %vm2243_vm14 = vweird.f32 %v9054_v47  ;;  %2836 = vmatpush.bf16.msra.mxu0 %v5635_v0 }
 0x43c   :  { %6963 = vrcp.f32 %v9056_v54  ;;  %v2211_v10 = vpop.f32.mrf.mxu2  ;;  %v2224_v34 = vpop.f32.mrf.mxu3  ;;  %v2264_v30 = vand.u32 2147483648, %v9056_v54  ;;  %v2262_v41 = vand.u32 2147483647, %v9056_v54  ;;  %vm2258_vm15 = vweird.f32 %v9056_v54  ;;  %2849 = vmatpush.bf16.msra.mxu1 %v5639_v43  ;;  %v6735_v43 = vld [vmem:[%s10304_s5 + $0xc4] sm:$0xf] }
 0x43d   :  { %v2250_v58 = vor.u32 1.1754944e-38, %v2249_v33  ;;  %vm2248_vm2 = vcmp.eq.f32.partialorder %v2247_v52, 8.507059e+37  ;;  %2875 = vmatpush.bf16.msra.mxu3 %v5647_v44  ;;  %v5643_v34 = vor.u32 %v6682_v55, %v5642_v50  ;;  %v9181_v23 = vpop.f32.mrf.mxu1  ;;  %v5877_v52 = vld [vmem:[%s10304_s5 + $0xe0] sm:$0xf]  ;;  %v5882_v0 = vor.u32 %v6739_v59, %v5879_v38  ;;  %v6738_v50 = vld [vmem:[%s10304_s5 + $0xd4] sm:$0xf0] }
 0x43e   :  { %v2265_v51 = vor.u32 1.1754944e-38, %v2264_v30  ;;  %vm2263_vm3 = vcmp.eq.f32.partialorder %v2262_v41, 8.507059e+37  ;;  %2861 = vmatpush.bf16.msra.mxu2 %v5659_v28  ;;  %v5878_v22 = vor.u32 %v6741_v24, %v5877_v52  ;;  %v5887_v41 = vld [vmem:[%s10304_s5 + $0xf8] sm:$0xf0]  ;;  %v6737_v28 = vld [vmem:[%s10304_s5 + $0xcc] sm:$0xf0] }
 0x43f   :  { %v6960_v6 = vpop.eup %6959  ;;  %v6727_v52 = vld [vmem:[%s10304_s5 + $0x84] sm:$0xf]  ;;  %v5831_v24 = vld [vmem:[%s10304_s5 + $0x90] sm:$0xf0]  ;;  %v5837_v59 = vld [vmem:[%s10304_s5 + $0x88] sm:$0xf] }
 0x440   :  { %v9099_v8 = vadd.f32 1.0, %v6960_v6  ;;  %3146 = vmatpush.bf16.msrb.mxu0 %v5878_v22  ;;  %3159 = vmatpush.bf16.msrb.mxu1 %v5882_v0  ;;  %v5834_v22 = vor.u32 %v6727_v52, %v5831_v24  ;;  %v6730_v38 = vld [vmem:[%s10304_s5 + $0x94] sm:$0xf0]  ;;  %v5807_v24 = vld [vmem:[%s10304_s5 + $0x58] sm:$0xf0] }
 0x441   :  { %v9107_v15 = vpop.eup %6961  ;;  %v5838_v0 = vor.u32 %v6730_v38, %v5837_v59  ;;  %v5781_v59 = vld [vmem:[%s10304_s5 + $0x20] sm:$0xf] }
 0x442   :  { %v9112_v5 = vpop.eup %6963  ;;  %v2239_v12 = vmul.f32 %v9107_v15, %v9054_v47  ;;  %6965 = vrcp.f32 %v9099_v8  ;;  %vm2244_vm13 = vweird.f32 %v9107_v15  ;;  %2862 = vmatpush.bf16.msra.mxu2 %v5643_v34  ;;  %v2284_v57 = vand.u32 2147483648, %v9099_v8 }
 0x443   :  { %v2254_v17 = vmul.f32 %v9112_v5, %v9056_v54  ;;  %6967 = vtanh.f32 %v2228_v1  ;;  %vm2259_vm12 = vweird.f32 %v9112_v5  ;;  %vm2245_vm0 = vmor %vm2243_vm14, %vm2244_vm13  ;;  %vm2278_vm5 = vweird.f32 %v9099_v8 }
 0x444   :  { %v2240_v35 = vsub.f32 1.0, %v2239_v12  ;;  %vm2260_vm1 = vmor %vm2258_vm15, %vm2259_vm12  ;;  %v2282_v14 = vand.u32 2147483647, %v9099_v8  ;;  %v2285_v62 = vor.u32 1.1754944e-38, %v2284_v57  ;;  %v2636_v1 = vpack.c.bf16 %v5630_v56, %v5630_v56  ;;  %v9183_v25 = vpop.f32.mrf.mxu2  ;;  %v6729_v56 = vld [vmem:[%s10304_s5 + $0x8c] sm:$0xf0] }
 0x445   :  { %v2255_v39 = vsub.f32 1.0, %v2254_v17  ;;  %v9189_v2 = vpop.f32.mrf.mxu1 }
 0x446   :  { %v2241_v29 = vmul.f32 %v9107_v15, %v2240_v35  ;;  %vm2283_vm7 = vcmp.eq.f32.partialorder %v2282_v14, 8.507059e+37 }
 0x447   :  { %v2256_v53 = vmul.f32 %v9112_v5, %v2255_v39  ;;  %v6742_v39 = vld [vmem:[%s10304_s5 + $0xf4] sm:$0xf0] }
 0x448   :  { %v6966_v45 = vpop.eup %6965  ;;  %v2242_v46 = vadd.f32 %v9107_v15, %v2241_v29  ;;  %v5886_v40 = vor.u32 %v6742_v39, %v5885_v3  ;;  %v6740_v29 = vld [vmem:[%s10304_s5 + $0xec] sm:$0xf]  ;;  %v5839_v39 = vld [vmem:[%s10304_s5 + $0x98] sm:$0xf0] }
 0x449   :  { %v2257_v21 = vadd.f32 %v9112_v5, %v2256_v53  ;;  %v2274_v48 = vmul.f32 %v6966_v45, %v9099_v8  ;;  %v6968_v47 = vpop.eup %6967  ;;  %vm2279_vm4 = vweird.f32 %v6966_v45  ;;  %v9179_v8 = vpop.f32.mrf.mxu0  ;;  %v5890_v36 = vor.u32 %v6740_v29, %v5887_v41  ;;  %v5861_v53 = vld [vmem:[%s10304_s5 + $0xc0] sm:$0xf]  ;;  %v6728_v3 = vld [vmem:[%s10304_s5 + $0x8c] sm:$0xf]  ;;  %v6725_v41 = vld [vmem:[%s10304_s5 + $0x6c] sm:$0xf0] }
 0x44a   :  { %v2246_v18 = vsel %vm2245_vm0, %v9107_v15, %v2242_v46  ;;  %vm2280_vm6 = vmor %vm2278_vm5, %vm2279_vm4  ;;  %3172 = vmatpush.bf16.msrb.mxu2 %v5886_v40  ;;  %v5862_v44 = vor.u32 %v6737_v28, %v5861_v53  ;;  %v5869_v46 = vld [vmem:[%s10304_s5 + $0xc8] sm:$0xf]  ;;  %v5842_v40 = vor.u32 %v6728_v3, %v5839_v39  ;;  %v5813_v29 = vld [vmem:[%s10304_s5 + $0x60] sm:$0xf] }
 0x44b   :  { %v2251_v54 = vsel %vm2248_vm2, %v2250_v58, %v2246_v18  ;;  %v2261_v20 = vsel %vm2260_vm1, %v9112_v5, %v2257_v21  ;;  %v2275_v10 = vsub.f32 1.0, %v2274_v48  ;;  %3185 = vmatpush.bf16.msrb.mxu3 %v5890_v36  ;;  %v5870_v58 = vor.u32 %v6738_v50, %v5869_v46  ;;  %v6736_v21 = vld [vmem:[%s10304_s5 + $0xcc] sm:$0xf]  ;;  %v5871_v48 = vld [vmem:[%s10304_s5 + $0xd8] sm:$0xf0] }
 0x44c   :  { %v2266_v60 = vsel %vm2263_vm3, %v2265_v51, %v2261_v20  ;;  %v2289_v11 = vmul.f32 %v6968_v47, %v2251_v54  ;;  %v9191_v16 = vpop.f32.mrf.mxu2  ;;  %v9266_v47 = vld [vmem:[%s10305_s6] sm:$0xf]  ;;  %3147 = vmatpush.bf16.msrb.mxu0 %v5862_v44  ;;  %v5874_v51 = vor.u32 %v6736_v21, %v5871_v48  ;;  %v6733_v54 = vld [vmem:[%s10304_s5 + $0xac] sm:$0xf0]  ;;  %v6731_v20 = vld [vmem:[%s10304_s5 + $0xa4] sm:$0xf] }
 0x44d   :  { %v2288_v13 = vmul.f32 %v2266_v60, %v8918_v42  ;;  %v2276_v32 = vmul.f32 %v6966_v45, %v2275_v10  ;;  %v9197_v7 = vpop.f32.mrf.mxu1  ;;  %v5845_v18 = vld [vmem:[%s10304_s5 + $0xa0] sm:$0xf]  ;;  %v6723_v36 = vld [vmem:[%s10304_s5 + $0x64] sm:$0xf]  ;;  %v5815_v46 = vld [vmem:[%s10304_s5 + $0x70] sm:$0xf0] }
 0x44e   :  { %3173 = vmatpush.bf16.msrb.mxu2 %v5870_v58  ;;  %v5846_v60 = vor.u32 %v6733_v54, %v5845_v18  ;;  %v5821_v50 = vld [vmem:[%s10304_s5 + $0x68] sm:$0xf]  ;;  %v5818_v58 = vor.u32 %v6723_v36, %v5815_v46  ;;  %v6724_v48 = vld [vmem:[%s10304_s5 + $0x6c] sm:$0xf]  ;;  %v9363_v18 = vperm.slane %v9266_v47, 3  ;;  %s7120_s6 = smov 128  }
 0x44f   :  { %v2290_v19 = vadd.f32 %v2289_v11, %v2288_v13  ;;  %v2277_v37 = vadd.f32 %v6966_v45, %v2276_v32  ;;  %3186 = vmatpush.bf16.msrb.mxu3 %v5874_v51  ;;  %v5847_v11 = vld [vmem:[%s10304_s5 + $0xb0] sm:$0xf0]  ;;  %v5853_v13 = vld [vmem:[%s10304_s5 + $0xa8] sm:$0xf]  ;;  %v6734_v32 = vld [vmem:[%s10304_s5 + $0xb4] sm:$0xf0] }
 0x450   :  { %v5850_v57 = vor.u32 %v6731_v20, %v5847_v11  ;;  %v5854_v14 = vor.u32 %v6734_v32, %v5853_v13  ;;  %3148 = vmatpush.bf16.msrb.mxu0 %v5846_v60  ;;  %v5823_v51 = vld [vmem:[%s10304_s5 + $0x78] sm:$0xf0]  ;;  %v5797_v11 = vld [vmem:[%s10304_s5 + $0x40] sm:$0xf]  ;;  %v6721_v13 = vld [vmem:[%s10304_s5 + $0x4c] sm:$0xf0] }
 0x451   :  { %6969 = vtanh.f32 %v2290_v19  ;;  %2296 = vst [vmem:[#allocation6] sm:$0xff] %v2290_v19  ;;  %v2281_v6 = vsel %vm2280_vm6, %v6966_v45, %v2277_v37  ;;  %v9187_v15 = vpop.f32.mrf.mxu0  ;;  %v5863_v45 = vld [vmem:[%s10304_s5 + $0xd0] sm:$0xf0]  ;;  %v5826_v60 = vor.u32 %v6724_v48, %v5823_v51  ;;  %v6719_v32 = vld [vmem:[%s10304_s5 + $0x44] sm:$0xf] }
 0x452   :  { %v2286_v49 = vsel %vm2283_vm7, %v2285_v62, %v2281_v6  ;;  %v5866_v55 = vor.u32 %v6735_v43, %v5863_v45  ;;  %v6732_v6 = vld [vmem:[%s10304_s5 + $0xac] sm:$0xf]  ;;  %v5855_v62 = vld [vmem:[%s10304_s5 + $0xb8] sm:$0xf0]  ;;  %3174 = vmatpush.bf16.msrb.mxu2 %v5854_v14  ;;  %v5814_v45 = vor.u32 %v6725_v41, %v5813_v29  ;;  %v5789_v29 = vld [vmem:[%s10304_s5 + $0x28] sm:$0xf] }
 0x453   :  { %v6711_v48 = vld [vmem:[%s10304_s5 + $0x4] sm:$0xf] }
 0x454   :  { %v9199_v9 = vpop.f32.mrf.mxu2  ;;  %3160 = vmatpush.bf16.msrb.mxu1 %v5866_v55 }
 0x455   :  { %v9205_v17 = vpop.f32.mrf.mxu1 }
 0x456   :  { %3175 = vmatpush.bf16.msrb.mxu2 %v5838_v0  ;;  %v6715_v0 = vld [vmem:[%s10304_s5 + $0x24] sm:$0xf] }
 0x457   :  { %v6970_v63 = vpop.eup %6969 }
 0x458   :  { %v2292_v42 = vmul.f32 %v6970_v63, %v2286_v49  ;;  %v5858_v63 = vor.u32 %v6732_v6, %v5855_v62  ;;  %v9301_v49 = vperm.slane %v9266_v47, 0  ;;  %3161 = vmatpush.bf16.msrb.mxu1 %v5850_v57  ;;  %v5798_v6 = vor.u32 %v6721_v13, %v5797_v11  ;;  %v5799_v62 = vld [vmem:[%s10304_s5 + $0x50] sm:$0xf0] }
 0x459   :  { %v9195_v12 = vpop.f32.mrf.mxu0 }
 0x45a   :  { %v2305_v26 = vpack.c.bf16 %v2292_v42, %v8924_v31  ;;  %2295 = vst [vmem:[#allocation4] sm:$0xff] %v2292_v42  ;;  %v9185_v31 = vpop.f32.mrf.mxu3  ;;  %v9304_v42 = vperm.slane %v9266_v47, 1  ;;  %3187 = vmatpush.bf16.msrb.mxu3 %v5858_v63  ;;  %v2518_v53 = vadd.f32 %v9179_v8, %v9301_v49  ;;  %v6726_v8 = vld [vmem:[%s10304_s5 + $0x74] sm:$0xf0]  ;;  %v5802_v63 = vor.u32 %v6719_v32, %v5799_v62  ;;  %v6712_v32 = vld [vmem:[%s10304_s5 + $0xc] sm:$0xf] }
 0x45b   :  { %v5822_v21 = vor.u32 %v6726_v8, %v5821_v50  ;;  %v2590_v38 = vadd.f32 %v9185_v31, %v9363_v18 }
 0x45c   :  { %2526 = vmatmul.bf16.gmra.mxu0 %v2305_v26  ;;  %2550 = vmatmul.bf16.gmra.mxu1 %v2305_v26  ;;  %v9216_v4 = vpop.f32.mrf.mxu2  ;;  %v2542_v28 = vadd.f32 %v9181_v23, %v9304_v42 }
 0x45d   :  { %2574 = vmatmul.bf16.gmra.mxu2 %v2305_v26  ;;  %2598 = vmatmul.bf16.gmra.mxu3 %v2305_v26  ;;  %v5829_v26 = vld [vmem:[%s10304_s5 + $0x80] sm:$0xf] }
 0x45e   :  { %3162 = vmatpush.bf16.msrb.mxu1 %v5834_v22  ;;  %3188 = vmatpush.bf16.msrb.mxu3 %v5842_v40  ;;  %v6717_v22 = vld [vmem:[%s10304_s5 + $0x2c] sm:$0xf0]  ;;  %v5783_v40 = vld [vmem:[%s10304_s5 + $0x30] sm:$0xf0] }
 0x45f   :  { %3176 = vmatpush.bf16.msrb.mxu2 %v5822_v21  ;;  %v5782_v39 = vor.u32 %v6717_v22, %v5781_v59  ;;  %v5786_v31 = vor.u32 %v6715_v0, %v5783_v40  ;;  %v6713_v21 = vld [vmem:[%s10304_s5 + $0xc] sm:$0xf0] }
 0x461   :  { %v9203_v61 = vpop.f32.mrf.mxu0 }
 0x462   :  { %v9193_v5 = vpop.f32.mrf.mxu3  ;;  %3163 = vmatpush.bf16.msrb.mxu1 %v5818_v58  ;;  %3189 = vmatpush.bf16.msrb.mxu3 %v5826_v60  ;;  %v5765_v58 = vld [vmem:[%s10304_s5] sm:$0xf]  ;;  %v6714_v60 = vld [vmem:[%s10304_s5 + $0x14] sm:$0xf0] }
 0x463   :  { %v5766_v51 = vor.u32 %v6713_v21, %v5765_v58  ;;  %v5631_v21 = vld [vmem:[%s10307_s8 + $0x8] sm:$0xff] }
 0x466   :  { %3164 = vmatpush.bf16.msrb.mxu1 %v5802_v63 }
 0x46a   :  { %v9201_v27 = vpop.f32.mrf.mxu3  ;;  %3165 = vmatpush.bf16.msrb.mxu1 %v5786_v31 }
 0x46c   :  { %2837 = vmatmul.bf16.vlgmr.msra.gmra.mxu0 %v2636_v1  ;;  %2850 = vmatmul.bf16.vlgmr.msra.gmra.mxu1 %v2636_v1 }
 0x46d   :  { %2863 = vmatmul.bf16.vlgmr.msra.gmra.mxu2 %v2636_v1  ;;  %2876 = vmatmul.bf16.vlgmr.msra.gmra.mxu3 %v2636_v1  ;;  %v5830_v1 = vor.u32 %v6729_v56, %v5829_v26  ;;  %v5805_v26 = vld [vmem:[%s10304_s5 + $0x48] sm:$0xf]  ;;  %v6722_v56 = vld [vmem:[%s10304_s5 + $0x54] sm:$0xf0] }
 0x46e   :  { %v5806_v52 = vor.u32 %v6722_v56, %v5805_v26 }
 0x46f   :  { %3149 = vmatpush.bf16.msrb.mxu0 %v5830_v1  ;;  %v6720_v1 = vld [vmem:[%s10304_s5 + $0x4c] sm:$0xf] }
 0x470   :  { %v5810_v3 = vor.u32 %v6720_v1, %v5807_v24  ;;  %3177 = vmatpush.bf16.msrb.mxu2 %v5806_v52  ;;  %v9440_v1 = vperm.slane %v9266_v47, 2 }
 0x472   :  { %v9218_v35 = vpop.f32.mrf.mxu3  ;;  %3190 = vmatpush.bf16.msrb.mxu3 %v5810_v3  ;;  %v2566_v22 = vadd.f32 %v9183_v25, %v9440_v1 }
 0x473   :  { %3150 = vmatpush.bf16.msrb.mxu0 %v5814_v45  ;;  %v5791_v45 = vld [vmem:[%s10304_s5 + $0x38] sm:$0xf0] }
 0x477   :  { %3151 = vmatpush.bf16.msrb.mxu0 %v5798_v6 }
 0x47b   :  { %3152 = vmatpush.bf16.msrb.mxu0 %v5782_v39 }
 0x47f   :  { %3153 = vmatpush.bf16.msrb.mxu0 %v5766_v51 }
 0x4d9   :  { %v9229_v30 = vpop.f32.mrf.mxu0  ;;  %v9231_v33 = vpop.f32.mrf.mxu1 }
 0x4e0   :  { %v9277_v10 = vpop.f32.mrf.mxu2  ;;  %v9279_v34 = vpop.f32.mrf.mxu3 }
 0x4e1   :  { %v9290_v19 = vpop.f32.mrf.mxu0  ;;  %v9292_v37 = vpop.f32.mrf.mxu1 }
 0x4e8   :  { %v9343_v43 = vpop.f32.mrf.mxu2  ;;  %v9345_v44 = vpop.f32.mrf.mxu3 }
 0x4e9   :  { %v2838_v23 = vpop.f32.mrf.mxu0  ;;  %v2851_v55 = vpop.f32.mrf.mxu1 }
 0x4ea   :  { %v2881_v54 = vadd.f32 %v2838_v23, %v2518_v53  ;;  %v2882_v20 = vadd.f32 %v2851_v55, %v2542_v28  ;;  %v6718_v53 = vld [vmem:[%s10304_s5 + $0x34] sm:$0xf0]  ;;  %v6716_v28 = vld [vmem:[%s10304_s5 + $0x2c] sm:$0xf] }
 0x4eb   :  { %v5790_v23 = vor.u32 %v6718_v53, %v5789_v29  ;;  %v5794_v55 = vor.u32 %v6716_v28, %v5791_v45 }
 0x4ec   :  { %v5760_v57 = vmul.f32 -1.442695, %v2881_v54  ;;  %v5761_v14 = vmul.f32 -1.442695, %v2882_v20  ;;  %v5767_v54 = vld [vmem:[%s10304_s5 + $0x10] sm:$0xf0] }
 0x4ed   :  { %v5773_v20 = vld [vmem:[%s10304_s5 + $0x8] sm:$0xf]  ;;  %v5770_v13 = vor.u32 %v6711_v48, %v5767_v54  ;;  %3178 = vmatpush.bf16.msrb.mxu2 %v5790_v23  ;;  %3191 = vmatpush.bf16.msrb.mxu3 %v5794_v55 }
 0x4ee   :  { %6971 = vpow2.f32 %v5760_v57  ;;  %v5775_v57 = vld [vmem:[%s10304_s5 + $0x18] sm:$0xf0]  ;;  %v5774_v6 = vor.u32 %v6714_v60, %v5773_v20 }
 0x4ef   :  { %6973 = vpow2.f32 %v5761_v14  ;;  %v5778_v26 = vor.u32 %v6712_v32, %v5775_v57  ;;  %3166 = vmatpush.bf16.msrb.mxu1 %v5770_v13 }
 0x4f0   :  { %v2864_v41 = vpop.f32.mrf.mxu2  ;;  %v2877_v36 = vpop.f32.mrf.mxu3 }
 0x4f1   :  { %v2884_v46 = vadd.f32 %v2877_v36, %v2590_v38  ;;  %v2840_v50 = vpop.f32.mrf.mxu0  ;;  %v2853_v8 = vpop.f32.mrf.mxu1  ;;  %3179 = vmatpush.bf16.msrb.mxu2 %v5774_v6  ;;  %3192 = vmatpush.bf16.msrb.mxu3 %v5778_v26  ;;  %v2883_v39 = vadd.f32 %v2864_v41, %v2566_v22 }
 0x4f3   :  { %v5762_v11 = vmul.f32 -1.442695, %v2884_v46 }
 0x4f4   :  { %v6972_v14 = vpop.eup %6971 }
 0x4f5   :  { %v6974_v62 = vpop.eup %6973  ;;  %v2891_v63 = vadd.f32 1.0, %v6972_v14  ;;  %6975 = vpow2.f32 %v5762_v11 }
 0x4f6   :  { %v2892_v56 = vadd.f32 1.0, %v6974_v62 }
 0x4f7   :  { %6977 = vrcp.f32 %v2891_v63  ;;  %v2904_v31 = vand.u32 2147483648, %v2891_v63  ;;  %v2902_v45 = vand.u32 2147483647, %v2891_v63  ;;  %vm2898_vm10 = vweird.f32 %v2891_v63 }
 0x4f8   :  { %6979 = vrcp.f32 %v2892_v56  ;;  %v2879_v52 = vpop.f32.mrf.mxu3  ;;  %v2866_v24 = vpop.f32.mrf.mxu2  ;;  %v2919_v53 = vand.u32 2147483648, %v2892_v56  ;;  %v2917_v50 = vand.u32 2147483647, %v2892_v56  ;;  %vm2913_vm11 = vweird.f32 %v2892_v56 }
 0x4f9   :  { %v2905_v41 = vor.u32 1.1754944e-38, %v2904_v31  ;;  %vm2903_vm14 = vcmp.eq.f32.partialorder %v2902_v45, 8.507059e+37 }
 0x4fa   :  { %v2920_v58 = vor.u32 1.1754944e-38, %v2919_v53  ;;  %vm2918_vm15 = vcmp.eq.f32.partialorder %v2917_v50, 8.507059e+37  ;;  %v6772_v53 = vld [vmem:[%s10304_s5 + $0xec] sm:$0xf]  ;;  %v6769_v50 = vld [vmem:[%s10304_s5 + $0xcc] sm:$0xf0] }
 0x4fb   :  { %v6976_v59 = vpop.eup %6975 }
 0x4fc   :  { %v2927_v38 = vadd.f32 1.0, %v6976_v59 }
 0x4fd   :  { %v6978_v3 = vpop.eup %6977 }
 0x4fe   :  { %v6980_v0 = vpop.eup %6979  ;;  %v2894_v40 = vmul.f32 %v6978_v3, %v2891_v63  ;;  %6981 = vrcp.f32 %v2927_v38  ;;  %vm2899_vm8 = vweird.f32 %v6978_v3  ;;  %v2939_v62 = vand.u32 2147483648, %v2927_v38 }
 0x4ff   :  { %v2909_v29 = vmul.f32 %v6980_v0, %v2892_v56  ;;  %6983 = vtanh.f32 %v2883_v39  ;;  %vm2914_vm9 = vweird.f32 %v6980_v0  ;;  %vm2900_vm12 = vmor %vm2898_vm10, %vm2899_vm8  ;;  %vm2933_vm1 = vweird.f32 %v2927_v38  ;;  %v6771_v39 = vld [vmem:[%s10304_s5 + $0xe4] sm:$0xf] }
 0x500   :  { %v2895_v47 = vsub.f32 1.0, %v2894_v40  ;;  %vm2915_vm13 = vmor %vm2913_vm11, %vm2914_vm9  ;;  %v2937_v63 = vand.u32 2147483647, %v2927_v38  ;;  %v2940_v56 = vor.u32 1.1754944e-38, %v2939_v62  ;;  %v6011_v40 = vld [vmem:[%s10304_s5 + $0xf0] sm:$0xf0] }
 0x501   :  { %v2910_v36 = vsub.f32 1.0, %v2909_v29  ;;  %v6017_v29 = vld [vmem:[%s10304_s5 + $0xe8] sm:$0xf] }
 0x502   :  { %v2896_v28 = vmul.f32 %v6978_v3, %v2895_v47  ;;  %vm2938_vm3 = vcmp.eq.f32.partialorder %v2937_v63, 8.507059e+37  ;;  %v6774_v47 = vld [vmem:[%s10304_s5 + $0xf4] sm:$0xf0] }
 0x503   :  { %v2911_v46 = vmul.f32 %v6980_v0, %v2910_v36  ;;  %v6014_v36 = vor.u32 %v6771_v39, %v6011_v40  ;;  %v6018_v31 = vor.u32 %v6774_v47, %v6017_v29  ;;  %v5969_v39 = vld [vmem:[%s10304_s5 + $0x88] sm:$0xf]  ;;  %v6760_v47 = vld [vmem:[%s10304_s5 + $0x8c] sm:$0xf] }
 0x504   :  { %v6982_v8 = vpop.eup %6981  ;;  %v2897_v25 = vadd.f32 %v6978_v3, %v2896_v28  ;;  %v6019_v28 = vld [vmem:[%s10304_s5 + $0xf8] sm:$0xf0] }
 0x505   :  { %v2912_v23 = vadd.f32 %v6980_v0, %v2911_v46  ;;  %v2929_v55 = vmul.f32 %v6982_v8, %v2927_v38  ;;  %v6984_v51 = vpop.eup %6983  ;;  %vm2934_vm0 = vweird.f32 %v6982_v8  ;;  %v6009_v38 = vld [vmem:[%s10304_s5 + $0xe0] sm:$0xf]  ;;  %v6022_v45 = vor.u32 %v6772_v53, %v6019_v28  ;;  %3477 = vmatpush.bf16.msra.mxu1 %v6014_v36  ;;  %3490 = vmatpush.bf16.msra.mxu2 %v6018_v31  ;;  %v5971_v36 = vld [vmem:[%s10304_s5 + $0x98] sm:$0xf0]  ;;  %v6757_v28 = vld [vmem:[%s10304_s5 + $0x6c] sm:$0xf0] }
 0x506   :  { %v2901_v48 = vsel %vm2900_vm12, %v6978_v3, %v2897_v25  ;;  %vm2935_vm2 = vmor %vm2933_vm1, %vm2934_vm0  ;;  %v6773_v3 = vld [vmem:[%s10304_s5 + $0xec] sm:$0xf0]  ;;  %v5993_v46 = vld [vmem:[%s10304_s5 + $0xc0] sm:$0xf]  ;;  %v5974_v31 = vor.u32 %v6760_v47, %v5971_v36 }
 0x507   :  { %v2906_v54 = vsel %vm2903_vm14, %v2905_v41, %v2901_v48  ;;  %v2916_v20 = vsel %vm2915_vm13, %v6980_v0, %v2912_v23  ;;  %v2930_v60 = vsub.f32 1.0, %v2929_v55  ;;  %v6010_v0 = vor.u32 %v6773_v3, %v6009_v38  ;;  %3503 = vmatpush.bf16.msra.mxu3 %v6022_v45  ;;  %v5995_v41 = vld [vmem:[%s10304_s5 + $0xd0] sm:$0xf0]  ;;  %v6001_v23 = vld [vmem:[%s10304_s5 + $0xc8] sm:$0xf] }
 0x508   :  { %v2921_v11 = vsel %vm2918_vm15, %v2920_v58, %v2916_v20  ;;  %v2944_v13 = vmul.f32 %v6984_v51, %v2906_v54  ;;  %v5994_v25 = vor.u32 %v6769_v50, %v5993_v46  ;;  %v6770_v55 = vld [vmem:[%s10304_s5 + $0xd4] sm:$0xf0]  ;;  %v6768_v48 = vld [vmem:[%s10304_s5 + $0xcc] sm:$0xf]  ;;  %v6003_v51 = vld [vmem:[%s10304_s5 + $0xd8] sm:$0xf0]  ;;  %v2520_v46 = vadd.f32 %v9187_v15, %v9301_v49 }
 0x509   :  { %v2943_v32 = vmul.f32 %v5631_v21, %v2921_v11  ;;  %v2931_v57 = vmul.f32 %v6982_v8, %v2930_v60  ;;  %3464 = vmatpush.bf16.msra.mxu0 %v6010_v0  ;;  %v6002_v21 = vor.u32 %v6770_v55, %v6001_v23  ;;  %v6006_v54 = vor.u32 %v6768_v48, %v6003_v51  ;;  %v5977_v20 = vld [vmem:[%s10304_s5 + $0xa0] sm:$0xf]  ;;  %v6765_v60 = vld [vmem:[%s10304_s5 + $0xac] sm:$0xf0]  ;;  %v6763_v11 = vld [vmem:[%s10304_s5 + $0xa4] sm:$0xf] }
 0x50a   :  { %v5963_v3 = vld [vmem:[%s10304_s5 + $0x90] sm:$0xf0]  ;;  %v6762_v0 = vld [vmem:[%s10304_s5 + $0x94] sm:$0xf0]  ;;  %v5945_v53 = vld [vmem:[%s10304_s5 + $0x60] sm:$0xf]  ;;  %v2544_v50 = vadd.f32 %v9189_v2, %v9304_v42 }
 0x50b   :  { %v9447_v14 = vadd.f32 %v2944_v13, %v2943_v32  ;;  %v2932_v6 = vadd.f32 %v6982_v8, %v2931_v57  ;;  %3491 = vmatpush.bf16.msra.mxu2 %v6002_v21  ;;  %3504 = vmatpush.bf16.msra.mxu3 %v6006_v54  ;;  %v5978_v13 = vor.u32 %v6765_v60, %v5977_v20  ;;  %v5979_v32 = vld [vmem:[%s10304_s5 + $0xb0] sm:$0xf0]  ;;  %v5985_v57 = vld [vmem:[%s10304_s5 + $0xa8] sm:$0xf]  ;;  %v6755_v45 = vld [vmem:[%s10304_s5 + $0x64] sm:$0xf] }
 0x50c   :  { %v5982_v62 = vor.u32 %v6763_v11, %v5979_v32  ;;  %v5970_v29 = vor.u32 %v6762_v0, %v5969_v39  ;;  %v6758_v23 = vld [vmem:[%s10304_s5 + $0x74] sm:$0xf0]  ;;  %v6756_v2 = vld [vmem:[%s10304_s5 + $0x6c] sm:$0xf]  ;;  %v5955_v48 = vld [vmem:[%s10304_s5 + $0x78] sm:$0xf0] }
 0x50d   :  { %6985 = vtanh.f32 %v9447_v14  ;;  %v2936_v26 = vsel %vm2935_vm2, %v6982_v8, %v2932_v6  ;;  %v6767_v8 = vld [vmem:[%s10304_s5 + $0xc4] sm:$0xf]  ;;  %3465 = vmatpush.bf16.msra.mxu0 %v5994_v25  ;;  %v6766_v6 = vld [vmem:[%s10304_s5 + $0xb4] sm:$0xf0]  ;;  %v5947_v25 = vld [vmem:[%s10304_s5 + $0x70] sm:$0xf0]  ;;  %v5958_v20 = vor.u32 %v6756_v2, %v5955_v48 }
 0x50e   :  { %v2941_v24 = vsel %vm2938_vm3, %v2940_v56, %v2936_v26  ;;  %v5998_v58 = vor.u32 %v6767_v8, %v5995_v41  ;;  %v5986_v63 = vor.u32 %v6766_v6, %v5985_v57  ;;  %v6764_v26 = vld [vmem:[%s10304_s5 + $0xac] sm:$0xf]  ;;  %v5987_v56 = vld [vmem:[%s10304_s5 + $0xb8] sm:$0xf0]  ;;  %v5946_v8 = vor.u32 %v6757_v28, %v5945_v53  ;;  %v5953_v41 = vld [vmem:[%s10304_s5 + $0x68] sm:$0xf] }
 0x50f   :  { %v5950_v15 = vor.u32 %v6755_v45, %v5947_v25  ;;  %v5954_v21 = vor.u32 %v6758_v23, %v5953_v41  ;;  %v5929_v60 = vld [vmem:[%s10304_s5 + $0x40] sm:$0xf]  ;;  %v6753_v11 = vld [vmem:[%s10304_s5 + $0x4c] sm:$0xf0]  ;;  %v5921_v47 = vld [vmem:[%s10304_s5 + $0x28] sm:$0xf] }
 0x510   :  { %3478 = vmatpush.bf16.msra.mxu1 %v5998_v58  ;;  %3492 = vmatpush.bf16.msra.mxu2 %v5986_v63  ;;  %v5930_v6 = vor.u32 %v6753_v11, %v5929_v60  ;;  %v6750_v53 = vld [vmem:[%s10304_s5 + $0x34] sm:$0xf0]  ;;  %v6748_v28 = vld [vmem:[%s10304_s5 + $0x2c] sm:$0xf]  ;;  %v5923_v45 = vld [vmem:[%s10304_s5 + $0x38] sm:$0xf0] }
 0x511   :  { %3466 = vmatpush.bf16.msra.mxu0 %v5978_v13  ;;  %v6751_v13 = vld [vmem:[%s10304_s5 + $0x44] sm:$0xf]  ;;  %v5922_v25 = vor.u32 %v6750_v53, %v5921_v47  ;;  %v5926_v41 = vor.u32 %v6748_v28, %v5923_v45  ;;  %v5897_v23 = vld [vmem:[%s10304_s5] sm:$0xf]  ;;  %v5905_v2 = vld [vmem:[%s10304_s5 + $0x8] sm:$0xf] }
 0x512   :  { %v6746_v48 = vld [vmem:[%s10304_s5 + $0x14] sm:$0xf0]  ;;  %v5907_v60 = vld [vmem:[%s10304_s5 + $0x18] sm:$0xf0] }
 0x513   :  { %v6986_v52 = vpop.eup %6985 }
 0x514   :  { %v2947_v59 = vmul.f32 %v6986_v52, %v2941_v24  ;;  %v5990_v52 = vor.u32 %v6764_v26, %v5987_v56  ;;  %3479 = vmatpush.bf16.msra.mxu1 %v5982_v62  ;;  %v5961_v24 = vld [vmem:[%s10304_s5 + $0x80] sm:$0xf]  ;;  %3493 = vmatpush.bf16.msra.mxu2 %v5970_v29  ;;  %v5931_v62 = vld [vmem:[%s10304_s5 + $0x50] sm:$0xf0]  ;;  %v5937_v26 = vld [vmem:[%s10304_s5 + $0x48] sm:$0xf] }
 0x515   :  { %v5934_v63 = vor.u32 %v6751_v13, %v5931_v62  ;;  %v6754_v56 = vld [vmem:[%s10304_s5 + $0x54] sm:$0xf0]  ;;  %v5915_v29 = vld [vmem:[%s10304_s5 + $0x30] sm:$0xf0]  ;;  %v5906_v13 = vor.u32 %v6746_v48, %v5905_v2 }
 0x516   :  { %2948 = vst [vmem:[%s10308_s9] sm:$0xff] %v2947_v59  ;;  %v2953_v22 = vpack.c.bf16 %v2947_v59, %v2947_v59  ;;  %v6761_v59 = vld [vmem:[%s10304_s5 + $0x8c] sm:$0xf0]  ;;  %3505 = vmatpush.bf16.msra.mxu3 %v5990_v52  ;;  %v6752_v52 = vld [vmem:[%s10304_s5 + $0x4c] sm:$0xf] }
 0x517   :  { %v5962_v38 = vor.u32 %v6761_v59, %v5961_v24  ;;  %v5938_v24 = vor.u32 %v6754_v56, %v5937_v26  ;;  %v5939_v59 = vld [vmem:[%s10304_s5 + $0x58] sm:$0xf0] }
 0x518   :  { %3154 = vmatmul.bf16.vlgmr.msrb.gmra.mxu0 %v2953_v22  ;;  %3167 = vmatmul.bf16.vlgmr.msrb.gmra.mxu1 %v2953_v22  ;;  %v5942_v39 = vor.u32 %v6752_v52, %v5939_v59  ;;  %v2568_v52 = vadd.f32 %v9191_v16, %v9440_v1 }
 0x519   :  { %3180 = vmatmul.bf16.vlgmr.msrb.gmra.mxu2 %v2953_v22  ;;  %3193 = vmatmul.bf16.vlgmr.msrb.gmra.mxu3 %v2953_v22  ;;  %v6759_v22 = vld [vmem:[%s10304_s5 + $0x84] sm:$0xf] }
 0x51a   :  { %v5966_v40 = vor.u32 %v6759_v22, %v5963_v3  ;;  %3467 = vmatpush.bf16.msra.mxu0 %v5962_v38  ;;  %3506 = vmatpush.bf16.msra.mxu3 %v5974_v31  ;;  %v5913_v22 = vld [vmem:[%s10304_s5 + $0x20] sm:$0xf]  ;;  %v6749_v38 = vld [vmem:[%s10304_s5 + $0x2c] sm:$0xf0]  ;;  %v2592_v3 = vadd.f32 %v9193_v5, %v9363_v18 }
 0x51b   :  { %3494 = vmatpush.bf16.msra.mxu2 %v5954_v21  ;;  %v5914_v0 = vor.u32 %v6749_v38, %v5913_v22  ;;  %v5899_v21 = vld [vmem:[%s10304_s5 + $0x10] sm:$0xf0] }
 0x51c   :  { %3480 = vmatpush.bf16.msra.mxu1 %v5966_v40  ;;  %v6747_v40 = vld [vmem:[%s10304_s5 + $0x24] sm:$0xf] }
 0x51d   :  { %v5918_v5 = vor.u32 %v6747_v40, %v5915_v29 }
 0x51e   :  { %3468 = vmatpush.bf16.msra.mxu0 %v5946_v8  ;;  %3507 = vmatpush.bf16.msra.mxu3 %v5958_v20  ;;  %v6744_v20 = vld [vmem:[%s10304_s5 + $0xc] sm:$0xf] }
 0x51f   :  { %3495 = vmatpush.bf16.msra.mxu2 %v5938_v24 }
 0x520   :  { %3481 = vmatpush.bf16.msra.mxu1 %v5950_v15 }
 0x522   :  { %3469 = vmatpush.bf16.msra.mxu0 %v5930_v6  ;;  %3508 = vmatpush.bf16.msra.mxu3 %v5942_v39  ;;  %v5910_v6 = vor.u32 %v6744_v20, %v5907_v60 }
 0x523   :  { %3496 = vmatpush.bf16.msra.mxu2 %v5922_v25 }
 0x524   :  { %3482 = vmatpush.bf16.msra.mxu1 %v5934_v63 }
 0x526   :  { %3470 = vmatpush.bf16.msra.mxu0 %v5914_v0  ;;  %3509 = vmatpush.bf16.msra.mxu3 %v5926_v41 }
 0x527   :  { %3497 = vmatpush.bf16.msra.mxu2 %v5906_v13 }
 0x528   :  { %3483 = vmatpush.bf16.msra.mxu1 %v5918_v5 }
 0x52a   :  { %3510 = vmatpush.bf16.msra.mxu3 %v5910_v6 }
 0x595   :  { %v3155_v55 = vpop.f32.mrf.mxu0  ;;  %v3168_v58 = vpop.f32.mrf.mxu1 }
 0x596   :  { %v3198_v51 = vadd.f32 %v3155_v55, %v2520_v46  ;;  %v3199_v54 = vadd.f32 %v3168_v58, %v2544_v50  ;;  %v6745_v55 = vld [vmem:[%s10304_s5 + $0xc] sm:$0xf0]  ;;  %v6743_v58 = vld [vmem:[%s10304_s5 + $0x4] sm:$0xf] }
 0x597   :  { %v5898_v15 = vor.u32 %v6745_v55, %v5897_v23 }
 0x598   :  { %v5891_v32 = vmul.f32 -1.442695, %v3198_v51  ;;  %v5892_v57 = vmul.f32 -1.442695, %v3199_v54  ;;  %v5902_v54 = vor.u32 %v6743_v58, %v5899_v21 }
 0x599   :  { %3471 = vmatpush.bf16.msra.mxu0 %v5898_v15 }
 0x59a   :  { %6987 = vpow2.f32 %v5891_v32  ;;  %3484 = vmatpush.bf16.msra.mxu1 %v5902_v54 }
 0x59b   :  { %6989 = vpow2.f32 %v5892_v57 }
 0x59c   :  { %v3181_v36 = vpop.f32.mrf.mxu2  ;;  %v3194_v31 = vpop.f32.mrf.mxu3 }
 0x59d   :  { %v3201_v46 = vadd.f32 %v3194_v31, %v2592_v3  ;;  %v3157_v50 = vpop.f32.mrf.mxu0  ;;  %v3170_v8 = vpop.f32.mrf.mxu1  ;;  %v3200_v22 = vadd.f32 %v3181_v36, %v2568_v52  ;;  %v6143_v52 = vld [vmem:[%s10304_s5 + $0xf0] sm:$0xf0] }
 0x59f   :  { %v5893_v51 = vmul.f32 -1.442695, %v3201_v46 }
 0x5a0   :  { %v6988_v11 = vpop.eup %6987 }
 0x5a1   :  { %v6990_v32 = vpop.eup %6989  ;;  %v3208_v57 = vadd.f32 1.0, %v6988_v11  ;;  %6991 = vpow2.f32 %v5893_v51 }
 0x5a2   :  { %v3209_v62 = vadd.f32 1.0, %v6990_v32 }
 0x5a3   :  { %6993 = vrcp.f32 %v3208_v57  ;;  %v3221_v29 = vand.u32 2147483648, %v3208_v57  ;;  %v3219_v5 = vand.u32 2147483647, %v3208_v57  ;;  %vm3215_vm6 = vweird.f32 %v3208_v57 }
 0x5a4   :  { %6995 = vrcp.f32 %v3209_v62  ;;  %v3183_v63 = vpop.f32.mrf.mxu2  ;;  %v3196_v26 = vpop.f32.mrf.mxu3  ;;  %v3236_v47 = vand.u32 2147483648, %v3209_v62  ;;  %v3234_v28 = vand.u32 2147483647, %v3209_v62  ;;  %vm3230_vm7 = vweird.f32 %v3209_v62 }
 0x5a5   :  { %v3222_v36 = vor.u32 1.1754944e-38, %v3221_v29  ;;  %vm3220_vm10 = vcmp.eq.f32.partialorder %v3219_v5, 8.507059e+37  ;;  %v6805_v63 = vld [vmem:[%s10304_s5 + $0xec] sm:$0xf0]  ;;  %v6803_v26 = vld [vmem:[%s10304_s5 + $0xe4] sm:$0xf] }
 0x5a6   :  { %v3237_v8 = vor.u32 1.1754944e-38, %v3236_v47  ;;  %vm3235_vm11 = vcmp.eq.f32.partialorder %v3234_v28, 8.507059e+37  ;;  %v6801_v29 = vld [vmem:[%s10304_s5 + $0xcc] sm:$0xf0]  ;;  %v6799_v47 = vld [vmem:[%s10304_s5 + $0xc4] sm:$0xf] }
 0x5a7   :  { %v6992_v56 = vpop.eup %6991  ;;  %v6127_v5 = vld [vmem:[%s10304_s5 + $0xd0] sm:$0xf0]  ;;  %v6802_v28 = vld [vmem:[%s10304_s5 + $0xd4] sm:$0xf0] }
 0x5a8   :  { %v3244_v24 = vadd.f32 1.0, %v6992_v56 }
 0x5a9   :  { %v6994_v59 = vpop.eup %6993 }
 0x5aa   :  { %v6996_v38 = vpop.eup %6995  ;;  %v3211_v3 = vmul.f32 %v6994_v59, %v3208_v57  ;;  %6997 = vrcp.f32 %v3244_v24  ;;  %vm3216_vm4 = vweird.f32 %v6994_v59  ;;  %v3256_v20 = vand.u32 2147483648, %v3244_v24 }
 0x5ab   :  { %v3226_v39 = vmul.f32 %v6996_v38, %v3209_v62  ;;  %6999 = vtanh.f32 %v3200_v22  ;;  %vm3231_vm5 = vweird.f32 %v6996_v38  ;;  %vm3217_vm8 = vmor %vm3215_vm6, %vm3216_vm4  ;;  %vm3250_vm13 = vweird.f32 %v3244_v24  ;;  %v6141_v62 = vld [vmem:[%s10304_s5 + $0xe0] sm:$0xf] }
 0x5ac   :  { %v3212_v0 = vsub.f32 1.0, %v3211_v3  ;;  %vm3232_vm9 = vmor %vm3230_vm7, %vm3231_vm5  ;;  %v3254_v60 = vand.u32 2147483647, %v3244_v24  ;;  %v3257_v13 = vor.u32 1.1754944e-38, %v3256_v20  ;;  %v6142_v56 = vor.u32 %v6805_v63, %v6141_v62  ;;  %v6804_v3 = vld [vmem:[%s10304_s5 + $0xec] sm:$0xf] }
 0x5ad   :  { %v3227_v40 = vsub.f32 1.0, %v3226_v39  ;;  %v6146_v22 = vor.u32 %v6803_v26, %v6143_v52  ;;  %v6151_v39 = vld [vmem:[%s10304_s5 + $0xf8] sm:$0xf0]  ;;  %v6792_v26 = vld [vmem:[%s10304_s5 + $0x8c] sm:$0xf] }
 0x5ae   :  { %v3213_v31 = vmul.f32 %v6994_v59, %v3212_v0  ;;  %vm3255_vm15 = vcmp.eq.f32.partialorder %v3254_v60, 8.507059e+37  ;;  %3782 = vmatpush.bf16.msrb.mxu0 %v6142_v56  ;;  %v6154_v0 = vor.u32 %v6804_v3, %v6151_v39  ;;  %v6093_v60 = vld [vmem:[%s10304_s5 + $0x80] sm:$0xf]  ;;  %v6103_v56 = vld [vmem:[%s10304_s5 + $0x98] sm:$0xf0]  ;;  %v2547_v3 = vadd.f32 %v9197_v7, %v9304_v42 }
 0x5af   :  { %v3228_v53 = vmul.f32 %v6996_v38, %v3227_v40  ;;  %3795 = vmatpush.bf16.msrb.mxu1 %v6146_v22  ;;  %v6125_v40 = vld [vmem:[%s10304_s5 + $0xc0] sm:$0xf]  ;;  %v6106_v52 = vor.u32 %v6792_v26, %v6103_v56  ;;  %v6787_v22 = vld [vmem:[%s10304_s5 + $0x64] sm:$0xf]  ;;  %v6788_v7 = vld [vmem:[%s10304_s5 + $0x6c] sm:$0xf] }
 0x5b0   :  { %v6998_v45 = vpop.eup %6997  ;;  %v3214_v16 = vadd.f32 %v6994_v59, %v3213_v31  ;;  %3821 = vmatpush.bf16.msrb.mxu3 %v6154_v0  ;;  %v6126_v31 = vor.u32 %v6801_v29, %v6125_v40  ;;  %v6079_v0 = vld [vmem:[%s10304_s5 + $0x70] sm:$0xf0]  ;;  %v6085_v40 = vld [vmem:[%s10304_s5 + $0x68] sm:$0xf]  ;;  %v6790_v29 = vld [vmem:[%s10304_s5 + $0x74] sm:$0xf0] }
 0x5b1   :  { %v3229_v46 = vadd.f32 %v6996_v38, %v3228_v53  ;;  %v3246_v50 = vmul.f32 %v6998_v45, %v3244_v24  ;;  %v7000_v41 = vpop.eup %6999  ;;  %vm3251_vm12 = vweird.f32 %v6998_v45  ;;  %v6149_v24 = vld [vmem:[%s10304_s5 + $0xe8] sm:$0xf]  ;;  %v6780_v26 = vld [vmem:[%s10304_s5 + $0x2c] sm:$0xf]  ;;  %v6055_v56 = vld [vmem:[%s10304_s5 + $0x38] sm:$0xf0] }
 0x5b2   :  { %v3218_v25 = vsel %vm3217_vm8, %v6994_v59, %v3214_v16  ;;  %vm3252_vm14 = vmor %vm3250_vm13, %vm3251_vm12  ;;  %v6806_v59 = vld [vmem:[%s10304_s5 + $0xf4] sm:$0xf0]  ;;  %v6133_v53 = vld [vmem:[%s10304_s5 + $0xc8] sm:$0xf]  ;;  %3783 = vmatpush.bf16.msrb.mxu0 %v6126_v31 }
 0x5b3   :  { %v3223_v23 = vsel %vm3220_vm10, %v3222_v36, %v3218_v25  ;;  %v3233_v55 = vsel %vm3232_vm9, %v6996_v38, %v3229_v46  ;;  %v3247_v58 = vsub.f32 1.0, %v3246_v50  ;;  %v6150_v38 = vor.u32 %v6806_v59, %v6149_v24  ;;  %v6800_v36 = vld [vmem:[%s10304_s5 + $0xcc] sm:$0xf]  ;;  %v6135_v46 = vld [vmem:[%s10304_s5 + $0xd8] sm:$0xf0] }
 0x5b4   :  { %v3238_v15 = vsel %vm3235_vm11, %v3237_v8, %v3233_v55  ;;  %v3261_v21 = vmul.f32 %v7000_v41, %v3223_v23  ;;  %v6134_v16 = vor.u32 %v6802_v28, %v6133_v53  ;;  %v6138_v50 = vor.u32 %v6800_v36, %v6135_v46  ;;  %v6109_v8 = vld [vmem:[%s10304_s5 + $0xa0] sm:$0xf]  ;;  %v6797_v25 = vld [vmem:[%s10304_s5 + $0xac] sm:$0xf0]  ;;  %v6795_v41 = vld [vmem:[%s10304_s5 + $0xa4] sm:$0xf] }
 0x5b5   :  { %v3260_v2 = vmul.f32 %v3238_v15, %v9447_v14  ;;  %v3248_v48 = vmul.f32 %v6998_v45, %v3247_v58  ;;  %3808 = vmatpush.bf16.msrb.mxu2 %v6150_v38  ;;  %v6110_v23 = vor.u32 %v6797_v25, %v6109_v8  ;;  %v6111_v55 = vld [vmem:[%s10304_s5 + $0xb0] sm:$0xf0]  ;;  %v6117_v58 = vld [vmem:[%s10304_s5 + $0xa8] sm:$0xf]  ;;  %v6798_v15 = vld [vmem:[%s10304_s5 + $0xb4] sm:$0xf0]  ;;  %v2523_v38 = vadd.f32 %v9195_v12, %v9301_v49 }
 0x5b6   :  { %3822 = vmatpush.bf16.msrb.mxu3 %v6138_v50  ;;  %v6077_v24 = vld [vmem:[%s10304_s5 + $0x60] sm:$0xf]  ;;  %v6789_v59 = vld [vmem:[%s10304_s5 + $0x6c] sm:$0xf0]  ;;  %v6082_v12 = vor.u32 %v6787_v22, %v6079_v0  ;;  %v6087_v53 = vld [vmem:[%s10304_s5 + $0x78] sm:$0xf0] }
 0x5b7   :  { %v9654_v51 = vadd.f32 %v3261_v21, %v3260_v2  ;;  %v3249_v54 = vadd.f32 %v6998_v45, %v3248_v48  ;;  %v6114_v21 = vor.u32 %v6795_v41, %v6111_v55  ;;  %v6118_v2 = vor.u32 %v6798_v15, %v6117_v58  ;;  %v6796_v48 = vld [vmem:[%s10304_s5 + $0xac] sm:$0xf]  ;;  %3784 = vmatpush.bf16.msrb.mxu0 %v6110_v23  ;;  %v6061_v36 = vld [vmem:[%s10304_s5 + $0x40] sm:$0xf]  ;;  %v6785_v46 = vld [vmem:[%s10304_s5 + $0x4c] sm:$0xf0] }
 0x5b8   :  { %v6078_v39 = vor.u32 %v6789_v59, %v6077_v24  ;;  %v6783_v50 = vld [vmem:[%s10304_s5 + $0x44] sm:$0xf]  ;;  %v6062_v41 = vor.u32 %v6785_v46, %v6061_v36  ;;  %v6063_v23 = vld [vmem:[%s10304_s5 + $0x50] sm:$0xf0]  ;;  %v6069_v58 = vld [vmem:[%s10304_s5 + $0x48] sm:$0xf] }
 0x5b9   :  { %7001 = vtanh.f32 %v9654_v51  ;;  %v3253_v11 = vsel %vm3252_vm14, %v6998_v45, %v3249_v54  ;;  %v6130_v45 = vor.u32 %v6799_v47, %v6127_v5  ;;  %3809 = vmatpush.bf16.msrb.mxu2 %v6134_v16  ;;  %v6119_v54 = vld [vmem:[%s10304_s5 + $0xb8] sm:$0xf0]  ;;  %v6086_v5 = vor.u32 %v6790_v29, %v6085_v40  ;;  %v6786_v15 = vld [vmem:[%s10304_s5 + $0x54] sm:$0xf0]  ;;  %v6775_v0 = vld [vmem:[%s10304_s5 + $0x4] sm:$0xf] }
 0x5ba   :  { %v3258_v57 = vsel %vm3255_vm15, %v3257_v13, %v3253_v11  ;;  %v6122_v20 = vor.u32 %v6796_v48, %v6119_v54  ;;  %v6793_v11 = vld [vmem:[%s10304_s5 + $0x8c] sm:$0xf0]  ;;  %v6791_v13 = vld [vmem:[%s10304_s5 + $0x84] sm:$0xf]  ;;  %v6090_v16 = vor.u32 %v6788_v7, %v6087_v53  ;;  %v6066_v55 = vor.u32 %v6783_v50, %v6063_v23  ;;  %v6071_v48 = vld [vmem:[%s10304_s5 + $0x58] sm:$0xf0] }
 0x5bb   :  { %3796 = vmatpush.bf16.msrb.mxu1 %v6130_v45  ;;  %v6045_v54 = vld [vmem:[%s10304_s5 + $0x20] sm:$0xf]  ;;  %v6031_v29 = vld [vmem:[%s10304_s5 + $0x10] sm:$0xf0]  ;;  %v6776_v7 = vld [vmem:[%s10304_s5 + $0xc] sm:$0xf]  ;;  %v2571_v23 = vadd.f32 %v9199_v9, %v9440_v1 }
 0x5bc   :  { %3823 = vmatpush.bf16.msrb.mxu3 %v6122_v20  ;;  %v6781_v20 = vld [vmem:[%s10304_s5 + $0x2c] sm:$0xf0]  ;;  %v6039_v53 = vld [vmem:[%s10304_s5 + $0x18] sm:$0xf0] }
 0x5bd   :  { %3810 = vmatpush.bf16.msrb.mxu2 %v6118_v2  ;;  %v6070_v2 = vor.u32 %v6786_v15, %v6069_v58  ;;  %v6042_v46 = vor.u32 %v6776_v7, %v6039_v53 }
 0x5bf   :  { %v7002_v32 = vpop.eup %7001  ;;  %3797 = vmatpush.bf16.msrb.mxu1 %v6114_v21  ;;  %v6784_v21 = vld [vmem:[%s10304_s5 + $0x4c] sm:$0xf] }
 0x5c0   :  { %v3264_v6 = vmul.f32 %v7002_v32, %v3258_v57  ;;  %v6094_v32 = vor.u32 %v6793_v11, %v6093_v60  ;;  %v6095_v57 = vld [vmem:[%s10304_s5 + $0x90] sm:$0xf0]  ;;  %3824 = vmatpush.bf16.msrb.mxu3 %v6106_v52  ;;  %v2595_v60 = vadd.f32 %v9201_v27, %v9363_v18  ;;  %v6074_v11 = vor.u32 %v6784_v21, %v6071_v48 }
 0x5c1   :  { %v6098_v62 = vor.u32 %v6791_v13, %v6095_v57  ;;  %v6046_v13 = vor.u32 %v6781_v20, %v6045_v54  ;;  %v6047_v57 = vld [vmem:[%s10304_s5 + $0x30] sm:$0xf0] }
 0x5c2   :  { %5894 = vst [vmem:[%s10308_s9 + $0x8] sm:$0xff] %v3264_v6  ;;  %v3271_v14 = vpack.c.bf16 %v3264_v6, %v3264_v6  ;;  %v6101_v6 = vld [vmem:[%s10304_s5 + $0x88] sm:$0xf]  ;;  %3785 = vmatpush.bf16.msrb.mxu0 %v6094_v32  ;;  %v6779_v32 = vld [vmem:[%s10304_s5 + $0x24] sm:$0xf] }
 0x5c3   :  { %3798 = vmatpush.bf16.msrb.mxu1 %v6098_v62  ;;  %v6050_v27 = vor.u32 %v6779_v32, %v6047_v57 }
 0x5c4   :  { %3472 = vmatmul.bf16.vlgmr.msra.gmra.mxu0 %v3271_v14  ;;  %3485 = vmatmul.bf16.vlgmr.msra.gmra.mxu1 %v3271_v14 }
 0x5c5   :  { %3498 = vmatmul.bf16.vlgmr.msra.gmra.mxu2 %v3271_v14  ;;  %3511 = vmatmul.bf16.vlgmr.msra.gmra.mxu3 %v3271_v14  ;;  %v6794_v14 = vld [vmem:[%s10304_s5 + $0x94] sm:$0xf0] }
 0x5c6   :  { %v6102_v63 = vor.u32 %v6794_v14, %v6101_v6  ;;  %3786 = vmatpush.bf16.msrb.mxu0 %v6078_v39  ;;  %3825 = vmatpush.bf16.msrb.mxu3 %v6090_v16  ;;  %v6053_v6 = vld [vmem:[%s10304_s5 + $0x28] sm:$0xf]  ;;  %v6777_v39 = vld [vmem:[%s10304_s5 + $0xc] sm:$0xf0] }
 0x5c7   :  { %3799 = vmatpush.bf16.msrb.mxu1 %v6082_v12 }
 0x5c8   :  { %3811 = vmatpush.bf16.msrb.mxu2 %v6102_v63  ;;  %v6782_v63 = vld [vmem:[%s10304_s5 + $0x34] sm:$0xf0] }
 0x5c9   :  { %v6054_v22 = vor.u32 %v6782_v63, %v6053_v6 }
 0x5ca   :  { %3787 = vmatpush.bf16.msrb.mxu0 %v6062_v41  ;;  %3826 = vmatpush.bf16.msrb.mxu3 %v6074_v11 }
 0x5cb   :  { %3800 = vmatpush.bf16.msrb.mxu1 %v6066_v55 }
 0x5cc   :  { %3812 = vmatpush.bf16.msrb.mxu2 %v6086_v5  ;;  %v6034_v5 = vor.u32 %v6775_v0, %v6031_v29 }
 0x5ce   :  { %3788 = vmatpush.bf16.msrb.mxu0 %v6046_v13 }
 0x5cf   :  { %3801 = vmatpush.bf16.msrb.mxu1 %v6050_v27 }
 0x5d0   :  { %3813 = vmatpush.bf16.msrb.mxu2 %v6070_v2 }
 0x5d3   :  { %3802 = vmatpush.bf16.msrb.mxu1 %v6034_v5 }
 0x5d4   :  { %3814 = vmatpush.bf16.msrb.mxu2 %v6054_v22 }
 0x641   :  { %v3473_v47 = vpop.f32.mrf.mxu0  ;;  %v3486_v31 = vpop.f32.mrf.mxu1 }
 0x642   :  { %v3516_v28 = vadd.f32 %v3473_v47, %v2523_v38  ;;  %v3517_v45 = vadd.f32 %v3486_v31, %v2547_v3  ;;  %v6058_v38 = vor.u32 %v6780_v26, %v6055_v56  ;;  %v6029_v3 = vld [vmem:[%s10304_s5] sm:$0xf]  ;;  %v6037_v47 = vld [vmem:[%s10304_s5 + $0x8] sm:$0xf]  ;;  %v6778_v31 = vld [vmem:[%s10304_s5 + $0x14] sm:$0xf0] }
 0x643   :  { %v6030_v40 = vor.u32 %v6777_v39, %v6029_v3 }
 0x644   :  { %v6023_v8 = vmul.f32 -1.442695, %v3516_v28  ;;  %v6024_v25 = vmul.f32 -1.442695, %v3517_v45  ;;  %v6038_v45 = vor.u32 %v6778_v31, %v6037_v47  ;;  %3827 = vmatpush.bf16.msrb.mxu3 %v6058_v38 }
 0x645   :  { %3789 = vmatpush.bf16.msrb.mxu0 %v6030_v40 }
 0x646   :  { %7003 = vpow2.f32 %v6023_v8  ;;  %3815 = vmatpush.bf16.msrb.mxu2 %v6038_v45  ;;  %v6273_v45 = vld [vmem:[%s10304_s5 + $0xe0] sm:$0xf] }
 0x647   :  { %7005 = vpow2.f32 %v6024_v25 }
 0x648   :  { %v3499_v14 = vpop.f32.mrf.mxu2  ;;  %v3512_v62 = vpop.f32.mrf.mxu3  ;;  %3828 = vmatpush.bf16.msrb.mxu3 %v6042_v46 }
 0x649   :  { %v3519_v52 = vadd.f32 %v3512_v62, %v2595_v60  ;;  %v3475_v24 = vpop.f32.mrf.mxu0  ;;  %v3488_v59 = vpop.f32.mrf.mxu1  ;;  %v3518_v15 = vadd.f32 %v3499_v14, %v2571_v23 }
 0x64b   :  { %v6025_v12 = vmul.f32 -1.442695, %v3519_v52 }
 0x64c   :  { %v7004_v28 = vpop.eup %7003 }
 0x64d   :  { %v7006_v16 = vpop.eup %7005  ;;  %v3526_v36 = vadd.f32 1.0, %v7004_v28  ;;  %7007 = vpow2.f32 %v6025_v12 }
 0x64e   :  { %v3527_v50 = vadd.f32 1.0, %v7006_v16  ;;  %v6837_v16 = vld [vmem:[%s10304_s5 + $0xec] sm:$0xf0] }
 0x64f   :  { %7009 = vrcp.f32 %v3526_v36  ;;  %v3539_v60 = vand.u32 2147483648, %v3526_v36  ;;  %v3537_v32 = vand.u32 2147483647, %v3526_v36  ;;  %vm3533_vm2 = vweird.f32 %v3526_v36 }
 0x650   :  { %7011 = vrcp.f32 %v3527_v50  ;;  %v3501_v8 = vpop.f32.mrf.mxu2  ;;  %v3514_v25 = vpop.f32.mrf.mxu3  ;;  %v3554_v11 = vand.u32 2147483648, %v3527_v50  ;;  %v3552_v6 = vand.u32 2147483647, %v3527_v50  ;;  %vm3548_vm3 = vweird.f32 %v3527_v50 }
 0x651   :  { %v3540_v14 = vor.u32 1.1754944e-38, %v3539_v60  ;;  %vm3538_vm6 = vcmp.eq.f32.partialorder %v3537_v32, 8.507059e+37  ;;  %v6274_v46 = vor.u32 %v6837_v16, %v6273_v45  ;;  %v6281_v8 = vld [vmem:[%s10304_s5 + $0xe8] sm:$0xf]  ;;  %v6838_v25 = vld [vmem:[%s10304_s5 + $0xf4] sm:$0xf0] }
 0x652   :  { %v3555_v26 = vor.u32 1.1754944e-38, %v3554_v11  ;;  %vm3553_vm7 = vcmp.eq.f32.partialorder %v3552_v6, 8.507059e+37  ;;  %v6282_v23 = vor.u32 %v6838_v25, %v6281_v8  ;;  %v6265_v60 = vld [vmem:[%s10304_s5 + $0xc8] sm:$0xf]  ;;  %v6834_v11 = vld [vmem:[%s10304_s5 + $0xd4] sm:$0xf0]  ;;  %v2549_v8 = vadd.f32 %v9205_v17, %v9304_v42 }
 0x653   :  { %v7008_v41 = vpop.eup %7007  ;;  %4100 = vmatpush.bf16.msra.mxu0 %v6274_v46  ;;  %v6266_v32 = vor.u32 %v6834_v11, %v6265_v60  ;;  %v6267_v6 = vld [vmem:[%s10304_s5 + $0xd8] sm:$0xf0]  ;;  %v6209_v16 = vld [vmem:[%s10304_s5 + $0x60] sm:$0xf]  ;;  %v6819_v46 = vld [vmem:[%s10304_s5 + $0x64] sm:$0xf] }
 0x654   :  { %v3562_v55 = vadd.f32 1.0, %v7008_v41  ;;  %4126 = vmatpush.bf16.msra.mxu2 %v6282_v23  ;;  %v6217_v23 = vld [vmem:[%s10304_s5 + $0x68] sm:$0xf]  ;;  %v6820_v17 = vld [vmem:[%s10304_s5 + $0x6c] sm:$0xf] }
 0x655   :  { %v7010_v58 = vpop.eup %7009  ;;  %v6193_v60 = vld [vmem:[%s10304_s5 + $0x40] sm:$0xf]  ;;  %v6817_v11 = vld [vmem:[%s10304_s5 + $0x4c] sm:$0xf0] }
 0x656   :  { %v7012_v21 = vpop.eup %7011  ;;  %v3529_v2 = vmul.f32 %v7010_v58, %v3526_v36  ;;  %7013 = vrcp.f32 %v3562_v55  ;;  %vm3534_vm0 = vweird.f32 %v7010_v58  ;;  %v3574_v47 = vand.u32 2147483648, %v3562_v55  ;;  %v6835_v36 = vld [vmem:[%s10304_s5 + $0xe4] sm:$0xf] }
 0x657   :  { %v3544_v48 = vmul.f32 %v7012_v21, %v3527_v50  ;;  %7015 = vtanh.f32 %v3518_v15  ;;  %vm3549_vm1 = vweird.f32 %v7012_v21  ;;  %vm3535_vm4 = vmor %vm3533_vm2, %vm3534_vm0  ;;  %vm3568_vm9 = vweird.f32 %v3562_v55  ;;  %v6275_v50 = vld [vmem:[%s10304_s5 + $0xf0] sm:$0xf0] }
 0x658   :  { %v3530_v54 = vsub.f32 1.0, %v3529_v2  ;;  %vm3550_vm5 = vmor %vm3548_vm3, %vm3549_vm1  ;;  %v3572_v31 = vand.u32 2147483647, %v3562_v55  ;;  %v3575_v5 = vor.u32 1.1754944e-38, %v3574_v47  ;;  %v6278_v41 = vor.u32 %v6835_v36, %v6275_v50  ;;  %v6833_v2 = vld [vmem:[%s10304_s5 + $0xcc] sm:$0xf0]  ;;  %4127 = vmatpush.bf16.msra.mxu2 %v6266_v32 }
 0x659   :  { %v3545_v20 = vsub.f32 1.0, %v3544_v48  ;;  %v6831_v48 = vld [vmem:[%s10304_s5 + $0xc4] sm:$0xf]  ;;  %v6821_v36 = vld [vmem:[%s10304_s5 + $0x6c] sm:$0xf0]  ;;  %v2525_v50 = vadd.f32 %v9203_v61, %v9301_v49 }
 0x65a   :  { %v3531_v13 = vmul.f32 %v7010_v58, %v3530_v54  ;;  %vm3573_vm11 = vcmp.eq.f32.partialorder %v3572_v31, 8.507059e+37  ;;  %4113 = vmatpush.bf16.msra.mxu1 %v6278_v41  ;;  %v6227_v31 = vld [vmem:[%s10304_s5 + $0x90] sm:$0xf0]  ;;  %v6210_v25 = vor.u32 %v6821_v36, %v6209_v16  ;;  %v6161_v16 = vld [vmem:[%s10304_s5] sm:$0xf] }
 0x65b   :  { %v3546_v57 = vmul.f32 %v7012_v21, %v3545_v20  ;;  %v6259_v20 = vld [vmem:[%s10304_s5 + $0xd0] sm:$0xf0]  ;;  %v6809_v36 = vld [vmem:[%s10304_s5 + $0xc] sm:$0xf0] }
 0x65c   :  { %v7014_v62 = vpop.eup %7013  ;;  %v3532_v9 = vadd.f32 %v7010_v58, %v3531_v13  ;;  %v6262_v13 = vor.u32 %v6831_v48, %v6259_v20  ;;  %v6211_v41 = vld [vmem:[%s10304_s5 + $0x70] sm:$0xf0] }
 0x65d   :  { %v3547_v27 = vadd.f32 %v7012_v21, %v3546_v57  ;;  %v3564_v63 = vmul.f32 %v7014_v62, %v3562_v55  ;;  %v7016_v52 = vpop.eup %7015  ;;  %vm3569_vm8 = vweird.f32 %v7014_v62  ;;  %v6836_v55 = vld [vmem:[%s10304_s5 + $0xec] sm:$0xf]  ;;  %v6214_v61 = vor.u32 %v6819_v46, %v6211_v41  ;;  %v6807_v46 = vld [vmem:[%s10304_s5 + $0x4] sm:$0xf]  ;;  %v6810_v41 = vld [vmem:[%s10304_s5 + $0x14] sm:$0xf0] }
 0x65e   :  { %v3536_v56 = vsel %vm3535_vm4, %v7010_v58, %v3532_v9  ;;  %vm3570_vm10 = vmor %vm3568_vm9, %vm3569_vm8  ;;  %v6283_v58 = vld [vmem:[%s10304_s5 + $0xf8] sm:$0xf0]  ;;  %v6832_v57 = vld [vmem:[%s10304_s5 + $0xcc] sm:$0xf]  ;;  %4114 = vmatpush.bf16.msra.mxu1 %v6262_v13 }
 0x65f   :  { %v3541_v24 = vsel %vm3538_vm6, %v3540_v14, %v3536_v56  ;;  %v3551_v59 = vsel %vm3550_vm5, %v7012_v21, %v3547_v27  ;;  %v3565_v22 = vsub.f32 1.0, %v3564_v63  ;;  %v6286_v15 = vor.u32 %v6836_v55, %v6283_v58  ;;  %v6257_v21 = vld [vmem:[%s10304_s5 + $0xc0] sm:$0xf]  ;;  %v6829_v14 = vld [vmem:[%s10304_s5 + $0xac] sm:$0xf0] }
 0x660   :  { %v3556_v38 = vsel %vm3553_vm7, %v3555_v26, %v3551_v59  ;;  %v3579_v3 = vmul.f32 %v7016_v52, %v3541_v24  ;;  %v6258_v54 = vor.u32 %v6833_v2, %v6257_v21  ;;  %v6241_v9 = vld [vmem:[%s10304_s5 + $0xa0] sm:$0xf]  ;;  %v6827_v27 = vld [vmem:[%s10304_s5 + $0xa4] sm:$0xf]  ;;  %v6243_v26 = vld [vmem:[%s10304_s5 + $0xb0] sm:$0xf0] }
 0x661   :  { %v3578_v39 = vmul.f32 %v3556_v38, %v9654_v51  ;;  %v3566_v0 = vmul.f32 %v7014_v62, %v3565_v22  ;;  %4139 = vmatpush.bf16.msra.mxu3 %v6286_v15  ;;  %v6242_v63 = vor.u32 %v6829_v14, %v6241_v9  ;;  %v6249_v56 = vld [vmem:[%s10304_s5 + $0xa8] sm:$0xf]  ;;  %v6830_v52 = vld [vmem:[%s10304_s5 + $0xb4] sm:$0xf0]  ;;  %v6246_v24 = vor.u32 %v6827_v27, %v6243_v26  ;;  %v6828_v22 = vld [vmem:[%s10304_s5 + $0xac] sm:$0xf] }
 0x662   :  { %4101 = vmatpush.bf16.msra.mxu0 %v6258_v54  ;;  %v6250_v59 = vor.u32 %v6830_v52, %v6249_v56  ;;  %v6251_v38 = vld [vmem:[%s10304_s5 + $0xb8] sm:$0xf0]  ;;  %v6822_v55 = vld [vmem:[%s10304_s5 + $0x74] sm:$0xf0]  ;;  %v6815_v13 = vld [vmem:[%s10304_s5 + $0x44] sm:$0xf] }
 0x663   :  { %v9861_v40 = vadd.f32 %v3579_v3, %v3578_v39  ;;  %v3567_v29 = vadd.f32 %v7014_v62, %v3566_v0  ;;  %v6254_v3 = vor.u32 %v6828_v22, %v6251_v38  ;;  %4115 = vmatpush.bf16.msra.mxu1 %v6246_v24  ;;  %v6225_v39 = vld [vmem:[%s10304_s5 + $0x80] sm:$0xf]  ;;  %v6825_v0 = vld [vmem:[%s10304_s5 + $0x8c] sm:$0xf0]  ;;  %v6218_v21 = vor.u32 %v6822_v55, %v6217_v23  ;;  %v6219_v2 = vld [vmem:[%s10304_s5 + $0x78] sm:$0xf0] }
 0x664   :  { %4128 = vmatpush.bf16.msra.mxu2 %v6250_v59  ;;  %v6226_v47 = vor.u32 %v6825_v0, %v6225_v39  ;;  %v6222_v20 = vor.u32 %v6820_v17, %v6219_v2  ;;  %v6201_v14 = vld [vmem:[%s10304_s5 + $0x48] sm:$0xf]  ;;  %v6818_v27 = vld [vmem:[%s10304_s5 + $0x54] sm:$0xf0]  ;;  %v6203_v56 = vld [vmem:[%s10304_s5 + $0x58] sm:$0xf0]  ;;  %v2597_v59 = vadd.f32 %v9218_v35, %v9363_v18 }
 0x665   :  { %7017 = vtanh.f32 %v9861_v40  ;;  %v3571_v12 = vsel %vm3570_vm10, %v7014_v62, %v3567_v29  ;;  %v6270_v62 = vor.u32 %v6832_v57, %v6267_v6  ;;  %v6823_v29 = vld [vmem:[%s10304_s5 + $0x84] sm:$0xf]  ;;  %v6194_v6 = vor.u32 %v6817_v11, %v6193_v60  ;;  %v6177_v52 = vld [vmem:[%s10304_s5 + $0x20] sm:$0xf]  ;;  %v6813_v24 = vld [vmem:[%s10304_s5 + $0x2c] sm:$0xf0] }
 0x666   :  { %v3576_v53 = vsel %vm3573_vm11, %v3575_v5, %v3571_v12  ;;  %4102 = vmatpush.bf16.msra.mxu0 %v6242_v63  ;;  %v6233_v12 = vld [vmem:[%s10304_s5 + $0x88] sm:$0xf]  ;;  %v6826_v5 = vld [vmem:[%s10304_s5 + $0x94] sm:$0xf0]  ;;  %v6816_v63 = vld [vmem:[%s10304_s5 + $0x4c] sm:$0xf]  ;;  %v6202_v26 = vor.u32 %v6818_v27, %v6201_v14  ;;  %v6178_v38 = vor.u32 %v6813_v24, %v6177_v52 }
 0x667   :  { %4140 = vmatpush.bf16.msra.mxu3 %v6270_v62  ;;  %v6195_v62 = vld [vmem:[%s10304_s5 + $0x50] sm:$0xf0]  ;;  %v6206_v22 = vor.u32 %v6816_v63, %v6203_v56  ;;  %v6185_v0 = vld [vmem:[%s10304_s5 + $0x28] sm:$0xf] }
 0x668   :  { %v6198_v9 = vor.u32 %v6815_v13, %v6195_v62  ;;  %v6179_v39 = vld [vmem:[%s10304_s5 + $0x30] sm:$0xf0]  ;;  %v2573_v13 = vadd.f32 %v9216_v4, %v9440_v1 }
 0x66a   :  { %4103 = vmatpush.bf16.msra.mxu0 %v6226_v47 }
 0x66b   :  { %v7018_v7 = vpop.eup %7017  ;;  %4141 = vmatpush.bf16.msra.mxu3 %v6254_v3  ;;  %v6811_v3 = vld [vmem:[%s10304_s5 + $0x24] sm:$0xf] }
 0x66c   :  { %v3582_v28 = vmul.f32 %v7018_v7, %v3576_v53  ;;  %v6230_v7 = vor.u32 %v6823_v29, %v6227_v31  ;;  %v6234_v53 = vor.u32 %v6826_v5, %v6233_v12  ;;  %v6182_v35 = vor.u32 %v6811_v3, %v6179_v39  ;;  %v6814_v31 = vld [vmem:[%s10304_s5 + $0x34] sm:$0xf0]  ;;  %v6812_v12 = vld [vmem:[%s10304_s5 + $0x2c] sm:$0xf]  ;;  %v6187_v5 = vld [vmem:[%s10304_s5 + $0x38] sm:$0xf0] }
 0x66e   :  { %6026 = vst [vmem:[%s10308_s9 + $0x10] sm:$0xff] %v3582_v28  ;;  %v3589_v51 = vpack.c.bf16 %v3582_v28, %v3582_v28  ;;  %v6824_v28 = vld [vmem:[%s10304_s5 + $0x8c] sm:$0xf]  ;;  %4116 = vmatpush.bf16.msra.mxu1 %v6230_v7  ;;  %4129 = vmatpush.bf16.msra.mxu2 %v6234_v53 }
 0x66f   :  { %4104 = vmatpush.bf16.msra.mxu0 %v6210_v25  ;;  %v6169_v25 = vld [vmem:[%s10304_s5 + $0x8] sm:$0xf] }
 0x670   :  { %3790 = vmatmul.bf16.vlgmr.msrb.gmra.mxu0 %v3589_v51  ;;  %3803 = vmatmul.bf16.vlgmr.msrb.gmra.mxu1 %v3589_v51 }
 0x671   :  { %3816 = vmatmul.bf16.vlgmr.msrb.gmra.mxu2 %v3589_v51  ;;  %3829 = vmatmul.bf16.vlgmr.msrb.gmra.mxu3 %v3589_v51  ;;  %v6235_v51 = vld [vmem:[%s10304_s5 + $0x98] sm:$0xf0] }
 0x672   :  { %v6238_v45 = vor.u32 %v6824_v28, %v6235_v51  ;;  %4117 = vmatpush.bf16.msra.mxu1 %v6214_v61  ;;  %4130 = vmatpush.bf16.msra.mxu2 %v6218_v21  ;;  %v6186_v51 = vor.u32 %v6814_v31, %v6185_v0  ;;  %v6170_v21 = vor.u32 %v6810_v41, %v6169_v25 }
 0x673   :  { %4105 = vmatpush.bf16.msra.mxu0 %v6194_v6 }
 0x674   :  { %4142 = vmatpush.bf16.msra.mxu3 %v6238_v45  ;;  %v6190_v45 = vor.u32 %v6812_v12, %v6187_v5 }
 0x676   :  { %4118 = vmatpush.bf16.msra.mxu1 %v6198_v9  ;;  %4131 = vmatpush.bf16.msra.mxu2 %v6202_v26 }
 0x677   :  { %4106 = vmatpush.bf16.msra.mxu0 %v6178_v38 }
 0x678   :  { %4143 = vmatpush.bf16.msra.mxu3 %v6222_v20 }
 0x67a   :  { %4119 = vmatpush.bf16.msra.mxu1 %v6182_v35  ;;  %4132 = vmatpush.bf16.msra.mxu2 %v6186_v51 }
 0x67c   :  { %4144 = vmatpush.bf16.msra.mxu3 %v6206_v22 }
 0x67e   :  { %4133 = vmatpush.bf16.msra.mxu2 %v6170_v21  ;;  %v6407_v21 = vld [vmem:[%s10304_s5 + $0xf0] sm:$0xf0] }
 0x680   :  { %4145 = vmatpush.bf16.msra.mxu3 %v6190_v45 }
 0x6ed   :  { %v3791_v58 = vpop.f32.mrf.mxu0  ;;  %v3804_v15 = vpop.f32.mrf.mxu1 }
 0x6ee   :  { %v3834_v48 = vadd.f32 %v3791_v58, %v2525_v50  ;;  %v3835_v54 = vadd.f32 %v3804_v15, %v2549_v8  ;;  %v6162_v50 = vor.u32 %v6809_v36, %v6161_v16  ;;  %v6163_v8 = vld [vmem:[%s10304_s5 + $0x10] sm:$0xf0]  ;;  %v6808_v58 = vld [vmem:[%s10304_s5 + $0xc] sm:$0xf]  ;;  %v6171_v15 = vld [vmem:[%s10304_s5 + $0x18] sm:$0xf0] }
 0x6ef   :  { %v6166_v55 = vor.u32 %v6807_v46, %v6163_v8 }
 0x6f0   :  { %v6155_v32 = vmul.f32 -1.442695, %v3834_v48  ;;  %v6156_v57 = vmul.f32 -1.442695, %v3835_v54  ;;  %v6174_v48 = vor.u32 %v6808_v58, %v6171_v15  ;;  %4107 = vmatpush.bf16.msra.mxu0 %v6162_v50  ;;  %v6869_v58 = vld [vmem:[%s10304_s5 + $0xec] sm:$0xf0] }
 0x6f1   :  { %4120 = vmatpush.bf16.msra.mxu1 %v6166_v55  ;;  %v6405_v55 = vld [vmem:[%s10304_s5 + $0xe0] sm:$0xf]  ;;  %v6867_v15 = vld [vmem:[%s10304_s5 + $0xe4] sm:$0xf] }
 0x6f2   :  { %7019 = vpow2.f32 %v6155_v32  ;;  %4146 = vmatpush.bf16.msra.mxu3 %v6174_v48  ;;  %v6410_v48 = vor.u32 %v6867_v15, %v6407_v21  ;;  %v6349_v21 = vld [vmem:[%s10304_s5 + $0x68] sm:$0xf] }
 0x6f3   :  { %7021 = vpow2.f32 %v6156_v57 }
 0x6f4   :  { %v3817_v29 = vpop.f32.mrf.mxu2  ;;  %v3830_v47 = vpop.f32.mrf.mxu3 }
 0x6f5   :  { %v3837_v7 = vadd.f32 %v3830_v47, %v2597_v59  ;;  %v3793_v53 = vpop.f32.mrf.mxu0  ;;  %v3806_v28 = vpop.f32.mrf.mxu1  ;;  %v3836_v6 = vadd.f32 %v3817_v29, %v2573_v13  ;;  %4431 = vmatpush.bf16.msrb.mxu1 %v6410_v48  ;;  %v6389_v13 = vld [vmem:[%s10304_s5 + $0xc0] sm:$0xf] }
 0x6f7   :  { %v6157_v23 = vmul.f32 -1.442695, %v3837_v7 }
 0x6f8   :  { %v7020_v61 = vpop.eup %7019 }
 0x6f9   :  { %v7022_v17 = vpop.eup %7021  ;;  %v3844_v2 = vadd.f32 1.0, %v7020_v61  ;;  %7023 = vpow2.f32 %v6157_v23  ;;  %v6406_v61 = vor.u32 %v6869_v58, %v6405_v55  ;;  %v2528_v55 = vadd.f32 %v9229_v30, %v9301_v49 }
 0x6fa   :  { %v3845_v54 = vadd.f32 1.0, %v7022_v17  ;;  %v6413_v17 = vld [vmem:[%s10304_s5 + $0xe8] sm:$0xf]  ;;  %v2552_v58 = vadd.f32 %v9231_v33, %v9304_v42  ;;  %v6852_v33 = vld [vmem:[%s10304_s5 + $0x6c] sm:$0xf] }
 0x6fb   :  { %7025 = vrcp.f32 %v3844_v2  ;;  %v3857_v26 = vand.u32 2147483648, %v3844_v2  ;;  %v3855_v24 = vand.u32 2147483647, %v3844_v2  ;;  %vm3851_vm14 = vweird.f32 %v3844_v2  ;;  %4418 = vmatpush.bf16.msrb.mxu0 %v6406_v61  ;;  %v6343_v61 = vld [vmem:[%s10304_s5 + $0x70] sm:$0xf0] }
 0x6fc   :  { %7027 = vrcp.f32 %v3845_v54  ;;  %v3819_v20 = vpop.f32.mrf.mxu2  ;;  %v3832_v60 = vpop.f32.mrf.mxu3  ;;  %v3872_v56 = vand.u32 2147483648, %v3845_v54  ;;  %v3870_v22 = vand.u32 2147483647, %v3845_v54  ;;  %vm3866_vm15 = vweird.f32 %v3845_v54 }
 0x6fd   :  { %v3858_v3 = vor.u32 1.1754944e-38, %v3857_v26  ;;  %vm3856_vm2 = vcmp.eq.f32.partialorder %v3855_v24, 8.507059e+37  ;;  %v6868_v20 = vld [vmem:[%s10304_s5 + $0xec] sm:$0xf]  ;;  %v6415_v60 = vld [vmem:[%s10304_s5 + $0xf8] sm:$0xf0] }
 0x6fe   :  { %v3873_v29 = vor.u32 1.1754944e-38, %v3872_v56  ;;  %vm3871_vm3 = vcmp.eq.f32.partialorder %v3870_v22, 8.507059e+37  ;;  %v6864_v26 = vld [vmem:[%s10304_s5 + $0xcc] sm:$0xf]  ;;  %v6399_v56 = vld [vmem:[%s10304_s5 + $0xd8] sm:$0xf0] }
 0x6ff   :  { %v7024_v11 = vpop.eup %7023  ;;  %v6373_v24 = vld [vmem:[%s10304_s5 + $0xa0] sm:$0xf]  ;;  %v6859_v22 = vld [vmem:[%s10304_s5 + $0xa4] sm:$0xf] }
 0x700   :  { %v3880_v32 = vadd.f32 1.0, %v7024_v11  ;;  %v6418_v11 = vor.u32 %v6868_v20, %v6415_v60  ;;  %v6351_v20 = vld [vmem:[%s10304_s5 + $0x78] sm:$0xf0] }
 0x701   :  { %v7026_v57 = vpop.eup %7025 }
 0x702   :  { %v7028_v62 = vpop.eup %7027  ;;  %v3847_v9 = vmul.f32 %v7026_v57, %v3844_v2  ;;  %7029 = vrcp.f32 %v3880_v32  ;;  %vm3852_vm12 = vweird.f32 %v7026_v57  ;;  %v3892_v36 = vand.u32 2147483648, %v3880_v32  ;;  %v6870_v2 = vld [vmem:[%s10304_s5 + $0xf4] sm:$0xf0]  ;;  %4457 = vmatpush.bf16.msrb.mxu3 %v6418_v11 }
 0x703   :  { %v3862_v14 = vmul.f32 %v7028_v62, %v3845_v54  ;;  %7031 = vtanh.f32 %v3836_v6  ;;  %vm3867_vm13 = vweird.f32 %v7028_v62  ;;  %vm3853_vm0 = vmor %vm3851_vm14, %vm3852_vm12  ;;  %vm3886_vm5 = vweird.f32 %v3880_v32 }
 0x704   :  { %v3848_v27 = vsub.f32 1.0, %v3847_v9  ;;  %vm3868_vm1 = vmor %vm3866_vm15, %vm3867_vm13  ;;  %v3890_v46 = vand.u32 2147483647, %v3880_v32  ;;  %v3893_v8 = vor.u32 1.1754944e-38, %v3892_v36  ;;  %v6414_v54 = vor.u32 %v6870_v2, %v6413_v17  ;;  %v6397_v9 = vld [vmem:[%s10304_s5 + $0xc8] sm:$0xf] }
 0x705   :  { %v3863_v63 = vsub.f32 1.0, %v3862_v14  ;;  %v6866_v14 = vld [vmem:[%s10304_s5 + $0xd4] sm:$0xf0] }
 0x706   :  { %v3849_v52 = vmul.f32 %v7026_v57, %v3848_v27  ;;  %vm3891_vm7 = vcmp.eq.f32.partialorder %v3890_v46, 8.507059e+37  ;;  %4444 = vmatpush.bf16.msrb.mxu2 %v6414_v54  ;;  %v6854_v17 = vld [vmem:[%s10304_s5 + $0x74] sm:$0xf0] }
 0x707   :  { %v3864_v59 = vmul.f32 %v7028_v62, %v3863_v63  ;;  %v6398_v63 = vor.u32 %v6866_v14, %v6397_v9  ;;  %v6350_v54 = vor.u32 %v6854_v17, %v6349_v21 }
 0x708   :  { %v7030_v38 = vpop.eup %7029  ;;  %v3850_v4 = vadd.f32 %v7026_v57, %v3849_v52  ;;  %v6402_v52 = vor.u32 %v6864_v26, %v6399_v56  ;;  %v6333_v26 = vld [vmem:[%s10304_s5 + $0x48] sm:$0xf]  ;;  %v6850_v56 = vld [vmem:[%s10304_s5 + $0x54] sm:$0xf0] }
 0x709   :  { %v3865_v39 = vadd.f32 %v7028_v62, %v3864_v59  ;;  %v3882_v0 = vmul.f32 %v7030_v38, %v3880_v32  ;;  %v7032_v35 = vpop.eup %7031  ;;  %vm3887_vm4 = vweird.f32 %v7030_v38  ;;  %v6865_v32 = vld [vmem:[%s10304_s5 + $0xcc] sm:$0xf0] }
 0x70a   :  { %v3854_v47 = vsel %vm3853_vm0, %v7026_v57, %v3850_v4  ;;  %vm3888_vm6 = vmor %vm3886_vm5, %vm3887_vm4  ;;  %v6863_v57 = vld [vmem:[%s10304_s5 + $0xc4] sm:$0xf]  ;;  %v6390_v6 = vor.u32 %v6865_v32, %v6389_v13  ;;  %4445 = vmatpush.bf16.msrb.mxu2 %v6398_v63  ;;  %v6861_v59 = vld [vmem:[%s10304_s5 + $0xac] sm:$0xf0]  ;;  %4458 = vmatpush.bf16.msrb.mxu3 %v6402_v52  ;;  %v6354_v13 = vor.u32 %v6852_v33, %v6351_v20 }
 0x70b   :  { %v3859_v31 = vsel %vm3856_vm2, %v3858_v3, %v3854_v47  ;;  %v3869_v12 = vsel %vm3868_vm1, %v7028_v62, %v3865_v39  ;;  %v3883_v5 = vsub.f32 1.0, %v3882_v0  ;;  %v6391_v62 = vld [vmem:[%s10304_s5 + $0xd0] sm:$0xf0]  ;;  %v6381_v3 = vld [vmem:[%s10304_s5 + $0xa8] sm:$0xf] }
 0x70c   :  { %v3874_v7 = vsel %vm3871_vm3, %v3873_v29, %v3869_v12  ;;  %v3897_v53 = vmul.f32 %v7032_v35, %v3859_v31  ;;  %v6394_v27 = vor.u32 %v6863_v57, %v6391_v62  ;;  %4419 = vmatpush.bf16.msrb.mxu0 %v6390_v6  ;;  %v6375_v4 = vld [vmem:[%s10304_s5 + $0xb0] sm:$0xf0]  ;;  %v6862_v39 = vld [vmem:[%s10304_s5 + $0xb4] sm:$0xf0]  ;;  %v6860_v47 = vld [vmem:[%s10304_s5 + $0xac] sm:$0xf] }
 0x70d   :  { %v3896_v28 = vmul.f32 %v3874_v7, %v9861_v40  ;;  %v3884_v51 = vmul.f32 %v7030_v38, %v3883_v5  ;;  %v6378_v0 = vor.u32 %v6859_v22, %v6375_v4  ;;  %v6382_v29 = vor.u32 %v6862_v39, %v6381_v3  ;;  %v6383_v35 = vld [vmem:[%s10304_s5 + $0xb8] sm:$0xf0]  ;;  %v6357_v12 = vld [vmem:[%s10304_s5 + $0x80] sm:$0xf]  ;;  %v6857_v5 = vld [vmem:[%s10304_s5 + $0x8c] sm:$0xf0] }
 0x70e   :  { %4432 = vmatpush.bf16.msrb.mxu1 %v6394_v27  ;;  %v6386_v31 = vor.u32 %v6860_v47, %v6383_v35  ;;  %v6855_v7 = vld [vmem:[%s10304_s5 + $0x84] sm:$0xf]  ;;  %v6325_v32 = vld [vmem:[%s10304_s5 + $0x40] sm:$0xf]  ;;  %v6849_v57 = vld [vmem:[%s10304_s5 + $0x4c] sm:$0xf0]  ;;  %v2600_v4 = vadd.f32 %v9279_v34, %v9363_v18 }
 0x70f   :  { %v10068_v45 = vadd.f32 %v3897_v53, %v3896_v28  ;;  %v3885_v16 = vadd.f32 %v7030_v38, %v3884_v51  ;;  %4446 = vmatpush.bf16.msrb.mxu2 %v6382_v29  ;;  %v6358_v53 = vor.u32 %v6857_v5, %v6357_v12  ;;  %v6359_v28 = vld [vmem:[%s10304_s5 + $0x90] sm:$0xf0]  ;;  %v6365_v51 = vld [vmem:[%s10304_s5 + $0x88] sm:$0xf]  ;;  %v6847_v6 = vld [vmem:[%s10304_s5 + $0x44] sm:$0xf]  ;;  %v6326_v14 = vor.u32 %v6849_v57, %v6325_v32 }
 0x710   :  { %4459 = vmatpush.bf16.msrb.mxu3 %v6386_v31  ;;  %v6362_v36 = vor.u32 %v6855_v7, %v6359_v28  ;;  %v6327_v27 = vld [vmem:[%s10304_s5 + $0x50] sm:$0xf0]  ;;  %v6848_v52 = vld [vmem:[%s10304_s5 + $0x4c] sm:$0xf]  ;;  %v6309_v22 = vld [vmem:[%s10304_s5 + $0x20] sm:$0xf] }
 0x711   :  { %7033 = vtanh.f32 %v10068_v45  ;;  %v3889_v50 = vsel %vm3888_vm6, %v7030_v38, %v3885_v16  ;;  %v6374_v38 = vor.u32 %v6861_v59, %v6373_v24  ;;  %v6858_v16 = vld [vmem:[%s10304_s5 + $0x94] sm:$0xf0]  ;;  %v6330_v63 = vor.u32 %v6847_v6, %v6327_v27  ;;  %v6335_v59 = vld [vmem:[%s10304_s5 + $0x58] sm:$0xf0]  ;;  %v6311_v29 = vld [vmem:[%s10304_s5 + $0x30] sm:$0xf0] }
 0x712   :  { %v3894_v41 = vsel %vm3891_vm7, %v3893_v8, %v3889_v50  ;;  %4433 = vmatpush.bf16.msrb.mxu1 %v6378_v0  ;;  %v6366_v46 = vor.u32 %v6858_v16, %v6365_v51  ;;  %v6856_v50 = vld [vmem:[%s10304_s5 + $0x8c] sm:$0xf]  ;;  %v6367_v8 = vld [vmem:[%s10304_s5 + $0x98] sm:$0xf0]  ;;  %v6334_v24 = vor.u32 %v6850_v56, %v6333_v26  ;;  %v6338_v3 = vor.u32 %v6848_v52, %v6335_v59  ;;  %v6843_v0 = vld [vmem:[%s10304_s5 + $0x24] sm:$0xf] }
 0x713   :  { %4420 = vmatpush.bf16.msrb.mxu0 %v6374_v38  ;;  %v6845_v38 = vld [vmem:[%s10304_s5 + $0x2c] sm:$0xf0]  ;;  %v6317_v47 = vld [vmem:[%s10304_s5 + $0x28] sm:$0xf]  ;;  %v6314_v34 = vor.u32 %v6843_v0, %v6311_v29  ;;  %v6846_v12 = vld [vmem:[%s10304_s5 + $0x34] sm:$0xf0] }
 0x714   :  { %4447 = vmatpush.bf16.msrb.mxu2 %v6366_v46  ;;  %v6310_v39 = vor.u32 %v6845_v38, %v6309_v22  ;;  %v6844_v5 = vld [vmem:[%s10304_s5 + $0x2c] sm:$0xf]  ;;  %v6319_v7 = vld [vmem:[%s10304_s5 + $0x38] sm:$0xf0]  ;;  %v6318_v16 = vor.u32 %v6846_v12, %v6317_v47  ;;  %v6293_v46 = vld [vmem:[%s10304_s5] sm:$0xf] }
 0x716   :  { %4434 = vmatpush.bf16.msrb.mxu1 %v6362_v36  ;;  %v6322_v36 = vor.u32 %v6844_v5, %v6319_v7 }
 0x717   :  { %v7034_v25 = vpop.eup %7033  ;;  %4421 = vmatpush.bf16.msrb.mxu0 %v6358_v53 }
 0x718   :  { %v3900_v23 = vmul.f32 %v7034_v25, %v3894_v41  ;;  %v6370_v25 = vor.u32 %v6856_v50, %v6367_v8  ;;  %v6341_v41 = vld [vmem:[%s10304_s5 + $0x60] sm:$0xf]  ;;  %4448 = vmatpush.bf16.msrb.mxu2 %v6350_v54  ;;  %v6841_v50 = vld [vmem:[%s10304_s5 + $0xc] sm:$0xf0]  ;;  %v6839_v8 = vld [vmem:[%s10304_s5 + $0x4] sm:$0xf] }
 0x71a   :  { %6158 = vst [vmem:[%s10308_s9 + $0x18] sm:$0xff] %v3900_v23  ;;  %v3907_v40 = vpack.c.bf16 %v3900_v23, %v3900_v23  ;;  %v6853_v23 = vld [vmem:[%s10304_s5 + $0x6c] sm:$0xf0]  ;;  %4460 = vmatpush.bf16.msrb.mxu3 %v6370_v25  ;;  %v6294_v25 = vor.u32 %v6841_v50, %v6293_v46 }
 0x71b   :  { %v6342_v15 = vor.u32 %v6853_v23, %v6341_v41  ;;  %v6295_v41 = vld [vmem:[%s10304_s5 + $0x10] sm:$0xf0]  ;;  %v6301_v23 = vld [vmem:[%s10304_s5 + $0x8] sm:$0xf] }
 0x71c   :  { %4108 = vmatmul.bf16.vlgmr.msra.gmra.mxu0 %v3907_v40  ;;  %4121 = vmatmul.bf16.vlgmr.msra.gmra.mxu1 %v3907_v40 }
 0x71d   :  { %4134 = vmatmul.bf16.vlgmr.msra.gmra.mxu2 %v3907_v40  ;;  %4147 = vmatmul.bf16.vlgmr.msra.gmra.mxu3 %v3907_v40  ;;  %v6851_v40 = vld [vmem:[%s10304_s5 + $0x64] sm:$0xf] }
 0x71e   :  { %v6346_v30 = vor.u32 %v6851_v40, %v6343_v61  ;;  %4422 = vmatpush.bf16.msrb.mxu0 %v6342_v15  ;;  %4461 = vmatpush.bf16.msrb.mxu3 %v6354_v13  ;;  %v6842_v40 = vld [vmem:[%s10304_s5 + $0x14] sm:$0xf0]  ;;  %v6840_v15 = vld [vmem:[%s10304_s5 + $0xc] sm:$0xf]  ;;  %v6303_v61 = vld [vmem:[%s10304_s5 + $0x18] sm:$0xf0] }
 0x71f   :  { %4449 = vmatpush.bf16.msrb.mxu2 %v6334_v24  ;;  %v6302_v17 = vor.u32 %v6842_v40, %v6301_v23  ;;  %v2554_v23 = vadd.f32 %v9292_v37, %v9304_v42 }
 0x720   :  { %4435 = vmatpush.bf16.msrb.mxu1 %v6346_v30  ;;  %v6306_v30 = vor.u32 %v6840_v15, %v6303_v61 }
 0x722   :  { %4423 = vmatpush.bf16.msrb.mxu0 %v6326_v14  ;;  %4462 = vmatpush.bf16.msrb.mxu3 %v6338_v3 }
 0x723   :  { %4450 = vmatpush.bf16.msrb.mxu2 %v6318_v16 }
 0x724   :  { %4436 = vmatpush.bf16.msrb.mxu1 %v6330_v63 }
 0x726   :  { %4424 = vmatpush.bf16.msrb.mxu0 %v6310_v39  ;;  %4463 = vmatpush.bf16.msrb.mxu3 %v6322_v36 }
 0x727   :  { %4451 = vmatpush.bf16.msrb.mxu2 %v6302_v17  ;;  %v2602_v17 = vadd.f32 %v9345_v44, %v9363_v18  ;;  %v2578_v44 = vadd.f32 %v9343_v43, %v9440_v1 }
 0x728   :  { %4437 = vmatpush.bf16.msrb.mxu1 %v6314_v34 }
 0x72a   :  { %4425 = vmatpush.bf16.msrb.mxu0 %v6294_v25  ;;  %4464 = vmatpush.bf16.msrb.mxu3 %v6306_v30 }
 0x799   :  { %v4109_v2 = vpop.f32.mrf.mxu0  ;;  %v4122_v48 = vpop.f32.mrf.mxu1 }
 0x79a   :  { %v4152_v60 = vadd.f32 %v4109_v2, %v2528_v55  ;;  %v4153_v11 = vadd.f32 %v4122_v48, %v2552_v58  ;;  %v6298_v58 = vor.u32 %v6839_v8, %v6295_v41  ;;  %v2530_v41 = vadd.f32 %v9290_v19, %v9301_v49 }
 0x79c   :  { %v6287_v62 = vmul.f32 -1.442695, %v4152_v60  ;;  %v6288_v9 = vmul.f32 -1.442695, %v4153_v11  ;;  %4438 = vmatpush.bf16.msrb.mxu1 %v6298_v58  ;;  %v2576_v11 = vadd.f32 %v9277_v10, %v9440_v1 }
 0x79e   :  { %7035 = vpow2.f32 %v6287_v62 }
 0x79f   :  { %7037 = vpow2.f32 %v6288_v9 }
 0x7a0   :  { %v4135_v35 = vpop.f32.mrf.mxu2  ;;  %v4148_v31 = vpop.f32.mrf.mxu3 }
 0x7a1   :  { %v4155_v53 = vadd.f32 %v4148_v31, %v2600_v4  ;;  %v4111_v28 = vpop.f32.mrf.mxu0  ;;  %v4124_v51 = vpop.f32.mrf.mxu1  ;;  %v4154_v57 = vadd.f32 %v4135_v35, %v2576_v11 }
 0x7a3   :  { %v6289_v55 = vmul.f32 -1.442695, %v4155_v53 }
 0x7a4   :  { %v7036_v21 = vpop.eup %7035 }
 0x7a5   :  { %v7038_v2 = vpop.eup %7037  ;;  %v4162_v48 = vadd.f32 1.0, %v7036_v21  ;;  %7039 = vpow2.f32 %v6289_v55 }
 0x7a6   :  { %v4163_v54 = vadd.f32 1.0, %v7038_v2 }
 0x7a7   :  { %7041 = vrcp.f32 %v4162_v48  ;;  %v4175_v63 = vand.u32 2147483648, %v4162_v48  ;;  %v4173_v52 = vand.u32 2147483647, %v4162_v48  ;;  %vm4169_vm10 = vweird.f32 %v4162_v48 }
 0x7a8   :  { %7043 = vrcp.f32 %v4163_v54  ;;  %v4137_v33 = vpop.f32.mrf.mxu2  ;;  %v4150_v20 = vpop.f32.mrf.mxu3  ;;  %v4190_v26 = vand.u32 2147483648, %v4163_v54  ;;  %v4188_v59 = vand.u32 2147483647, %v4163_v54  ;;  %vm4184_vm11 = vweird.f32 %v4163_v54 }
 0x7a9   :  { %v4176_v38 = vor.u32 1.1754944e-38, %v4175_v63  ;;  %vm4174_vm14 = vcmp.eq.f32.partialorder %v4173_v52, 8.507059e+37 }
 0x7aa   :  { %v4191_v39 = vor.u32 1.1754944e-38, %v4190_v26  ;;  %vm4189_vm15 = vcmp.eq.f32.partialorder %v4188_v59, 8.507059e+37 }
 0x7ab   :  { %v7040_v60 = vpop.eup %7039 }
 0x7ac   :  { %v4198_v13 = vadd.f32 1.0, %v7040_v60 }
 0x7ad   :  { %v7042_v32 = vpop.eup %7041 }
 0x7ae   :  { %v7044_v6 = vpop.eup %7043  ;;  %v4165_v62 = vmul.f32 %v7042_v32, %v4162_v48  ;;  %7045 = vrcp.f32 %v4198_v13  ;;  %vm4170_vm8 = vweird.f32 %v7042_v32  ;;  %v4210_v51 = vand.u32 2147483648, %v4198_v13 }
 0x7af   :  { %v4180_v9 = vmul.f32 %v7044_v6, %v4163_v54  ;;  %7047 = vtanh.f32 %v4154_v57  ;;  %vm4185_vm9 = vweird.f32 %v7044_v6  ;;  %vm4171_vm12 = vmor %vm4169_vm10, %vm4170_vm8  ;;  %vm4204_vm1 = vweird.f32 %v4198_v13 }
 0x7b0   :  { %v4166_v14 = vsub.f32 1.0, %v4165_v62  ;;  %vm4186_vm13 = vmor %vm4184_vm11, %vm4185_vm9  ;;  %v4208_v16 = vand.u32 2147483647, %v4198_v13  ;;  %v4211_v46 = vor.u32 1.1754944e-38, %v4210_v51 }
 0x7b1   :  { %v4181_v27 = vsub.f32 1.0, %v4180_v9 }
 0x7b2   :  { %v4167_v56 = vmul.f32 %v7042_v32, %v4166_v14  ;;  %vm4209_vm3 = vcmp.eq.f32.partialorder %v4208_v16, 8.507059e+37 }
 0x7b3   :  { %v4182_v24 = vmul.f32 %v7044_v6, %v4181_v27 }
 0x7b4   :  { %v7046_v22 = vpop.eup %7045  ;;  %v4168_v10 = vadd.f32 %v7042_v32, %v4167_v56 }
 0x7b5   :  { %v4183_v4 = vadd.f32 %v7044_v6, %v4182_v24  ;;  %v4200_v3 = vmul.f32 %v7046_v22, %v4198_v13  ;;  %v7048_v29 = vpop.eup %7047  ;;  %vm4205_vm0 = vweird.f32 %v7046_v22 }
 0x7b6   :  { %v4172_v0 = vsel %vm4171_vm12, %v7042_v32, %v4168_v10  ;;  %vm4206_vm2 = vmor %vm4204_vm1, %vm4205_vm0 }
 0x7b7   :  { %v4177_v47 = vsel %vm4174_vm14, %v4176_v38, %v4172_v0  ;;  %v4187_v35 = vsel %vm4186_vm13, %v7044_v6, %v4183_v4  ;;  %v4201_v31 = vsub.f32 1.0, %v4200_v3 }
 0x7b8   :  { %v4192_v34 = vsel %vm4189_vm15, %v4191_v39, %v4187_v35  ;;  %v4215_v12 = vmul.f32 %v7048_v29, %v4177_v47 }
 0x7b9   :  { %v4214_v5 = vmul.f32 %v4192_v34, %v10068_v45  ;;  %v4202_v7 = vmul.f32 %v7046_v22, %v4201_v31 }
 0x7bb   :  { %v10275_v53 = vadd.f32 %v4215_v12, %v4214_v5  ;;  %v4203_v28 = vadd.f32 %v7046_v22, %v4202_v7 }
 0x7bd   :  { %7049 = vtanh.f32 %v10275_v53  ;;  %v4207_v36 = vsel %vm4206_vm2, %v7046_v22, %v4203_v28 }
 0x7be   :  { %v4212_v8 = vsel %vm4209_vm3, %v4211_v46, %v4207_v36 }
 0x7c3   :  { %v7050_v50 = vpop.eup %7049 }
 0x7c4   :  { %v4218_v25 = vmul.f32 %v7050_v50, %v4212_v8 }
 0x7c6   :  { %6290 = vst [vmem:[%s10308_s9 + $0x20] sm:$0xff] %v4218_v25  ;;  %v4225_v45 = vpack.c.bf16 %v4218_v25, %v4218_v25 }
 0x7c8   :  { %4426 = vmatmul.bf16.vlgmr.msrb.gmra.mxu0 %v4225_v45  ;;  %4439 = vmatmul.bf16.vlgmr.msrb.gmra.mxu1 %v4225_v45 }
 0x7c9   :  { %4452 = vmatmul.bf16.vlgmr.msrb.gmra.mxu2 %v4225_v45  ;;  %4465 = vmatmul.bf16.vlgmr.msrb.gmra.mxu3 %v4225_v45 }
 0x845   :  { %v4427_v40 = vpop.f32.mrf.mxu0  ;;  %v4440_v55 = vpop.f32.mrf.mxu1 }
 0x846   :  { %v4470_v58 = vadd.f32 %v4427_v40, %v2530_v41  ;;  %v4471_v15 = vadd.f32 %v4440_v55, %v2554_v23 }
 0x848   :  { %v6419_v61 = vmul.f32 -1.442695, %v4470_v58  ;;  %v6420_v21 = vmul.f32 -1.442695, %v4471_v15 }
 0x84a   :  { %7051 = vpow2.f32 %v6419_v61 }
 0x84b   :  { %7053 = vpow2.f32 %v6420_v21 }
 0x84c   :  { %v4453_v2 = vpop.f32.mrf.mxu2  ;;  %v4466_v48 = vpop.f32.mrf.mxu3 }
 0x84d   :  { %v4473_v30 = vadd.f32 %v4466_v48, %v2602_v17  ;;  %v4429_v54 = vpop.f32.mrf.mxu0  ;;  %v4442_v33 = vpop.f32.mrf.mxu1  ;;  %v4472_v57 = vadd.f32 %v4453_v2, %v2578_v44 }
 0x84f   :  { %v6421_v19 = vmul.f32 -1.442695, %v4473_v30 }
 0x850   :  { %v7052_v49 = vpop.eup %7051 }
 0x851   :  { %v7054_v20 = vpop.eup %7053  ;;  %v4480_v37 = vadd.f32 1.0, %v7052_v49  ;;  %7055 = vpow2.f32 %v6421_v19 }
 0x852   :  { %v4481_v42 = vadd.f32 1.0, %v7054_v20 }
 0x853   :  { %7057 = vrcp.f32 %v4480_v37  ;;  %v4493_v63 = vand.u32 2147483648, %v4480_v37  ;;  %v4491_v52 = vand.u32 2147483647, %v4480_v37  ;;  %vm4487_vm6 = vweird.f32 %v4480_v37 }
 0x854   :  { %7059 = vrcp.f32 %v4481_v42  ;;  %v4455_v60 = vpop.f32.mrf.mxu2  ;;  %v4468_v11 = vpop.f32.mrf.mxu3  ;;  %v4508_v26 = vand.u32 2147483648, %v4481_v42  ;;  %v4506_v59 = vand.u32 2147483647, %v4481_v42  ;;  %vm4502_vm7 = vweird.f32 %v4481_v42 }
 0x855   :  { %v4494_v1 = vor.u32 1.1754944e-38, %v4493_v63  ;;  %vm4492_vm10 = vcmp.eq.f32.partialorder %v4491_v52, 8.507059e+37 }
 0x856   :  { %v4509_v4 = vor.u32 1.1754944e-38, %v4508_v26  ;;  %vm4507_vm11 = vcmp.eq.f32.partialorder %v4506_v59, 8.507059e+37 }
 0x857   :  { %v7056_v13 = vpop.eup %7055 }
 0x858   :  { %v4516_v18 = vadd.f32 1.0, %v7056_v13 }
 0x859   :  { %v7058_v32 = vpop.eup %7057 }
 0x85a   :  { %v7060_v6 = vpop.eup %7059  ;;  %v4483_v62 = vmul.f32 %v7058_v32, %v4480_v37  ;;  %7061 = vrcp.f32 %v4516_v18  ;;  %vm4488_vm4 = vweird.f32 %v7058_v32  ;;  %v4528_v28 = vand.u32 2147483648, %v4516_v18 }
 0x85b   :  { %v4498_v9 = vmul.f32 %v7060_v6, %v4481_v42  ;;  %7063 = vtanh.f32 %v4472_v57  ;;  %vm4503_vm5 = vweird.f32 %v7060_v6  ;;  %vm4489_vm8 = vmor %vm4487_vm6, %vm4488_vm4  ;;  %vm4522_vm13 = vweird.f32 %v4516_v18 }
 0x85c   :  { %v4484_v14 = vsub.f32 1.0, %v4483_v62  ;;  %vm4504_vm9 = vmor %vm4502_vm7, %vm4503_vm5  ;;  %v4526_v51 = vand.u32 2147483647, %v4516_v18  ;;  %v4529_v36 = vor.u32 1.1754944e-38, %v4528_v28 }
 0x85d   :  { %v4499_v27 = vsub.f32 1.0, %v4498_v9 }
 0x85e   :  { %v4485_v56 = vmul.f32 %v7058_v32, %v4484_v14  ;;  %vm4527_vm15 = vcmp.eq.f32.partialorder %v4526_v51, 8.507059e+37 }
 0x85f   :  { %v4500_v24 = vmul.f32 %v7060_v6, %v4499_v27 }
 0x860   :  { %v7062_v22 = vpop.eup %7061  ;;  %v4486_v43 = vadd.f32 %v7058_v32, %v4485_v56 }
 0x861   :  { %v4501_v10 = vadd.f32 %v7060_v6, %v4500_v24  ;;  %v4518_v38 = vmul.f32 %v7062_v22, %v4516_v18  ;;  %v7064_v39 = vpop.eup %7063  ;;  %vm4523_vm12 = vweird.f32 %v7062_v22 }
 0x862   :  { %v4490_v3 = vsel %vm4489_vm8, %v7058_v32, %v4486_v43  ;;  %vm4524_vm14 = vmor %vm4522_vm13, %vm4523_vm12 }
 0x863   :  { %v4495_v0 = vsel %vm4492_vm10, %v4494_v1, %v4490_v3  ;;  %v4505_v29 = vsel %vm4504_vm9, %v7060_v6, %v4501_v10  ;;  %v4519_v47 = vsub.f32 1.0, %v4518_v38 }
 0x864   :  { %v4510_v35 = vsel %vm4507_vm11, %v4509_v4, %v4505_v29  ;;  %v4533_v31 = vmul.f32 %v7064_v39, %v4495_v0 }
 0x865   :  { %v4532_v34 = vmul.f32 %v4510_v35, %v10275_v53  ;;  %v4520_v12 = vmul.f32 %v7062_v22, %v4519_v47 }
 0x867   :  { %v4534_v5 = vadd.f32 %v4533_v31, %v4532_v34  ;;  %v4521_v7 = vadd.f32 %v7062_v22, %v4520_v12 }
 0x869   :  { %7065 = vtanh.f32 %v4534_v5  ;;  %4542 = vst [vmem:[#allocation6 + $0x8] sm:$0xff] %v4534_v5  ;;  %v4525_v16 = vsel %vm4524_vm14, %v7062_v22, %v4521_v7 }
 0x86a   :  { %4570 = dma.vmem_to_hbm [thread:$0]  %s4563_s25, 256, %s4565_s28, [#allocation7], %s7120_s6, %s7120_s6, %s7121_s4   ;;  %v4530_v46 = vsel %vm4527_vm15, %v4529_v36, %v4525_v16 }
 0x86f   :  { %v7066_v53 = vpop.eup %7065 }
 0x870   :  { %v4536_v50 = vmul.f32 %v7066_v53, %v4530_v46 }
 0x872   :  { %6422 = vst [vmem:[%s10308_s9 + $0x28] sm:$0xff] %v4536_v50 }
 0x873   :  { %4540 = vst [vmem:[#allocation4 + $0x8] sm:$0xff] %v4536_v50 }
 0x874   :  { %4557 = dma.vmem_to_hbm [thread:$0]  %s4550_s29, 256, %s4552_s13, [#allocation5], %s7120_s6, %s7120_s6, %s7121_s4  }
 0x875   :  { %7115 = dma.done.wait [#allocation5], 256  }
 0x876   :  { %7116 = vsyncadd [#allocation5], 4294967040 }
 0x877   :  { %7117 = dma.done.wait [#allocation7], 256  }
 0x878   :  { %7118 = vsyncadd [#allocation7], 4294967040 }
 0x879   :  { %4581 = vsyncpa [#allocation5], 1 }
 0x87a   :  { %4582 = vsyncpa [#allocation7], 1 }

</bundles_post_ra>
